<compile_context>
chip_gen: v5e
topology: v5e:2x2
jax: 0.10.0
libtpu: 0.0.40
codegen_flags: <defaults>
</compile_context>

<pallas_src>
import jax
import jax.numpy as jnp
from jax.experimental import pallas as pl
from jax.experimental.pallas import tpu as pltpu

C_IN = 128                      # conv1 in_channels (fixed by the module)
C_OUT = 49                      # conv1 out_channels
N_EXTRA = 2                     # extra_token rows
N_TOK = C_OUT + N_EXTRA         # 51 output tokens
TOK_PAD = 64                    # token rows padded to a multiple of 8 (rows >= 49 use zero weight)
POOL_OUT = (12, 8, 8)
OD, OH, OW = POOL_OUT
OHW = OH * OW                   # 64 pooled H*W positions
S = OD * OHW                    # 768 == hidden dim
PAIR = 2                        # pooled-D outputs fused per in-kernel matmul -> 128-lane tiles

_MAX_BLOCK_BYTES = 6 << 20      # per-step feature slab cap (double-buffered fits v7x scoped VMEM)
_MIN_BLOCK_BYTES = 1 << 20


def _choose_blk_od(per_od_bytes, batch):
    """Pooled-D outputs per grid step: largest even divisor of OD within the VMEM budget."""
    cands = [c for c in (12, 6, 4, 2) if OD % c == 0]
    blk = next((c for c in cands if c * per_od_bytes <= _MAX_BLOCK_BYTES), 2)
    # TODO(synk): if even blk=2 exceeds the budget (very large H*W), tile the H*W axis too.
    # v7x megacore nicety: prefer an even total step count so both TensorCores get equal work.
    if (batch * (OD // blk)) % 2 == 1 and (blk // 2) % 2 == 0 and \
            (blk // 2) * per_od_bytes >= _MIN_BLOCK_BYTES:
        blk //= 2
    return blk


def _make_kernel(n_pairs, pair_cols, pair_out):
    def kernel(x_ref, p_ref, w_ref, add_ref, o_ref):
        # x_ref:   (C_IN, blk_od*fd*HW)        native dtype; one batch, blk_od pooled-D outputs
        # p_ref:   (PAIR*fd*HW, PAIR*OHW=128)  bf16; 3-D pooling (x 1/K) for one od-pair
        # w_ref:   (TOK_PAD, C_IN)             bf16; conv1 weight, rows >= C_OUT are zero
        # add_ref: (TOK_PAD, blk_od*OHW)       f32 ; bias + pos_emb + indicator / extra tokens
        # o_ref:   (TOK_PAD, blk_od*OHW)       f32 ; lane-dense output slab
        p = p_ref[...]
        w = w_ref[...]
        for pr in range(n_pairs):                     # static, unrolled; nothing live across iters
            xs = x_ref[:, pr * pair_cols:(pr + 1) * pair_cols].astype(jnp.bfloat16)
            # full 3-D pool means for this od-pair (MXU, f32 accumulation; 1/K folded into p)
            xp = jnp.dot(xs, p, preferred_element_type=jnp.float32)          # (C_IN, 128)
            # conv1: channel contraction (xp is already at mean scale before the bf16 cast)
            y = jnp.dot(w, xp.astype(jnp.bfloat16),
                        preferred_element_type=jnp.float32)                  # (TOK_PAD, 128)
            sl = slice(pr * pair_out, (pr + 1) * pair_out)
            o_ref[:, sl] = y + add_ref[:, sl]
    return kernel


@jax.jit
def seg_map_encoder_forward(feat, conv_w, conv_b, pos_emb, ind_tok, extra_tok):
    """feat: (B, 128, D, H, W) resnet stage-2 features (NCDHW). Returns (B, 51, 768) f32."""
    B, C, D, H, W = feat.shape
    assert C == C_IN
    # TODO(synk): AdaptiveAvgPool3d with non-divisible spatial dims (uneven bins) not implemented.
    assert D % OD == 0 and H % OH == 0 and W % OW == 0, \
        "adaptive pool implemented for evenly divisible spatial dims"
    fd, fh, fw = D // OD, H // OH, W // OW
    K = fd * fh * fw
    HW = H * W
    od_cols = fd * HW                               # feature columns per pooled-D output
    pair_cols = PAIR * od_cols
    pair_out = PAIR * OHW                           # 128
    blk_od = _choose_blk_od(C_IN * od_cols * feat.dtype.itemsize, B)
    n_blk = OD // blk_od
    n_pairs = blk_od // PAIR
    blk_cols = blk_od * od_cols
    blk_out = blk_od * OHW

    # Free metadata reshape; the kernel casts to bf16 in VMEM (no standalone HBM cast pass).
    x = feat.reshape(B, C, D * HW)

    # ---- tiny parameter packing (exact) ----
    # Pooling matrix for one od-pair: row r = j*fd*HW + f*HW + (h*W + w), col = j*OHW + q,
    # value 1/K iff (h // fh, w // fw) == (q // OW, q % OW).  Identical for every pair.
    hw_q = ((jnp.arange(H) // fh)[:, None] * OW + (jnp.arange(W) // fw)[None, :]).reshape(HW)
    row_col = (jnp.arange(PAIR)[:, None, None] * OHW
               + jnp.broadcast_to(hw_q[None, None, :], (PAIR, fd, HW))).reshape(PAIR * fd * HW)
    pool_mat = ((row_col[:, None] == jnp.arange(pair_out)[None, :]).astype(jnp.float32)
                * (1.0 / K)).astype(jnp.bfloat16)

    # conv1 weight padded to TOK_PAD token rows (rows >= C_OUT are zero, so extra / pad tokens
    # come only from the additive term -- exact concat semantics).
    wk = jnp.zeros((TOK_PAD, C_IN), jnp.float32).at[:C_OUT].set(conv_w).astype(jnp.bfloat16)

    # Additive term: conv bias + position embedding + indicator token, plus the extra tokens.
    add = jnp.zeros((TOK_PAD, S), jnp.float32)
    add = add.at[:C_OUT].set(conv_b[:, None] + pos_emb[0, 0][None, :] + ind_tok[0][None, :])
    add = add.at[C_OUT:N_TOK].set(extra_tok)

    kernel = _make_kernel(n_pairs, pair_cols, pair_out)
    out = pl.pallas_call(
        kernel,
        out_shape=jax.ShapeDtypeStruct((B, TOK_PAD, S), jnp.float32),
        grid=(B, n_blk),
        in_specs=[
            pl.BlockSpec((None, C_IN, blk_cols), lambda b, g: (b, 0, g)),    # feature slab
            pl.BlockSpec((PAIR * fd * HW, pair_out), lambda b, g: (0, 0)),   # shared pool matrix
            pl.BlockSpec((TOK_PAD, C_IN), lambda b, g: (0, 0)),              # shared conv weight
            pl.BlockSpec((TOK_PAD, blk_out), lambda b, g: (0, g)),           # additive slab
        ],
        out_specs=pl.BlockSpec((None, TOK_PAD, blk_out), lambda b, g: (b, 0, g)),
        compiler_params=pltpu.CompilerParams(
            dimension_semantics=("parallel", "parallel")),
    )(x, pool_mat, wk, add)

    # Epilogue: slice off pad tokens only (kernel output is already lane-dense (B, 64, 768)).
    return out[:, :N_TOK, :]


def reference_forward(feat, conv_w, conv_b, pos_emb, ind_tok, extra_tok):
    """Pure-JAX f32 reference mirroring the PyTorch op order."""
    B, C, D, H, W = feat.shape
    fd, fh, fw = D // OD, H // OH, W // OW
    y = jnp.einsum("bcdhw,oc->bodhw", feat, conv_w) + conv_b[None, :, None, None, None]
    y = y.reshape(B, C_OUT, OD, fd, OH, fh, OW, fw).mean(axis=(3, 5, 7)).reshape(B, C_OUT, S)
    y = y + pos_emb + ind_tok[None]
    extra = jnp.broadcast_to(extra_tok[None], (B, N_EXTRA, S))
    return jnp.concatenate([y, extra], axis=1)


if __name__ == "__main__":
    key = jax.random.PRNGKey(0)
    k_feat, k_w, k_b, k_ind, k_ex = jax.random.split(key, 5)

    # small shapes: B=2, resnet stage-2 feature map (B, 128, 24, 16, 16)
    B, D, H, W = 2, 24, 16, 16
    feat = jax.random.normal(k_feat, (B, C_IN, D, H, W), jnp.float32)

    # deterministic parameter init (module __init__ shapes; 1x1x1 conv kernel squeezed to (49, 128))
    conv_w = 0.05 * jax.random.normal(k_w, (C_OUT, C_IN), jnp.float32)
    conv_b = 0.01 * jax.random.normal(k_b, (C_OUT,), jnp.float32)
    pos_emb = jnp.zeros((1, 1, S), jnp.float32)                     # nn.Parameter(zeros(1,1,768))
    ind_tok = jax.random.normal(k_ind, (1, S), jnp.float32)         # nn.Parameter(randn(1,768))
    extra_tok = jax.random.normal(k_ex, (N_EXTRA, S), jnp.float32)  # nn.Parameter(randn(2,768))

    out = jax.block_until_ready(
        seg_map_encoder_forward(feat, conv_w, conv_b, pos_emb, ind_tok, extra_tok))
    ref = reference_forward(feat, conv_w, conv_b, pos_emb, ind_tok, extra_tok)

    assert out.shape == (B, N_TOK, S), out.shape
    max_err = float(jnp.abs(out - ref).max())
    # Tolerance covers the bf16 quantization used on the MXU path (features, pooled means, weight).
    assert jnp.allclose(out, ref, atol=1e-2, rtol=1e-2), max_err
    print("KERNEL_OK")
</pallas_src>

<mosaic_0001>
module attributes {stable_mosaic.version = 11 : i64} {
  func.func @kernel(%arg0: i32, %arg1: i32, %arg2: memref<1x128x6144xf32, #tpu.memory_space<vmem>>, %arg3: memref<1024x128xbf16, #tpu.memory_space<vmem>>, %arg4: memref<64x128xbf16, #tpu.memory_space<vmem>>, %arg5: memref<64x768xf32, #tpu.memory_space<vmem>>, %arg6: memref<1x64x768xf32, #tpu.memory_space<vmem>>) attributes {dimension_semantics = [#tpu.dimension_semantics<parallel>, #tpu.dimension_semantics<parallel>], iteration_bounds = array<i64: 2, 1>, scalar_prefetch = 0 : i64, scratch_operands = 0 : i64, tpu.core_type = #tpu.core_type<tc>, window_params = [{transform_indices = @transform_0, window_bounds = array<i64: 1, 128, 6144>}, {pipeline_mode = #tpu.pipeline_mode<synchronous>, transform_indices = @transform_1, window_bounds = array<i64: 1024, 128>}, {pipeline_mode = #tpu.pipeline_mode<synchronous>, transform_indices = @transform_2, window_bounds = array<i64: 64, 128>}, {transform_indices = @transform_3, window_bounds = array<i64: 64, 768>}, {transform_indices = @transform_4, window_bounds = array<i64: 1, 64, 768>}]} {
    %c0 = arith.constant 0 : index
    %c0_0 = arith.constant 0 : index
    %0 = vector.load %arg3[%c0, %c0_0] : memref<1024x128xbf16, #tpu.memory_space<vmem>>, vector<1024x128xbf16>
    %c0_1 = arith.constant 0 : index
    %c0_2 = arith.constant 0 : index
    %1 = vector.load %arg4[%c0_1, %c0_2] : memref<64x128xbf16, #tpu.memory_space<vmem>>, vector<64x128xbf16>
    %c0_3 = arith.constant 0 : index
    %c0_4 = arith.constant 0 : index
    %c0_5 = arith.constant 0 : index
    %2 = vector.load %arg2[%c0_3, %c0_4, %c0_5] : memref<1x128x6144xf32, #tpu.memory_space<vmem>>, vector<1x128x1024xf32>
    %3 = vector.shape_cast %2 : vector<1x128x1024xf32> to vector<128x1024xf32>
    %4 = arith.truncf %3 : vector<128x1024xf32> to vector<128x1024xbf16>
    %cst = arith.constant dense<0.000000e+00> : vector<128x128xf32>
    %5 = tpu.matmul %4, %0, %cst {dimension_numbers = #tpu.dot_dimension_numbers<[1], [0], [0], [1], [0, 0, 1, 1], [], []>} : vector<128x1024xbf16>, vector<1024x128xbf16>, vector<128x128xf32> -> vector<128x128xf32>
    %6 = arith.truncf %5 : vector<128x128xf32> to vector<128x128xbf16>
    %cst_6 = arith.constant dense<0.000000e+00> : vector<64x128xf32>
    %7 = tpu.matmul %1, %6, %cst_6 {dimension_numbers = #tpu.dot_dimension_numbers<[1], [0], [0], [1], [0, 0, 1, 1], [], []>} : vector<64x128xbf16>, vector<128x128xbf16>, vector<64x128xf32> -> vector<64x128xf32>
    %c0_7 = arith.constant 0 : index
    %c0_8 = arith.constant 0 : index
    %8 = vector.load %arg5[%c0_7, %c0_8] : memref<64x768xf32, #tpu.memory_space<vmem>>, vector<64x128xf32>
    %9 = arith.addf %7, %8 : vector<64x128xf32>
    %c0_9 = arith.constant 0 : index
    %c0_10 = arith.constant 0 : index
    %c0_11 = arith.constant 0 : index
    %10 = vector.load %arg6[%c0_9, %c0_10, %c0_11] : memref<1x64x768xf32, #tpu.memory_space<vmem>>, vector<1x64x128xf32>
    %11 = vector.shape_cast %10 : vector<1x64x128xf32> to vector<64x128xf32>
    %12 = vector.shape_cast %9 : vector<64x128xf32> to vector<1x64x128xf32>
    tpu.vector_store %arg6[%c0_9, %c0_10, %c0_11], %12 {strides = array<i32>} : memref<1x64x768xf32, #tpu.memory_space<vmem>>, vector<1x64x128xf32>,
    %c0_12 = arith.constant 0 : index
    %c0_13 = arith.constant 0 : index
    %c1024 = arith.constant 1024 : index
    %13 = vector.load %arg2[%c0_12, %c0_13, %c1024] : memref<1x128x6144xf32, #tpu.memory_space<vmem>>, vector<1x128x1024xf32>
    %14 = vector.shape_cast %13 : vector<1x128x1024xf32> to vector<128x1024xf32>
    %15 = arith.truncf %14 : vector<128x1024xf32> to vector<128x1024xbf16>
    %cst_14 = arith.constant dense<0.000000e+00> : vector<128x128xf32>
    %16 = tpu.matmul %15, %0, %cst_14 {dimension_numbers = #tpu.dot_dimension_numbers<[1], [0], [0], [1], [0, 0, 1, 1], [], []>} : vector<128x1024xbf16>, vector<1024x128xbf16>, vector<128x128xf32> -> vector<128x128xf32>
    %17 = arith.truncf %16 : vector<128x128xf32> to vector<128x128xbf16>
    %cst_15 = arith.constant dense<0.000000e+00> : vector<64x128xf32>
    %18 = tpu.matmul %1, %17, %cst_15 {dimension_numbers = #tpu.dot_dimension_numbers<[1], [0], [0], [1], [0, 0, 1, 1], [], []>} : vector<64x128xbf16>, vector<128x128xbf16>, vector<64x128xf32> -> vector<64x128xf32>
    %c0_16 = arith.constant 0 : index
    %c128 = arith.constant 128 : index
    %19 = vector.load %arg5[%c0_16, %c128] : memref<64x768xf32, #tpu.memory_space<vmem>>, vector<64x128xf32>
    %20 = arith.addf %18, %19 : vector<64x128xf32>
    %c0_17 = arith.constant 0 : index
    %c0_18 = arith.constant 0 : index
    %c128_19 = arith.constant 128 : index
    %21 = vector.load %arg6[%c0_17, %c0_18, %c128_19] : memref<1x64x768xf32, #tpu.memory_space<vmem>>, vector<1x64x128xf32>
    %22 = vector.shape_cast %21 : vector<1x64x128xf32> to vector<64x128xf32>
    %23 = vector.shape_cast %20 : vector<64x128xf32> to vector<1x64x128xf32>
    tpu.vector_store %arg6[%c0_17, %c0_18, %c128_19], %23 {strides = array<i32>} : memref<1x64x768xf32, #tpu.memory_space<vmem>>, vector<1x64x128xf32>,
    %c0_20 = arith.constant 0 : index
    %c0_21 = arith.constant 0 : index
    %c2048 = arith.constant 2048 : index
    %24 = vector.load %arg2[%c0_20, %c0_21, %c2048] : memref<1x128x6144xf32, #tpu.memory_space<vmem>>, vector<1x128x1024xf32>
    %25 = vector.shape_cast %24 : vector<1x128x1024xf32> to vector<128x1024xf32>
    %26 = arith.truncf %25 : vector<128x1024xf32> to vector<128x1024xbf16>
    %cst_22 = arith.constant dense<0.000000e+00> : vector<128x128xf32>
    %27 = tpu.matmul %26, %0, %cst_22 {dimension_numbers = #tpu.dot_dimension_numbers<[1], [0], [0], [1], [0, 0, 1, 1], [], []>} : vector<128x1024xbf16>, vector<1024x128xbf16>, vector<128x128xf32> -> vector<128x128xf32>
    %28 = arith.truncf %27 : vector<128x128xf32> to vector<128x128xbf16>
    %cst_23 = arith.constant dense<0.000000e+00> : vector<64x128xf32>
    %29 = tpu.matmul %1, %28, %cst_23 {dimension_numbers = #tpu.dot_dimension_numbers<[1], [0], [0], [1], [0, 0, 1, 1], [], []>} : vector<64x128xbf16>, vector<128x128xbf16>, vector<64x128xf32> -> vector<64x128xf32>
    %c0_24 = arith.constant 0 : index
    %c256 = arith.constant 256 : index
    %30 = vector.load %arg5[%c0_24, %c256] : memref<64x768xf32, #tpu.memory_space<vmem>>, vector<64x128xf32>
    %31 = arith.addf %29, %30 : vector<64x128xf32>
    %c0_25 = arith.constant 0 : index
    %c0_26 = arith.constant 0 : index
    %c256_27 = arith.constant 256 : index
    %32 = vector.load %arg6[%c0_25, %c0_26, %c256_27] : memref<1x64x768xf32, #tpu.memory_space<vmem>>, vector<1x64x128xf32>
    %33 = vector.shape_cast %32 : vector<1x64x128xf32> to vector<64x128xf32>
    %34 = vector.shape_cast %31 : vector<64x128xf32> to vector<1x64x128xf32>
    tpu.vector_store %arg6[%c0_25, %c0_26, %c256_27], %34 {strides = array<i32>} : memref<1x64x768xf32, #tpu.memory_space<vmem>>, vector<1x64x128xf32>,
    %c0_28 = arith.constant 0 : index
    %c0_29 = arith.constant 0 : index
    %c3072 = arith.constant 3072 : index
    %35 = vector.load %arg2[%c0_28, %c0_29, %c3072] : memref<1x128x6144xf32, #tpu.memory_space<vmem>>, vector<1x128x1024xf32>
    %36 = vector.shape_cast %35 : vector<1x128x1024xf32> to vector<128x1024xf32>
    %37 = arith.truncf %36 : vector<128x1024xf32> to vector<128x1024xbf16>
    %cst_30 = arith.constant dense<0.000000e+00> : vector<128x128xf32>
    %38 = tpu.matmul %37, %0, %cst_30 {dimension_numbers = #tpu.dot_dimension_numbers<[1], [0], [0], [1], [0, 0, 1, 1], [], []>} : vector<128x1024xbf16>, vector<1024x128xbf16>, vector<128x128xf32> -> vector<128x128xf32>
    %39 = arith.truncf %38 : vector<128x128xf32> to vector<128x128xbf16>
    %cst_31 = arith.constant dense<0.000000e+00> : vector<64x128xf32>
    %40 = tpu.matmul %1, %39, %cst_31 {dimension_numbers = #tpu.dot_dimension_numbers<[1], [0], [0], [1], [0, 0, 1, 1], [], []>} : vector<64x128xbf16>, vector<128x128xbf16>, vector<64x128xf32> -> vector<64x128xf32>
    %c0_32 = arith.constant 0 : index
    %c384 = arith.constant 384 : index
    %41 = vector.load %arg5[%c0_32, %c384] : memref<64x768xf32, #tpu.memory_space<vmem>>, vector<64x128xf32>
    %42 = arith.addf %40, %41 : vector<64x128xf32>
    %c0_33 = arith.constant 0 : index
    %c0_34 = arith.constant 0 : index
    %c384_35 = arith.constant 384 : index
    %43 = vector.load %arg6[%c0_33, %c0_34, %c384_35] : memref<1x64x768xf32, #tpu.memory_space<vmem>>, vector<1x64x128xf32>
    %44 = vector.shape_cast %43 : vector<1x64x128xf32> to vector<64x128xf32>
    %45 = vector.shape_cast %42 : vector<64x128xf32> to vector<1x64x128xf32>
    tpu.vector_store %arg6[%c0_33, %c0_34, %c384_35], %45 {strides = array<i32>} : memref<1x64x768xf32, #tpu.memory_space<vmem>>, vector<1x64x128xf32>,
    %c0_36 = arith.constant 0 : index
    %c0_37 = arith.constant 0 : index
    %c4096 = arith.constant 4096 : index
    %46 = vector.load %arg2[%c0_36, %c0_37, %c4096] : memref<1x128x6144xf32, #tpu.memory_space<vmem>>, vector<1x128x1024xf32>
    %47 = vector.shape_cast %46 : vector<1x128x1024xf32> to vector<128x1024xf32>
    %48 = arith.truncf %47 : vector<128x1024xf32> to vector<128x1024xbf16>
    %cst_38 = arith.constant dense<0.000000e+00> : vector<128x128xf32>
    %49 = tpu.matmul %48, %0, %cst_38 {dimension_numbers = #tpu.dot_dimension_numbers<[1], [0], [0], [1], [0, 0, 1, 1], [], []>} : vector<128x1024xbf16>, vector<1024x128xbf16>, vector<128x128xf32> -> vector<128x128xf32>
    %50 = arith.truncf %49 : vector<128x128xf32> to vector<128x128xbf16>
    %cst_39 = arith.constant dense<0.000000e+00> : vector<64x128xf32>
    %51 = tpu.matmul %1, %50, %cst_39 {dimension_numbers = #tpu.dot_dimension_numbers<[1], [0], [0], [1], [0, 0, 1, 1], [], []>} : vector<64x128xbf16>, vector<128x128xbf16>, vector<64x128xf32> -> vector<64x128xf32>
    %c0_40 = arith.constant 0 : index
    %c512 = arith.constant 512 : index
    %52 = vector.load %arg5[%c0_40, %c512] : memref<64x768xf32, #tpu.memory_space<vmem>>, vector<64x128xf32>
    %53 = arith.addf %51, %52 : vector<64x128xf32>
    %c0_41 = arith.constant 0 : index
    %c0_42 = arith.constant 0 : index
    %c512_43 = arith.constant 512 : index
    %54 = vector.load %arg6[%c0_41, %c0_42, %c512_43] : memref<1x64x768xf32, #tpu.memory_space<vmem>>, vector<1x64x128xf32>
    %55 = vector.shape_cast %54 : vector<1x64x128xf32> to vector<64x128xf32>
    %56 = vector.shape_cast %53 : vector<64x128xf32> to vector<1x64x128xf32>
    tpu.vector_store %arg6[%c0_41, %c0_42, %c512_43], %56 {strides = array<i32>} : memref<1x64x768xf32, #tpu.memory_space<vmem>>, vector<1x64x128xf32>,
    %c0_44 = arith.constant 0 : index
    %c0_45 = arith.constant 0 : index
    %c5120 = arith.constant 5120 : index
    %57 = vector.load %arg2[%c0_44, %c0_45, %c5120] : memref<1x128x6144xf32, #tpu.memory_space<vmem>>, vector<1x128x1024xf32>
    %58 = vector.shape_cast %57 : vector<1x128x1024xf32> to vector<128x1024xf32>
    %59 = arith.truncf %58 : vector<128x1024xf32> to vector<128x1024xbf16>
    %cst_46 = arith.constant dense<0.000000e+00> : vector<128x128xf32>
    %60 = tpu.matmul %59, %0, %cst_46 {dimension_numbers = #tpu.dot_dimension_numbers<[1], [0], [0], [1], [0, 0, 1, 1], [], []>} : vector<128x1024xbf16>, vector<1024x128xbf16>, vector<128x128xf32> -> vector<128x128xf32>
    %61 = arith.truncf %60 : vector<128x128xf32> to vector<128x128xbf16>
    %cst_47 = arith.constant dense<0.000000e+00> : vector<64x128xf32>
    %62 = tpu.matmul %1, %61, %cst_47 {dimension_numbers = #tpu.dot_dimension_numbers<[1], [0], [0], [1], [0, 0, 1, 1], [], []>} : vector<64x128xbf16>, vector<128x128xbf16>, vector<64x128xf32> -> vector<64x128xf32>
    %c0_48 = arith.constant 0 : index
    %c640 = arith.constant 640 : index
    %63 = vector.load %arg5[%c0_48, %c640] : memref<64x768xf32, #tpu.memory_space<vmem>>, vector<64x128xf32>
    %64 = arith.addf %62, %63 : vector<64x128xf32>
    %c0_49 = arith.constant 0 : index
    %c0_50 = arith.constant 0 : index
    %c640_51 = arith.constant 640 : index
    %65 = vector.load %arg6[%c0_49, %c0_50, %c640_51] : memref<1x64x768xf32, #tpu.memory_space<vmem>>, vector<1x64x128xf32>
    %66 = vector.shape_cast %65 : vector<1x64x128xf32> to vector<64x128xf32>
    %67 = vector.shape_cast %64 : vector<64x128xf32> to vector<1x64x128xf32>
    tpu.vector_store %arg6[%c0_49, %c0_50, %c640_51], %67 {strides = array<i32>} : memref<1x64x768xf32, #tpu.memory_space<vmem>>, vector<1x64x128xf32>,
    return
  }
  func.func @transform_0(%arg0: i32, %arg1: i32) -> (i32, i32, i32) {
    %c0_i32 = arith.constant 0 : i32
    %c0_i32_0 = arith.constant 0 : i32
    return %arg0, %c0_i32, %arg1 : i32, i32, i32
  }
  func.func @transform_1(%arg0: i32, %arg1: i32) -> (i32, i32) {
    %c0_i32 = arith.constant 0 : i32
    %c0_i32_0 = arith.constant 0 : i32
    %c0_i32_1 = arith.constant 0 : i32
    return %c0_i32, %c0_i32_0 : i32, i32
  }
  func.func @transform_2(%arg0: i32, %arg1: i32) -> (i32, i32) {
    %c0_i32 = arith.constant 0 : i32
    %c0_i32_0 = arith.constant 0 : i32
    %c0_i32_1 = arith.constant 0 : i32
    return %c0_i32, %c0_i32_0 : i32, i32
  }
  func.func @transform_3(%arg0: i32, %arg1: i32) -> (i32, i32) {
    %c0_i32 = arith.constant 0 : i32
    %c0_i32_0 = arith.constant 0 : i32
    return %c0_i32, %arg1 : i32, i32
  }
  func.func @transform_4(%arg0: i32, %arg1: i32) -> (i32, i32, i32) {
    %c0_i32 = arith.constant 0 : i32
    %c0_i32_0 = arith.constant 0 : i32
    return %arg0, %c0_i32, %arg1 : i32, i32, i32
  }
}

</mosaic_0001>

<bundles_post_ra>
// kernel: seg_map_encoder_forward.1
= control target key start
LH: loop header
LB: loop body
LE: loop exit
PB: predicated region body
PF: predicated region fallthrough
CT: control target
= control target key end

     0   :  { %s5456_s15 = smov 0   ;;  %s5458_s16 = smov 0   ;;  %s9025_s0 = inlined_call_operand.vmem [shape: f32[2,128,6144], index: 0, kind: input, shape index: {}]   ;;  %s9026_s1 = inlined_call_operand.vmem [shape: bf16[1024,128], index: 1, kind: input, shape index: {}]   ;;  %s9027_s2 = inlined_call_operand.vmem [shape: bf16[64,128], index: 2, kind: input, shape index: {}]   ;;  %s9028_s3 = inlined_call_operand.vmem [shape: f32[64,768], index: 3, kind: input, shape index: {}]   ;;  %s9029_s4 = inlined_call_operand.vmem [shape: f32[2,64,768], index: 4, kind: output, shape index: {}]  }
   0x1   :  { %s5460_s17 = smov 0  }
   0x2 LB: > { %s26_s18 = sadd.s32 1, %s5425_s16  ;;  %p4732_p0 = scmp.ge.s32.totalorder %s5429_s17, 1  ;;  %s5429_s17 = sphi %s5460_s17, %s14_s17   ;;  %s5425_s16 = sphi %s5458_s16, %s9039_s16   ;;  %s5421_s15 = sphi %s5456_s15, %s9038_s15  }
   0x3   : > { %p28_p1 = scmp.ge.s32.totalorder %s26_s18, 2  ;;  %p194_p2 = scmp.lt.s32.totalorder %s5429_s17, 3 }
   0x5   : > { %s9041_s18 = smov (%p28_p1, %s26_s18), 0  ;;  %p195_p3 = pnand %p4732_p0, %p194_p2 }
   0x6   : > { %p234_p4 = scmp.lt.s32.totalorder (!%p195_p3), %s5421_s15, 1 }
   0x7   : > { %198 = sbr.rel (%p195_p3) target bundleno = 3055 (0xbef), region = 36 }
   0xc   : > { %v5479_v0 = vld [vmem:[%s9026_s1 + $0x38] sm:$0xff]  ;;  %v5491_v2 = vld [vmem:[%s9026_s1 + $0x30] sm:$0xff]  ;;  %v5505_v4 = vld [vmem:[%s9026_s1 + $0x28] sm:$0xff]  ;;  %s9043_s15 = smov (!%p234_p4, %s5421_s15), 1 }
   0xd   : > { %v5484_v1 = vld [vmem:[%s9026_s1 + $0x78] sm:$0xff]  ;;  %971 = vmatpush.bf16.msra.mxu0 %v5479_v0  ;;  %5077 = vmatpush.bf16.msra.mxu2 %v5479_v0  ;;  %v5498_v3 = vld [vmem:[%s9026_s1 + $0x70] sm:$0xff]  ;;  %v5512_v5 = vld [vmem:[%s9026_s1 + $0x68] sm:$0xff]  ;;  %s5093_s19 = smul.u32 6144, %s9043_s15 }
   0xe   : > { %5085 = vmatpush.bf16.msra.mxu3 %v5484_v1  ;;  %1020 = vmatpush.bf16.msra.mxu1 %v5484_v1  ;;  %v5519_v6 = vld [vmem:[%s9026_s1 + $0x20] sm:$0xff]  ;;  %v5534_v8 = vld [vmem:[%s9026_s1 + $0x18] sm:$0xff]  ;;  %v5551_v10 = vld [vmem:[%s9026_s1 + $0x10] sm:$0xff]  ;;  %s5094_s13 = smul.u32 384, %s9043_s15 }
   0xf   : > { %v5527_v7 = vld [vmem:[%s9026_s1 + $0x60] sm:$0xff]  ;;  %v5544_v9 = vld [vmem:[%s9026_s1 + $0x58] sm:$0xff]  ;;  %v5559_v11 = vld [vmem:[%s9026_s1 + $0x50] sm:$0xff]  ;;  %s5571_s26 = scalar_lea.vmem %s9025_s0, %s5093_s19 }
  0x10   : > { %v5566_v12 = vld [vmem:[%s9026_s1 + $0x8] sm:$0xff]  ;;  %v5583_v14 = vld [vmem:[%s9026_s1] sm:$0xff]  ;;  %v5605_v24 = vld [vmem:[%s9026_s1 + $0xb8] sm:$0xff]  ;;  %s6539_s22 = scalar_lea.vmem %s9029_s4, %s5094_s13 }
  0x11   : > { %972 = vmatpush.bf16.msra.mxu0 %v5491_v2  ;;  %5078 = vmatpush.bf16.msra.mxu2 %v5491_v2  ;;  %v5578_v13 = vld [vmem:[%s9026_s1 + $0x48] sm:$0xff]  ;;  %v5588_v15 = vld [vmem:[%s9026_s1 + $0x40] sm:$0xff]  ;;  %v5040_v25 = vld [vmem:[%s9026_s1 + $0xf8] sm:$0xff] }
  0x12   : > { %5086 = vmatpush.bf16.msra.mxu3 %v5498_v3  ;;  %1021 = vmatpush.bf16.msra.mxu1 %v5498_v3  ;;  %v395_v16 = vld [vmem:[%s5571_s26] sm:$0xff]  ;;  %v492_v20 = vld [vmem:[%s5571_s26 + $0x1208] sm:$0xff]  ;;  %v5618_v30 = vld [vmem:[%s9026_s1 + $0xb0] sm:$0xff] }
  0x13   : > { %v403_v17 = vld [vmem:[%s5571_s26 + $0x180] sm:$0xff]  ;;  %v500_v21 = vld [vmem:[%s5571_s26 + $0x1388] sm:$0xff]  ;;  %v5039_v31 = vld [vmem:[%s9026_s1 + $0xf0] sm:$0xff] }
  0x14   : > { %v491_v18 = vld [vmem:[%s5571_s26 + $0x1200] sm:$0xff]  ;;  %v396_v22 = vld [vmem:[%s5571_s26 + $0x8] sm:$0xff]  ;;  %v523_v26 = vpack.c.bf16 %v403_v17, %v395_v16  ;;  %v572_v28 = vpack.c.bf16 %v500_v21, %v492_v20  ;;  %v5653_v44 = vld [vmem:[%s9026_s1 + $0x98] sm:$0xff] }
  0x15   : > { %973 = vmatpush.bf16.msra.mxu0 %v5505_v4  ;;  %5079 = vmatpush.bf16.msra.mxu2 %v5505_v4  ;;  %v499_v19 = vld [vmem:[%s5571_s26 + $0x1380] sm:$0xff]  ;;  %v404_v23 = vld [vmem:[%s5571_s26 + $0x188] sm:$0xff]  ;;  %v5036_v45 = vld [vmem:[%s9026_s1 + $0xd8] sm:$0xff] }
  0x16   : > { %5087 = vmatpush.bf16.msra.mxu3 %v5512_v5  ;;  %1022 = vmatpush.bf16.msra.mxu1 %v5512_v5  ;;  %v571_v27 = vpack.c.bf16 %v499_v19, %v491_v18  ;;  %v524_v29 = vpack.c.bf16 %v404_v23, %v396_v22  ;;  %v5627_v32 = vld [vmem:[%s9026_s1 + $0xa8] sm:$0xff]  ;;  %v5636_v34 = vld [vmem:[%s9026_s1 + $0xa0] sm:$0xff]  ;;  %v5662_v50 = vld [vmem:[%s9026_s1 + $0x90] sm:$0xff] }
  0x17   : > { %v5038_v33 = vld [vmem:[%s9026_s1 + $0xe8] sm:$0xff]  ;;  %v5037_v35 = vld [vmem:[%s9026_s1 + $0xe0] sm:$0xff]  ;;  %v5035_v51 = vld [vmem:[%s9026_s1 + $0xd0] sm:$0xff] }
  0x18   : > { %v411_v36 = vld [vmem:[%s5571_s26 + $0x300] sm:$0xff]  ;;  %v508_v40 = vld [vmem:[%s5571_s26 + $0x1508] sm:$0xff]  ;;  %v397_v58 = vld [vmem:[%s5571_s26 + $0x10] sm:$0xff] }
  0x19   : > { %974 = vmatpush.bf16.msra.mxu0 %v5519_v6  ;;  %5080 = vmatpush.bf16.msra.mxu2 %v5519_v6  ;;  %v419_v37 = vld [vmem:[%s5571_s26 + $0x480] sm:$0xff]  ;;  %v516_v41 = vld [vmem:[%s5571_s26 + $0x1688] sm:$0xff]  ;;  %v405_v59 = vld [vmem:[%s5571_s26 + $0x190] sm:$0xff] }
  0x1a   : > { %5088 = vmatpush.bf16.msra.mxu3 %v5527_v7  ;;  %1023 = vmatpush.bf16.msra.mxu1 %v5527_v7  ;;  %v507_v38 = vld [vmem:[%s5571_s26 + $0x1500] sm:$0xff]  ;;  %v412_v42 = vld [vmem:[%s5571_s26 + $0x308] sm:$0xff]  ;;  %v531_v46 = vpack.c.bf16 %v419_v37, %v411_v36  ;;  %v580_v48 = vpack.c.bf16 %v516_v41, %v508_v40  ;;  %v398_v60 = vld [vmem:[%s5571_s26 + $0x18] sm:$0xff]  ;;  %v525_v17 = vpack.c.bf16 %v405_v59, %v397_v58 }
  0x1b   : > { %v515_v39 = vld [vmem:[%s5571_s26 + $0x1680] sm:$0xff]  ;;  %v420_v43 = vld [vmem:[%s5571_s26 + $0x488] sm:$0xff]  ;;  %v406_v61 = vld [vmem:[%s5571_s26 + $0x198] sm:$0xff] }
  0x1c   : > { %v579_v47 = vpack.c.bf16 %v515_v39, %v507_v38  ;;  %v532_v49 = vpack.c.bf16 %v420_v43, %v412_v42  ;;  %v5671_v52 = vld [vmem:[%s9026_s1 + $0x88] sm:$0xff]  ;;  %v5680_v54 = vld [vmem:[%s9026_s1 + $0x80] sm:$0xff]  ;;  %v526_v18 = vpack.c.bf16 %v406_v61, %v398_v60  ;;  %v5697_v20 = vld [vmem:[%s9026_s1 + $0x138] sm:$0xff] }
  0x1d   : > { %975 = vmatpush.bf16.msra.mxu0 %v5534_v8  ;;  %5081 = vmatpush.bf16.msra.mxu2 %v5534_v8  ;;  %v5034_v53 = vld [vmem:[%s9026_s1 + $0xc8] sm:$0xff]  ;;  %v5033_v55 = vld [vmem:[%s9026_s1 + $0xc0] sm:$0xff]  ;;  %v5702_v21 = vld [vmem:[%s9026_s1 + $0x178] sm:$0xff] }
  0x1e   : > { %5089 = vmatpush.bf16.msra.mxu3 %v5544_v9  ;;  %1024 = vmatpush.bf16.msra.mxu1 %v5544_v9  ;;  %v427_v56 = vld [vmem:[%s5571_s26 + $0x600] sm:$0xff]  ;;  %v428_v62 = vld [vmem:[%s5571_s26 + $0x608] sm:$0xff]  ;;  %v5708_v22 = vld [vmem:[%s9026_s1 + $0x130] sm:$0xff] }
  0x1f   : > { %v435_v57 = vld [vmem:[%s5571_s26 + $0x780] sm:$0xff]  ;;  %v436_v63 = vld [vmem:[%s5571_s26 + $0x788] sm:$0xff]  ;;  %v5714_v23 = vld [vmem:[%s9026_s1 + $0x170] sm:$0xff] }
  0x20   : > { %v539_v16 = vpack.c.bf16 %v435_v57, %v427_v56  ;;  %v540_v19 = vpack.c.bf16 %v436_v63, %v428_v62  ;;  %v444_v36 = vld [vmem:[%s5571_s26 + $0x908] sm:$0xff]  ;;  %v5740_v38 = vld [vmem:[%s9026_s1 + $0x120] sm:$0xff]  ;;  %v429_v56 = vld [vmem:[%s5571_s26 + $0x610] sm:$0xff] }
  0x21   : > { %976 = vmatpush.bf16.msra.mxu0 %v5551_v10  ;;  %5082 = vmatpush.bf16.msra.mxu2 %v5551_v10  ;;  %v452_v37 = vld [vmem:[%s5571_s26 + $0xa88] sm:$0xff]  ;;  %v5746_v39 = vld [vmem:[%s9026_s1 + $0x160] sm:$0xff]  ;;  %v437_v57 = vld [vmem:[%s5571_s26 + $0x790] sm:$0xff] }
  0x22   : > { %5090 = vmatpush.bf16.msra.mxu3 %v5559_v11  ;;  %1025 = vmatpush.bf16.msra.mxu1 %v5559_v11  ;;  %v548_v43 = vpack.c.bf16 %v452_v37, %v444_v36  ;;  %v430_v58 = vld [vmem:[%s5571_s26 + $0x618] sm:$0xff]  ;;  %v460_v60 = vld [vmem:[%s5571_s26 + $0xc08] sm:$0xff]  ;;  %v5796_v62 = vld [vmem:[%s9026_s1 + $0x100] sm:$0xff] }
  0x23   : > { %v438_v59 = vld [vmem:[%s5571_s26 + $0x798] sm:$0xff]  ;;  %v468_v61 = vld [vmem:[%s5571_s26 + $0xd88] sm:$0xff]  ;;  %v5802_v63 = vld [vmem:[%s9026_s1 + $0x140] sm:$0xff] }
  0x24   : > { %v476_v36 = vld [vmem:[%s5571_s26 + $0xf08] sm:$0xff] }
  0x25   : > { %977 = vmatpush.bf16.msra.mxu0 %v5566_v12  ;;  %5083 = vmatpush.bf16.msra.mxu2 %v5566_v12  ;;  %v484_v37 = vld [vmem:[%s5571_s26 + $0x1088] sm:$0xff] }
  0x26   : > { %5091 = vmatpush.bf16.msra.mxu3 %v5578_v13  ;;  %1026 = vmatpush.bf16.msra.mxu1 %v5578_v13 }
  0x29   : > { %978 = vmatpush.bf16.msra.mxu0 %v5583_v14  ;;  %5084 = vmatpush.bf16.msra.mxu2 %v5583_v14 }
  0x2a   : > { %5092 = vmatpush.bf16.msra.mxu3 %v5588_v15  ;;  %1027 = vmatpush.bf16.msra.mxu1 %v5588_v15 }
  0x2c   : > { %979 = vmatmul.bf16.vlgmr.msra.gmra.mxu0 %v523_v26  ;;  %1009 = vmatmul.bf16.vlgmr.msra.gmra.mxu2 %v571_v27  ;;  %v5726_v26 = vld [vmem:[%s9026_s1 + $0x168] sm:$0xff]  ;;  %v443_v27 = vld [vmem:[%s5571_s26 + $0x900] sm:$0xff] }
  0x2d   : > { %1069 = vmatpush.bf16.msrb.mxu2 %v5605_v24  ;;  %1058 = vmatmul.bf16.vlgmr.msra.gmra.mxu3 %v572_v28  ;;  %v451_v28 = vld [vmem:[%s5571_s26 + $0xa80] sm:$0xff] }
  0x2e   : > { %1118 = vmatpush.bf16.msrb.mxu3 %v5040_v25  ;;  %1028 = vmatmul.bf16.vlgmr.msra.gmra.mxu1 %v524_v29  ;;  %v5720_v25 = vld [vmem:[%s9026_s1 + $0x128] sm:$0xff]  ;;  %v413_v29 = vld [vmem:[%s5571_s26 + $0x310] sm:$0xff]  ;;  %v547_v40 = vpack.c.bf16 %v451_v28, %v443_v27  ;;  %v475_v27 = vld [vmem:[%s5571_s26 + $0xf00] sm:$0xff] }
  0x2f   : > { %1167 = vmatpush.bf16.msrb.mxu0 %v5697_v20  ;;  %1216 = vmatpush.bf16.msrb.mxu1 %v5702_v21  ;;  %v483_v28 = vld [vmem:[%s5571_s26 + $0x1080] sm:$0xff] }
  0x31   : > { %1070 = vmatpush.bf16.msrb.mxu2 %v5618_v30 }
  0x32   : > { %1119 = vmatpush.bf16.msrb.mxu3 %v5039_v31  ;;  %v421_v31 = vld [vmem:[%s5571_s26 + $0x490] sm:$0xff] }
  0x33   : > { %1168 = vmatpush.bf16.msrb.mxu0 %v5708_v22  ;;  %1217 = vmatpush.bf16.msrb.mxu1 %v5714_v23  ;;  %v533_v41 = vpack.c.bf16 %v421_v31, %v413_v29  ;;  %v445_v29 = vld [vmem:[%s5571_s26 + $0x910] sm:$0xff] }
  0x34   : > { %v453_v31 = vld [vmem:[%s5571_s26 + $0xa90] sm:$0xff] }
  0x35   : > { %1071 = vmatpush.bf16.msrb.mxu2 %v5627_v32 }
  0x36   : > { %1120 = vmatpush.bf16.msrb.mxu3 %v5038_v33  ;;  %v414_v33 = vld [vmem:[%s5571_s26 + $0x318] sm:$0xff] }
  0x37   : > { %1169 = vmatpush.bf16.msrb.mxu0 %v5720_v25  ;;  %1218 = vmatpush.bf16.msrb.mxu1 %v5726_v26 }
  0x39   : > { %1072 = vmatpush.bf16.msrb.mxu2 %v5636_v34 }
  0x3a   : > { %1121 = vmatpush.bf16.msrb.mxu3 %v5037_v35  ;;  %v422_v35 = vld [vmem:[%s5571_s26 + $0x498] sm:$0xff] }
  0x3b   : > { %v534_v42 = vpack.c.bf16 %v422_v35, %v414_v33  ;;  %1170 = vmatpush.bf16.msrb.mxu0 %v5740_v38  ;;  %1219 = vmatpush.bf16.msrb.mxu1 %v5746_v39  ;;  %v446_v33 = vld [vmem:[%s5571_s26 + $0x918] sm:$0xff] }
  0x3c   : > { %984 = vmatmul.bf16.gmra.mxu0 %v531_v46  ;;  %1014 = vmatmul.bf16.gmra.mxu2 %v579_v47  ;;  %v5758_v46 = vld [vmem:[%s9026_s1 + $0x158] sm:$0xff]  ;;  %v5764_v47 = vld [vmem:[%s9026_s1 + $0x110] sm:$0xff] }
  0x3d   : > { %1073 = vmatpush.bf16.msrb.mxu2 %v5653_v44  ;;  %1063 = vmatmul.bf16.gmra.mxu3 %v580_v48  ;;  %v5770_v48 = vld [vmem:[%s9026_s1 + $0x150] sm:$0xff]  ;;  %v454_v35 = vld [vmem:[%s5571_s26 + $0xa98] sm:$0xff] }
  0x3e   : > { %1122 = vmatpush.bf16.msrb.mxu3 %v5036_v45  ;;  %1033 = vmatmul.bf16.gmra.mxu1 %v532_v49  ;;  %v5753_v45 = vld [vmem:[%s9026_s1 + $0x118] sm:$0xff]  ;;  %v5776_v49 = vld [vmem:[%s9026_s1 + $0x108] sm:$0xff] }
  0x3f   : > { %1171 = vmatpush.bf16.msrb.mxu0 %v5753_v45  ;;  %1220 = vmatpush.bf16.msrb.mxu1 %v5758_v46 }
  0x41   : > { %1074 = vmatpush.bf16.msrb.mxu2 %v5662_v50 }
  0x42   : > { %1123 = vmatpush.bf16.msrb.mxu3 %v5035_v51  ;;  %v5782_v51 = vld [vmem:[%s9026_s1 + $0x148] sm:$0xff] }
  0x43   : > { %1172 = vmatpush.bf16.msrb.mxu0 %v5764_v47  ;;  %1221 = vmatpush.bf16.msrb.mxu1 %v5770_v48 }
  0x45   : > { %1075 = vmatpush.bf16.msrb.mxu2 %v5671_v52 }
  0x46   : > { %1124 = vmatpush.bf16.msrb.mxu3 %v5034_v53  ;;  %v459_v53 = vld [vmem:[%s5571_s26 + $0xc00] sm:$0xff] }
  0x47   : > { %1173 = vmatpush.bf16.msrb.mxu0 %v5776_v49  ;;  %1222 = vmatpush.bf16.msrb.mxu1 %v5782_v51 }
  0x49   : > { %1076 = vmatpush.bf16.msrb.mxu2 %v5680_v54 }
  0x4a   : > { %1125 = vmatpush.bf16.msrb.mxu3 %v5033_v55  ;;  %v467_v55 = vld [vmem:[%s5571_s26 + $0xd80] sm:$0xff] }
  0x4b   : > { %1174 = vmatpush.bf16.msrb.mxu0 %v5796_v62  ;;  %1223 = vmatpush.bf16.msrb.mxu1 %v5802_v63 }
  0x4c   : > { %989 = vmatmul.bf16.gmra.mxu0 %v539_v16  ;;  %1077 = vmatmul.bf16.vlgmr.msrb.gmra.mxu2 %v525_v17  ;;  %v555_v16 = vpack.c.bf16 %v467_v55, %v459_v53  ;;  %v541_v17 = vpack.c.bf16 %v437_v57, %v429_v56  ;;  %v399_v53 = vld [vmem:[%s5571_s26 + $0x20] sm:$0xff]  ;;  %v470_v56 = vld [vmem:[%s5571_s26 + $0xd98] sm:$0xff]  ;;  %v400_v57 = vld [vmem:[%s5571_s26 + $0x28] sm:$0xff] }
  0x4d   : > { %1126 = vmatmul.bf16.vlgmr.msrb.gmra.mxu3 %v526_v18  ;;  %v542_v18 = vpack.c.bf16 %v438_v59, %v430_v58  ;;  %v407_v55 = vld [vmem:[%s5571_s26 + $0x1a0] sm:$0xff]  ;;  %v408_v58 = vld [vmem:[%s5571_s26 + $0x1a8] sm:$0xff] }
  0x4e   : > { %1038 = vmatmul.bf16.gmra.mxu1 %v540_v19  ;;  %v556_v19 = vpack.c.bf16 %v468_v61, %v460_v60  ;;  %v528_v61 = vpack.c.bf16 %v408_v58, %v400_v57  ;;  %v502_v57 = vld [vmem:[%s5571_s26 + $0x1398] sm:$0xff]  ;;  %v432_v58 = vld [vmem:[%s5571_s26 + $0x628] sm:$0xff] }
  0x4f   : > { %1632 = vmatpush.bf16.msra.mxu1 %v5479_v0  ;;  %v549_v0 = vpack.c.bf16 %v453_v31, %v445_v29  ;;  %v486_v29 = vld [vmem:[%s5571_s26 + $0x1098] sm:$0xff]  ;;  %v416_v31 = vld [vmem:[%s5571_s26 + $0x328] sm:$0xff] }
  0x53   : > { %1633 = vmatpush.bf16.msra.mxu1 %v5491_v2  ;;  %v550_v2 = vpack.c.bf16 %v454_v35, %v446_v33  ;;  %v424_v33 = vld [vmem:[%s5571_s26 + $0x4a8] sm:$0xff] }
  0x57   : > { %1634 = vmatpush.bf16.msra.mxu1 %v5505_v4  ;;  %v469_v4 = vld [vmem:[%s5571_s26 + $0xd90] sm:$0xff] }
  0x5b   : > { %1635 = vmatpush.bf16.msra.mxu1 %v5519_v6  ;;  %v527_v6 = vpack.c.bf16 %v407_v55, %v399_v53  ;;  %v494_v53 = vld [vmem:[%s5571_s26 + $0x1218] sm:$0xff]  ;;  %v431_v55 = vld [vmem:[%s5571_s26 + $0x620] sm:$0xff] }
  0x5c   : > { %994 = vmatmul.bf16.gmra.mxu0 %v547_v40  ;;  %1082 = vmatmul.bf16.gmra.mxu2 %v533_v41  ;;  %v563_v40 = vpack.c.bf16 %v483_v28, %v475_v27  ;;  %v564_v41 = vpack.c.bf16 %v484_v37, %v476_v36  ;;  %v415_v27 = vld [vmem:[%s5571_s26 + $0x320] sm:$0xff] }
  0x5d   : > { %1131 = vmatmul.bf16.gmra.mxu3 %v534_v42  ;;  %v461_v42 = vld [vmem:[%s5571_s26 + $0xc10] sm:$0xff]  ;;  %v423_v28 = vld [vmem:[%s5571_s26 + $0x4a0] sm:$0xff] }
  0x5e   : > { %1043 = vmatmul.bf16.gmra.mxu1 %v548_v43  ;;  %v462_v43 = vld [vmem:[%s5571_s26 + $0xc18] sm:$0xff]  ;;  %v557_v59 = vpack.c.bf16 %v469_v4, %v461_v42  ;;  %v535_v36 = vpack.c.bf16 %v423_v28, %v415_v27  ;;  %v5871_v37 = vld [vmem:[%s9026_s1 + $0x1a0] sm:$0xff]  ;;  %v5900_v42 = vld [vmem:[%s9026_s1 + $0x188] sm:$0xff] }
  0x5f   : > { %1636 = vmatpush.bf16.msra.mxu1 %v5534_v8  ;;  %v558_v60 = vpack.c.bf16 %v470_v56, %v462_v43  ;;  %v5833_v8 = vld [vmem:[%s9026_s1 + $0x1b8] sm:$0xff]  ;;  %v493_v4 = vld [vmem:[%s5571_s26 + $0x1210] sm:$0xff]  ;;  %v439_v56 = vld [vmem:[%s5571_s26 + $0x7a0] sm:$0xff] }
  0x60   : > { %1265 = vmatpush.bf16.msra.mxu2 %v5833_v8  ;;  %v501_v43 = vld [vmem:[%s5571_s26 + $0x1390] sm:$0xff] }
  0x63   : > { %1637 = vmatpush.bf16.msra.mxu1 %v5551_v10  ;;  %v5072_v10 = vld [vmem:[%s9026_s1 + $0x1f8] sm:$0xff] }
  0x64   : > { %1314 = vmatpush.bf16.msra.mxu3 %v5072_v10 }
  0x67   : > { %1638 = vmatpush.bf16.msra.mxu1 %v5566_v12  ;;  %v5843_v12 = vld [vmem:[%s9026_s1 + $0x1b0] sm:$0xff] }
  0x68   : > { %1266 = vmatpush.bf16.msra.mxu2 %v5843_v12 }
  0x6b   : > { %1639 = vmatpush.bf16.msra.mxu1 %v5583_v14  ;;  %v5071_v14 = vld [vmem:[%s9026_s1 + $0x1f0] sm:$0xff] }
  0x6c   : > { %999 = vmatmul.bf16.gmra.mxu0 %v555_v16  ;;  %1087 = vmatmul.bf16.gmra.mxu2 %v541_v17  ;;  %v5852_v16 = vld [vmem:[%s9026_s1 + $0x1a8] sm:$0xff]  ;;  %v477_v17 = vld [vmem:[%s5571_s26 + $0xf10] sm:$0xff] }
  0x6d   : > { %1136 = vmatmul.bf16.gmra.mxu3 %v542_v18  ;;  %v485_v18 = vld [vmem:[%s5571_s26 + $0x1090] sm:$0xff]  ;;  %1267 = vmatpush.bf16.msra.mxu2 %v5852_v16 }
  0x6e   : > { %1048 = vmatmul.bf16.gmra.mxu1 %v556_v19  ;;  %1315 = vmatpush.bf16.msra.mxu3 %v5071_v14  ;;  %v478_v19 = vld [vmem:[%s5571_s26 + $0xf18] sm:$0xff]  ;;  %v565_v35 = vpack.c.bf16 %v485_v18, %v477_v17  ;;  %v574_v14 = vpack.c.bf16 %v502_v57, %v494_v53  ;;  %v471_v57 = vld [vmem:[%s5571_s26 + $0xda0] sm:$0xff] }
  0x71   : > { %1268 = vmatpush.bf16.msra.mxu2 %v5871_v37 }
  0x7c   : > { %1004 = vmatmul.bf16.gmra.mxu0 %v563_v40  ;;  %1092 = vmatmul.bf16.gmra.mxu2 %v549_v0  ;;  %v566_v40 = vpack.c.bf16 %v486_v29, %v478_v19  ;;  %v536_v0 = vpack.c.bf16 %v424_v33, %v416_v31  ;;  %v517_v29 = vld [vmem:[%s5571_s26 + $0x1690] sm:$0xff]  ;;  %v510_v31 = vld [vmem:[%s5571_s26 + $0x1518] sm:$0xff]  ;;  %v447_v33 = vld [vmem:[%s5571_s26 + $0x920] sm:$0xff] }
  0x7d   : > { %1141 = vmatmul.bf16.gmra.mxu3 %v550_v2  ;;  %v5068_v2 = vld [vmem:[%s9026_s1 + $0x1d8] sm:$0xff] }
  0x7e   : > { %1053 = vmatmul.bf16.gmra.mxu1 %v564_v41  ;;  %v5067_v41 = vld [vmem:[%s9026_s1 + $0x1d0] sm:$0xff] }
  0x8c   : > { %1097 = vmatmul.bf16.gmra.mxu2 %v557_v59  ;;  %1175 = vmatmul.bf16.vlgmr.msrb.gmra.mxu0 %v527_v6  ;;  %v440_v59 = vld [vmem:[%s5571_s26 + $0x7a8] sm:$0xff]  ;;  %v573_v6 = vpack.c.bf16 %v501_v43, %v493_v4 }
  0x8d   : > { %1146 = vmatmul.bf16.gmra.mxu3 %v558_v60  ;;  %v543_v60 = vpack.c.bf16 %v439_v56, %v431_v55  ;;  %v463_v56 = vld [vmem:[%s5571_s26 + $0xc20] sm:$0xff] }
  0x8e   : > { %1224 = vmatmul.bf16.vlgmr.msrb.gmra.mxu1 %v528_v61  ;;  %v5919_v61 = vld [vmem:[%s9026_s1 + $0x180] sm:$0xff] }
  0x8f   : > { %1828 = vmatpush.bf16.msrb.mxu1 %v5697_v20  ;;  %v5070_v20 = vld [vmem:[%s9026_s1 + $0x1e8] sm:$0xff] }
  0x90   : > { %1316 = vmatpush.bf16.msra.mxu3 %v5070_v20  ;;  %v544_v20 = vpack.c.bf16 %v440_v59, %v432_v58  ;;  %v401_v58 = vld [vmem:[%s5571_s26 + $0x30] sm:$0xff] }
  0x91   : > { %v409_v59 = vld [vmem:[%s5571_s26 + $0x1b0] sm:$0xff] }
  0x93   : > { %1829 = vmatpush.bf16.msrb.mxu1 %v5708_v22  ;;  %v5069_v22 = vld [vmem:[%s9026_s1 + $0x1e0] sm:$0xff] }
  0x94   : > { %1317 = vmatpush.bf16.msra.mxu3 %v5069_v22  ;;  %v456_v22 = vld [vmem:[%s5571_s26 + $0xaa8] sm:$0xff] }
  0x97   : > { %1830 = vmatpush.bf16.msrb.mxu1 %v5720_v25  ;;  %v5881_v25 = vld [vmem:[%s9026_s1 + $0x198] sm:$0xff] }
  0x98   : > { %1269 = vmatpush.bf16.msra.mxu2 %v5881_v25  ;;  %1318 = vmatpush.bf16.msra.mxu3 %v5068_v2 }
  0x9b   : > { %1831 = vmatpush.bf16.msrb.mxu1 %v5740_v38  ;;  %v5891_v38 = vld [vmem:[%s9026_s1 + $0x190] sm:$0xff] }
  0x9c   : > { %1102 = vmatmul.bf16.gmra.mxu2 %v565_v35  ;;  %1180 = vmatmul.bf16.gmra.mxu0 %v535_v36  ;;  %v455_v35 = vld [vmem:[%s5571_s26 + $0xaa0] sm:$0xff]  ;;  %v448_v36 = vld [vmem:[%s5571_s26 + $0x928] sm:$0xff] }
  0x9d   : > { %1151 = vmatmul.bf16.gmra.mxu3 %v566_v40  ;;  %1270 = vmatpush.bf16.msra.mxu2 %v5891_v38  ;;  %v551_v2 = vpack.c.bf16 %v455_v35, %v447_v33  ;;  %v479_v33 = vld [vmem:[%s5571_s26 + $0xf20] sm:$0xff]  ;;  %v417_v35 = vld [vmem:[%s5571_s26 + $0x330] sm:$0xff] }
  0x9e   : > { %1229 = vmatmul.bf16.gmra.mxu1 %v536_v0  ;;  %1319 = vmatpush.bf16.msra.mxu3 %v5067_v41 }
  0x9f   : > { %1832 = vmatpush.bf16.msrb.mxu1 %v5753_v45  ;;  %v5066_v45 = vld [vmem:[%s9026_s1 + $0x1c8] sm:$0xff] }
  0xa1   : > { %1271 = vmatpush.bf16.msra.mxu2 %v5900_v42 }
  0xa2   : > { %1320 = vmatpush.bf16.msra.mxu3 %v5066_v45  ;;  %v552_v45 = vpack.c.bf16 %v456_v22, %v448_v36  ;;  %v426_v36 = vld [vmem:[%s5571_s26 + $0x4b8] sm:$0xff]  ;;  %v480_v22 = vld [vmem:[%s5571_s26 + $0xf28] sm:$0xff] }
  0xa3   : > { %1833 = vmatpush.bf16.msrb.mxu1 %v5764_v47  ;;  %v5065_v47 = vld [vmem:[%s9026_s1 + $0x1c0] sm:$0xff] }
  0xa5   : > { %1272 = vmatpush.bf16.msra.mxu2 %v5919_v61 }
  0xa6   : > { %1321 = vmatpush.bf16.msra.mxu3 %v5065_v47  ;;  %v472_v47 = vld [vmem:[%s5571_s26 + $0xda8] sm:$0xff] }
  0xa7   : > { %1834 = vmatpush.bf16.msrb.mxu1 %v5776_v49 }
  0xa9   : > { %v980_v10 = vpop.f32.mrf.mxu0  ;;  %1681 = vmatpush.bf16.msrb.mxu2 %v5484_v1 }
  0xaa   : > { %1730 = vmatpush.bf16.msrb.mxu3 %v5605_v24 }
  0xab   : > { %v1029_v17 = vpop.f32.mrf.mxu1  ;;  %1835 = vmatpush.bf16.msrb.mxu1 %v5796_v62  ;;  %v509_v62 = vld [vmem:[%s5571_s26 + $0x1510] sm:$0xff] }
  0xac   : > { %v5925_v18 = vadd.f32 %v1029_v17, %v980_v10  ;;  %1107 = vmatmul.bf16.gmra.mxu2 %v573_v6  ;;  %1185 = vmatmul.bf16.gmra.mxu0 %v543_v60  ;;  %v581_v0 = vpack.c.bf16 %v517_v29, %v509_v62  ;;  %v402_v6 = vld [vmem:[%s5571_s26 + $0x38] sm:$0xff]  ;;  %v464_v60 = vld [vmem:[%s5571_s26 + $0xc28] sm:$0xff] }
  0xad   : > { %1156 = vmatmul.bf16.gmra.mxu3 %v574_v14  ;;  %1682 = vmatpush.bf16.msrb.mxu2 %v5498_v3  ;;  %v518_v3 = vld [vmem:[%s5571_s26 + $0x1698] sm:$0xff]  ;;  %v559_v14 = vpack.c.bf16 %v471_v57, %v463_v56  ;;  %v441_v56 = vld [vmem:[%s5571_s26 + $0x7b0] sm:$0xff] }
  0xae   : > { %1234 = vmatmul.bf16.gmra.mxu1 %v544_v20  ;;  %1731 = vmatpush.bf16.msrb.mxu3 %v5618_v30  ;;  %v529_v20 = vpack.c.bf16 %v409_v59, %v401_v58  ;;  %v442_v57 = vld [vmem:[%s5571_s26 + $0x7b8] sm:$0xff]  ;;  %v496_v58 = vld [vmem:[%s5571_s26 + $0x1228] sm:$0xff] }
  0xaf   : > { %v1010_v49 = vpop.f32.mrf.mxu2  ;;  %v504_v59 = vld [vmem:[%s5571_s26 + $0x13a8] sm:$0xff] }
  0xb0   : > { %v1059_v1 = vpop.f32.mrf.mxu3 }
  0xb1   : > { %v5932_v24 = vadd.f32 %v1059_v1, %v1010_v49  ;;  %v982_v19 = vpop.f32.mrf.mxu0  ;;  %1683 = vmatpush.bf16.msrb.mxu2 %v5512_v5  ;;  %v560_v49 = vpack.c.bf16 %v472_v47, %v464_v60 }
  0xb2   : > { %1732 = vmatpush.bf16.msrb.mxu3 %v5627_v32  ;;  %v582_v32 = vpack.c.bf16 %v518_v3, %v510_v31  ;;  %v425_v3 = vld [vmem:[%s5571_s26 + $0x4b0] sm:$0xff] }
  0xb3   : > { %v1031_v27 = vpop.f32.mrf.mxu1 }
  0xb4   : > { %v5934_v28 = vadd.f32 %v1031_v27, %v982_v19 }
  0xb5   : > { %1684 = vmatpush.bf16.msrb.mxu2 %v5527_v7 }
  0xb6   : > { %1733 = vmatpush.bf16.msrb.mxu3 %v5636_v34 }
  0xb7   : > { %v1012_v30 = vpop.f32.mrf.mxu2 }
  0xb8   : > { %v1061_v40 = vpop.f32.mrf.mxu3 }
  0xb9   : > { %v5948_v41 = vadd.f32 %v1061_v40, %v1012_v30  ;;  %v985_v5 = vpop.f32.mrf.mxu0  ;;  %1685 = vmatpush.bf16.msrb.mxu2 %v5544_v9  ;;  %v488_v30 = vld [vmem:[%s5571_s26 + $0x10a8] sm:$0xff] }
  0xba   : > { %1734 = vmatpush.bf16.msrb.mxu3 %v5653_v44 }
  0xbb   : > { %v1034_v4 = vpop.f32.mrf.mxu1 }
  0xbc   : > { %v5950_v43 = vadd.f32 %v1034_v4, %v985_v5  ;;  %1112 = vmatmul.bf16.gmra.mxu2 %v581_v0  ;;  %1190 = vmatmul.bf16.gmra.mxu0 %v551_v2 }
  0xbd   : > { %1161 = vmatmul.bf16.gmra.mxu3 %v582_v32  ;;  %1686 = vmatpush.bf16.msrb.mxu2 %v5559_v11  ;;  %v410_v11 = vld [vmem:[%s5571_s26 + $0x1b8] sm:$0xff]  ;;  %v568_v32 = vpack.c.bf16 %v488_v30, %v480_v22 }
  0xbe   : > { %1239 = vmatmul.bf16.gmra.mxu1 %v552_v45  ;;  %1735 = vmatpush.bf16.msrb.mxu3 %v5662_v50 }
  0xbf   : > { %v1015_v7 = vpop.f32.mrf.mxu2 }
  0xc0   : > { %v1064_v9 = vpop.f32.mrf.mxu3 }
  0xc1   : > { %v5956_v34 = vadd.f32 %v1064_v9, %v1015_v7  ;;  %v987_v44 = vpop.f32.mrf.mxu0  ;;  %1687 = vmatpush.bf16.msrb.mxu2 %v5578_v13 }
  0xc2   : > { %1736 = vmatpush.bf16.msrb.mxu3 %v5671_v52  ;;  %v530_v52 = vpack.c.bf16 %v410_v11, %v402_v6 }
  0xc3   : > { %v1036_v53 = vpop.f32.mrf.mxu1 }
  0xc4   : > { %v5958_v55 = vadd.f32 %v1036_v53, %v987_v44  ;;  %v495_v44 = vld [vmem:[%s5571_s26 + $0x1220] sm:$0xff]  ;;  %v433_v53 = vld [vmem:[%s5571_s26 + $0x630] sm:$0xff] }
  0xc5   : > { %1688 = vmatpush.bf16.msrb.mxu2 %v5588_v15 }
  0xc6   : > { %1737 = vmatpush.bf16.msrb.mxu3 %v5680_v54 }
  0xc7   : > { %v1017_v50 = vpop.f32.mrf.mxu2 }
  0xc8   : > { %v1066_v10 = vpop.f32.mrf.mxu3 }
  0xc9   : > { %v5972_v17 = vadd.f32 %v1066_v10, %v1017_v50  ;;  %v990_v13 = vpop.f32.mrf.mxu0  ;;  %v576_v50 = vpack.c.bf16 %v504_v59, %v496_v58 }
  0xcb   : > { %v1039_v1 = vpop.f32.mrf.mxu1 }
  0xcc   : > { %v5974_v19 = vadd.f32 %v1039_v1, %v990_v13  ;;  %1195 = vmatmul.bf16.gmra.mxu0 %v559_v14  ;;  %1273 = vmatmul.bf16.vlgmr.msra.gmra.mxu2 %v529_v20  ;;  %v519_v1 = vld [vmem:[%s5571_s26 + $0x16a0] sm:$0xff] }
  0xcd   : > { %1322 = vmatmul.bf16.vlgmr.msra.gmra.mxu3 %v530_v52  ;;  %1877 = vmatpush.bf16.msra.mxu2 %v5702_v21  ;;  %v487_v21 = vld [vmem:[%s5571_s26 + $0x10a0] sm:$0xff] }
  0xce   : > { %1244 = vmatmul.bf16.gmra.mxu1 %v560_v49  ;;  %1926 = vmatpush.bf16.msra.mxu3 %v5833_v8  ;;  %v418_v8 = vld [vmem:[%s5571_s26 + $0x338] sm:$0xff]  ;;  %v567_v2 = vpack.c.bf16 %v487_v21, %v479_v33  ;;  %v511_v49 = vld [vmem:[%s5571_s26 + $0x1520] sm:$0xff]  ;;  %v512_v21 = vld [vmem:[%s5571_s26 + $0x1528] sm:$0xff] }
  0xcf   : > { %v1078_v15 = vpop.f32.mrf.mxu2  ;;  %v458_v33 = vld [vmem:[%s5571_s26 + $0xab8] sm:$0xff] }
  0xd0   : > { %v1079_v54 = vadd.f32 %v1078_v15, %v5925_v18  ;;  %v1127_v27 = vpop.f32.mrf.mxu3  ;;  %v449_v15 = vld [vmem:[%s5571_s26 + $0x930] sm:$0xff] }
  0xd1   : > { %v5979_v62 = vpop.f32.mrf.mxu0  ;;  %1878 = vmatpush.bf16.msra.mxu2 %v5714_v23  ;;  %v537_v23 = vpack.c.bf16 %v425_v3, %v417_v35  ;;  %v520_v35 = vld [vmem:[%s5571_s26 + $0x16a8] sm:$0xff] }
  0xd2   : > { %v5981_v29 = vadd.f32 %v1127_v27, %v1079_v54  ;;  %1927 = vmatpush.bf16.msra.mxu3 %v5843_v12  ;;  %v538_v12 = vpack.c.bf16 %v426_v36, %v418_v8  ;;  %v457_v54 = vld [vmem:[%s5571_s26 + $0xab0] sm:$0xff]  ;;  %v450_v27 = vld [vmem:[%s5571_s26 + $0x938] sm:$0xff]  ;;  %v583_v36 = vpack.c.bf16 %v519_v1, %v511_v49 }
  0xd3   : > { %v5983_v31 = vpop.f32.mrf.mxu1  ;;  %v553_v22 = vpack.c.bf16 %v457_v54, %v449_v15 }
  0xd5   : > { %1879 = vmatpush.bf16.msra.mxu2 %v5726_v26 }
  0xd6   : > { %1928 = vmatpush.bf16.msra.mxu3 %v5852_v16 }
  0xd7   : > { %v1080_v18 = vpop.f32.mrf.mxu2 }
  0xd8   : > { %v1081_v40 = vadd.f32 %v1080_v18, %v5934_v28  ;;  %v1129_v0 = vpop.f32.mrf.mxu3  ;;  %v554_v18 = vpack.c.bf16 %v458_v33, %v450_v27 }
  0xd9   : > { %v995_v5 = vpop.f32.mrf.mxu0  ;;  %1880 = vmatpush.bf16.msra.mxu2 %v5746_v39 }
  0xda   : > { %v5998_v45 = vadd.f32 %v1129_v0, %v1081_v40  ;;  %1929 = vmatpush.bf16.msra.mxu3 %v5871_v37  ;;  %v584_v40 = vpack.c.bf16 %v520_v35, %v512_v21 }
  0xdb   : > { %v1044_v4 = vpop.f32.mrf.mxu1 }
  0xdc   : > { %v6002_v26 = vadd.f32 %v1044_v4, %v995_v5  ;;  %1200 = vmatmul.bf16.gmra.mxu0 %v567_v2  ;;  %1278 = vmatmul.bf16.gmra.mxu2 %v537_v23 }
  0xdd   : > { %1327 = vmatmul.bf16.gmra.mxu3 %v538_v12  ;;  %1881 = vmatpush.bf16.msra.mxu2 %v5758_v46  ;;  %v503_v46 = vld [vmem:[%s5571_s26 + $0x13a0] sm:$0xff] }
  0xde   : > { %1249 = vmatmul.bf16.gmra.mxu1 %v568_v32  ;;  %1930 = vmatpush.bf16.msra.mxu3 %v5881_v25  ;;  %v434_v25 = vld [vmem:[%s5571_s26 + $0x638] sm:$0xff]  ;;  %v575_v60 = vpack.c.bf16 %v503_v46, %v495_v44 }
  0xdf   : > { %v1083_v39 = vpop.f32.mrf.mxu2  ;;  %v466_v44 = vld [vmem:[%s5571_s26 + $0xc38] sm:$0xff] }
  0xe0   : > { %v1084_v16 = vadd.f32 %v1083_v39, %v5950_v43  ;;  %v1132_v37 = vpop.f32.mrf.mxu3  ;;  %v474_v46 = vld [vmem:[%s5571_s26 + $0xdb8] sm:$0xff] }
  0xe1   : > { %v6007_v28 = vpop.f32.mrf.mxu0  ;;  %1882 = vmatpush.bf16.msra.mxu2 %v5770_v48  ;;  %v545_v48 = vpack.c.bf16 %v441_v56, %v433_v53  ;;  %v562_v58 = vpack.c.bf16 %v474_v46, %v466_v44 }
  0xe2   : > { %v6009_v7 = vadd.f32 %v1132_v37, %v1084_v16  ;;  %1931 = vmatpush.bf16.msra.mxu3 %v5891_v38  ;;  %v546_v38 = vpack.c.bf16 %v442_v57, %v434_v25  ;;  %v465_v16 = vld [vmem:[%s5571_s26 + $0xc30] sm:$0xff] }
  0xe3   : > { %v6011_v9 = vpop.f32.mrf.mxu1  ;;  %v473_v37 = vld [vmem:[%s5571_s26 + $0xdb0] sm:$0xff] }
  0xe4   : > { %v1047_v39 = vadd.f32 %v6011_v9, %v6007_v28  ;;  %v561_v57 = vpack.c.bf16 %v473_v37, %v465_v16 }
  0xe5   : > { %1883 = vmatpush.bf16.msra.mxu2 %v5782_v51 }
  0xe6   : > { %1932 = vmatpush.bf16.msra.mxu3 %v5900_v42 }
  0xe7   : > { %v1085_v43 = vpop.f32.mrf.mxu2 }
  0xe8   : > { %v1086_v6 = vadd.f32 %v1085_v43, %v5958_v55  ;;  %v1134_v11 = vpop.f32.mrf.mxu3 }
  0xe9   : > { %v1000_v47 = vpop.f32.mrf.mxu0  ;;  %1884 = vmatpush.bf16.msra.mxu2 %v5802_v63 }
  0xea   : > { %v6026_v10 = vadd.f32 %v1134_v11, %v1086_v6  ;;  %1933 = vmatpush.bf16.msra.mxu3 %v5919_v61  ;;  %v1042_v61 = vadd.f32 %v5983_v31, %v5979_v62 }
  0xeb   : > { %v1049_v14 = vpop.f32.mrf.mxu1 }
  0xec   : > { %v1050_v51 = vadd.f32 %v1049_v14, %v1000_v47  ;;  %1205 = vmatmul.bf16.gmra.mxu0 %v575_v60  ;;  %1283 = vmatmul.bf16.gmra.mxu2 %v545_v48  ;;  %v489_v14 = vld [vmem:[%s5571_s26 + $0x10b0] sm:$0xff] }
  0xed   : > { %1332 = vmatmul.bf16.gmra.mxu3 %v546_v38 }
  0xee   : > { %1254 = vmatmul.bf16.gmra.mxu1 %v576_v50  ;;  %v481_v50 = vld [vmem:[%s5571_s26 + $0xf30] sm:$0xff] }
  0xef   : > { %v1088_v42 = vpop.f32.mrf.mxu2 }
  0xf0   : > { %v1089_v55 = vadd.f32 %v1088_v42, %v5974_v19  ;;  %v1137_v20 = vpop.f32.mrf.mxu3  ;;  %v482_v42 = vld [vmem:[%s5571_s26 + $0xf38] sm:$0xff] }
  0xf1   : > { %v6031_v13 = vpop.f32.mrf.mxu0 }
  0xf2   : > { %v6033_v63 = vadd.f32 %v1137_v20, %v1089_v55  ;;  %v490_v55 = vld [vmem:[%s5571_s26 + $0x10b8] sm:$0xff] }
  0xf3   : > { %v6035_v52 = vpop.f32.mrf.mxu1  ;;  %v570_v49 = vpack.c.bf16 %v490_v55, %v482_v42 }
  0xf7   : > { %v1090_v3 = vpop.f32.mrf.mxu2 }
  0xf8   : > { %v1091_v19 = vadd.f32 %v1090_v3, %v1042_v61  ;;  %v1139_v8 = vpop.f32.mrf.mxu3  ;;  %v569_v61 = vpack.c.bf16 %v489_v14, %v481_v50 }
  0xf9   : > { %v1005_v30 = vpop.f32.mrf.mxu0 }
  0xfa   : > { %v6047_v0 = vadd.f32 %v1139_v8, %v1091_v19  ;;  %v497_v8 = vld [vmem:[%s5571_s26 + $0x1230] sm:$0xff] }
  0xfb   : > { %v1054_v62 = vpop.f32.mrf.mxu1 }
  0xfc   : > { %v1055_v31 = vadd.f32 %v1054_v62, %v1005_v30  ;;  %1210 = vmatmul.bf16.gmra.mxu0 %v583_v36  ;;  %1288 = vmatmul.bf16.gmra.mxu2 %v553_v22  ;;  %v505_v36 = vld [vmem:[%s5571_s26 + $0x13b0] sm:$0xff]  ;;  %v498_v22 = vld [vmem:[%s5571_s26 + $0x1238] sm:$0xff] }
  0xfd   : > { %1337 = vmatmul.bf16.gmra.mxu3 %v554_v18  ;;  %v506_v30 = vld [vmem:[%s5571_s26 + $0x13b8] sm:$0xff] }
  0xfe   : > { %1259 = vmatmul.bf16.gmra.mxu1 %v584_v40  ;;  %v577_v40 = vpack.c.bf16 %v505_v36, %v497_v8 }
  0xff   : > { %v1093_v2 = vpop.f32.mrf.mxu2 }
 0x100   : > { %v1094_v23 = vadd.f32 %v1093_v2, %v6002_v26  ;;  %v1142_v5 = vpop.f32.mrf.mxu3 }
 0x101   : > { %v6050_v12 = vpop.f32.mrf.mxu0 }
 0x102   : > { %v6052_v32 = vadd.f32 %v1142_v5, %v1094_v23 }
 0x103   : > { %v6054_v4 = vpop.f32.mrf.mxu1 }
 0x107   : > { %v1095_v53 = vpop.f32.mrf.mxu2 }
 0x108   : > { %v1096_v56 = vadd.f32 %v1095_v53, %v1047_v39  ;;  %v1144_v25 = vpop.f32.mrf.mxu3 }
 0x109   : > { %v1176_v26 = vpop.f32.mrf.mxu0 }
 0x10a   : > { %v6062_v59 = vadd.f32 %v1144_v25, %v1096_v56  ;;  %v1177_v43 = vadd.f32 %v1176_v26, %v5981_v29  ;;  %v513_v56 = vld [vmem:[%s5571_s26 + $0x1530] sm:$0xff]  ;;  %v522_v26 = vld [vmem:[%s5571_s26 + $0x16b8] sm:$0xff] }
 0x10b   : > { %v1225_v6 = vpop.f32.mrf.mxu1  ;;  %v521_v25 = vld [vmem:[%s5571_s26 + $0x16b0] sm:$0xff] }
 0x10c   : > { %v6065_v28 = vadd.f32 %v1225_v6, %v1177_v43  ;;  %1293 = vmatmul.bf16.gmra.mxu2 %v561_v57  ;;  %v514_v57 = vld [vmem:[%s5571_s26 + $0x1538] sm:$0xff] }
 0x10d   : > { %1342 = vmatmul.bf16.gmra.mxu3 %v562_v58 }
 0x10f   : > { %v1098_v9 = vpop.f32.mrf.mxu2 }
 0x110   : > { %v1099_v11 = vadd.f32 %v1098_v9, %v1050_v51  ;;  %v1147_v60 = vpop.f32.mrf.mxu3  ;;  %v586_v9 = vpack.c.bf16 %v522_v26, %v514_v57 }
 0x111   : > { %v6067_v48 = vpop.f32.mrf.mxu0 }
 0x112   : > { %v6069_v47 = vadd.f32 %v1147_v60, %v1099_v11 }
 0x113   : > { %v6071_v38 = vpop.f32.mrf.mxu1 }
 0x117   : > { %v6077_v20 = vpop.f32.mrf.mxu2 }
 0x118   : > { %v6079_v29 = vpop.f32.mrf.mxu3 }
 0x119   : > { %v1181_v51 = vpop.f32.mrf.mxu0 }
 0x11a   : > { %v1182_v1 = vadd.f32 %v1181_v51, %v6009_v7 }
 0x11b   : > { %v1230_v15 = vpop.f32.mrf.mxu1 }
 0x11c   : > { %v6082_v54 = vadd.f32 %v1230_v15, %v1182_v1  ;;  %1298 = vmatmul.bf16.gmra.mxu2 %v569_v61 }
 0x11d   : > { %1347 = vmatmul.bf16.gmra.mxu3 %v570_v49 }
 0x11f   : > { %v1103_v27 = vpop.f32.mrf.mxu2 }
 0x120   : > { %v1104_v33 = vadd.f32 %v1103_v27, %v1055_v31  ;;  %v1152_v21 = vpop.f32.mrf.mxu3  ;;  %v578_v31 = vpack.c.bf16 %v506_v30, %v498_v22 }
 0x121   : > { %v6084_v35 = vpop.f32.mrf.mxu0 }
 0x122   : > { %v6086_v3 = vadd.f32 %v1152_v21, %v1104_v33 }
 0x123   : > { %v6088_v19 = vpop.f32.mrf.mxu1 }
 0x127   : > { %v6094_v18 = vpop.f32.mrf.mxu2 }
 0x128   : > { %v6096_v7 = vpop.f32.mrf.mxu3 }
 0x129   : > { %v1186_v62 = vpop.f32.mrf.mxu0 }
 0x12a   : > { %v1187_v2 = vadd.f32 %v1186_v62, %v6033_v63  ;;  %v585_v63 = vpack.c.bf16 %v521_v25, %v513_v56 }
 0x12b   : > { %v1235_v23 = vpop.f32.mrf.mxu1 }
 0x12c   : > { %v1236_v5 = vadd.f32 %v1235_v23, %v1187_v2  ;;  %1303 = vmatmul.bf16.gmra.mxu2 %v577_v40 }
 0x12d   : > { %1352 = vmatmul.bf16.gmra.mxu3 %v578_v31 }
 0x12f   : > { %v1108_v39 = vpop.f32.mrf.mxu2 }
 0x130   : > { %v1109_v16 = vadd.f32 %v1108_v39, %v5932_v24  ;;  %v1157_v37 = vpop.f32.mrf.mxu3 }
 0x131   : > { %v1188_v44 = vpop.f32.mrf.mxu0 }
 0x132   : > { %v6100_v46 = vadd.f32 %v1157_v37, %v1109_v16  ;;  %v1184_v16 = vadd.f32 %v6084_v35, %v6026_v10 }
 0x133   : > { %v1237_v53 = vpop.f32.mrf.mxu1 }
 0x137   : > { %v6106_v58 = vpop.f32.mrf.mxu2 }
 0x138   : > { %v6108_v43 = vpop.f32.mrf.mxu3 }
 0x139   : > { %v1191_v6 = vpop.f32.mrf.mxu0 }
 0x13a   : > { %v1192_v11 = vadd.f32 %v1191_v6, %v6052_v32 }
 0x13b   : > { %v1240_v60 = vpop.f32.mrf.mxu1 }
 0x13c   : > { %v1241_v24 = vadd.f32 %v1240_v60, %v1192_v11  ;;  %1308 = vmatmul.bf16.gmra.mxu2 %v585_v63 }
 0x13d   : > { %1357 = vmatmul.bf16.gmra.mxu3 %v586_v9 }
 0x13f   : > { %v1113_v50 = vpop.f32.mrf.mxu2 }
 0x140   : > { %v1114_v14 = vadd.f32 %v1113_v50, %v5956_v34  ;;  %v1162_v42 = vpop.f32.mrf.mxu3  ;;  %v1179_v34 = vadd.f32 %v6067_v48, %v5998_v45  ;;  %v1233_v48 = vadd.f32 %v6088_v19, %v1184_v16 }
 0x141   : > { %v1193_v55 = vpop.f32.mrf.mxu0 }
 0x142   : > { %v6112_v61 = vadd.f32 %v1162_v42, %v1114_v14  ;;  %v1228_v30 = vadd.f32 %v6071_v38, %v1179_v34  ;;  %v1449_v34 = vld [vmem:[%s5571_s26 + $0x1c8] sm:$0xff] }
 0x143   : > { %v1242_v51 = vpop.f32.mrf.mxu1 }
 0x147   : > { %v6114_v49 = vpop.f32.mrf.mxu2 }
 0x148   : > { %v6116_v1 = vpop.f32.mrf.mxu3 }
 0x149   : > { %v1196_v15 = vpop.f32.mrf.mxu0 }
 0x14a   : > { %v1197_v27 = vadd.f32 %v1196_v15, %v6069_v47 }
 0x14b   : > { %v1245_v32 = vpop.f32.mrf.mxu1 }
 0x14c   : > { %v6119_v33 = vadd.f32 %v1245_v32, %v1197_v27 }
 0x14f   : > { %v1274_v21 = vpop.f32.mrf.mxu2 }
 0x150   : > { %v1275_v8 = vadd.f32 %v1274_v21, %v6065_v28  ;;  %v1323_v36 = vpop.f32.mrf.mxu3 }
 0x152   : > { %v6124_v22 = vadd.f32 %v1323_v36, %v1275_v8  ;;  %v1441_v36 = vld [vmem:[%s5571_s26 + $0x48] sm:$0xff] }
 0x153   : > { %v6153_v27 = vpop.f32.mrf.mxu1 }
 0x157   : > { %v1276_v40 = vpop.f32.mrf.mxu2 }
 0x158   : > { %v1277_v62 = vadd.f32 %v1276_v40, %v1228_v30  ;;  %v1325_v31 = vpop.f32.mrf.mxu3  ;;  %v1442_v40 = vld [vmem:[%s5571_s26 + $0x50] sm:$0xff] }
 0x15a   : > { %v6127_v2 = vadd.f32 %v1325_v31, %v1277_v62  ;;  %v1450_v62 = vld [vmem:[%s5571_s26 + $0x1d0] sm:$0xff] }
 0x15c   : > { %v1363_v47 = vpack.c.bf16 %v6127_v2, %v6124_v22  ;;  %v5136_v22 = vld [vmem:[%s9026_s1 + $0xf0] sm:$0xff]  ;;  %v5137_v2 = vld [vmem:[%s9026_s1 + $0xe8] sm:$0xff] }
 0x15f   : > { %v1279_v23 = vpop.f32.mrf.mxu2 }
 0x160   : > { %v1280_v39 = vadd.f32 %v1279_v23, %v6082_v54  ;;  %v1328_v28 = vpop.f32.mrf.mxu3  ;;  %v1189_v54 = vadd.f32 %v1188_v44, %v6047_v0  ;;  %v1194_v0 = vadd.f32 %v1193_v55, %v6062_v59  ;;  %v1570_v55 = vpack.c.bf16 %v1450_v62, %v1442_v40  ;;  %v1448_v23 = vld [vmem:[%s5571_s26 + $0x1c0] sm:$0xff] }
 0x162   : > { %v6134_v45 = vadd.f32 %v1328_v28, %v1280_v39  ;;  %v1238_v10 = vadd.f32 %v1237_v53, %v1189_v54  ;;  %v6151_v53 = vpop.f32.mrf.mxu0  ;;  %v1243_v15 = vadd.f32 %v1242_v51, %v1194_v0  ;;  %v1440_v51 = vld [vmem:[%s5571_s26 + $0x40] sm:$0xff]  ;;  %v5119_v39 = vld [vmem:[%s9026_s1 + $0x38] sm:$0xff]  ;;  %1738 = vmatmul.bf16.vlgmr.msrb.gmra.mxu3 %v1570_v55 }
 0x163   : > { %v1568_v28 = vpack.c.bf16 %v1448_v23, %v1440_v51  ;;  %v5128_v55 = vld [vmem:[%s9026_s1 + $0x58] sm:$0xff] }
 0x165   : > { %1640 = vmatmul.bf16.vlgmr.msra.gmra.mxu1 %v1568_v28  ;;  %v5130_v28 = vld [vmem:[%s9026_s1 + $0x50] sm:$0xff] }
 0x167   : > { %v1281_v38 = vpop.f32.mrf.mxu2 }
 0x168   : > { %v1282_v37 = vadd.f32 %v1281_v38, %v1233_v48  ;;  %v1330_v56 = vpop.f32.mrf.mxu3  ;;  %v5120_v48 = vld [vmem:[%s9026_s1 + $0x78] sm:$0xff] }
 0x169   : > { %2318 = vmatpush.bf16.msrb.mxu3 %v5120_v48  ;;  %v5131_v48 = vld [vmem:[%s9026_s1 + $0x8] sm:$0xff] }
 0x16a   : > { %v6137_v25 = vadd.f32 %v1330_v56, %v1282_v37  ;;  %v6163_v31 = vpop.f32.mrf.mxu0  ;;  %v6174_v56 = vpop.f32.mrf.mxu1 }
 0x16c   : > { %v1364_v57 = vpack.c.bf16 %v6137_v25, %v6134_v45  ;;  %v1536_v25 = vld [vmem:[%s5571_s26 + $0x1240] sm:$0xff] }
 0x16f   : > { %v1284_v26 = vpop.f32.mrf.mxu2 }
 0x170   : > { %v1285_v63 = vadd.f32 %v1284_v26, %v1236_v5  ;;  %v1333_v6 = vpop.f32.mrf.mxu3  ;;  %v5121_v26 = vld [vmem:[%s9026_s1 + $0x30] sm:$0xff] }
 0x172   : > { %v6142_v9 = vadd.f32 %v1333_v6, %v1285_v63  ;;  %v5122_v6 = vld [vmem:[%s9026_s1 + $0x70] sm:$0xff]  ;;  %v6187_v54 = vpop.f32.mrf.mxu0  ;;  %v6201_v0 = vpop.f32.mrf.mxu1 }
 0x173   : > { %2319 = vmatpush.bf16.msrb.mxu3 %v5122_v6  ;;  %v1473_v6 = vld [vmem:[%s5571_s26 + $0x648] sm:$0xff] }
 0x177   : > { %v1286_v35 = vpop.f32.mrf.mxu2 }
 0x178   : > { %v1287_v11 = vadd.f32 %v1286_v35, %v1238_v10  ;;  %v1335_v19 = vpop.f32.mrf.mxu3  ;;  %v5124_v35 = vld [vmem:[%s9026_s1 + $0x68] sm:$0xff] }
 0x179   : > { %2320 = vmatpush.bf16.msrb.mxu3 %v5124_v35  ;;  %v5133_v35 = vld [vmem:[%s9026_s1] sm:$0xff] }
 0x17a   : > { %v6144_v60 = vadd.f32 %v1335_v19, %v1287_v11  ;;  %v1457_v19 = vld [vmem:[%s5571_s26 + $0x348] sm:$0xff]  ;;  %v1206_v23 = vpop.f32.mrf.mxu0 }
 0x17c   : > { %v1365_v50 = vpack.c.bf16 %v6144_v60, %v6142_v9  ;;  %v1546_v9 = vld [vmem:[%s5571_s26 + $0x13d0] sm:$0xff]  ;;  %v5135_v60 = vld [vmem:[%s9026_s1 + $0xf8] sm:$0xff] }
 0x17f   : > { %v1289_v14 = vpop.f32.mrf.mxu2 }
 0x180   : > { %v1290_v5 = vadd.f32 %v1289_v14, %v1241_v24  ;;  %v1338_v42 = vpop.f32.mrf.mxu3  ;;  %v1569_v24 = vpack.c.bf16 %v1449_v34, %v1441_v36  ;;  %v1465_v14 = vld [vmem:[%s5571_s26 + $0x4c8] sm:$0xff]  ;;  %v1456_v36 = vld [vmem:[%s5571_s26 + $0x340] sm:$0xff] }
 0x181   : > { %v1464_v34 = vld [vmem:[%s5571_s26 + $0x4c0] sm:$0xff] }
 0x182   : > { %v6149_v44 = vadd.f32 %v1338_v42, %v1290_v5  ;;  %1689 = vmatmul.bf16.vlgmr.msrb.gmra.mxu2 %v1569_v24  ;;  %v5125_v5 = vld [vmem:[%s9026_s1 + $0x20] sm:$0xff]  ;;  %v1577_v42 = vpack.c.bf16 %v1465_v14, %v1457_v19  ;;  %v5127_v24 = vld [vmem:[%s9026_s1 + $0x18] sm:$0xff]  ;;  %v1576_v40 = vpack.c.bf16 %v1464_v34, %v1456_v36  ;;  %v1208_v14 = vpop.f32.mrf.mxu0 }
 0x183   : > { %2269 = vmatpush.bf16.msrb.mxu2 %v5119_v39  ;;  %v5129_v39 = vld [vmem:[%s9026_s1 + $0x10] sm:$0xff]  ;;  %v1480_v36 = vld [vmem:[%s5571_s26 + $0x7c0] sm:$0xff] }
 0x184   : > { %1645 = vmatmul.bf16.gmra.mxu1 %v1576_v40 }
 0x187   : > { %v1291_v32 = vpop.f32.mrf.mxu2  ;;  %2270 = vmatpush.bf16.msrb.mxu2 %v5121_v26 }
 0x188   : > { %v1292_v21 = vadd.f32 %v1291_v32, %v1243_v15  ;;  %v1340_v8 = vpop.f32.mrf.mxu3  ;;  %v1458_v15 = vld [vmem:[%s5571_s26 + $0x350] sm:$0xff] }
 0x189   : > { %v1466_v32 = vld [vmem:[%s5571_s26 + $0x4d0] sm:$0xff] }
 0x18a   : > { %v6157_v30 = vadd.f32 %v1340_v8, %v1292_v21  ;;  %v5126_v21 = vld [vmem:[%s9026_s1 + $0x60] sm:$0xff]  ;;  %v1578_v8 = vpack.c.bf16 %v1466_v32, %v1458_v15  ;;  %v1111_v32 = vadd.f32 %v6106_v58, %v5948_v41  ;;  %v1211_v58 = vpop.f32.mrf.mxu0 }
 0x18b   : > { %2321 = vmatpush.bf16.msrb.mxu3 %v5126_v21  ;;  %v5134_v15 = vld [vmem:[%s9026_s1 + $0x40] sm:$0xff] }
 0x18c   : > { %v1366_v59 = vpack.c.bf16 %v6157_v30, %v6149_v44  ;;  %1743 = vmatmul.bf16.gmra.mxu3 %v1578_v8  ;;  %v1472_v8 = vld [vmem:[%s5571_s26 + $0x640] sm:$0xff]  ;;  %v1538_v30 = vld [vmem:[%s5571_s26 + $0x1250] sm:$0xff] }
 0x18d   : > { %v1584_v34 = vpack.c.bf16 %v1480_v36, %v1472_v8  ;;  %v5073_v44 = vld [vmem:[%s9027_s2] sm:$0xff]  ;;  %v1618_v45 = vpack.c.bf16 %v1546_v9, %v1538_v30  ;;  %v5156_v30 = vld [vmem:[%s9026_s1 + $0x1d0] sm:$0xff] }
 0x18f   : > { %v1294_v16 = vpop.f32.mrf.mxu2  ;;  %2322 = vmatpush.bf16.msrb.mxu3 %v5128_v55  ;;  %v1160_v55 = vadd.f32 %v6108_v43, %v1111_v32 }
 0x190   : > { %v1295_v38 = vadd.f32 %v1294_v16, %v6119_v33  ;;  %v1343_v37 = vpop.f32.mrf.mxu3  ;;  %v5123_v33 = vld [vmem:[%s9026_s1 + $0x28] sm:$0xff]  ;;  %v1255_v16 = vpop.f32.mrf.mxu1 }
 0x191   : > { %2271 = vmatpush.bf16.msrb.mxu2 %v5123_v33  ;;  %v1481_v33 = vld [vmem:[%s5571_s26 + $0x7c8] sm:$0xff] }
 0x192   : > { %v6179_v63 = vadd.f32 %v1343_v37, %v1295_v38  ;;  %1694 = vmatmul.bf16.gmra.mxu2 %v1577_v42  ;;  %v5132_v37 = vld [vmem:[%s9026_s1 + $0x48] sm:$0xff]  ;;  %v1585_v19 = vpack.c.bf16 %v1481_v33, %v1473_v6  ;;  %v1482_v42 = vld [vmem:[%s5571_s26 + $0x7d0] sm:$0xff] }
 0x193   : > { %2323 = vmatpush.bf16.msrb.mxu3 %v5130_v28 }
 0x194   : > { %1650 = vmatmul.bf16.gmra.mxu1 %v1584_v34  ;;  %v1488_v34 = vld [vmem:[%s5571_s26 + $0x940] sm:$0xff] }
 0x195   : > { %2272 = vmatpush.bf16.msrb.mxu2 %v5125_v5  ;;  %v1474_v5 = vld [vmem:[%s5571_s26 + $0x650] sm:$0xff] }
 0x196   : > { %v1586_v21 = vpack.c.bf16 %v1482_v42, %v1474_v5  ;;  %v1489_v42 = vld [vmem:[%s5571_s26 + $0x948] sm:$0xff] }
 0x197   : > { %v6189_v10 = vpop.f32.mrf.mxu2  ;;  %2324 = vmatpush.bf16.msrb.mxu3 %v5132_v37 }
 0x198   : > { %v6194_v11 = vpop.f32.mrf.mxu3 }
 0x199   : > { %2273 = vmatpush.bf16.msrb.mxu2 %v5127_v24  ;;  %v1257_v24 = vpop.f32.mrf.mxu1 }
 0x19b   : > { %2325 = vmatpush.bf16.msrb.mxu3 %v5134_v15  ;;  %v1497_v15 = vld [vmem:[%s5571_s26 + $0xac8] sm:$0xff] }
 0x19c   : > { %1748 = vmatmul.bf16.gmra.mxu3 %v1586_v21  ;;  %v1498_v21 = vld [vmem:[%s5571_s26 + $0xad0] sm:$0xff] }
 0x19d   : > { %2274 = vmatpush.bf16.msrb.mxu2 %v5129_v39  ;;  %v1207_v39 = vadd.f32 %v1206_v23, %v6100_v46  ;;  %v1593_v46 = vpack.c.bf16 %v1497_v15, %v1489_v42  ;;  %v1490_v23 = vld [vmem:[%s5571_s26 + $0x950] sm:$0xff] }
 0x19e   : > { %v1594_v8 = vpack.c.bf16 %v1498_v21, %v1490_v23  ;;  %v1512_v21 = vld [vmem:[%s5571_s26 + $0xdc0] sm:$0xff] }
 0x19f   : > { %v6213_v62 = vpop.f32.mrf.mxu2  ;;  %v1256_v41 = vadd.f32 %v1255_v16, %v1207_v39  ;;  %v1057_v16 = vadd.f32 %v6054_v4, %v6050_v12  ;;  %v1213_v39 = vpop.f32.mrf.mxu0  ;;  %v1212_v12 = vadd.f32 %v1211_v58, %v6112_v61  ;;  %v1202_v58 = vadd.f32 %v6163_v31, %v6086_v3 }
 0x1a0   : > { %v6218_v51 = vpop.f32.mrf.mxu3 }
 0x1a1   : > { %2275 = vmatpush.bf16.msrb.mxu2 %v5131_v48  ;;  %v1209_v48 = vadd.f32 %v1208_v14, %v1160_v55  ;;  %v1260_v5 = vpop.f32.mrf.mxu1  ;;  %v1116_v14 = vadd.f32 %v6114_v49, %v5972_v17  ;;  %v1052_v55 = vadd.f32 %v6035_v52, %v6031_v13 }
 0x1a2   : > { %1699 = vmatmul.bf16.gmra.mxu2 %v1585_v19 }
 0x1a3   : > { %v1258_v37 = vadd.f32 %v1257_v24, %v1209_v48  ;;  %v1496_v24 = vld [vmem:[%s5571_s26 + $0xac0] sm:$0xff]  ;;  %v1106_v48 = vadd.f32 %v6094_v18, %v1057_v16  ;;  %v1101_v49 = vadd.f32 %v6077_v20, %v1052_v55 }
 0x1a5   : > { %2276 = vmatpush.bf16.msrb.mxu2 %v5133_v35 }
 0x1a7   : > { %v6229_v38 = vpop.f32.mrf.mxu2 }
 0x1a8   : > { %v6234_v26 = vpop.f32.mrf.mxu3 }
 0x1ac   : > { %1753 = vmatmul.bf16.gmra.mxu3 %v1594_v8 }
 0x1af   : > { %v1304_v40 = vpop.f32.mrf.mxu2 }
 0x1b0   : > { %v1353_v28 = vpop.f32.mrf.mxu3  ;;  %v1305_v6 = vadd.f32 %v1304_v40, %v1256_v41  ;;  %v1592_v40 = vpack.c.bf16 %v1496_v24, %v1488_v34  ;;  %v1165_v41 = vadd.f32 %v6116_v1, %v1116_v14  ;;  %v1150_v1 = vadd.f32 %v6079_v29, %v1101_v49  ;;  %v1521_v24 = vld [vmem:[%s5571_s26 + $0xf48] sm:$0xff]  ;;  %v1562_v49 = vld [vmem:[%s5571_s26 + $0x16d0] sm:$0xff] }
 0x1b1   : > { %v1251_v29 = vadd.f32 %v6174_v56, %v1202_v58  ;;  %v1453_v58 = vld [vmem:[%s5571_s26 + $0x1e8] sm:$0xff] }
 0x1b2   : > { %v1354_v43 = vadd.f32 %v1353_v28, %v1305_v6  ;;  %1704 = vmatmul.bf16.gmra.mxu2 %v1593_v46  ;;  %1655 = vmatmul.bf16.gmra.mxu1 %v1592_v40  ;;  %v1214_v17 = vadd.f32 %v1213_v39, %v1165_v41  ;;  %v1155_v6 = vadd.f32 %v6096_v7, %v1106_v48  ;;  %v1505_v7 = vld [vmem:[%s5571_s26 + $0xc48] sm:$0xff]  ;;  %v1514_v46 = vld [vmem:[%s5571_s26 + $0xdd0] sm:$0xff]  ;;  %v5138_v41 = vld [vmem:[%s9026_s1 + $0xe0] sm:$0xff] }
 0x1b3   : > { %v1199_v20 = vadd.f32 %v6151_v53, %v1150_v1  ;;  %v1504_v53 = vld [vmem:[%s5571_s26 + $0xc40] sm:$0xff]  ;;  %v5141_v1 = vld [vmem:[%s9026_s1 + $0xc8] sm:$0xff] }
 0x1b4   : > { %v1204_v13 = vadd.f32 %v6187_v54, %v1155_v6  ;;  %v1600_v16 = vpack.c.bf16 %v1512_v21, %v1504_v53  ;;  %v5147_v21 = vld [vmem:[%s9026_s1 + $0x1e8] sm:$0xff] }
 0x1b5   : > { %v1248_v8 = vadd.f32 %v6153_v27, %v1199_v20 }
 0x1b6   : > { %v1253_v42 = vadd.f32 %v6201_v0, %v1204_v13  ;;  %v1300_v0 = vadd.f32 %v6213_v62, %v1251_v29  ;;  %v1529_v62 = vld [vmem:[%s5571_s26 + $0x10c8] sm:$0xff]  ;;  %v1560_v13 = vld [vmem:[%s5571_s26 + $0x16c0] sm:$0xff]  ;;  %v5145_v29 = vld [vmem:[%s9026_s1 + $0x138] sm:$0xff] }
 0x1b7   : > { %v1306_v33 = vpop.f32.mrf.mxu2  ;;  %v1297_v56 = vadd.f32 %v6189_v10, %v1248_v8  ;;  %v1609_v55 = vpack.c.bf16 %v1529_v62, %v1521_v24  ;;  %v1522_v10 = vld [vmem:[%s5571_s26 + $0xf50] sm:$0xff]  ;;  %v5151_v24 = vld [vmem:[%s9026_s1 + $0x128] sm:$0xff] }
 0x1b8   : > { %v1307_v35 = vadd.f32 %v1306_v33, %v1258_v37  ;;  %v1355_v19 = vpop.f32.mrf.mxu3  ;;  %v1262_v37 = vpop.f32.mrf.mxu1  ;;  %v1261_v33 = vadd.f32 %v1260_v5, %v1212_v12  ;;  %v1513_v5 = vld [vmem:[%s5571_s26 + $0xdc8] sm:$0xff]  ;;  %v1302_v23 = vadd.f32 %v6229_v38, %v1253_v42  ;;  %v1349_v14 = vadd.f32 %v6218_v51, %v1300_v0  ;;  %v1520_v51 = vld [vmem:[%s5571_s26 + $0xf40] sm:$0xff]  ;;  %v1454_v42 = vld [vmem:[%s5571_s26 + $0x1f0] sm:$0xff] }
 0x1b9   : > { %v1263_v52 = vadd.f32 %v1262_v37, %v1214_v17  ;;  %v1346_v34 = vadd.f32 %v6194_v11, %v1297_v56  ;;  %v1554_v17 = vld [vmem:[%s5571_s26 + $0x1550] sm:$0xff]  ;;  %v5139_v37 = vld [vmem:[%s9026_s1 + $0xd8] sm:$0xff] }
 0x1ba   : > { %v1356_v32 = vadd.f32 %v1355_v19, %v1307_v35  ;;  %v1351_v38 = vadd.f32 %v6234_v26, %v1302_v23  ;;  %v1530_v26 = vld [vmem:[%s5571_s26 + $0x10d0] sm:$0xff]  ;;  %v1626_v6 = vpack.c.bf16 %v1562_v49, %v1554_v17  ;;  %v5162_v17 = vld [vmem:[%s9026_s1 + $0x1c0] sm:$0xff] }
 0x1bb   : > { %v1367_v40 = vpack.c.bf16 %v1346_v34, %v6179_v63  ;;  %v1610_v39 = vpack.c.bf16 %v1530_v26, %v1522_v10  ;;  %v1537_v63 = vld [vmem:[%s5571_s26 + $0x1248] sm:$0xff]  ;;  %v5148_v0 = vld [vmem:[%s9026_s1 + $0x130] sm:$0xff]  ;;  %v5153_v26 = vld [vmem:[%s9026_s1 + $0x1d8] sm:$0xff] }
 0x1bc   : > { %v1369_v36 = vpack.c.bf16 %v1356_v32, %v1354_v43  ;;  %v1601_v43 = vpack.c.bf16 %v1513_v5, %v1505_v7  ;;  %v1506_v32 = vld [vmem:[%s5571_s26 + $0xc50] sm:$0xff]  ;;  %v1368_v27 = vpack.c.bf16 %v1351_v38, %v1349_v14  ;;  %v5150_v38 = vld [vmem:[%s9026_s1 + $0x1e0] sm:$0xff]  ;;  %v1461_v34 = vld [vmem:[%s5571_s26 + $0x368] sm:$0xff] }
 0x1bd   : > { %v1602_v31 = vpack.c.bf16 %v1514_v46, %v1506_v32  ;;  %v5075_v7 = vld [vmem:[%s9027_s2 + $0x10] sm:$0xff]  ;;  %v1444_v32 = vld [vmem:[%s5571_s26 + $0x60] sm:$0xff] }
 0x1be   : > { %v1446_v5 = vld [vmem:[%s5571_s26 + $0x70] sm:$0xff]  ;;  %v1452_v46 = vld [vmem:[%s5571_s26 + $0x1e0] sm:$0xff] }
 0x1bf   : > { %v1309_v28 = vpop.f32.mrf.mxu2  ;;  %1758 = vmatmul.bf16.gmra.mxu3 %v1602_v31  ;;  %v1572_v23 = vpack.c.bf16 %v1452_v46, %v1444_v32  ;;  %v5146_v31 = vld [vmem:[%s9026_s1 + $0x178] sm:$0xff]  ;;  %v5149_v56 = vld [vmem:[%s9026_s1 + $0x170] sm:$0xff]  ;;  %v1476_v32 = vld [vmem:[%s5571_s26 + $0x660] sm:$0xff] }
 0x1c0   : > { %v1358_v4 = vpop.f32.mrf.mxu3  ;;  %v1310_v18 = vadd.f32 %v1309_v28, %v1261_v33  ;;  %v1545_v28 = vld [vmem:[%s5571_s26 + $0x13c8] sm:$0xff]  ;;  %v1552_v33 = vld [vmem:[%s5571_s26 + $0x1540] sm:$0xff] }
 0x1c1   : > { %v1617_v48 = vpack.c.bf16 %v1545_v28, %v1537_v63  ;;  %v1462_v63 = vld [vmem:[%s5571_s26 + $0x370] sm:$0xff]  ;;  %v1484_v46 = vld [vmem:[%s5571_s26 + $0x7e0] sm:$0xff] }
 0x1c2   : > { %v1359_v54 = vadd.f32 %v1358_v4, %v1310_v18  ;;  %1709 = vmatmul.bf16.gmra.mxu2 %v1601_v43  ;;  %1660 = vmatmul.bf16.gmra.mxu1 %v1600_v16  ;;  %v5074_v4 = vld [vmem:[%s9027_s2 + $0x8] sm:$0xff]  ;;  %v5140_v18 = vld [vmem:[%s9026_s1 + $0xd0] sm:$0xff] }
 0x1c3   : > { %v1470_v28 = vld [vmem:[%s5571_s26 + $0x4f0] sm:$0xff] }
 0x1c7   : > { %v1311_v61 = vpop.f32.mrf.mxu2 }
 0x1c8   : > { %v1312_v35 = vadd.f32 %v1311_v61, %v1263_v52  ;;  %v1360_v19 = vpop.f32.mrf.mxu3  ;;  %v1624_v52 = vpack.c.bf16 %v1560_v13, %v1552_v33  ;;  %v1445_v61 = vld [vmem:[%s5571_s26 + $0x68] sm:$0xff]  ;;  %v1443_v13 = vld [vmem:[%s5571_s26 + $0x58] sm:$0xff] }
 0x1c9   : > { %v1573_v20 = vpack.c.bf16 %v1453_v58, %v1445_v61  ;;  %v5163_v33 = vld [vmem:[%s9026_s1 + $0x108] sm:$0xff] }
 0x1ca   : > { %v1361_v15 = vadd.f32 %v1360_v19, %v1312_v35  ;;  %v5142_v35 = vld [vmem:[%s9026_s1 + $0xc0] sm:$0xff]  ;;  %v5143_v19 = vld [vmem:[%s9026_s1 + $0x1f8] sm:$0xff] }
 0x1cc   : > { %v1370_v3 = vpack.c.bf16 %v1361_v15, %v1359_v54  ;;  %v1574_v54 = vpack.c.bf16 %v1454_v42, %v1446_v5  ;;  %v5144_v15 = vld [vmem:[%s9026_s1 + $0x1f0] sm:$0xff] }
 0x1cd   : > { %v1478_v5 = vld [vmem:[%s5571_s26 + $0x670] sm:$0xff] }
 0x1ce   : > { %1403 = vmatpush.bf16.msra.mxu0 %v1370_v3  ;;  %v1486_v42 = vld [vmem:[%s5571_s26 + $0x7f0] sm:$0xff] }
 0x1cf   : > { %1763 = vmatmul.bf16.gmra.mxu3 %v1610_v39  ;;  %v5076_v39 = vld [vmem:[%s9027_s2 + $0x18] sm:$0xff] }
 0x1d2   : > { %1404 = vmatpush.bf16.msra.mxu0 %v1369_v36  ;;  %1714 = vmatmul.bf16.gmra.mxu2 %v1609_v55  ;;  %v1528_v36 = vld [vmem:[%s5571_s26 + $0x10c0] sm:$0xff] }
 0x1d3   : > { %v1608_v11 = vpack.c.bf16 %v1528_v36, %v1520_v51  ;;  %v5154_v36 = vld [vmem:[%s9026_s1 + $0x120] sm:$0xff] }
 0x1d5   : > { %1665 = vmatmul.bf16.gmra.mxu1 %v1608_v11 }
 0x1d6   : > { %1405 = vmatpush.bf16.msra.mxu0 %v1368_v27  ;;  %v1469_v27 = vld [vmem:[%s5571_s26 + $0x4e8] sm:$0xff] }
 0x1d7   : > { %v1581_v10 = vpack.c.bf16 %v1469_v27, %v1461_v34  ;;  %v1467_v34 = vld [vmem:[%s5571_s26 + $0x4d8] sm:$0xff]  ;;  %v5169_v27 = vld [vmem:[%s9026_s1 + $0xa8] sm:$0xff] }
 0x1da   : > { %1406 = vmatpush.bf16.msra.mxu0 %v1367_v40  ;;  %v5152_v40 = vld [vmem:[%s9026_s1 + $0x168] sm:$0xff] }
 0x1de   : > { %1407 = vmatpush.bf16.msra.mxu0 %v1366_v59  ;;  %v1561_v59 = vld [vmem:[%s5571_s26 + $0x16c8] sm:$0xff] }
 0x1df   : > { %1768 = vmatmul.bf16.gmra.mxu3 %v1618_v45  ;;  %v1468_v45 = vld [vmem:[%s5571_s26 + $0x4e0] sm:$0xff] }
 0x1e2   : > { %1408 = vmatpush.bf16.msra.mxu0 %v1365_v50  ;;  %1719 = vmatmul.bf16.gmra.mxu2 %v1617_v48  ;;  %v1641_v43 = vpop.f32.mrf.mxu1  ;;  %v5155_v48 = vld [vmem:[%s9026_s1 + $0x160] sm:$0xff] }
 0x1e5   : > { %v1739_v8 = vpop.f32.mrf.mxu3 }
 0x1e6   : > { %1409 = vmatpush.bf16.msra.mxu0 %v1364_v57  ;;  %v1544_v57 = vld [vmem:[%s5571_s26 + $0x13c0] sm:$0xff] }
 0x1e7   : > { %v1616_v50 = vpack.c.bf16 %v1544_v57, %v1536_v25  ;;  %v5157_v25 = vld [vmem:[%s9026_s1 + $0x118] sm:$0xff] }
 0x1e9   : > { %1670 = vmatmul.bf16.gmra.mxu1 %v1616_v50 }
 0x1ea   : > { %1410 = vmatpush.bf16.msra.mxu0 %v1363_v47  ;;  %v1553_v47 = vld [vmem:[%s5571_s26 + $0x1548] sm:$0xff]  ;;  %v1643_v14 = vpop.f32.mrf.mxu1 }
 0x1eb   : > { %v1625_v12 = vpack.c.bf16 %v1561_v59, %v1553_v47  ;;  %v5159_v47 = vld [vmem:[%s9026_s1 + $0x1c8] sm:$0xff] }
 0x1ed   : > { %1411 = vmatmul.bf16.vlgmr.msra.gmra.mxu0 %v5073_v44  ;;  %v1741_v51 = vpop.f32.mrf.mxu3  ;;  %v1582_v44 = vpack.c.bf16 %v1470_v28, %v1462_v63 }
 0x1ee   : > { %1779 = vmatpush.bf16.msrb.mxu0 %v5135_v60  ;;  %v1460_v60 = vld [vmem:[%s5571_s26 + $0x360] sm:$0xff] }
 0x1ef   : > { %1773 = vmatmul.bf16.gmra.mxu3 %v1626_v6  ;;  %v1580_v57 = vpack.c.bf16 %v1468_v45, %v1460_v60  ;;  %v1485_v6 = vld [vmem:[%s5571_s26 + $0x7e8] sm:$0xff] }
 0x1f2   : > { %1780 = vmatpush.bf16.msrb.mxu0 %v5136_v22  ;;  %1724 = vmatmul.bf16.gmra.mxu2 %v1625_v12  ;;  %v5158_v22 = vld [vmem:[%s9026_s1 + $0x158] sm:$0xff] }
 0x1f6   : > { %1781 = vmatpush.bf16.msrb.mxu0 %v5137_v2 }
 0x1f9   : > { %1675 = vmatmul.bf16.gmra.mxu1 %v1624_v52  ;;  %v1451_v52 = vld [vmem:[%s5571_s26 + $0x1d8] sm:$0xff] }
 0x1fa   : > { %1782 = vmatpush.bf16.msrb.mxu0 %v5138_v41  ;;  %v5160_v41 = vld [vmem:[%s9026_s1 + $0x110] sm:$0xff] }
 0x1fd   : > { %1416 = vmatmul.bf16.gmra.mxu0 %v5074_v4  ;;  %v5161_v4 = vld [vmem:[%s9026_s1 + $0x150] sm:$0xff] }
 0x1fe   : > { %1783 = vmatpush.bf16.msrb.mxu0 %v5139_v37  ;;  %v1477_v37 = vld [vmem:[%s5571_s26 + $0x668] sm:$0xff] }
 0x1ff   : > { %1934 = vmatmul.bf16.vlgmr.msra.gmra.mxu3 %v1574_v54  ;;  %v1589_v58 = vpack.c.bf16 %v1485_v6, %v1477_v37  ;;  %v5166_v54 = vld [vmem:[%s9026_s1 + $0x140] sm:$0xff]  ;;  %v1509_v37 = vld [vmem:[%s5571_s26 + $0xc68] sm:$0xff] }
 0x200   : > { %2514 = vmatpush.bf16.msra.mxu3 %v5146_v31  ;;  %v1517_v6 = vld [vmem:[%s5571_s26 + $0xde8] sm:$0xff] }
 0x201   : > { %v1646_v9 = vpop.f32.mrf.mxu1 }
 0x202   : > { %1784 = vmatpush.bf16.msrb.mxu0 %v5140_v18  ;;  %1885 = vmatmul.bf16.vlgmr.msra.gmra.mxu2 %v1573_v20 }
 0x203   : > { %2465 = vmatpush.bf16.msra.mxu2 %v5145_v29  ;;  %v1588_v29 = vpack.c.bf16 %v1484_v46, %v1476_v32  ;;  %v1491_v32 = vld [vmem:[%s5571_s26 + $0x958] sm:$0xff] }
 0x204   : > { %2515 = vmatpush.bf16.msra.mxu3 %v5149_v56  ;;  %v1493_v56 = vld [vmem:[%s5571_s26 + $0x968] sm:$0xff]  ;;  %v1499_v46 = vld [vmem:[%s5571_s26 + $0xad8] sm:$0xff] }
 0x205   : > { %v1690_v3 = vpop.f32.mrf.mxu2 }
 0x206   : > { %1785 = vmatpush.bf16.msrb.mxu0 %v5141_v1  ;;  %v1691_v53 = vadd.f32 %v1690_v3, %v1641_v43  ;;  %v5164_v1 = vld [vmem:[%s9026_s1 + $0x148] sm:$0xff] }
 0x207   : > { %2466 = vmatpush.bf16.msra.mxu2 %v5148_v0 }
 0x208   : > { %v6377_v16 = vadd.f32 %v1739_v8, %v1691_v53  ;;  %2516 = vmatpush.bf16.msra.mxu3 %v5152_v40  ;;  %v5168_v8 = vld [vmem:[%s9026_s1 + $0xb0] sm:$0xff] }
 0x209   : > { %1836 = vmatmul.bf16.vlgmr.msrb.gmra.mxu1 %v1572_v23  ;;  %v1648_v49 = vpop.f32.mrf.mxu1  ;;  %v5167_v23 = vld [vmem:[%s9026_s1 + $0xb8] sm:$0xff] }
 0x20a   : > { %1786 = vmatpush.bf16.msrb.mxu0 %v5142_v35  ;;  %v1571_v35 = vpack.c.bf16 %v1451_v52, %v1443_v13  ;;  %v1605_v13 = vpack.c.bf16 %v1517_v6, %v1509_v37  ;;  %v5174_v52 = vld [vmem:[%s9026_s1 + $0x80] sm:$0xff] }
 0x20b   : > { %2467 = vmatpush.bf16.msra.mxu2 %v5151_v24 }
 0x20c   : > { %2517 = vmatpush.bf16.msra.mxu3 %v5155_v48  ;;  %v1492_v48 = vld [vmem:[%s5571_s26 + $0x960] sm:$0xff] }
 0x20d   : > { %1421 = vmatmul.bf16.gmra.mxu0 %v5075_v7  ;;  %v1692_v62 = vpop.f32.mrf.mxu2 }
 0x20e   : > { %1975 = vmatpush.bf16.msra.mxu0 %v5143_v19  ;;  %v1693_v55 = vadd.f32 %v1692_v62, %v1643_v14  ;;  %v5165_v19 = vld [vmem:[%s9026_s1 + $0x100] sm:$0xff]  ;;  %v1459_v14 = vld [vmem:[%s5571_s26 + $0x358] sm:$0xff] }
 0x20f   : > { %2468 = vmatpush.bf16.msra.mxu2 %v5154_v36  ;;  %1939 = vmatmul.bf16.gmra.mxu3 %v1582_v44  ;;  %v1744_v59 = vpop.f32.mrf.mxu3  ;;  %v1502_v36 = vld [vmem:[%s5571_s26 + $0xaf0] sm:$0xff]  ;;  %v1500_v44 = vld [vmem:[%s5571_s26 + $0xae0] sm:$0xff] }
 0x210   : > { %v6402_v11 = vadd.f32 %v1741_v51, %v1693_v55  ;;  %2518 = vmatpush.bf16.msra.mxu3 %v5158_v22  ;;  %v1579_v55 = vpack.c.bf16 %v1467_v34, %v1459_v14  ;;  %v1494_v51 = vld [vmem:[%s5571_s26 + $0x970] sm:$0xff]  ;;  %v1524_v34 = vld [vmem:[%s5571_s26 + $0xf60] sm:$0xff] }
 0x211   : > { %v1651_v43 = vpop.f32.mrf.mxu1  ;;  %v1598_v63 = vpack.c.bf16 %v1502_v36, %v1494_v51  ;;  %v1507_v51 = vld [vmem:[%s5571_s26 + $0xc58] sm:$0xff] }
 0x212   : > { %1976 = vmatpush.bf16.msra.mxu0 %v5144_v15  ;;  %1890 = vmatmul.bf16.gmra.mxu2 %v1581_v10  ;;  %v1590_v15 = vpack.c.bf16 %v1486_v42, %v1478_v5  ;;  %v1515_v36 = vld [vmem:[%s5571_s26 + $0xdd8] sm:$0xff] }
 0x213   : > { %2469 = vmatpush.bf16.msra.mxu2 %v5157_v25 }
 0x214   : > { %2519 = vmatpush.bf16.msra.mxu3 %v5161_v4 }
 0x215   : > { %v1695_v50 = vpop.f32.mrf.mxu2 }
 0x216   : > { %1977 = vmatpush.bf16.msra.mxu0 %v5147_v21  ;;  %v1696_v2 = vadd.f32 %v1695_v50, %v1646_v9  ;;  %v5171_v9 = vld [vmem:[%s9026_s1 + $0x98] sm:$0xff]  ;;  %v5172_v50 = vld [vmem:[%s9026_s1 + $0x90] sm:$0xff] }
 0x217   : > { %2470 = vmatpush.bf16.msra.mxu2 %v5160_v41  ;;  %v1746_v20 = vpop.f32.mrf.mxu3 }
 0x218   : > { %v6426_v12 = vadd.f32 %v1744_v59, %v1696_v2  ;;  %2520 = vmatpush.bf16.msra.mxu3 %v5164_v1  ;;  %v1475_v2 = vld [vmem:[%s5571_s26 + $0x658] sm:$0xff]  ;;  %v5173_v59 = vld [vmem:[%s9026_s1 + $0x88] sm:$0xff]  ;;  %v1518_v1 = vld [vmem:[%s5571_s26 + $0xdf0] sm:$0xff] }
 0x219   : > { %1841 = vmatmul.bf16.gmra.mxu1 %v1580_v57  ;;  %v1653_v0 = vpop.f32.mrf.mxu1 }
 0x21a   : > { %1978 = vmatpush.bf16.msra.mxu0 %v5150_v38  ;;  %v1501_v38 = vld [vmem:[%s5571_s26 + $0xae8] sm:$0xff] }
 0x21b   : > { %2471 = vmatpush.bf16.msra.mxu2 %v5163_v33  ;;  %v1597_v40 = vpack.c.bf16 %v1501_v38, %v1493_v56  ;;  %v1534_v56 = vld [vmem:[%s5571_s26 + $0x10f0] sm:$0xff] }
 0x21c   : > { %2521 = vmatpush.bf16.msra.mxu3 %v5166_v54 }
 0x21d   : > { %1426 = vmatmul.bf16.gmra.mxu0 %v5076_v39  ;;  %v1697_v18 = vpop.f32.mrf.mxu2  ;;  %v5170_v39 = vld [vmem:[%s9026_s1 + $0xa0] sm:$0xff] }
 0x21e   : > { %1979 = vmatpush.bf16.msra.mxu0 %v5153_v26  ;;  %v1698_v61 = vadd.f32 %v1697_v18, %v1648_v49  ;;  %v1510_v18 = vld [vmem:[%s5571_s26 + $0xc70] sm:$0xff] }
 0x21f   : > { %2472 = vmatpush.bf16.msra.mxu2 %v5165_v19  ;;  %1944 = vmatmul.bf16.gmra.mxu3 %v1590_v15  ;;  %v1749_v53 = vpop.f32.mrf.mxu3 }
 0x220   : > { %v6447_v7 = vadd.f32 %v1746_v20, %v1698_v61  ;;  %v1516_v20 = vld [vmem:[%s5571_s26 + $0xde0] sm:$0xff] }
 0x222   : > { %1980 = vmatpush.bf16.msra.mxu0 %v5156_v30  ;;  %1895 = vmatmul.bf16.gmra.mxu2 %v1589_v58  ;;  %v1596_v30 = vpack.c.bf16 %v1500_v44, %v1492_v48  ;;  %v1606_v58 = vpack.c.bf16 %v1518_v1, %v1510_v18  ;;  %v1603_v48 = vpack.c.bf16 %v1515_v36, %v1507_v51  ;;  %v1539_v36 = vld [vmem:[%s5571_s26 + $0x1258] sm:$0xff] }
 0x225   : > { %v1700_v3 = vpop.f32.mrf.mxu2 }
 0x226   : > { %1981 = vmatpush.bf16.msra.mxu0 %v5159_v47  ;;  %v1701_v31 = vadd.f32 %v1700_v3, %v1651_v43  ;;  %v1483_v47 = vld [vmem:[%s5571_s26 + $0x7d8] sm:$0xff] }
 0x227   : > { %v1751_v10 = vpop.f32.mrf.mxu3 }
 0x228   : > { %v6459_v21 = vadd.f32 %v1749_v53, %v1701_v31  ;;  %v1525_v31 = vld [vmem:[%s5571_s26 + $0xf68] sm:$0xff] }
 0x229   : > { %1846 = vmatmul.bf16.gmra.mxu1 %v1588_v29  ;;  %v1533_v53 = vld [vmem:[%s5571_s26 + $0x10e8] sm:$0xff] }
 0x22a   : > { %1982 = vmatpush.bf16.msra.mxu0 %v5162_v17  ;;  %v1587_v17 = vpack.c.bf16 %v1483_v47, %v1475_v2 }
 0x22d   : > { %1787 = vmatmul.bf16.vlgmr.msrb.gmra.mxu0 %v1571_v35  ;;  %v1702_v24 = vpop.f32.mrf.mxu2  ;;  %v1508_v35 = vld [vmem:[%s5571_s26 + $0xc60] sm:$0xff] }
 0x22e   : > { %2367 = vmatpush.bf16.msrb.mxu0 %v5167_v23  ;;  %v1703_v62 = vadd.f32 %v1702_v24, %v1653_v0  ;;  %v1604_v19 = vpack.c.bf16 %v1516_v20, %v1508_v35  ;;  %v1595_v23 = vpack.c.bf16 %v1499_v46, %v1491_v32  ;;  %v1526_v0 = vld [vmem:[%s5571_s26 + $0xf70] sm:$0xff]  ;;  %v1373_v20 = vld [vmem:[%s9028_s3 + $0x60] sm:$0xff] }
 0x22f   : > { %v1656_v28 = vpop.f32.mrf.mxu1  ;;  %1949 = vmatmul.bf16.gmra.mxu3 %v1598_v63  ;;  %v1754_v25 = vpop.f32.mrf.mxu3  ;;  %v1614_v14 = vpack.c.bf16 %v1534_v56, %v1526_v0  ;;  %v1556_v0 = vld [vmem:[%s5571_s26 + $0x1560] sm:$0xff] }
 0x230   : > { %v6471_v26 = vadd.f32 %v1751_v10, %v1703_v62  ;;  %v1564_v56 = vld [vmem:[%s5571_s26 + $0x16e0] sm:$0xff] }
 0x232   : > { %2368 = vmatpush.bf16.msrb.mxu0 %v5168_v8  ;;  %1900 = vmatmul.bf16.gmra.mxu2 %v1597_v40  ;;  %v1613_v8 = vpack.c.bf16 %v1533_v53, %v1525_v31  ;;  %v1558_v31 = vld [vmem:[%s5571_s26 + $0x1570] sm:$0xff] }
 0x233   : > { %v1566_v53 = vld [vmem:[%s5571_s26 + $0x16f0] sm:$0xff] }
 0x235   : > { %v1705_v60 = vpop.f32.mrf.mxu2 }
 0x236   : > { %2369 = vmatpush.bf16.msrb.mxu0 %v5169_v27  ;;  %v1706_v45 = vadd.f32 %v1705_v60, %v1656_v28  ;;  %v1532_v27 = vld [vmem:[%s5571_s26 + $0x10e0] sm:$0xff] }
 0x237   : > { %v1658_v22 = vpop.f32.mrf.mxu1  ;;  %v1756_v49 = vpop.f32.mrf.mxu3  ;;  %v1612_v24 = vpack.c.bf16 %v1532_v27, %v1524_v34  ;;  %v1371_v28 = vld [vmem:[%s9028_s3] sm:$0xff]  ;;  %v1374_v27 = vld [vmem:[%s9028_s3 + $0x90] sm:$0xff] }
 0x238   : > { %v6483_v57 = vadd.f32 %v1754_v25, %v1706_v45 }
 0x239   : > { %1851 = vmatmul.bf16.gmra.mxu1 %v1596_v30  ;;  %v1541_v30 = vld [vmem:[%s5571_s26 + $0x1268] sm:$0xff] }
 0x23a   : > { %2370 = vmatpush.bf16.msrb.mxu0 %v5170_v39 }
 0x23d   : > { %1792 = vmatmul.bf16.gmra.mxu0 %v1579_v55  ;;  %v1707_v41 = vpop.f32.mrf.mxu2 }
 0x23e   : > { %2371 = vmatpush.bf16.msrb.mxu0 %v5171_v9  ;;  %v1708_v4 = vadd.f32 %v1707_v41, %v1658_v22  ;;  %v1549_v9 = vld [vmem:[%s5571_s26 + $0x13e8] sm:$0xff]  ;;  %v1550_v22 = vld [vmem:[%s5571_s26 + $0x13f0] sm:$0xff]  ;;  %v1548_v41 = vld [vmem:[%s5571_s26 + $0x13e0] sm:$0xff] }
 0x23f   : > { %v1661_v61 = vpop.f32.mrf.mxu1  ;;  %1954 = vmatmul.bf16.gmra.mxu3 %v1606_v58  ;;  %v1621_v45 = vpack.c.bf16 %v1549_v9, %v1541_v30  ;;  %v1531_v58 = vld [vmem:[%s5571_s26 + $0x10d8] sm:$0xff] }
 0x240   : > { %v6495_v33 = vadd.f32 %v1756_v49, %v1708_v4  ;;  %v1372_v49 = vld [vmem:[%s9028_s3 + $0x30] sm:$0xff] }
 0x242   : > { %2372 = vmatpush.bf16.msrb.mxu0 %v5172_v50  ;;  %1905 = vmatmul.bf16.gmra.mxu2 %v1605_v13  ;;  %v1759_v54 = vpop.f32.mrf.mxu3  ;;  %v1542_v50 = vld [vmem:[%s5571_s26 + $0x1270] sm:$0xff] }
 0x243   : > { %v1622_v47 = vpack.c.bf16 %v1550_v22, %v1542_v50 }
 0x245   : > { %v1710_v5 = vpop.f32.mrf.mxu2 }
 0x246   : > { %2373 = vmatpush.bf16.msrb.mxu0 %v5173_v59  ;;  %v1711_v42 = vadd.f32 %v1710_v5, %v1661_v61  ;;  %v1540_v59 = vld [vmem:[%s5571_s26 + $0x1260] sm:$0xff]  ;;  %v1523_v61 = vld [vmem:[%s5571_s26 + $0xf58] sm:$0xff] }
 0x247   : > { %v6506_v43 = vpop.f32.mrf.mxu1  ;;  %v1620_v4 = vpack.c.bf16 %v1548_v41, %v1540_v59  ;;  %v1555_v59 = vld [vmem:[%s5571_s26 + $0x1558] sm:$0xff] }
 0x248   : > { %v6504_v15 = vadd.f32 %v1759_v54, %v1711_v42  ;;  %v1557_v42 = vld [vmem:[%s5571_s26 + $0x1568] sm:$0xff]  ;;  %v1563_v41 = vld [vmem:[%s5571_s26 + $0x16d8] sm:$0xff] }
 0x249   : > { %1856 = vmatmul.bf16.gmra.mxu1 %v1604_v19  ;;  %v1611_v19 = vpack.c.bf16 %v1531_v58, %v1523_v61  ;;  %v1565_v54 = vld [vmem:[%s5571_s26 + $0x16e8] sm:$0xff]  ;;  %v1378_v61 = vld [vmem:[%s9028_s3 + $0x150] sm:$0xff] }
 0x24a   : > { %2374 = vmatpush.bf16.msrb.mxu0 %v5174_v52  ;;  %v6512_v3 = vpop.f32.mrf.mxu3  ;;  %v1629_v46 = vpack.c.bf16 %v1565_v54, %v1557_v42  ;;  %v1447_v42 = vld [vmem:[%s5571_s26 + $0x78] sm:$0xff] }
 0x24b   : > { %v1455_v54 = vld [vmem:[%s5571_s26 + $0x1f8] sm:$0xff] }
 0x24d   : > { %1797 = vmatmul.bf16.gmra.mxu0 %v1587_v17  ;;  %v6510_v29 = vpop.f32.mrf.mxu2 }
 0x24f   : > { %1959 = vmatmul.bf16.gmra.mxu3 %v1614_v14 }
 0x252   : > { %1910 = vmatmul.bf16.gmra.mxu2 %v1613_v8  ;;  %v1666_v38 = vpop.f32.mrf.mxu1  ;;  %v1764_v55 = vpop.f32.mrf.mxu3  ;;  %v1630_v8 = vpack.c.bf16 %v1566_v53, %v1558_v31 }
 0x255   : > { %v1715_v62 = vpop.f32.mrf.mxu2 }
 0x256   : > { %v1716_v40 = vadd.f32 %v1715_v62, %v1666_v38  ;;  %v1628_v38 = vpack.c.bf16 %v1564_v56, %v1556_v0  ;;  %v5175_v56 = vld [vmem:[%s9026_s1 + $0x1b8] sm:$0xff] }
 0x258   : > { %v6520_v10 = vadd.f32 %v1764_v55, %v1716_v40 }
 0x259   : > { %1861 = vmatmul.bf16.gmra.mxu1 %v1612_v24 }
 0x25a   : > { %v6522_v39 = vpop.f32.mrf.mxu1  ;;  %v6532_v44 = vpop.f32.mrf.mxu3 }
 0x25d   : > { %1802 = vmatmul.bf16.gmra.mxu0 %v1595_v23  ;;  %v6527_v63 = vpop.f32.mrf.mxu2 }
 0x25f   : > { %1964 = vmatmul.bf16.gmra.mxu3 %v1622_v47 }
 0x262   : > { %1915 = vmatmul.bf16.gmra.mxu2 %v1621_v45  ;;  %v1769_v6 = vpop.f32.mrf.mxu3  ;;  %v1376_v45 = vld [vmem:[%s9028_s3 + $0xf0] sm:$0xff] }
 0x265   : > { %v1720_v17 = vpop.f32.mrf.mxu2 }
 0x266   : > { %v1671_v2 = vpop.f32.mrf.mxu1 }
 0x267   : > { %v1721_v37 = vadd.f32 %v1720_v17, %v1671_v2  ;;  %v1627_v17 = vpack.c.bf16 %v1563_v41, %v1555_v59 }
 0x269   : > { %1866 = vmatmul.bf16.gmra.mxu1 %v1620_v4  ;;  %v6549_v52 = vadd.f32 %v1769_v6, %v1721_v37  ;;  %v1377_v4 = vld [vmem:[%s9028_s3 + $0x120] sm:$0xff] }
 0x26a   : > { %v1412_v60 = vpop.f32.mrf.mxu0  ;;  %v6561_v5 = vpop.f32.mrf.mxu3 }
 0x26b   : > { %v1413_v25 = vadd.f32 %v1412_v60, %v1371_v28  ;;  %v1547_v28 = vld [vmem:[%s5571_s26 + $0x13d8] sm:$0xff] }
 0x26c   : > { %v1619_v30 = vpack.c.bf16 %v1547_v28, %v1539_v36  ;;  %v5177_v36 = vld [vmem:[%s9026_s1 + $0x1a8] sm:$0xff] }
 0x26d   : > { %1432 = vst [vmem:[%s6539_s22] sm:$0xff] %v1413_v25  ;;  %1807 = vmatmul.bf16.gmra.mxu0 %v1603_v48  ;;  %v6556_v35 = vpop.f32.mrf.mxu2  ;;  %v1375_v48 = vld [vmem:[%s9028_s3 + $0xc0] sm:$0xff] }
 0x26e   : > { %v6552_v1 = vpop.f32.mrf.mxu1 }
 0x26f   : > { %1969 = vmatmul.bf16.gmra.mxu3 %v1630_v8 }
 0x272   : > { %v1414_v13 = vpop.f32.mrf.mxu0  ;;  %1920 = vmatmul.bf16.gmra.mxu2 %v1629_v46  ;;  %v1774_v62 = vpop.f32.mrf.mxu3 }
 0x273   : > { %v1415_v18 = vadd.f32 %v1414_v13, %v1372_v49 }
 0x275   : > { %1433 = vst [vmem:[%s6539_s22 + $0x30] sm:$0xff] %v1415_v18  ;;  %v1725_v34 = vpop.f32.mrf.mxu2 }
 0x276   : > { %v1676_v14 = vpop.f32.mrf.mxu1 }
 0x277   : > { %v1726_v24 = vadd.f32 %v1725_v34, %v1676_v14 }
 0x279   : > { %1871 = vmatmul.bf16.gmra.mxu1 %v1628_v38  ;;  %v6573_v55 = vadd.f32 %v1774_v62, %v1726_v24  ;;  %v5176_v62 = vld [vmem:[%s9026_s1 + $0x1b0] sm:$0xff] }
 0x27a   : > { %v1417_v32 = vpop.f32.mrf.mxu0  ;;  %v6589_v47 = vpop.f32.mrf.mxu3 }
 0x27b   : > { %v1418_v23 = vadd.f32 %v1417_v32, %v1373_v20 }
 0x27d   : > { %1434 = vst [vmem:[%s6539_s22 + $0x60] sm:$0xff] %v1418_v23  ;;  %1812 = vmatmul.bf16.gmra.mxu0 %v1611_v19  ;;  %v6587_v22 = vpop.f32.mrf.mxu2  ;;  %v1575_v23 = vpack.c.bf16 %v1455_v54, %v1447_v42  ;;  %v5182_v42 = vld [vmem:[%s9026_s1 + $0x180] sm:$0xff] }
 0x27e   : > { %v6585_v25 = vpop.f32.mrf.mxu1 }
 0x282   : > { %v1419_v40 = vpop.f32.mrf.mxu0  ;;  %v1935_v18 = vpop.f32.mrf.mxu3 }
 0x283   : > { %v1420_v51 = vadd.f32 %v1419_v40, %v1374_v27  ;;  %v1463_v40 = vld [vmem:[%s5571_s26 + $0x378] sm:$0xff] }
 0x285   : > { %1435 = vst [vmem:[%s6539_s22 + $0x90] sm:$0xff] %v1420_v51  ;;  %v1886_v13 = vpop.f32.mrf.mxu2  ;;  %v1471_v51 = vld [vmem:[%s5571_s26 + $0x4f8] sm:$0xff] }
 0x286   : > { %v1837_v37 = vpop.f32.mrf.mxu1 }
 0x28a   : > { %v1422_v9 = vpop.f32.mrf.mxu0  ;;  %v6608_v46 = vpop.f32.mrf.mxu3 }
 0x28b   : > { %v1423_v60 = vadd.f32 %v1422_v9, %v1375_v48  ;;  %v1583_v48 = vpack.c.bf16 %v1471_v51, %v1463_v40 }
 0x28d   : > { %1436 = vst [vmem:[%s6539_s22 + $0xc0] sm:$0xff] %v1423_v60  ;;  %1817 = vmatmul.bf16.gmra.mxu0 %v1619_v30  ;;  %v6606_v32 = vpop.f32.mrf.mxu2  ;;  %v5178_v60 = vld [vmem:[%s9026_s1 + $0x1a0] sm:$0xff] }
 0x28e   : > { %v6601_v19 = vpop.f32.mrf.mxu1 }
 0x292   : > { %v1424_v50 = vpop.f32.mrf.mxu0  ;;  %v1940_v24 = vpop.f32.mrf.mxu3 }
 0x293   : > { %v1425_v2 = vadd.f32 %v1424_v50, %v1376_v45 }
 0x295   : > { %1437 = vst [vmem:[%s6539_s22 + $0xf0] sm:$0xff] %v1425_v2  ;;  %v1891_v14 = vpop.f32.mrf.mxu2  ;;  %v5179_v2 = vld [vmem:[%s9026_s1 + $0x198] sm:$0xff] }
 0x296   : > { %v1842_v0 = vpop.f32.mrf.mxu1 }
 0x29a   : > { %v1427_v49 = vpop.f32.mrf.mxu0  ;;  %v6635_v45 = vpop.f32.mrf.mxu3 }
 0x29b   : > { %v1428_v6 = vadd.f32 %v1427_v49, %v1377_v4  ;;  %v5180_v49 = vld [vmem:[%s9026_s1 + $0x190] sm:$0xff] }
 0x29d   : > { %1438 = vst [vmem:[%s6539_s22 + $0x120] sm:$0xff] %v1428_v6  ;;  %1822 = vmatmul.bf16.gmra.mxu0 %v1627_v17  ;;  %v6629_v9 = vpop.f32.mrf.mxu2  ;;  %v1479_v6 = vld [vmem:[%s5571_s26 + $0x678] sm:$0xff] }
 0x29e   : > { %v6627_v28 = vpop.f32.mrf.mxu1 }
 0x2a2   : > { %v1429_v58 = vpop.f32.mrf.mxu0 }
 0x2a3   : > { %v1430_v20 = vadd.f32 %v1429_v58, %v1378_v61  ;;  %v5181_v61 = vld [vmem:[%s9026_s1 + $0x188] sm:$0xff] }
 0x2a5   : > { %1439 = vst [vmem:[%s6539_s22 + $0x150] sm:$0xff] %v1430_v20 }
 0x2a6   : > { %v1847_v17 = vpop.f32.mrf.mxu1 }
 0x2aa   : > { %v1788_v31 = vpop.f32.mrf.mxu0 }
 0x2ab   : > { %v1789_v53 = vadd.f32 %v1788_v31, %v6377_v16 }
 0x2ad   : > { %v1838_v8 = vadd.f32 %v1837_v37, %v1789_v53  ;;  %1983 = vmatmul.bf16.vlgmr.msra.gmra.mxu0 %v1575_v23  ;;  %v1896_v37 = vpop.f32.mrf.mxu2 }
 0x2ae   : > { %2563 = vmatpush.bf16.msra.mxu0 %v5175_v56  ;;  %v6657_v54 = vpop.f32.mrf.mxu1 }
 0x2af   : > { %v1887_v38 = vadd.f32 %v1886_v13, %v1838_v8  ;;  %v1487_v13 = vld [vmem:[%s5571_s26 + $0x7f8] sm:$0xff] }
 0x2b0   : > { %v1591_v58 = vpack.c.bf16 %v1487_v13, %v1479_v6 }
 0x2b1   : > { %v6614_v34 = vadd.f32 %v1935_v18, %v1887_v38  ;;  %v1945_v18 = vpop.f32.mrf.mxu3 }
 0x2b2   : > { %v1790_v27 = vpop.f32.mrf.mxu0  ;;  %2564 = vmatpush.bf16.msra.mxu0 %v5176_v62 }
 0x2b3   : > { %v6620_v16 = vadd.f32 %v1790_v27, %v6402_v11  ;;  %v1495_v27 = vld [vmem:[%s5571_s26 + $0x978] sm:$0xff] }
 0x2b5   : > { %v6659_v31 = vpop.f32.mrf.mxu2 }
 0x2b6   : > { %2565 = vmatpush.bf16.msra.mxu0 %v5177_v36 }
 0x2b9   : > { %v6661_v8 = vpop.f32.mrf.mxu3 }
 0x2ba   : > { %v1793_v30 = vpop.f32.mrf.mxu0  ;;  %2566 = vmatpush.bf16.msra.mxu0 %v5178_v60 }
 0x2bb   : > { %v1794_v11 = vadd.f32 %v1793_v30, %v6426_v12 }
 0x2bd   : > { %v1843_v50 = vadd.f32 %v1842_v0, %v1794_v11  ;;  %1988 = vmatmul.bf16.gmra.mxu0 %v1583_v48 }
 0x2be   : > { %2567 = vmatpush.bf16.msra.mxu0 %v5179_v2 }
 0x2bf   : > { %v1892_v59 = vadd.f32 %v1891_v14, %v1843_v50  ;;  %v1852_v14 = vpop.f32.mrf.mxu1 }
 0x2c1   : > { %v6640_v41 = vadd.f32 %v1940_v24, %v1892_v59  ;;  %v1503_v24 = vld [vmem:[%s5571_s26 + $0xaf8] sm:$0xff]  ;;  %v1950_v51 = vpop.f32.mrf.mxu3 }
 0x2c2   : > { %v1795_v4 = vpop.f32.mrf.mxu0  ;;  %2568 = vmatpush.bf16.msra.mxu0 %v5180_v49  ;;  %v1599_v62 = vpack.c.bf16 %v1503_v24, %v1495_v27  ;;  %v1551_v27 = vld [vmem:[%s5571_s26 + $0x13f8] sm:$0xff] }
 0x2c3   : > { %v6646_v12 = vadd.f32 %v1795_v4, %v6447_v7  ;;  %v1511_v4 = vld [vmem:[%s5571_s26 + $0xc78] sm:$0xff] }
 0x2c6   : > { %2569 = vmatpush.bf16.msra.mxu0 %v5181_v61 }
 0x2c7   : > { %v6671_v60 = vpop.f32.mrf.mxu1 }
 0x2c9   : > { %v6678_v59 = vpop.f32.mrf.mxu3 }
 0x2ca   : > { %v1798_v20 = vpop.f32.mrf.mxu0  ;;  %2570 = vmatpush.bf16.msra.mxu0 %v5182_v42  ;;  %v1527_v42 = vld [vmem:[%s5571_s26 + $0xf78] sm:$0xff] }
 0x2cb   : > { %v1799_v7 = vadd.f32 %v1798_v20, %v6459_v21  ;;  %v1901_v21 = vpop.f32.mrf.mxu2 }
 0x2cd   : > { %v1848_v23 = vadd.f32 %v1847_v17, %v1799_v7  ;;  %1993 = vmatmul.bf16.gmra.mxu0 %v1591_v58  ;;  %v1519_v17 = vld [vmem:[%s5571_s26 + $0xdf8] sm:$0xff] }
 0x2ce   : > { %v1607_v49 = vpack.c.bf16 %v1519_v17, %v1511_v4  ;;  %v1535_v7 = vld [vmem:[%s5571_s26 + $0x10f8] sm:$0xff]  ;;  %v1840_v4 = vadd.f32 %v6601_v19, %v6620_v16 }
 0x2cf   : > { %v1897_v53 = vadd.f32 %v1896_v37, %v1848_v23  ;;  %v1857_v37 = vpop.f32.mrf.mxu1  ;;  %v1615_v23 = vpack.c.bf16 %v1535_v7, %v1527_v42 }
 0x2d1   : > { %v6663_v0 = vadd.f32 %v1945_v18, %v1897_v53  ;;  %v1955_v61 = vpop.f32.mrf.mxu3 }
 0x2d2   : > { %v1800_v56 = vpop.f32.mrf.mxu0 }
 0x2d3   : > { %v6666_v38 = vadd.f32 %v1800_v56, %v6471_v26  ;;  %v6675_v50 = vpop.f32.mrf.mxu2 }
 0x2da   : > { %v1803_v40 = vpop.f32.mrf.mxu0 }
 0x2db   : > { %v1804_v36 = vadd.f32 %v1803_v40, %v6483_v57  ;;  %v1906_v13 = vpop.f32.mrf.mxu2 }
 0x2dd   : > { %v1853_v48 = vadd.f32 %v1852_v14, %v1804_v36  ;;  %1998 = vmatmul.bf16.gmra.mxu0 %v1599_v62  ;;  %v1543_v14 = vld [vmem:[%s5571_s26 + $0x1278] sm:$0xff] }
 0x2de   : > { %v1623_v24 = vpack.c.bf16 %v1551_v27, %v1543_v14  ;;  %v1567_v36 = vld [vmem:[%s5571_s26 + $0x16f8] sm:$0xff]  ;;  %v2085_v14 = vld [vmem:[%s5571_s26 + $0x200] sm:$0xff] }
 0x2df   : > { %v1902_v30 = vadd.f32 %v1901_v21, %v1853_v48 }
 0x2e1   : > { %v6673_v11 = vadd.f32 %v1950_v51, %v1902_v30  ;;  %v1559_v51 = vld [vmem:[%s5571_s26 + $0x1578] sm:$0xff] }
 0x2e2   : > { %v1805_v26 = vpop.f32.mrf.mxu0  ;;  %v1631_v48 = vpack.c.bf16 %v1567_v36, %v1559_v51  ;;  %v2086_v51 = vld [vmem:[%s5571_s26 + $0x208] sm:$0xff] }
 0x2e3   : > { %v1806_v2 = vadd.f32 %v1805_v26, %v6495_v33 }
 0x2ea   : > { %v1808_v57 = vpop.f32.mrf.mxu0 }
 0x2eb   : > { %v1809_v6 = vadd.f32 %v1808_v57, %v6504_v15 }
 0x2ed   : > { %v1858_v18 = vadd.f32 %v1857_v37, %v1809_v6  ;;  %2003 = vmatmul.bf16.gmra.mxu0 %v1607_v49  ;;  %v1889_v49 = vadd.f32 %v6606_v32, %v1840_v4 }
 0x2ef   : > { %v1907_v58 = vadd.f32 %v1906_v13, %v1858_v18  ;;  %v1938_v57 = vadd.f32 %v6608_v46, %v1889_v49  ;;  %v1845_v13 = vadd.f32 %v6627_v28, %v6646_v12  ;;  %v2087_v49 = vld [vmem:[%s5571_s26 + $0x210] sm:$0xff] }
 0x2f1   : > { %v6683_v20 = vadd.f32 %v1955_v61, %v1907_v58  ;;  %v1850_v58 = vadd.f32 %v6657_v54, %v6666_v38  ;;  %v6748_v38 = vpop.f32.mrf.mxu2 }
 0x2f2   : > { %v6685_v33 = vpop.f32.mrf.mxu0 }
 0x2fa   : > { %v1813_v53 = vpop.f32.mrf.mxu0 }
 0x2fb   : > { %v6690_v56 = vadd.f32 %v1813_v53, %v6520_v10  ;;  %v6742_v53 = vpop.f32.mrf.mxu1 }
 0x2fd   : > { %2008 = vmatmul.bf16.gmra.mxu0 %v1615_v23  ;;  %v1855_v23 = vadd.f32 %v6671_v60, %v1806_v2  ;;  %v2078_v2 = vld [vmem:[%s5571_s26 + $0x88] sm:$0xff] }
 0x302   : > { %v6692_v15 = vpop.f32.mrf.mxu0 }
 0x30a   : > { %v1818_v21 = vpop.f32.mrf.mxu0 }
 0x30b   : > { %v6697_v62 = vadd.f32 %v1818_v21, %v6549_v52  ;;  %v6753_v21 = vpop.f32.mrf.mxu3 }
 0x30d   : > { %2013 = vmatmul.bf16.gmra.mxu0 %v1623_v24 }
 0x312   : > { %v6699_v40 = vpop.f32.mrf.mxu0 }
 0x31a   : > { %v1823_v30 = vpop.f32.mrf.mxu0 }
 0x31b   : > { %v6704_v10 = vadd.f32 %v1823_v30, %v6573_v55  ;;  %v6766_v30 = vpop.f32.mrf.mxu2  ;;  %v2134_v55 = vld [vmem:[%s5571_s26 + $0xb08] sm:$0xff] }
 0x31d   : > { %2018 = vmatmul.bf16.gmra.mxu0 %v1631_v48  ;;  %v6759_v48 = vpop.f32.mrf.mxu1 }
 0x322   : > { %v6706_v26 = vpop.f32.mrf.mxu0 }
 0x32a   : > { %v1984_v17 = vpop.f32.mrf.mxu0 }
 0x32b   : > { %v6711_v52 = vadd.f32 %v1984_v17, %v6614_v34  ;;  %v1894_v34 = vadd.f32 %v6629_v9, %v1845_v13  ;;  %v2079_v17 = vld [vmem:[%s5571_s26 + $0x90] sm:$0xff] }
 0x32c   : > { %v2207_v13 = vpack.c.bf16 %v2087_v49, %v2079_v17 }
 0x32d   : > { %v1943_v16 = vadd.f32 %v6635_v45, %v1894_v34  ;;  %v6778_v34 = vpop.f32.mrf.mxu1 }
 0x32e   : > { %2375 = vmatmul.bf16.vlgmr.msrb.gmra.mxu0 %v2207_v13  ;;  %v5194_v13 = vld [vmem:[%s9026_s1 + $0x58] sm:$0xff] }
 0x332   : > { %v1986_v37 = vpop.f32.mrf.mxu0 }
 0x333   : > { %v6715_v6 = vadd.f32 %v1986_v37, %v1938_v57  ;;  %v5184_v57 = vld [vmem:[%s9026_s1 + $0x30] sm:$0xff] }
 0x33a   : > { %v1989_v18 = vpop.f32.mrf.mxu0 }
 0x33b   : > { %v6722_v19 = vadd.f32 %v1989_v18, %v6640_v41  ;;  %v1899_v41 = vadd.f32 %v6659_v31, %v1850_v58  ;;  %v1904_v31 = vadd.f32 %v6675_v50, %v1855_v23  ;;  %v6776_v18 = vpop.f32.mrf.mxu3  ;;  %v2093_v58 = vld [vmem:[%s5571_s26 + $0x380] sm:$0xff]  ;;  %v2102_v23 = vld [vmem:[%s5571_s26 + $0x508] sm:$0xff] }
 0x33d   : > { %v1948_v9 = vadd.f32 %v6661_v8, %v1899_v41  ;;  %v2077_v8 = vld [vmem:[%s5571_s26 + $0x80] sm:$0xff]  ;;  %v1953_v27 = vadd.f32 %v6678_v59, %v1904_v31  ;;  %v5183_v59 = vld [vmem:[%s9026_s1 + $0x38] sm:$0xff]  ;;  %v6788_v41 = vpop.f32.mrf.mxu2  ;;  %v5188_v31 = vld [vmem:[%s9026_s1 + $0x70] sm:$0xff] }
 0x33e   : > { %v2205_v24 = vpack.c.bf16 %v2085_v14, %v2077_v8 }
 0x340   : > { %2277 = vmatmul.bf16.vlgmr.msrb.gmra.mxu2 %v2205_v24  ;;  %v5190_v24 = vld [vmem:[%s9026_s1 + $0x68] sm:$0xff] }
 0x342   : > { %v1991_v32 = vpop.f32.mrf.mxu0 }
 0x343   : > { %v6726_v61 = vadd.f32 %v1991_v32, %v1943_v16  ;;  %v5185_v16 = vld [vmem:[%s9026_s1 + $0x28] sm:$0xff]  ;;  %v5186_v32 = vld [vmem:[%s9026_s1 + $0x78] sm:$0xff]  ;;  %v6800_v14 = vpop.f32.mrf.mxu3 }
 0x344   : > { %2955 = vmatpush.bf16.msrb.mxu0 %v5186_v32  ;;  %v2109_v32 = vld [vmem:[%s5571_s26 + $0x680] sm:$0xff] }
 0x345   : > { %v6820_v49 = vpop.f32.mrf.mxu2 }
 0x348   : > { %2956 = vmatpush.bf16.msrb.mxu0 %v5188_v31  ;;  %v5195_v31 = vld [vmem:[%s9026_s1] sm:$0xff] }
 0x34a   : > { %v1994_v28 = vpop.f32.mrf.mxu0 }
 0x34b   : > { %v6733_v12 = vadd.f32 %v1994_v28, %v6663_v0  ;;  %v2101_v28 = vld [vmem:[%s5571_s26 + $0x500] sm:$0xff] }
 0x34c   : > { %2957 = vmatpush.bf16.msrb.mxu0 %v5190_v24 }
 0x34d   : > { %v1918_v24 = vpop.f32.mrf.mxu2 }
 0x352   : > { %v1996_v45 = vpop.f32.mrf.mxu0 }
 0x353   : > { %v6737_v42 = vadd.f32 %v1996_v45, %v1948_v9  ;;  %v2094_v45 = vld [vmem:[%s5571_s26 + $0x388] sm:$0xff] }
 0x354   : > { %v2214_v8 = vpack.c.bf16 %v2102_v23, %v2094_v45  ;;  %v2110_v23 = vld [vmem:[%s5571_s26 + $0x688] sm:$0xff] }
 0x355   : > { %v2026_v7 = vpack.c.bf16 %v6737_v42, %v6733_v12  ;;  %v5199_v12 = vld [vmem:[%s9026_s1 + $0xf8] sm:$0xff]  ;;  %v2183_v42 = vld [vmem:[%s5571_s26 + $0x1410] sm:$0xff] }
 0x35a   : > { %v1999_v54 = vpop.f32.mrf.mxu0 }
 0x35b   : > { %v6745_v0 = vadd.f32 %v1999_v54, %v6673_v11  ;;  %v2206_v11 = vpack.c.bf16 %v2086_v51, %v2078_v2  ;;  %v5187_v54 = vld [vmem:[%s9026_s1 + $0x20] sm:$0xff]  ;;  %v2095_v51 = vld [vmem:[%s5571_s26 + $0x390] sm:$0xff] }
 0x35d   : > { %2326 = vmatmul.bf16.vlgmr.msrb.gmra.mxu3 %v2206_v11  ;;  %v2103_v11 = vld [vmem:[%s5571_s26 + $0x510] sm:$0xff] }
 0x35e   : > { %2906 = vmatpush.bf16.msrb.mxu3 %v5183_v59  ;;  %v5191_v59 = vld [vmem:[%s9026_s1 + $0x10] sm:$0xff]  ;;  %v2215_v17 = vpack.c.bf16 %v2103_v11, %v2095_v51  ;;  %v5197_v51 = vld [vmem:[%s9026_s1 + $0x48] sm:$0xff] }
 0x360   : > { %2380 = vmatmul.bf16.gmra.mxu0 %v2215_v17  ;;  %v2119_v17 = vld [vmem:[%s5571_s26 + $0x810] sm:$0xff] }
 0x362   : > { %v2001_v60 = vpop.f32.mrf.mxu0  ;;  %2907 = vmatpush.bf16.msrb.mxu3 %v5184_v57  ;;  %v5193_v57 = vld [vmem:[%s9026_s1 + $0x8] sm:$0xff] }
 0x363   : > { %v6757_v36 = vadd.f32 %v2001_v60, %v1953_v27  ;;  %v5189_v27 = vld [vmem:[%s9026_s1 + $0x18] sm:$0xff]  ;;  %v6808_v60 = vpop.f32.mrf.mxu1 }
 0x365   : > { %v2027_v50 = vpack.c.bf16 %v6757_v36, %v6745_v0  ;;  %v9031_v36 = vpack.c.bf16 %v6715_v6, %v6711_v52  ;;  %v5201_v52 = vld [vmem:[%s9026_s1 + $0xf0] sm:$0xff] }
 0x366   : > { %2908 = vmatpush.bf16.msrb.mxu3 %v5185_v16  ;;  %v6828_v16 = vpop.f32.mrf.mxu3 }
 0x36a   : > { %v2004_v4 = vpop.f32.mrf.mxu0  ;;  %2909 = vmatpush.bf16.msrb.mxu3 %v5187_v54  ;;  %v2118_v54 = vld [vmem:[%s5571_s26 + $0x808] sm:$0xff] }
 0x36b   : > { %v6774_v37 = vadd.f32 %v2004_v4, %v6683_v20  ;;  %v2213_v20 = vpack.c.bf16 %v2101_v28, %v2093_v58  ;;  %v5192_v4 = vld [vmem:[%s9026_s1 + $0x60] sm:$0xff] }
 0x36c   : > { %2958 = vmatpush.bf16.msrb.mxu0 %v5192_v4  ;;  %v2117_v58 = vld [vmem:[%s5571_s26 + $0x800] sm:$0xff]  ;;  %v2111_v4 = vld [vmem:[%s5571_s26 + $0x690] sm:$0xff] }
 0x36d   : > { %2282 = vmatmul.bf16.gmra.mxu2 %v2213_v20  ;;  %2331 = vmatmul.bf16.gmra.mxu3 %v2214_v8  ;;  %v2221_v28 = vpack.c.bf16 %v2117_v58, %v2109_v32  ;;  %v1869_v20 = vpop.f32.mrf.mxu1  ;;  %v5196_v8 = vld [vmem:[%s9026_s1 + $0x50] sm:$0xff]  ;;  %v1728_v58 = vadd.f32 %v6587_v22, %v6585_v25 }
 0x36e   : > { %2910 = vmatpush.bf16.msrb.mxu3 %v5189_v27  ;;  %v2222_v27 = vpack.c.bf16 %v2118_v54, %v2110_v23  ;;  %v1967_v11 = vpop.f32.mrf.mxu3  ;;  %v2133_v23 = vld [vmem:[%s5571_s26 + $0xb00] sm:$0xff]  ;;  %v1921_v54 = vpop.f32.mrf.mxu2 }
 0x36f   : > { %v1777_v46 = vadd.f32 %v6589_v47, %v1728_v58 }
 0x370   : > { %2959 = vmatpush.bf16.msrb.mxu0 %v5194_v13  ;;  %v2223_v13 = vpack.c.bf16 %v2119_v17, %v2111_v4  ;;  %v1718_v17 = vadd.f32 %v6527_v63, %v6522_v39 }
 0x372   : > { %v6790_v9 = vpop.f32.mrf.mxu0  ;;  %2911 = vmatpush.bf16.msrb.mxu3 %v5191_v59  ;;  %2385 = vmatmul.bf16.gmra.mxu0 %v2223_v13  ;;  %v1767_v47 = vadd.f32 %v6532_v44, %v1718_v17 }
 0x374   : > { %2960 = vmatpush.bf16.msrb.mxu0 %v5196_v8  ;;  %v1723_v8 = vadd.f32 %v6556_v35, %v6552_v1  ;;  %v1713_v35 = vadd.f32 %v6510_v29, %v6506_v43  ;;  %v1868_v43 = vadd.f32 %v6808_v60, %v6697_v62 }
 0x375   : > { %v1872_v32 = vpop.f32.mrf.mxu1 }
 0x376   : > { %2912 = vmatpush.bf16.msrb.mxu3 %v5193_v57  ;;  %v5198_v57 = vld [vmem:[%s9026_s1 + $0x40] sm:$0xff]  ;;  %v1970_v25 = vpop.f32.mrf.mxu3  ;;  %v1772_v22 = vadd.f32 %v6561_v5, %v1723_v8  ;;  %v1923_v39 = vpop.f32.mrf.mxu2  ;;  %v2127_v5 = vld [vmem:[%s5571_s26 + $0x990] sm:$0xff] }
 0x377   : > { %v2141_v8 = vld [vmem:[%s5571_s26 + $0xc80] sm:$0xff] }
 0x378   : > { %2961 = vmatpush.bf16.msrb.mxu0 %v5197_v51  ;;  %v2126_v51 = vld [vmem:[%s5571_s26 + $0x988] sm:$0xff]  ;;  %v1821_v1 = vadd.f32 %v6699_v40, %v1772_v22  ;;  %v1762_v40 = vadd.f32 %v6512_v3, %v1713_v35  ;;  %v1863_v3 = vadd.f32 %v6759_v48, %v6690_v56  ;;  %v2151_v35 = vld [vmem:[%s5571_s26 + $0xe10] sm:$0xff] }
 0x379   : > { %v2230_v4 = vpack.c.bf16 %v2134_v55, %v2126_v51  ;;  %v1873_v55 = vadd.f32 %v1872_v32, %v6704_v10  ;;  %v2149_v51 = vld [vmem:[%s5571_s26 + $0xe00] sm:$0xff]  ;;  %v2150_v22 = vld [vmem:[%s5571_s26 + $0xe08] sm:$0xff] }
 0x37a   : > { %v6810_v2 = vpop.f32.mrf.mxu0  ;;  %2913 = vmatpush.bf16.msrb.mxu3 %v5195_v31  ;;  %v1912_v56 = vadd.f32 %v6766_v30, %v1863_v3  ;;  %v2191_v3 = vld [vmem:[%s5571_s26 + $0x1590] sm:$0xff] }
 0x37b   : > { %v1922_v29 = vadd.f32 %v1921_v54, %v1873_v55 }
 0x37c   : > { %2962 = vmatpush.bf16.msrb.mxu0 %v5198_v57  ;;  %v1826_v57 = vadd.f32 %v6706_v26, %v1777_v46  ;;  %v2135_v26 = vld [vmem:[%s5571_s26 + $0xb10] sm:$0xff]  ;;  %v1870_v46 = vadd.f32 %v1869_v20, %v1821_v1  ;;  %v2237_v20 = vpack.c.bf16 %v2149_v51, %v2141_v8  ;;  %v1961_v30 = vadd.f32 %v6776_v18, %v1912_v56  ;;  %v2158_v18 = vld [vmem:[%s5571_s26 + $0xf88] sm:$0xff]  ;;  %v5204_v51 = vld [vmem:[%s9026_s1 + $0xd8] sm:$0xff] }
 0x37d   : > { %2287 = vmatmul.bf16.gmra.mxu2 %v2221_v28  ;;  %2336 = vmatmul.bf16.gmra.mxu3 %v2222_v27  ;;  %v2125_v28 = vld [vmem:[%s5571_s26 + $0x980] sm:$0xff]  ;;  %v1874_v13 = vpop.f32.mrf.mxu1  ;;  %v1971_v62 = vadd.f32 %v1970_v25, %v1922_v29  ;;  %v5210_v56 = vld [vmem:[%s9026_s1 + $0x1f0] sm:$0xff] }
 0x37e   : > { %v2229_v31 = vpack.c.bf16 %v2133_v23, %v2125_v28  ;;  %v1875_v58 = vadd.f32 %v1874_v13, %v1826_v57  ;;  %v1816_v28 = vadd.f32 %v6692_v15, %v1767_v47  ;;  %v2231_v23 = vpack.c.bf16 %v2135_v26, %v2127_v5  ;;  %v1972_v32 = vpop.f32.mrf.mxu3  ;;  %v2159_v5 = vld [vmem:[%s5571_s26 + $0xf90] sm:$0xff] }
 0x37f   : > { %v1811_v15 = vadd.f32 %v6685_v33, %v1762_v40  ;;  %v2167_v26 = vld [vmem:[%s5571_s26 + $0x1110] sm:$0xff]  ;;  %v2182_v40 = vld [vmem:[%s5571_s26 + $0x1408] sm:$0xff] }
 0x380   : > { %v1924_v44 = vadd.f32 %v1923_v39, %v1875_v58  ;;  %v1865_v10 = vadd.f32 %v6778_v34, %v1816_v28  ;;  %v2142_v34 = vld [vmem:[%s5571_s26 + $0xc88] sm:$0xff]  ;;  %v2010_v28 = vadd.f32 %v6810_v2, %v1961_v30  ;;  %v2165_v39 = vld [vmem:[%s5571_s26 + $0x1100] sm:$0xff] }
 0x381   : > { %v1860_v54 = vadd.f32 %v6742_v53, %v1811_v15  ;;  %v2238_v1 = vpack.c.bf16 %v2150_v22, %v2142_v34  ;;  %v2143_v53 = vld [vmem:[%s5571_s26 + $0xc90] sm:$0xff]  ;;  %v2190_v15 = vld [vmem:[%s5571_s26 + $0x1588] sm:$0xff] }
 0x382   : > { %v6832_v45 = vpop.f32.mrf.mxu0  ;;  %2390 = vmatmul.bf16.gmra.mxu0 %v2231_v23  ;;  %v1973_v60 = vadd.f32 %v1972_v32, %v1924_v44  ;;  %v1914_v33 = vadd.f32 %v6788_v41, %v1865_v10  ;;  %v2239_v55 = vpack.c.bf16 %v2151_v35, %v2143_v53  ;;  %v2181_v23 = vld [vmem:[%s5571_s26 + $0x1400] sm:$0xff]  ;;  %v2198_v10 = vld [vmem:[%s5571_s26 + $0x1708] sm:$0xff]  ;;  %v2091_v53 = vld [vmem:[%s5571_s26 + $0x230] sm:$0xff] }
 0x383   : > { %v1909_v41 = vadd.f32 %v6748_v38, %v1860_v54  ;;  %v2157_v38 = vld [vmem:[%s5571_s26 + $0xf80] sm:$0xff]  ;;  %v2262_v8 = vpack.c.bf16 %v2198_v10, %v2190_v15  ;;  %v5207_v54 = vld [vmem:[%s9026_s1 + $0xc8] sm:$0xff]  ;;  %v5212_v35 = vld [vmem:[%s9026_s1 + $0x138] sm:$0xff] }
 0x384   : > { %v2197_v44 = vld [vmem:[%s5571_s26 + $0x1700] sm:$0xff]  ;;  %v2082_v34 = vld [vmem:[%s5571_s26 + $0xa8] sm:$0xff] }
 0x385   : > { %v1958_v58 = vadd.f32 %v6753_v21, %v1909_v41  ;;  %v2090_v22 = vld [vmem:[%s5571_s26 + $0x228] sm:$0xff]  ;;  %v5227_v15 = vld [vmem:[%s9026_s1 + $0x160] sm:$0xff] }
 0x386   : > { %v5213_v30 = vld [vmem:[%s9026_s1 + $0x1e8] sm:$0xff]  ;;  %v2113_v10 = vld [vmem:[%s5571_s26 + $0x6a0] sm:$0xff] }
 0x38a   : > { %v6845_v59 = vpop.f32.mrf.mxu0 }
 0x38d   : > { %2292 = vmatmul.bf16.gmra.mxu2 %v2229_v31  ;;  %2341 = vmatmul.bf16.gmra.mxu3 %v2230_v4  ;;  %v1919_v31 = vadd.f32 %v1918_v24, %v1870_v46  ;;  %v1917_v4 = vadd.f32 %v6820_v49, %v1868_v43  ;;  %v2173_v46 = vld [vmem:[%s5571_s26 + $0x1280] sm:$0xff]  ;;  %v9030_v43 = vpack.c.bf16 %v6726_v61, %v6722_v19  ;;  %v2175_v61 = vld [vmem:[%s5571_s26 + $0x1290] sm:$0xff] }
 0x38e   : > { %v2253_v29 = vpack.c.bf16 %v2181_v23, %v2173_v46  ;;  %v5200_v19 = vld [vmem:[%s9027_s2] sm:$0xff]  ;;  %v2255_v6 = vpack.c.bf16 %v2183_v42, %v2175_v61  ;;  %v5220_v23 = vld [vmem:[%s9026_s1 + $0x170] sm:$0xff] }
 0x38f   : > { %v1968_v24 = vadd.f32 %v1967_v11, %v1919_v31  ;;  %v1966_v48 = vadd.f32 %v6828_v16, %v1917_v4  ;;  %v1963_v11 = vadd.f32 %v6800_v14, %v1914_v33  ;;  %v2007_v14 = vadd.f32 %v6790_v9, %v1958_v58  ;;  %v5203_v31 = vld [vmem:[%s9026_s1 + $0xe0] sm:$0xff]  ;;  %v2199_v4 = vld [vmem:[%s5571_s26 + $0x1710] sm:$0xff] }
 0x390   : > { %v2247_v9 = vpack.c.bf16 %v2167_v26, %v2159_v5  ;;  %v2081_v33 = vld [vmem:[%s5571_s26 + $0xa0] sm:$0xff]  ;;  %v5218_v26 = vld [vmem:[%s9026_s1 + $0x1d8] sm:$0xff] }
 0x391   : > { %v2015_v47 = vadd.f32 %v6845_v59, %v1966_v48  ;;  %v2012_v16 = vadd.f32 %v6832_v45, %v1963_v11  ;;  %v2166_v59 = vld [vmem:[%s5571_s26 + $0x1108] sm:$0xff]  ;;  %v2245_v45 = vpack.c.bf16 %v2165_v39, %v2157_v38  ;;  %v2028_v21 = vpack.c.bf16 %v2007_v14, %v6774_v37  ;;  %v5211_v48 = vld [vmem:[%s9027_s2 + $0x10] sm:$0xff]  ;;  %v2097_v58 = vld [vmem:[%s5571_s26 + $0x3a0] sm:$0xff] }
 0x392   : > { %v2016_v27 = vpop.f32.mrf.mxu0  ;;  %2395 = vmatmul.bf16.gmra.mxu0 %v2239_v55  ;;  %v2246_v2 = vpack.c.bf16 %v2166_v59, %v2158_v18  ;;  %v2174_v37 = vld [vmem:[%s5571_s26 + $0x1288] sm:$0xff]  ;;  %v5215_v38 = vld [vmem:[%s9026_s1 + $0x1e0] sm:$0xff]  ;;  %v5217_v59 = vld [vmem:[%s9026_s1 + $0x178] sm:$0xff] }
 0x393   : > { %v2017_v49 = vadd.f32 %v2016_v27, %v1968_v24  ;;  %v2254_v0 = vpack.c.bf16 %v2182_v40, %v2174_v37  ;;  %v2098_v14 = vld [vmem:[%s5571_s26 + $0x3a8] sm:$0xff]  ;;  %v5219_v46 = vld [vmem:[%s9026_s1 + $0x120] sm:$0xff]  ;;  %v5221_v40 = vld [vmem:[%s9026_s1 + $0x1d0] sm:$0xff] }
 0x394   : > { %v5216_v18 = vld [vmem:[%s9026_s1 + $0x128] sm:$0xff] }
 0x395   : > { %v2030_v27 = vpack.c.bf16 %v2017_v49, %v2015_v47 }
 0x39a   : > { %v2019_v63 = vpop.f32.mrf.mxu0 }
 0x39b   : > { %v2020_v57 = vadd.f32 %v2019_v63, %v1971_v62  ;;  %v2029_v63 = vpack.c.bf16 %v2012_v16, %v2010_v28  ;;  %v5206_v62 = vld [vmem:[%s9026_s1 + $0xd0] sm:$0xff]  ;;  %v2105_v28 = vld [vmem:[%s5571_s26 + $0x520] sm:$0xff] }
 0x39d   : > { %2297 = vmatmul.bf16.gmra.mxu2 %v2237_v20  ;;  %2346 = vmatmul.bf16.gmra.mxu3 %v2238_v1  ;;  %v5205_v20 = vld [vmem:[%s9027_s2 + $0x8] sm:$0xff]  ;;  %v5209_v1 = vld [vmem:[%s9026_s1 + $0x1f8] sm:$0xff] }
 0x3a2   : > { %v2021_v17 = vpop.f32.mrf.mxu0  ;;  %2400 = vmatmul.bf16.gmra.mxu0 %v2247_v9 }
 0x3a3   : > { %v2022_v13 = vadd.f32 %v2021_v17, %v1973_v60  ;;  %v2263_v60 = vpack.c.bf16 %v2199_v4, %v2191_v3  ;;  %v2089_v17 = vld [vmem:[%s5571_s26 + $0x220] sm:$0xff]  ;;  %v5229_v3 = vld [vmem:[%s9026_s1 + $0x108] sm:$0xff]  ;;  %v2080_v4 = vld [vmem:[%s5571_s26 + $0x98] sm:$0xff] }
 0x3a4   : > { %v2209_v24 = vpack.c.bf16 %v2089_v17, %v2081_v33 }
 0x3a5   : > { %v2031_v25 = vpack.c.bf16 %v2022_v13, %v2020_v57  ;;  %v5208_v57 = vld [vmem:[%s9026_s1 + $0xc0] sm:$0xff]  ;;  %v2210_v13 = vpack.c.bf16 %v2090_v22, %v2082_v34 }
 0x3a7   : > { %2040 = vmatpush.bf16.msra.mxu1 %v2031_v25  ;;  %v2083_v25 = vld [vmem:[%s5571_s26 + $0xb0] sm:$0xff] }
 0x3a8   : > { %v2211_v47 = vpack.c.bf16 %v2091_v53, %v2083_v25  ;;  %v5233_v25 = vld [vmem:[%s9026_s1 + $0xb8] sm:$0xff]  ;;  %v5234_v53 = vld [vmem:[%s9026_s1 + $0x148] sm:$0xff] }
 0x3ab   : > { %2041 = vmatpush.bf16.msra.mxu1 %v2030_v27  ;;  %v2376_v16 = vpop.f32.mrf.mxu0  ;;  %v5214_v27 = vld [vmem:[%s9026_s1 + $0x130] sm:$0xff] }
 0x3ad   : > { %2302 = vmatmul.bf16.gmra.mxu2 %v2245_v45  ;;  %2351 = vmatmul.bf16.gmra.mxu3 %v2246_v2  ;;  %v2217_v45 = vpack.c.bf16 %v2105_v28, %v2097_v58  ;;  %v2129_v58 = vld [vmem:[%s5571_s26 + $0x9a0] sm:$0xff] }
 0x3ae   : > { %v2137_v28 = vld [vmem:[%s5571_s26 + $0xb20] sm:$0xff] }
 0x3af   : > { %2042 = vmatpush.bf16.msra.mxu1 %v2029_v63  ;;  %v2106_v63 = vld [vmem:[%s5571_s26 + $0x528] sm:$0xff] }
 0x3b0   : > { %v2218_v5 = vpack.c.bf16 %v2106_v63, %v2098_v14  ;;  %v2138_v14 = vld [vmem:[%s5571_s26 + $0xb28] sm:$0xff]  ;;  %v2096_v63 = vld [vmem:[%s5571_s26 + $0x398] sm:$0xff] }
 0x3b2   : > { %2405 = vmatmul.bf16.gmra.mxu0 %v2255_v6  ;;  %v5225_v6 = vld [vmem:[%s9026_s1 + $0x1c8] sm:$0xff] }
 0x3b3   : > { %2043 = vmatpush.bf16.msra.mxu1 %v2028_v21  ;;  %v2378_v9 = vpop.f32.mrf.mxu0 }
 0x3b7   : > { %2044 = vmatpush.bf16.msra.mxu1 %v2027_v50  ;;  %v2189_v50 = vld [vmem:[%s5571_s26 + $0x1580] sm:$0xff] }
 0x3b8   : > { %v2261_v32 = vpack.c.bf16 %v2197_v44, %v2189_v50  ;;  %v5226_v50 = vld [vmem:[%s9026_s1 + $0x110] sm:$0xff] }
 0x3bb   : > { %2045 = vmatpush.bf16.msra.mxu1 %v2026_v7  ;;  %v5202_v7 = vld [vmem:[%s9026_s1 + $0xe8] sm:$0xff] }
 0x3bd   : > { %2307 = vmatmul.bf16.gmra.mxu2 %v2253_v29  ;;  %2356 = vmatmul.bf16.gmra.mxu3 %v2254_v0  ;;  %v2099_v0 = vld [vmem:[%s5571_s26 + $0x3b0] sm:$0xff] }
 0x3bf   : > { %2046 = vmatpush.bf16.msra.mxu1 %v9030_v43  ;;  %v5222_v43 = vld [vmem:[%s9027_s2 + $0x18] sm:$0xff] }
 0x3c2   : > { %2410 = vmatmul.bf16.gmra.mxu0 %v2263_v60 }
 0x3c3   : > { %2047 = vmatpush.bf16.msra.mxu1 %v9031_v36  ;;  %v2278_v49 = vpop.f32.mrf.mxu2  ;;  %v2107_v36 = vld [vmem:[%s5571_s26 + $0x530] sm:$0xff] }
 0x3c6   : > { %2048 = vmatmul.bf16.vlgmr.msra.gmra.mxu1 %v5200_v19  ;;  %v5224_v19 = vld [vmem:[%s9026_s1 + $0x168] sm:$0xff] }
 0x3c7   : > { %2416 = vmatpush.bf16.msrb.mxu1 %v5199_v12  ;;  %v5223_v12 = vld [vmem:[%s9026_s1 + $0x118] sm:$0xff] }
 0x3cb   : > { %2417 = vmatpush.bf16.msrb.mxu1 %v5201_v52  ;;  %v2280_v39 = vpop.f32.mrf.mxu2  ;;  %v2219_v52 = vpack.c.bf16 %v2107_v36, %v2099_v0  ;;  %v5239_v0 = vld [vmem:[%s9026_s1 + $0x98] sm:$0xff] }
 0x3cd   : > { %2312 = vmatmul.bf16.gmra.mxu2 %v2261_v32  ;;  %2361 = vmatmul.bf16.gmra.mxu3 %v2262_v8  ;;  %v2121_v32 = vld [vmem:[%s5571_s26 + $0x820] sm:$0xff] }
 0x3ce   : > { %v2225_v60 = vpack.c.bf16 %v2121_v32, %v2113_v10  ;;  %v2120_v10 = vld [vmem:[%s5571_s26 + $0x818] sm:$0xff] }
 0x3cf   : > { %2418 = vmatpush.bf16.msrb.mxu1 %v5202_v7 }
 0x3d2   : > { %2571 = vmatmul.bf16.vlgmr.msra.gmra.mxu0 %v2211_v47 }
 0x3d3   : > { %2419 = vmatpush.bf16.msrb.mxu1 %v5203_v31  ;;  %3151 = vmatpush.bf16.msra.mxu0 %v5217_v59  ;;  %v5228_v31 = vld [vmem:[%s9026_s1 + $0x1c0] sm:$0xff]  ;;  %v2233_v59 = vpack.c.bf16 %v2137_v28, %v2129_v58  ;;  %v2162_v58 = vld [vmem:[%s5571_s26 + $0xfa8] sm:$0xff] }
 0x3d4   : > { %v2170_v28 = vld [vmem:[%s5571_s26 + $0x1128] sm:$0xff] }
 0x3d6   : > { %2053 = vmatmul.bf16.gmra.mxu1 %v5205_v20  ;;  %v2122_v20 = vld [vmem:[%s5571_s26 + $0x828] sm:$0xff] }
 0x3d7   : > { %2420 = vmatpush.bf16.msrb.mxu1 %v5204_v51  ;;  %3152 = vmatpush.bf16.msra.mxu0 %v5220_v23  ;;  %v2114_v51 = vld [vmem:[%s5571_s26 + $0x6a8] sm:$0xff]  ;;  %v5238_v23 = vld [vmem:[%s9026_s1 + $0xa0] sm:$0xff] }
 0x3d8   : > { %v2226_v34 = vpack.c.bf16 %v2122_v20, %v2114_v51 }
 0x3db   : > { %2421 = vmatpush.bf16.msrb.mxu1 %v5206_v62  ;;  %3153 = vmatpush.bf16.msra.mxu0 %v5224_v19  ;;  %v2088_v62 = vld [vmem:[%s5571_s26 + $0x218] sm:$0xff] }
 0x3dc   : > { %v2208_v22 = vpack.c.bf16 %v2088_v62, %v2080_v4  ;;  %v2146_v4 = vld [vmem:[%s5571_s26 + $0xca8] sm:$0xff] }
 0x3dd   : > { %2473 = vmatmul.bf16.vlgmr.msra.gmra.mxu2 %v2209_v24  ;;  %2522 = vmatmul.bf16.vlgmr.msra.gmra.mxu3 %v2210_v13  ;;  %v2381_v7 = vpop.f32.mrf.mxu0  ;;  %v2154_v62 = vld [vmem:[%s5571_s26 + $0xe28] sm:$0xff] }
 0x3de   : > { %3102 = vmatpush.bf16.msra.mxu3 %v5212_v35 }
 0x3df   : > { %2422 = vmatpush.bf16.msrb.mxu1 %v5207_v54  ;;  %3154 = vmatpush.bf16.msra.mxu0 %v5227_v15  ;;  %v5230_v54 = vld [vmem:[%s9026_s1 + $0x158] sm:$0xff] }
 0x3e0   : > { %v2327_v41 = vpop.f32.mrf.mxu3  ;;  %v2112_v15 = vld [vmem:[%s5571_s26 + $0x698] sm:$0xff] }
 0x3e1   : > { %v2328_v11 = vadd.f32 %v2327_v41, %v2278_v49  ;;  %v2123_v49 = vld [vmem:[%s5571_s26 + $0x830] sm:$0xff]  ;;  %v2224_v20 = vpack.c.bf16 %v2120_v10, %v2112_v15  ;;  %v2033_v10 = vld [vmem:[%s9028_s3 + $0x38] sm:$0xff] }
 0x3e2   : > { %3103 = vmatpush.bf16.msra.mxu3 %v5214_v27  ;;  %2576 = vmatmul.bf16.gmra.mxu0 %v2219_v52  ;;  %v5236_v27 = vld [vmem:[%s9026_s1 + $0x140] sm:$0xff]  ;;  %v5240_v52 = vld [vmem:[%s9026_s1 + $0x90] sm:$0xff] }
 0x3e3   : > { %2423 = vmatpush.bf16.msrb.mxu1 %v5208_v57  ;;  %v6984_v55 = vadd.f32 %v2376_v16, %v2328_v11  ;;  %3155 = vmatpush.bf16.msra.mxu0 %v5230_v54  ;;  %v5231_v57 = vld [vmem:[%s9026_s1 + $0x100] sm:$0xff]  ;;  %v5235_v16 = vld [vmem:[%s9026_s1 + $0xb0] sm:$0xff]  ;;  %v2242_v54 = vpack.c.bf16 %v2154_v62, %v2146_v4 }
 0x3e5   : > { %v2383_v24 = vpop.f32.mrf.mxu0 }
 0x3e6   : > { %2058 = vmatmul.bf16.gmra.mxu1 %v5211_v48  ;;  %3104 = vmatpush.bf16.msra.mxu3 %v5216_v18  ;;  %v2115_v48 = vld [vmem:[%s5571_s26 + $0x6b0] sm:$0xff]  ;;  %v2104_v18 = vld [vmem:[%s5571_s26 + $0x518] sm:$0xff] }
 0x3e7   : > { %2612 = vmatpush.bf16.msra.mxu1 %v5209_v1  ;;  %v5232_v1 = vld [vmem:[%s9026_s1 + $0x150] sm:$0xff]  ;;  %v2227_v11 = vpack.c.bf16 %v2123_v49, %v2115_v48 }
 0x3e8   : > { %v2329_v21 = vpop.f32.mrf.mxu3  ;;  %3156 = vmatpush.bf16.msra.mxu0 %v5232_v1  ;;  %v2155_v1 = vld [vmem:[%s5571_s26 + $0xe30] sm:$0xff] }
 0x3e9   : > { %v2330_v2 = vadd.f32 %v2329_v21, %v2280_v39  ;;  %v2130_v39 = vld [vmem:[%s5571_s26 + $0x9a8] sm:$0xff] }
 0x3ea   : > { %3105 = vmatpush.bf16.msra.mxu3 %v5219_v46 }
 0x3eb   : > { %2613 = vmatpush.bf16.msra.mxu1 %v5210_v56  ;;  %v7008_v37 = vadd.f32 %v2378_v9, %v2330_v2 }
 0x3ec   : > { %3157 = vmatpush.bf16.msra.mxu0 %v5234_v53  ;;  %v2169_v53 = vld [vmem:[%s5571_s26 + $0x1120] sm:$0xff] }
 0x3ed   : > { %2478 = vmatmul.bf16.gmra.mxu2 %v2217_v45  ;;  %2527 = vmatmul.bf16.gmra.mxu3 %v2218_v5  ;;  %v5237_v45 = vld [vmem:[%s9026_s1 + $0xa8] sm:$0xff]  ;;  %v2234_v5 = vpack.c.bf16 %v2138_v14, %v2130_v39 }
 0x3ee   : > { %3106 = vmatpush.bf16.msra.mxu3 %v5223_v12 }
 0x3ef   : > { %2614 = vmatpush.bf16.msra.mxu1 %v5213_v30  ;;  %v2386_v47 = vpop.f32.mrf.mxu0 }
 0x3f0   : > { %v2283_v29 = vpop.f32.mrf.mxu2  ;;  %v2332_v61 = vpop.f32.mrf.mxu3  ;;  %3158 = vmatpush.bf16.msra.mxu0 %v5236_v27 }
 0x3f1   : > { %v2333_v42 = vadd.f32 %v2332_v61, %v2283_v29  ;;  %v2139_v29 = vld [vmem:[%s5571_s26 + $0xb30] sm:$0xff] }
 0x3f2   : > { %3107 = vmatpush.bf16.msra.mxu3 %v5226_v50  ;;  %2581 = vmatmul.bf16.gmra.mxu0 %v2227_v11 }
 0x3f3   : > { %2615 = vmatpush.bf16.msra.mxu1 %v5215_v38  ;;  %v7030_v44 = vadd.f32 %v2381_v7, %v2333_v42  ;;  %v2153_v7 = vld [vmem:[%s5571_s26 + $0xe20] sm:$0xff] }
 0x3f6   : > { %2063 = vmatmul.bf16.gmra.mxu1 %v5222_v43  ;;  %3108 = vmatpush.bf16.msra.mxu3 %v5229_v3  ;;  %v2131_v43 = vld [vmem:[%s5571_s26 + $0x9b0] sm:$0xff] }
 0x3f7   : > { %2616 = vmatpush.bf16.msra.mxu1 %v5218_v26  ;;  %v2216_v26 = vpack.c.bf16 %v2104_v18, %v2096_v63  ;;  %v2388_v9 = vpop.f32.mrf.mxu0  ;;  %v2235_v19 = vpack.c.bf16 %v2139_v29, %v2131_v43 }
 0x3f8   : > { %v2285_v8 = vpop.f32.mrf.mxu2  ;;  %v2334_v33 = vpop.f32.mrf.mxu3 }
 0x3f9   : > { %v2335_v17 = vadd.f32 %v2334_v33, %v2285_v8  ;;  %v5242_v33 = vld [vmem:[%s9026_s1 + $0x80] sm:$0xff] }
 0x3fa   : > { %3109 = vmatpush.bf16.msra.mxu3 %v5231_v57  ;;  %v2147_v57 = vld [vmem:[%s5571_s26 + $0xcb0] sm:$0xff] }
 0x3fb   : > { %2617 = vmatpush.bf16.msra.mxu1 %v5221_v40  ;;  %v7053_v13 = vadd.f32 %v2383_v24, %v2335_v17  ;;  %v2243_v48 = vpack.c.bf16 %v2155_v1, %v2147_v57  ;;  %v2034_v1 = vld [vmem:[%s9028_s3 + $0x68] sm:$0xff] }
 0x3fd   : > { %2483 = vmatmul.bf16.gmra.mxu2 %v2225_v60  ;;  %2532 = vmatmul.bf16.gmra.mxu3 %v2226_v34 }
 0x3ff   : > { %2618 = vmatpush.bf16.msra.mxu1 %v5225_v6  ;;  %v2391_v61 = vpop.f32.mrf.mxu0  ;;  %v2145_v6 = vld [vmem:[%s5571_s26 + $0xca0] sm:$0xff] }
 0x400   : > { %v2288_v56 = vpop.f32.mrf.mxu2  ;;  %v2337_v35 = vpop.f32.mrf.mxu3  ;;  %v2241_v32 = vpack.c.bf16 %v2153_v7, %v2145_v6 }
 0x401   : > { %v2338_v41 = vadd.f32 %v2337_v35, %v2288_v56  ;;  %v2128_v35 = vld [vmem:[%s5571_s26 + $0x998] sm:$0xff] }
 0x402   : > { %2586 = vmatmul.bf16.gmra.mxu0 %v2235_v19  ;;  %v2178_v19 = vld [vmem:[%s5571_s26 + $0x12a8] sm:$0xff] }
 0x403   : > { %2619 = vmatpush.bf16.msra.mxu1 %v5228_v31  ;;  %v7066_v30 = vadd.f32 %v2386_v47, %v2338_v41  ;;  %v5241_v31 = vld [vmem:[%s9026_s1 + $0x88] sm:$0xff]  ;;  %v2136_v41 = vld [vmem:[%s5571_s26 + $0xb18] sm:$0xff] }
 0x406   : > { %2424 = vmatmul.bf16.vlgmr.msrb.gmra.mxu1 %v2208_v22 }
 0x407   : > { %3004 = vmatpush.bf16.msrb.mxu1 %v5233_v25  ;;  %v2393_v3 = vpop.f32.mrf.mxu0  ;;  %v2161_v25 = vld [vmem:[%s5571_s26 + $0xfa0] sm:$0xff] }
 0x408   : > { %v2290_v38 = vpop.f32.mrf.mxu2  ;;  %v2339_v21 = vpop.f32.mrf.mxu3  ;;  %v2249_v11 = vpack.c.bf16 %v2169_v53, %v2161_v25  ;;  %v2194_v53 = vld [vmem:[%s5571_s26 + $0x15a8] sm:$0xff] }
 0x409   : > { %v2340_v2 = vadd.f32 %v2339_v21, %v2290_v38  ;;  %v2250_v38 = vpack.c.bf16 %v2170_v28, %v2162_v58 }
 0x40b   : > { %3005 = vmatpush.bf16.msrb.mxu1 %v5235_v16  ;;  %v7083_v46 = vadd.f32 %v2388_v9, %v2340_v2  ;;  %v2232_v16 = vpack.c.bf16 %v2136_v41, %v2128_v35  ;;  %v2185_v9 = vld [vmem:[%s5571_s26 + $0x1420] sm:$0xff]  ;;  %v2202_v35 = vld [vmem:[%s5571_s26 + $0x1728] sm:$0xff] }
 0x40d   : > { %2488 = vmatmul.bf16.gmra.mxu2 %v2233_v59  ;;  %2537 = vmatmul.bf16.gmra.mxu3 %v2234_v5  ;;  %v2163_v59 = vld [vmem:[%s5571_s26 + $0xfb0] sm:$0xff] }
 0x40f   : > { %3006 = vmatpush.bf16.msrb.mxu1 %v5237_v45  ;;  %v2396_v24 = vpop.f32.mrf.mxu0  ;;  %v2171_v45 = vld [vmem:[%s5571_s26 + $0x1130] sm:$0xff] }
 0x410   : > { %v2293_v40 = vpop.f32.mrf.mxu2  ;;  %v2342_v36 = vpop.f32.mrf.mxu3  ;;  %v2251_v2 = vpack.c.bf16 %v2171_v45, %v2163_v59 }
 0x411   : > { %v2343_v12 = vadd.f32 %v2342_v36, %v2293_v40  ;;  %v2152_v40 = vld [vmem:[%s5571_s26 + $0xe18] sm:$0xff] }
 0x412   : > { %2591 = vmatmul.bf16.gmra.mxu0 %v2243_v48 }
 0x413   : > { %3007 = vmatpush.bf16.msrb.mxu1 %v5238_v23  ;;  %v7093_v42 = vadd.f32 %v2391_v61, %v2343_v12  ;;  %v2144_v23 = vld [vmem:[%s5571_s26 + $0xc98] sm:$0xff]  ;;  %v2186_v61 = vld [vmem:[%s5571_s26 + $0x1428] sm:$0xff] }
 0x414   : > { %v2240_v36 = vpack.c.bf16 %v2152_v40, %v2144_v23  ;;  %v2258_v6 = vpack.c.bf16 %v2186_v61, %v2178_v19  ;;  %v2184_v23 = vld [vmem:[%s5571_s26 + $0x1418] sm:$0xff]  ;;  %v2036_v40 = vld [vmem:[%s9028_s3 + $0xc8] sm:$0xff] }
 0x415   : > { %v2037_v19 = vld [vmem:[%s9028_s3 + $0xf8] sm:$0xff] }
 0x416   : > { %2429 = vmatmul.bf16.gmra.mxu1 %v2216_v26  ;;  %v2177_v26 = vld [vmem:[%s5571_s26 + $0x12a0] sm:$0xff] }
 0x417   : > { %3008 = vmatpush.bf16.msrb.mxu1 %v5239_v0  ;;  %v7124_v27 = vpop.f32.mrf.mxu0  ;;  %v2257_v43 = vpack.c.bf16 %v2185_v9, %v2177_v26  ;;  %v2032_v0 = vld [vmem:[%s9028_s3 + $0x8] sm:$0xff]  ;;  %v2176_v9 = vld [vmem:[%s5571_s26 + $0x1298] sm:$0xff] }
 0x418   : > { %v2295_v50 = vpop.f32.mrf.mxu2  ;;  %v2344_v8 = vpop.f32.mrf.mxu3 }
 0x419   : > { %v2345_v51 = vadd.f32 %v2344_v8, %v2295_v50  ;;  %v2179_v8 = vld [vmem:[%s5571_s26 + $0x12b0] sm:$0xff] }
 0x41b   : > { %3009 = vmatpush.bf16.msrb.mxu1 %v5240_v52  ;;  %v7107_v60 = vadd.f32 %v2393_v3, %v2345_v51  ;;  %v2187_v51 = vld [vmem:[%s5571_s26 + $0x1430] sm:$0xff] }
 0x41c   : > { %v2259_v4 = vpack.c.bf16 %v2187_v51, %v2179_v8 }
 0x41d   : > { %2493 = vmatmul.bf16.gmra.mxu2 %v2241_v32  ;;  %2542 = vmatmul.bf16.gmra.mxu3 %v2242_v54 }
 0x41f   : > { %3010 = vmatpush.bf16.msrb.mxu1 %v5241_v31  ;;  %v2401_v18 = vpop.f32.mrf.mxu0 }
 0x420   : > { %v2298_v17 = vpop.f32.mrf.mxu2  ;;  %v2347_v34 = vpop.f32.mrf.mxu3 }
 0x421   : > { %v2348_v22 = vadd.f32 %v2347_v34, %v2298_v17  ;;  %v2201_v17 = vld [vmem:[%s5571_s26 + $0x1720] sm:$0xff]  ;;  %v2160_v34 = vld [vmem:[%s5571_s26 + $0xf98] sm:$0xff] }
 0x422   : > { %2596 = vmatmul.bf16.gmra.mxu0 %v2251_v2 }
 0x423   : > { %3011 = vmatpush.bf16.msrb.mxu1 %v5242_v33  ;;  %v7114_v56 = vadd.f32 %v2396_v24, %v2348_v22  ;;  %v2193_v33 = vld [vmem:[%s5571_s26 + $0x15a0] sm:$0xff]  ;;  %v2168_v22 = vld [vmem:[%s5571_s26 + $0x1118] sm:$0xff] }
 0x424   : > { %v2265_v24 = vpack.c.bf16 %v2201_v17, %v2193_v33  ;;  %v2248_v48 = vpack.c.bf16 %v2168_v22, %v2160_v34  ;;  %v2039_v33 = vld [vmem:[%s9028_s3 + $0x158] sm:$0xff] }
 0x426   : > { %2434 = vmatmul.bf16.gmra.mxu1 %v2224_v20 }
 0x427   : > { %v7143_v12 = vpop.f32.mrf.mxu0 }
 0x428   : > { %v7116_v49 = vpop.f32.mrf.mxu2  ;;  %v7122_v47 = vpop.f32.mrf.mxu3 }
 0x42d   : > { %2498 = vmatmul.bf16.gmra.mxu2 %v2249_v11  ;;  %2547 = vmatmul.bf16.gmra.mxu3 %v2250_v38  ;;  %v2266_v11 = vpack.c.bf16 %v2202_v35, %v2194_v53  ;;  %v2035_v38 = vld [vmem:[%s9028_s3 + $0x98] sm:$0xff] }
 0x42f   : > { %v2406_v31 = vpop.f32.mrf.mxu0 }
 0x430   : > { %v2303_v39 = vpop.f32.mrf.mxu2  ;;  %v2352_v14 = vpop.f32.mrf.mxu3 }
 0x431   : > { %v2353_v63 = vadd.f32 %v2352_v14, %v2303_v39 }
 0x432   : > { %2601 = vmatmul.bf16.gmra.mxu0 %v2259_v4 }
 0x433   : > { %v7130_v21 = vadd.f32 %v2401_v18, %v2353_v63  ;;  %v2195_v63 = vld [vmem:[%s5571_s26 + $0x15b0] sm:$0xff] }
 0x434   : > { %v2203_v18 = vld [vmem:[%s5571_s26 + $0x1730] sm:$0xff] }
 0x435   : > { %v2267_v2 = vpack.c.bf16 %v2203_v18, %v2195_v63 }
 0x436   : > { %2439 = vmatmul.bf16.gmra.mxu1 %v2232_v16 }
 0x437   : > { %v7167_v25 = vpop.f32.mrf.mxu0 }
 0x438   : > { %v7132_v5 = vpop.f32.mrf.mxu2  ;;  %v7138_v29 = vpop.f32.mrf.mxu3 }
 0x43d   : > { %2503 = vmatmul.bf16.gmra.mxu2 %v2257_v43  ;;  %2552 = vmatmul.bf16.gmra.mxu3 %v2258_v6  ;;  %v2256_v43 = vpack.c.bf16 %v2184_v23, %v2176_v9  ;;  %v5245_v9 = vld [vmem:[%s9026_s1 + $0x1a8] sm:$0xff] }
 0x43f   : > { %v2411_v14 = vpop.f32.mrf.mxu0 }
 0x440   : > { %v2308_v50 = vpop.f32.mrf.mxu2  ;;  %v2357_v15 = vpop.f32.mrf.mxu3 }
 0x441   : > { %v2358_v32 = vadd.f32 %v2357_v15, %v2308_v50  ;;  %v2192_v15 = vld [vmem:[%s5571_s26 + $0x1598] sm:$0xff] }
 0x442   : > { %2606 = vmatmul.bf16.gmra.mxu0 %v2267_v2  ;;  %v2100_v2 = vld [vmem:[%s5571_s26 + $0x3b8] sm:$0xff] }
 0x443   : > { %v2049_v52 = vpop.f32.mrf.mxu1  ;;  %v7153_v3 = vadd.f32 %v2406_v31, %v2358_v32  ;;  %v2038_v32 = vld [vmem:[%s9028_s3 + $0x128] sm:$0xff] }
 0x444   : > { %v2050_v7 = vadd.f32 %v2049_v52, %v2032_v0 }
 0x446   : > { %2069 = vst [vmem:[%s6539_s22 + $0x8] sm:$0xff] %v2050_v7  ;;  %2444 = vmatmul.bf16.gmra.mxu1 %v2240_v36 }
 0x447   : > { %v7193_v50 = vpop.f32.mrf.mxu0 }
 0x448   : > { %v7156_v54 = vpop.f32.mrf.mxu2  ;;  %v7162_v57 = vpop.f32.mrf.mxu3 }
 0x44b   : > { %v2051_v20 = vpop.f32.mrf.mxu1 }
 0x44c   : > { %v2052_v62 = vadd.f32 %v2051_v20, %v2033_v10  ;;  %v2200_v10 = vld [vmem:[%s5571_s26 + $0x1718] sm:$0xff] }
 0x44d   : > { %2508 = vmatmul.bf16.gmra.mxu2 %v2265_v24  ;;  %2557 = vmatmul.bf16.gmra.mxu3 %v2266_v11  ;;  %v2264_v31 = vpack.c.bf16 %v2200_v10, %v2192_v15  ;;  %v2084_v24 = vld [vmem:[%s5571_s26 + $0xb8] sm:$0xff] }
 0x44e   : > { %2070 = vst [vmem:[%s6539_s22 + $0x38] sm:$0xff] %v2052_v62 }
 0x44f   : > { %v2572_v62 = vpop.f32.mrf.mxu0 }
 0x450   : > { %v2313_v58 = vpop.f32.mrf.mxu2  ;;  %v2362_v28 = vpop.f32.mrf.mxu3 }
 0x451   : > { %v2363_v39 = vadd.f32 %v2362_v28, %v2313_v58  ;;  %v5243_v28 = vld [vmem:[%s9026_s1 + $0x1b8] sm:$0xff] }
 0x453   : > { %v2054_v41 = vpop.f32.mrf.mxu1  ;;  %v7177_v45 = vadd.f32 %v2411_v14, %v2363_v39 }
 0x454   : > { %v2055_v16 = vadd.f32 %v2054_v41, %v2034_v1  ;;  %v2092_v1 = vld [vmem:[%s5571_s26 + $0x238] sm:$0xff] }
 0x455   : > { %v2212_v35 = vpack.c.bf16 %v2092_v1, %v2084_v24  ;;  %v5250_v24 = vld [vmem:[%s9026_s1 + $0x180] sm:$0xff] }
 0x456   : > { %2071 = vst [vmem:[%s6539_s22 + $0x68] sm:$0xff] %v2055_v16  ;;  %2449 = vmatmul.bf16.gmra.mxu1 %v2248_v48 }
 0x457   : > { %v7212_v53 = vpop.f32.mrf.mxu0 }
 0x458   : > { %v7189_v61 = vpop.f32.mrf.mxu2  ;;  %v7191_v6 = vpop.f32.mrf.mxu3 }
 0x45b   : > { %v2056_v59 = vpop.f32.mrf.mxu1 }
 0x45c   : > { %v2057_v26 = vadd.f32 %v2056_v59, %v2035_v38  ;;  %v5244_v59 = vld [vmem:[%s9026_s1 + $0x1b0] sm:$0xff] }
 0x45e   : > { %2072 = vst [vmem:[%s6539_s22 + $0x98] sm:$0xff] %v2057_v26  ;;  %v2108_v26 = vld [vmem:[%s5571_s26 + $0x538] sm:$0xff] }
 0x45f   : > { %v2577_v18 = vpop.f32.mrf.mxu0 }
 0x460   : > { %v2474_v51 = vpop.f32.mrf.mxu2  ;;  %v2523_v4 = vpop.f32.mrf.mxu3 }
 0x463   : > { %v2059_v0 = vpop.f32.mrf.mxu1 }
 0x464   : > { %v2060_v36 = vadd.f32 %v2059_v0, %v2036_v40  ;;  %v2220_v40 = vpack.c.bf16 %v2108_v26, %v2100_v2 }
 0x466   : > { %2073 = vst [vmem:[%s6539_s22 + $0xc8] sm:$0xff] %v2060_v36  ;;  %2454 = vmatmul.bf16.gmra.mxu1 %v2256_v43  ;;  %v5246_v36 = vld [vmem:[%s9026_s1 + $0x1a0] sm:$0xff] }
 0x468   : > { %v7205_v22 = vpop.f32.mrf.mxu2  ;;  %v7210_v48 = vpop.f32.mrf.mxu3 }
 0x46b   : > { %v2061_v52 = vpop.f32.mrf.mxu1 }
 0x46c   : > { %v2062_v7 = vadd.f32 %v2061_v52, %v2037_v19  ;;  %v7239_v19 = vpop.f32.mrf.mxu0 }
 0x46e   : > { %2074 = vst [vmem:[%s6539_s22 + $0xf8] sm:$0xff] %v2062_v7  ;;  %v5247_v7 = vld [vmem:[%s9026_s1 + $0x198] sm:$0xff] }
 0x470   : > { %v2479_v58 = vpop.f32.mrf.mxu2  ;;  %v2528_v39 = vpop.f32.mrf.mxu3 }
 0x473   : > { %v2064_v8 = vpop.f32.mrf.mxu1 }
 0x474   : > { %v2065_v20 = vadd.f32 %v2064_v8, %v2038_v32  ;;  %v5248_v8 = vld [vmem:[%s9026_s1 + $0x190] sm:$0xff] }
 0x476   : > { %2075 = vst [vmem:[%s6539_s22 + $0x128] sm:$0xff] %v2065_v20  ;;  %2459 = vmatmul.bf16.gmra.mxu1 %v2264_v31  ;;  %v2116_v20 = vld [vmem:[%s5571_s26 + $0x6b8] sm:$0xff] }
 0x478   : > { %v7231_v23 = vpop.f32.mrf.mxu2  ;;  %v7233_v0 = vpop.f32.mrf.mxu3 }
 0x47b   : > { %v2066_v17 = vpop.f32.mrf.mxu1 }
 0x47c   : > { %v2067_v34 = vadd.f32 %v2066_v17, %v2039_v33  ;;  %v5249_v33 = vld [vmem:[%s9026_s1 + $0x188] sm:$0xff] }
 0x47e   : > { %2076 = vst [vmem:[%s6539_s22 + $0x158] sm:$0xff] %v2067_v34 }
 0x480   : > { %v2484_v31 = vpop.f32.mrf.mxu2 }
 0x483   : > { %v2425_v41 = vpop.f32.mrf.mxu1 }
 0x484   : > { %v2426_v11 = vadd.f32 %v2425_v41, %v6984_v55 }
 0x486   : > { %v2475_v16 = vadd.f32 %v2474_v51, %v2426_v11  ;;  %2620 = vmatmul.bf16.vlgmr.msra.gmra.mxu1 %v2212_v35  ;;  %v2533_v51 = vpop.f32.mrf.mxu3 }
 0x487   : > { %3200 = vmatpush.bf16.msra.mxu1 %v5243_v28 }
 0x488   : > { %v2524_v38 = vadd.f32 %v2523_v4, %v2475_v16  ;;  %v2124_v4 = vld [vmem:[%s5571_s26 + $0x838] sm:$0xff]  ;;  %v7261_v1 = vpop.f32.mrf.mxu2 }
 0x489   : > { %v2228_v17 = vpack.c.bf16 %v2124_v4, %v2116_v20 }
 0x48a   : > { %v7218_v14 = vadd.f32 %v2572_v62, %v2524_v38  ;;  %v2582_v62 = vpop.f32.mrf.mxu0 }
 0x48b   : > { %v2427_v63 = vpop.f32.mrf.mxu1  ;;  %3201 = vmatpush.bf16.msra.mxu1 %v5244_v59 }
 0x48c   : > { %v7224_v55 = vadd.f32 %v2427_v63, %v7008_v37  ;;  %v2132_v63 = vld [vmem:[%s5571_s26 + $0x9b8] sm:$0xff] }
 0x48e   : > { %v7263_v41 = vpop.f32.mrf.mxu3 }
 0x48f   : > { %3202 = vmatpush.bf16.msra.mxu1 %v5245_v9 }
 0x492   : > { %v7265_v16 = vpop.f32.mrf.mxu0 }
 0x493   : > { %v2430_v43 = vpop.f32.mrf.mxu1  ;;  %3203 = vmatpush.bf16.msra.mxu1 %v5246_v36 }
 0x494   : > { %v2431_v37 = vadd.f32 %v2430_v43, %v7030_v44 }
 0x496   : > { %v2480_v52 = vadd.f32 %v2479_v58, %v2431_v37  ;;  %2625 = vmatmul.bf16.gmra.mxu1 %v2220_v40 }
 0x497   : > { %3204 = vmatpush.bf16.msra.mxu1 %v5247_v7 }
 0x498   : > { %v2529_v15 = vadd.f32 %v2528_v39, %v2480_v52  ;;  %v2489_v39 = vpop.f32.mrf.mxu2 }
 0x49a   : > { %v7244_v10 = vadd.f32 %v2577_v18, %v2529_v15  ;;  %v2140_v18 = vld [vmem:[%s5571_s26 + $0xb38] sm:$0xff]  ;;  %v2587_v26 = vpop.f32.mrf.mxu0 }
 0x49b   : > { %v2432_v32 = vpop.f32.mrf.mxu1  ;;  %3205 = vmatpush.bf16.msra.mxu1 %v5248_v8  ;;  %v2236_v59 = vpack.c.bf16 %v2140_v18, %v2132_v63  ;;  %v2188_v63 = vld [vmem:[%s5571_s26 + $0x1438] sm:$0xff] }
 0x49c   : > { %v7250_v44 = vadd.f32 %v2432_v32, %v7053_v13  ;;  %v2148_v32 = vld [vmem:[%s5571_s26 + $0xcb8] sm:$0xff] }
 0x49f   : > { %3206 = vmatpush.bf16.msra.mxu1 %v5249_v33 }
 0x4a0   : > { %v7275_v36 = vpop.f32.mrf.mxu2 }
 0x4a2   : > { %v7282_v15 = vpop.f32.mrf.mxu0 }
 0x4a3   : > { %v2435_v34 = vpop.f32.mrf.mxu1  ;;  %3207 = vmatpush.bf16.msra.mxu1 %v5250_v24  ;;  %v2164_v24 = vld [vmem:[%s5571_s26 + $0xfb8] sm:$0xff] }
 0x4a4   : > { %v2436_v13 = vadd.f32 %v2435_v34, %v7066_v30  ;;  %v2538_v30 = vpop.f32.mrf.mxu3 }
 0x4a6   : > { %v2485_v35 = vadd.f32 %v2484_v31, %v2436_v13  ;;  %2630 = vmatmul.bf16.gmra.mxu1 %v2228_v17  ;;  %v2156_v31 = vld [vmem:[%s5571_s26 + $0xe38] sm:$0xff] }
 0x4a7   : > { %v2244_v8 = vpack.c.bf16 %v2156_v31, %v2148_v32  ;;  %v2172_v13 = vld [vmem:[%s5571_s26 + $0x1138] sm:$0xff]  ;;  %v2477_v32 = vadd.f32 %v7205_v22, %v7224_v55 }
 0x4a8   : > { %v2534_v11 = vadd.f32 %v2533_v51, %v2485_v35  ;;  %v2494_v51 = vpop.f32.mrf.mxu2  ;;  %v2252_v35 = vpack.c.bf16 %v2172_v13, %v2164_v24 }
 0x4aa   : > { %v7267_v58 = vadd.f32 %v2582_v62, %v2534_v11  ;;  %v2592_v33 = vpop.f32.mrf.mxu0 }
 0x4ab   : > { %v2437_v28 = vpop.f32.mrf.mxu1 }
 0x4ac   : > { %v7270_v38 = vadd.f32 %v2437_v28, %v7083_v46  ;;  %v7279_v52 = vpop.f32.mrf.mxu3 }
 0x4b3   : > { %v2440_v2 = vpop.f32.mrf.mxu1 }
 0x4b4   : > { %v2441_v9 = vadd.f32 %v2440_v2, %v7093_v42  ;;  %v2543_v4 = vpop.f32.mrf.mxu3 }
 0x4b6   : > { %v2490_v40 = vadd.f32 %v2489_v39, %v2441_v9  ;;  %2635 = vmatmul.bf16.gmra.mxu1 %v2236_v59  ;;  %v2180_v39 = vld [vmem:[%s5571_s26 + $0x12b8] sm:$0xff] }
 0x4b7   : > { %v2260_v18 = vpack.c.bf16 %v2188_v63, %v2180_v39  ;;  %v2204_v9 = vld [vmem:[%s5571_s26 + $0x1738] sm:$0xff]  ;;  %v7355_v39 = vpop.f32.mrf.mxu0 }
 0x4b8   : > { %v2539_v43 = vadd.f32 %v2538_v30, %v2490_v40 }
 0x4ba   : > { %v7277_v37 = vadd.f32 %v2587_v26, %v2539_v43  ;;  %v2196_v26 = vld [vmem:[%s5571_s26 + $0x15b8] sm:$0xff] }
 0x4bb   : > { %v2442_v46 = vpop.f32.mrf.mxu1  ;;  %v2268_v40 = vpack.c.bf16 %v2204_v9, %v2196_v26 }
 0x4bc   : > { %v2443_v7 = vadd.f32 %v2442_v46, %v7107_v60 }
 0x4c3   : > { %v2445_v42 = vpop.f32.mrf.mxu1 }
 0x4c4   : > { %v2446_v20 = vadd.f32 %v2445_v42, %v7114_v56 }
 0x4c6   : > { %v2495_v62 = vadd.f32 %v2494_v51, %v2446_v20  ;;  %2640 = vmatmul.bf16.gmra.mxu1 %v2244_v8  ;;  %v2526_v8 = vadd.f32 %v7210_v48, %v2477_v32  ;;  %v7372_v32 = vpop.f32.mrf.mxu0 }
 0x4c8   : > { %v2544_v17 = vadd.f32 %v2543_v4, %v2495_v62  ;;  %v2575_v42 = vadd.f32 %v7212_v53, %v2526_v8  ;;  %v2482_v4 = vadd.f32 %v7231_v23, %v7250_v44 }
 0x4ca   : > { %v7287_v34 = vadd.f32 %v2592_v33, %v2544_v17  ;;  %v2487_v17 = vadd.f32 %v7261_v1, %v7270_v38 }
 0x4cb   : > { %v7289_v60 = vpop.f32.mrf.mxu1 }
 0x4d3   : > { %v2450_v11 = vpop.f32.mrf.mxu1 }
 0x4d4   : > { %v7294_v28 = vadd.f32 %v2450_v11, %v7130_v21  ;;  %v7346_v11 = vpop.f32.mrf.mxu2 }
 0x4d6   : > { %2645 = vmatmul.bf16.gmra.mxu1 %v2252_v35  ;;  %v2492_v35 = vadd.f32 %v7275_v36, %v2443_v7 }
 0x4db   : > { %v7296_v56 = vpop.f32.mrf.mxu1 }
 0x4dc   : > { %v7359_v36 = vpop.f32.mrf.mxu2 }
 0x4e3   : > { %v2455_v30 = vpop.f32.mrf.mxu1 }
 0x4e4   : > { %v7301_v59 = vadd.f32 %v2455_v30, %v7153_v3  ;;  %v2722_v30 = vld [vmem:[%s5571_s26 + $0x240] sm:$0xff]  ;;  %v7374_v8 = vpop.f32.mrf.mxu2 }
 0x4e6   : > { %2650 = vmatmul.bf16.gmra.mxu1 %v2260_v18 }
 0x4eb   : > { %v7303_v2 = vpop.f32.mrf.mxu1 }
 0x4f3   : > { %v2460_v43 = vpop.f32.mrf.mxu1 }
 0x4f4   : > { %v7308_v21 = vadd.f32 %v2460_v43, %v7177_v45  ;;  %v2723_v43 = vld [vmem:[%s5571_s26 + $0x248] sm:$0xff]  ;;  %v2770_v45 = vld [vmem:[%s5571_s26 + $0xb40] sm:$0xff] }
 0x4f6   : > { %2655 = vmatmul.bf16.gmra.mxu1 %v2268_v40  ;;  %v2715_v40 = vld [vmem:[%s5571_s26 + $0xc8] sm:$0xff] }
 0x4fb   : > { %v7310_v46 = vpop.f32.mrf.mxu1 }
 0x503   : > { %v2621_v31 = vpop.f32.mrf.mxu1 }
 0x504   : > { %v7315_v3 = vadd.f32 %v2621_v31, %v7218_v14  ;;  %v2531_v14 = vadd.f32 %v7233_v0, %v2482_v4  ;;  %v2843_v31 = vpack.c.bf16 %v2723_v43, %v2715_v40  ;;  %v2724_v4 = vld [vmem:[%s5571_s26 + $0x250] sm:$0xff]  ;;  %v5258_v40 = vld [vmem:[%s9026_s1 + $0x18] sm:$0xff] }
 0x506   : > { %v2580_v55 = vadd.f32 %v7239_v19, %v2531_v14  ;;  %2963 = vmatmul.bf16.vlgmr.msrb.gmra.mxu0 %v2843_v31  ;;  %v2732_v31 = vld [vmem:[%s5571_s26 + $0x3d0] sm:$0xff] }
 0x50b   : > { %v2623_v51 = vpop.f32.mrf.mxu1 }
 0x50c   : > { %v7319_v20 = vadd.f32 %v2623_v51, %v2575_v42  ;;  %v5251_v42 = vld [vmem:[%s9026_s1 + $0x38] sm:$0xff]  ;;  %v2716_v51 = vld [vmem:[%s5571_s26 + $0xd0] sm:$0xff] }
 0x50d   : > { %3543 = vmatpush.bf16.msrb.mxu0 %v5251_v42  ;;  %v2740_v42 = vld [vmem:[%s5571_s26 + $0x550] sm:$0xff] }
 0x513   : > { %v2626_v62 = vpop.f32.mrf.mxu1 }
 0x514   : > { %v7326_v22 = vadd.f32 %v2626_v62, %v7244_v10  ;;  %v2536_v10 = vadd.f32 %v7263_v41, %v2487_v17  ;;  %v2541_v41 = vadd.f32 %v7279_v52, %v2492_v35  ;;  %v2844_v62 = vpack.c.bf16 %v2724_v4, %v2716_v51  ;;  %v2730_v17 = vld [vmem:[%s5571_s26 + $0x3c0] sm:$0xff]  ;;  %v7398_v35 = vpop.f32.mrf.mxu2 }
 0x515   : > { %v5259_v51 = vld [vmem:[%s9026_s1 + $0x60] sm:$0xff]  ;;  %v2852_v4 = vpack.c.bf16 %v2740_v42, %v2732_v31  ;;  %v5265_v31 = vld [vmem:[%s9026_s1 + $0x48] sm:$0xff] }
 0x516   : > { %v2585_v44 = vadd.f32 %v7265_v16, %v2536_v10  ;;  %v7352_v16 = vpop.f32.mrf.mxu3  ;;  %v2590_v38 = vadd.f32 %v7282_v15, %v2541_v41  ;;  %3012 = vmatmul.bf16.vlgmr.msrb.gmra.mxu1 %v2844_v62  ;;  %v7393_v10 = vpop.f32.mrf.mxu0  ;;  %v2747_v42 = vld [vmem:[%s5571_s26 + $0x6c8] sm:$0xff] }
 0x51b   : > { %v2628_v48 = vpop.f32.mrf.mxu1 }
 0x51c   : > { %v7330_v33 = vadd.f32 %v2628_v48, %v2580_v55  ;;  %v5252_v55 = vld [vmem:[%s9026_s1 + $0x30] sm:$0xff]  ;;  %v5253_v48 = vld [vmem:[%s9026_s1 + $0x78] sm:$0xff]  ;;  %v2506_v62 = vpop.f32.mrf.mxu2 }
 0x51d   : > { %3544 = vmatpush.bf16.msrb.mxu0 %v5252_v55  ;;  %3592 = vmatpush.bf16.msrb.mxu1 %v5253_v48  ;;  %v5260_v48 = vld [vmem:[%s9026_s1 + $0x10] sm:$0xff] }
 0x51e   : > { %v7365_v26 = vpop.f32.mrf.mxu3  ;;  %v7418_v43 = vpop.f32.mrf.mxu0 }
 0x523   : > { %v2631_v24 = vpop.f32.mrf.mxu1 }
 0x524   : > { %v7337_v23 = vadd.f32 %v2631_v24, %v7267_v58  ;;  %v2738_v24 = vld [vmem:[%s5571_s26 + $0x540] sm:$0xff] }
 0x526   : > { %3017 = vmatmul.bf16.gmra.mxu1 %v2852_v4  ;;  %v2365_v4 = vadd.f32 %v7191_v6, %v7189_v61  ;;  %v2355_v6 = vadd.f32 %v7138_v29, %v7132_v5 }
 0x52b   : > { %v2633_v0 = vpop.f32.mrf.mxu1 }
 0x52c   : > { %v7341_v19 = vadd.f32 %v2633_v0, %v2585_v44  ;;  %v2850_v44 = vpack.c.bf16 %v2738_v24, %v2730_v17  ;;  %v5254_v0 = vld [vmem:[%s9026_s1 + $0x28] sm:$0xff]  ;;  %v5261_v17 = vld [vmem:[%s9026_s1 + $0x58] sm:$0xff] }
 0x52d   : > { %3545 = vmatpush.bf16.msrb.mxu0 %v5254_v0  ;;  %v2754_v0 = vld [vmem:[%s5571_s26 + $0x840] sm:$0xff] }
 0x52e   : > { %v2663_v13 = vpack.c.bf16 %v7341_v19, %v7337_v23  ;;  %v5267_v23 = vld [vmem:[%s9026_s1 + $0xf8] sm:$0xff]  ;;  %v2818_v19 = vld [vmem:[%s5571_s26 + $0x1440] sm:$0xff] }
 0x533   : > { %v2636_v1 = vpop.f32.mrf.mxu1 }
 0x534   : > { %v7349_v58 = vadd.f32 %v2636_v1, %v7277_v37  ;;  %v2714_v37 = vld [vmem:[%s5571_s26 + $0xc0] sm:$0xff]  ;;  %v5255_v1 = vld [vmem:[%s9026_s1 + $0x70] sm:$0xff] }
 0x535   : > { %v2842_v52 = vpack.c.bf16 %v2722_v30, %v2714_v37  ;;  %3593 = vmatpush.bf16.msrb.mxu1 %v5255_v1  ;;  %v5256_v37 = vld [vmem:[%s9026_s1 + $0x20] sm:$0xff] }
 0x536   : > { %3546 = vmatpush.bf16.msrb.mxu0 %v5256_v37  ;;  %v2604_v37 = vpop.f32.mrf.mxu0 }
 0x537   : > { %2914 = vmatmul.bf16.vlgmr.msrb.gmra.mxu3 %v2842_v52 }
 0x53a   : > { %3547 = vmatpush.bf16.msrb.mxu0 %v5258_v40  ;;  %v2509_v40 = vpop.f32.mrf.mxu2 }
 0x53b   : > { %v2638_v63 = vpop.f32.mrf.mxu1 }
 0x53c   : > { %v7357_v18 = vadd.f32 %v2638_v63, %v2590_v38  ;;  %v2731_v38 = vld [vmem:[%s5571_s26 + $0x3c8] sm:$0xff] }
 0x53d   : > { %v2739_v63 = vld [vmem:[%s5571_s26 + $0x548] sm:$0xff] }
 0x53e   : > { %v2664_v7 = vpack.c.bf16 %v7357_v18, %v7349_v58  ;;  %v2851_v52 = vpack.c.bf16 %v2739_v63, %v2731_v38  ;;  %3548 = vmatpush.bf16.msrb.mxu0 %v5260_v48  ;;  %v5262_v38 = vld [vmem:[%s9026_s1 + $0x8] sm:$0xff]  ;;  %v5263_v63 = vld [vmem:[%s9026_s1 + $0x50] sm:$0xff]  ;;  %v2607_v61 = vpop.f32.mrf.mxu0  ;;  %v9033_v18 = vpack.c.bf16 %v7319_v20, %v7315_v3 }
 0x53f   : > { %v5269_v3 = vld [vmem:[%s9026_s1 + $0xf0] sm:$0xff]  ;;  %v2811_v20 = vld [vmem:[%s5571_s26 + $0x12c8] sm:$0xff] }
 0x540   : > { %2968 = vmatmul.bf16.gmra.mxu0 %v2851_v52 }
 0x542   : > { %3549 = vmatpush.bf16.msrb.mxu0 %v5262_v38  ;;  %v5266_v38 = vld [vmem:[%s9026_s1 + $0x40] sm:$0xff] }
 0x543   : > { %v2641_v9 = vpop.f32.mrf.mxu1 }
 0x544   : > { %v7368_v15 = vadd.f32 %v2641_v9, %v7287_v34  ;;  %v7381_v34 = vpop.f32.mrf.mxu3  ;;  %v5257_v9 = vld [vmem:[%s9026_s1 + $0x68] sm:$0xff] }
 0x545   : > { %3594 = vmatpush.bf16.msrb.mxu1 %v5257_v9  ;;  %v5264_v9 = vld [vmem:[%s9026_s1] sm:$0xff] }
 0x546   : > { %3550 = vmatpush.bf16.msrb.mxu0 %v5264_v9 }
 0x547   : > { %2919 = vmatmul.bf16.gmra.mxu3 %v2850_v44  ;;  %v2746_v44 = vld [vmem:[%s5571_s26 + $0x6c0] sm:$0xff] }
 0x548   : > { %v2858_v1 = vpack.c.bf16 %v2754_v0, %v2746_v44  ;;  %v2756_v44 = vld [vmem:[%s5571_s26 + $0x850] sm:$0xff] }
 0x549   : > { %3595 = vmatpush.bf16.msrb.mxu1 %v5259_v51  ;;  %v2755_v51 = vld [vmem:[%s5571_s26 + $0x848] sm:$0xff] }
 0x54a   : > { %v2859_v48 = vpack.c.bf16 %v2755_v51, %v2747_v42 }
 0x54b   : > { %v7383_v14 = vpop.f32.mrf.mxu1 }
 0x54c   : > { %v7410_v30 = vpop.f32.mrf.mxu3 }
 0x54d   : > { %3596 = vmatpush.bf16.msrb.mxu1 %v5261_v17  ;;  %v2748_v17 = vld [vmem:[%s5571_s26 + $0x6d0] sm:$0xff] }
 0x550   : > { %2973 = vmatmul.bf16.gmra.mxu0 %v2859_v48  ;;  %v2609_v48 = vpop.f32.mrf.mxu0 }
 0x551   : > { %3597 = vmatpush.bf16.msrb.mxu1 %v5263_v63  ;;  %v2360_v63 = vadd.f32 %v7162_v57, %v7156_v54  ;;  %v2350_v54 = vadd.f32 %v7122_v47, %v7116_v49  ;;  %v2404_v57 = vadd.f32 %v7143_v12, %v2355_v6  ;;  %v2772_v6 = vld [vmem:[%s5571_s26 + $0xb50] sm:$0xff] }
 0x553   : > { %v7403_v41 = vpop.f32.mrf.mxu1  ;;  %v2409_v42 = vadd.f32 %v7167_v25, %v2360_v63 }
 0x554   : > { %v2555_v24 = vpop.f32.mrf.mxu3 }
 0x555   : > { %3598 = vmatpush.bf16.msrb.mxu1 %v5265_v31  ;;  %v2414_v31 = vadd.f32 %v7193_v50, %v2365_v4  ;;  %v2510_v50 = vadd.f32 %v2509_v40, %v7308_v21  ;;  %v2763_v21 = vld [vmem:[%s5571_s26 + $0x9c8] sm:$0xff] }
 0x556   : > { %v2771_v40 = vld [vmem:[%s5571_s26 + $0xb48] sm:$0xff] }
 0x557   : > { %2924 = vmatmul.bf16.gmra.mxu3 %v2858_v1  ;;  %v2860_v1 = vpack.c.bf16 %v2756_v44, %v2748_v17  ;;  %v2463_v51 = vadd.f32 %v7310_v46, %v2414_v31  ;;  %v2511_v17 = vpop.f32.mrf.mxu2  ;;  %v2762_v44 = vld [vmem:[%s5571_s26 + $0x9c0] sm:$0xff]  ;;  %v2453_v46 = vadd.f32 %v7296_v56, %v2404_v57  ;;  %v2867_v63 = vpack.c.bf16 %v2771_v40, %v2763_v21  ;;  %v2764_v31 = vld [vmem:[%s5571_s26 + $0x9d0] sm:$0xff] }
 0x558   : > { %v2866_v53 = vpack.c.bf16 %v2770_v45, %v2762_v44  ;;  %v2505_v45 = vadd.f32 %v7398_v35, %v7301_v59  ;;  %v2868_v56 = vpack.c.bf16 %v2772_v6, %v2764_v31  ;;  %v2786_v44 = vld [vmem:[%s5571_s26 + $0xe40] sm:$0xff] }
 0x559   : > { %3599 = vmatpush.bf16.msrb.mxu1 %v5266_v38  ;;  %v2458_v38 = vadd.f32 %v7303_v2, %v2409_v42  ;;  %v2512_v5 = vadd.f32 %v2511_v17, %v2463_v51  ;;  %v2399_v2 = vadd.f32 %v7124_v27, %v2350_v54  ;;  %v2500_v27 = vadd.f32 %v7359_v36, %v7294_v28  ;;  %v2826_v31 = vld [vmem:[%s5571_s26 + $0x15c0] sm:$0xff] }
 0x55a   : > { %3022 = vmatmul.bf16.gmra.mxu1 %v2860_v1  ;;  %v2554_v59 = vadd.f32 %v7410_v30, %v2505_v45  ;;  %v2834_v6 = vld [vmem:[%s5571_s26 + $0x1740] sm:$0xff] }
 0x55b   : > { %v7425_v55 = vpop.f32.mrf.mxu1  ;;  %v2507_v4 = vadd.f32 %v2506_v62, %v2458_v38  ;;  %v2448_v12 = vadd.f32 %v7289_v60, %v2399_v2  ;;  %v2549_v17 = vadd.f32 %v7365_v26, %v2500_v27  ;;  %v2804_v2 = vld [vmem:[%s5571_s26 + $0x1150] sm:$0xff] }
 0x55c   : > { %v2558_v0 = vpop.f32.mrf.mxu3  ;;  %v2603_v28 = vadd.f32 %v7418_v43, %v2554_v59  ;;  %v2779_v43 = vld [vmem:[%s5571_s26 + $0xcc8] sm:$0xff]  ;;  %v5274_v27 = vld [vmem:[%s9026_s1 + $0xd0] sm:$0xff] }
 0x55d   : > { %v2559_v49 = vadd.f32 %v2558_v0, %v2510_v50  ;;  %v2556_v1 = vadd.f32 %v2555_v24, %v2507_v4  ;;  %v2497_v60 = vadd.f32 %v7346_v11, %v2448_v12  ;;  %v2598_v54 = vadd.f32 %v7372_v32, %v2549_v17  ;;  %v2803_v4 = vld [vmem:[%s5571_s26 + $0x1148] sm:$0xff]  ;;  %v2812_v12 = vld [vmem:[%s5571_s26 + $0x12d0] sm:$0xff] }
 0x55e   : > { %v2827_v59 = vld [vmem:[%s5571_s26 + $0x15c8] sm:$0xff]  ;;  %v5278_v17 = vld [vmem:[%s9026_s1 + $0x1f0] sm:$0xff] }
 0x55f   : > { %v2608_v35 = vadd.f32 %v2607_v61, %v2559_v49  ;;  %v2605_v24 = vadd.f32 %v2604_v37, %v2556_v1  ;;  %v2778_v61 = vld [vmem:[%s5571_s26 + $0xcc0] sm:$0xff]  ;;  %v2546_v11 = vadd.f32 %v7352_v16, %v2497_v60  ;;  %v2647_v16 = vadd.f32 %v7403_v41, %v2598_v54  ;;  %v5272_v1 = vld [vmem:[%s9026_s1 + $0xd8] sm:$0xff]  ;;  %v2828_v60 = vld [vmem:[%s5571_s26 + $0x15d0] sm:$0xff] }
 0x560   : > { %2978 = vmatmul.bf16.gmra.mxu0 %v2867_v63  ;;  %v2874_v38 = vpack.c.bf16 %v2786_v44, %v2778_v61  ;;  %v2802_v41 = vld [vmem:[%s5571_s26 + $0x1140] sm:$0xff]  ;;  %v9032_v49 = vpack.c.bf16 %v7330_v33, %v7326_v22  ;;  %v5273_v63 = vld [vmem:[%s9027_s2 + $0x8] sm:$0xff] }
 0x561   : > { %v2595_v50 = vadd.f32 %v7355_v39, %v2546_v11  ;;  %v2794_v39 = vld [vmem:[%s5571_s26 + $0xfc0] sm:$0xff]  ;;  %v5280_v44 = vld [vmem:[%s9026_s1 + $0x1e8] sm:$0xff] }
 0x562   : > { %v5268_v22 = vld [vmem:[%s9027_s2] sm:$0xff]  ;;  %v2719_v11 = vld [vmem:[%s5571_s26 + $0xe8] sm:$0xff] }
 0x563   : > { %v7441_v52 = vpop.f32.mrf.mxu1  ;;  %v2810_v33 = vld [vmem:[%s5571_s26 + $0x12c0] sm:$0xff] }
 0x564   : > { %v2560_v29 = vpop.f32.mrf.mxu3  ;;  %v2652_v37 = vadd.f32 %v7441_v52, %v2603_v28  ;;  %v2788_v52 = vld [vmem:[%s5571_s26 + $0xe50] sm:$0xff] }
 0x565   : > { %v2561_v47 = vadd.f32 %v2560_v29, %v2512_v5  ;;  %v2644_v5 = vadd.f32 %v7383_v14, %v2595_v50  ;;  %v2795_v14 = vld [vmem:[%s5571_s26 + $0xfc8] sm:$0xff]  ;;  %v5279_v28 = vld [vmem:[%s9027_s2 + $0x10] sm:$0xff] }
 0x566   : > { %v2883_v45 = vpack.c.bf16 %v2803_v4, %v2795_v14  ;;  %v2742_v14 = vld [vmem:[%s5571_s26 + $0x560] sm:$0xff]  ;;  %v5287_v4 = vld [vmem:[%s9026_s1 + $0x130] sm:$0xff] }
 0x567   : > { %2929 = vmatmul.bf16.gmra.mxu3 %v2866_v53  ;;  %v2502_v53 = vadd.f32 %v7374_v8, %v2453_v46  ;;  %v2610_v62 = vadd.f32 %v2609_v48, %v2561_v47  ;;  %v2882_v46 = vpack.c.bf16 %v2802_v41, %v2794_v39  ;;  %v5270_v47 = vld [vmem:[%s9026_s1 + $0xe8] sm:$0xff]  ;;  %v2820_v48 = vld [vmem:[%s5571_s26 + $0x1450] sm:$0xff]  ;;  %v5286_v41 = vld [vmem:[%s9027_s2 + $0x18] sm:$0xff] }
 0x568   : > { %v2892_v40 = vpack.c.bf16 %v2820_v48, %v2812_v12  ;;  %v5285_v39 = vld [vmem:[%s9026_s1 + $0x1d0] sm:$0xff]  ;;  %v5292_v12 = vld [vmem:[%s9026_s1 + $0x1c0] sm:$0xff] }
 0x569   : > { %v2551_v8 = vadd.f32 %v7381_v34, %v2502_v53  ;;  %v5271_v53 = vld [vmem:[%s9026_s1 + $0xe0] sm:$0xff] }
 0x56a   : > { %3027 = vmatmul.bf16.gmra.mxu1 %v2868_v56  ;;  %v2898_v56 = vpack.c.bf16 %v2834_v6, %v2826_v31  ;;  %v5293_v48 = vld [vmem:[%s9026_s1 + $0x120] sm:$0xff] }
 0x56b   : > { %v2653_v9 = vpop.f32.mrf.mxu1  ;;  %v2600_v34 = vadd.f32 %v7393_v10, %v2551_v8  ;;  %v2780_v10 = vld [vmem:[%s5571_s26 + $0xcd0] sm:$0xff] }
 0x56c   : > { %v2654_v36 = vadd.f32 %v2653_v9, %v2605_v24  ;;  %v2787_v9 = vld [vmem:[%s5571_s26 + $0xe48] sm:$0xff]  ;;  %v2876_v29 = vpack.c.bf16 %v2788_v52, %v2780_v10  ;;  %v5282_v52 = vld [vmem:[%s9026_s1 + $0x1d8] sm:$0xff] }
 0x56d   : > { %v2649_v26 = vadd.f32 %v7425_v55, %v2600_v34  ;;  %v2875_v55 = vpack.c.bf16 %v2787_v9, %v2779_v43  ;;  %v2727_v34 = vld [vmem:[%s5571_s26 + $0x268] sm:$0xff]  ;;  %v5281_v9 = vld [vmem:[%s9026_s1 + $0x1e0] sm:$0xff] }
 0x56e   : > { %v2667_v57 = vpack.c.bf16 %v2654_v36, %v2652_v37  ;;  %v2718_v36 = vld [vmem:[%s5571_s26 + $0xe0] sm:$0xff]  ;;  %v2847_v43 = vpack.c.bf16 %v2727_v34, %v2719_v11  ;;  %v2752_v34 = vld [vmem:[%s5571_s26 + $0x6f0] sm:$0xff] }
 0x56f   : > { %v2666_v32 = vpack.c.bf16 %v2649_v26, %v2647_v16  ;;  %v2720_v26 = vld [vmem:[%s5571_s26 + $0xf0] sm:$0xff] }
 0x570   : > { %2983 = vmatmul.bf16.gmra.mxu0 %v2875_v55 }
 0x573   : > { %v2656_v25 = vpop.f32.mrf.mxu1 }
 0x574   : > { %v2657_v42 = vadd.f32 %v2656_v25, %v2608_v35  ;;  %v2665_v25 = vpack.c.bf16 %v2644_v5, %v7368_v15  ;;  %v2796_v15 = vld [vmem:[%s5571_s26 + $0xfd0] sm:$0xff]  ;;  %v2835_v35 = vld [vmem:[%s5571_s26 + $0x1748] sm:$0xff]  ;;  %v5283_v5 = vld [vmem:[%s9026_s1 + $0x138] sm:$0xff] }
 0x575   : > { %v2884_v58 = vpack.c.bf16 %v2804_v2, %v2796_v15  ;;  %v2899_v8 = vpack.c.bf16 %v2835_v35, %v2827_v59 }
 0x577   : > { %2934 = vmatmul.bf16.gmra.mxu3 %v2874_v38 }
 0x57a   : > { %3032 = vmatmul.bf16.gmra.mxu1 %v2876_v29 }
 0x57b   : > { %v2658_v0 = vpop.f32.mrf.mxu1 }
 0x57c   : > { %v2659_v51 = vadd.f32 %v2658_v0, %v2610_v62  ;;  %v5275_v62 = vld [vmem:[%s9026_s1 + $0xc8] sm:$0xff]  ;;  %v2836_v0 = vld [vmem:[%s5571_s26 + $0x1750] sm:$0xff] }
 0x57d   : > { %v2900_v24 = vpack.c.bf16 %v2836_v0, %v2828_v60  ;;  %v2750_v60 = vld [vmem:[%s5571_s26 + $0x6e0] sm:$0xff] }
 0x57e   : > { %v2668_v30 = vpack.c.bf16 %v2659_v51, %v2657_v42  ;;  %v5276_v42 = vld [vmem:[%s9026_s1 + $0xc0] sm:$0xff]  ;;  %v5277_v51 = vld [vmem:[%s9026_s1 + $0x1f8] sm:$0xff] }
 0x57f   : > { %v2758_v0 = vld [vmem:[%s5571_s26 + $0x860] sm:$0xff] }
 0x580   : > { %2677 = vmatpush.bf16.msrb.mxu2 %v2668_v30  ;;  %2988 = vmatmul.bf16.gmra.mxu0 %v2883_v45  ;;  %v2726_v30 = vld [vmem:[%s5571_s26 + $0x260] sm:$0xff]  ;;  %v5288_v45 = vld [vmem:[%s9026_s1 + $0x170] sm:$0xff] }
 0x581   : > { %v2846_v61 = vpack.c.bf16 %v2726_v30, %v2718_v36  ;;  %v2751_v36 = vld [vmem:[%s5571_s26 + $0x6e8] sm:$0xff] }
 0x582   : > { %v2759_v30 = vld [vmem:[%s5571_s26 + $0x868] sm:$0xff] }
 0x583   : > { %v2964_v38 = vpop.f32.mrf.mxu0 }
 0x584   : > { %2678 = vmatpush.bf16.msrb.mxu2 %v2667_v57  ;;  %v2728_v57 = vld [vmem:[%s5571_s26 + $0x270] sm:$0xff] }
 0x585   : > { %v2848_v50 = vpack.c.bf16 %v2728_v57, %v2720_v26  ;;  %v5303_v57 = vld [vmem:[%s9026_s1 + $0x100] sm:$0xff] }
 0x587   : > { %2939 = vmatmul.bf16.gmra.mxu3 %v2882_v46  ;;  %v2734_v46 = vld [vmem:[%s5571_s26 + $0x3e0] sm:$0xff] }
 0x588   : > { %2679 = vmatpush.bf16.msrb.mxu2 %v2666_v32  ;;  %v2854_v15 = vpack.c.bf16 %v2742_v14, %v2734_v46  ;;  %v2766_v46 = vld [vmem:[%s5571_s26 + $0x9e0] sm:$0xff] }
 0x589   : > { %v2774_v14 = vld [vmem:[%s5571_s26 + $0xb60] sm:$0xff] }
 0x58a   : > { %3037 = vmatmul.bf16.gmra.mxu1 %v2884_v58  ;;  %v5289_v58 = vld [vmem:[%s9026_s1 + $0x1c8] sm:$0xff] }
 0x58b   : > { %v2966_v55 = vpop.f32.mrf.mxu0 }
 0x58c   : > { %2680 = vmatpush.bf16.msrb.mxu2 %v2665_v25  ;;  %v5284_v25 = vld [vmem:[%s9026_s1 + $0x178] sm:$0xff] }
 0x590   : > { %2681 = vmatpush.bf16.msrb.mxu2 %v2664_v7  ;;  %v2819_v7 = vld [vmem:[%s5571_s26 + $0x1448] sm:$0xff] }
 0x591   : > { %v2891_v21 = vpack.c.bf16 %v2819_v7, %v2811_v20  ;;  %v2744_v20 = vld [vmem:[%s5571_s26 + $0x570] sm:$0xff]  ;;  %v5291_v7 = vld [vmem:[%s9026_s1 + $0x168] sm:$0xff] }
 0x593   : > { %2993 = vmatmul.bf16.gmra.mxu0 %v2891_v21  ;;  %v3013_v16 = vpop.f32.mrf.mxu1  ;;  %v2717_v21 = vld [vmem:[%s5571_s26 + $0xd8] sm:$0xff] }
 0x594   : > { %2682 = vmatpush.bf16.msrb.mxu2 %v2663_v13  ;;  %v2890_v13 = vpack.c.bf16 %v2818_v19, %v2810_v33 }
 0x597   : > { %2944 = vmatmul.bf16.gmra.mxu3 %v2890_v13 }
 0x598   : > { %2683 = vmatpush.bf16.msrb.mxu2 %v9032_v49 }
 0x59a   : > { %3042 = vmatmul.bf16.gmra.mxu1 %v2892_v40  ;;  %v2725_v40 = vld [vmem:[%s5571_s26 + $0x258] sm:$0xff] }
 0x59b   : > { %v3015_v2 = vpop.f32.mrf.mxu1  ;;  %v2845_v6 = vpack.c.bf16 %v2725_v40, %v2717_v21  ;;  %v5309_v21 = vld [vmem:[%s9026_s1 + $0x88] sm:$0xff] }
 0x59c   : > { %2684 = vmatpush.bf16.msrb.mxu2 %v9033_v18  ;;  %v2735_v18 = vld [vmem:[%s5571_s26 + $0x3e8] sm:$0xff] }
 0x59f   : > { %2685 = vmatmul.bf16.vlgmr.msrb.gmra.mxu2 %v5268_v22  ;;  %v5290_v22 = vld [vmem:[%s9026_s1 + $0x128] sm:$0xff] }
 0x5a0   : > { %3053 = vmatpush.bf16.msra.mxu2 %v5267_v23  ;;  %v2743_v23 = vld [vmem:[%s5571_s26 + $0x568] sm:$0xff] }
 0x5a3   : > { %2998 = vmatmul.bf16.gmra.mxu0 %v2899_v8  ;;  %v5297_v8 = vld [vmem:[%s9026_s1 + $0x110] sm:$0xff] }
 0x5a4   : > { %3054 = vmatpush.bf16.msra.mxu2 %v5269_v3  ;;  %v2736_v3 = vld [vmem:[%s5571_s26 + $0x3f0] sm:$0xff] }
 0x5a7   : > { %2949 = vmatmul.bf16.gmra.mxu3 %v2898_v56  ;;  %v5295_v56 = vld [vmem:[%s9026_s1 + $0x118] sm:$0xff] }
 0x5a8   : > { %3055 = vmatpush.bf16.msra.mxu2 %v5270_v47  ;;  %v2855_v47 = vpack.c.bf16 %v2743_v23, %v2735_v18  ;;  %v2767_v18 = vld [vmem:[%s5571_s26 + $0x9e8] sm:$0xff] }
 0x5a9   : > { %v2775_v23 = vld [vmem:[%s5571_s26 + $0xb68] sm:$0xff] }
 0x5aa   : > { %3047 = vmatmul.bf16.gmra.mxu1 %v2900_v24  ;;  %v2862_v24 = vpack.c.bf16 %v2758_v0, %v2750_v60 }
 0x5ac   : > { %3056 = vmatpush.bf16.msra.mxu2 %v5271_v53  ;;  %v2856_v53 = vpack.c.bf16 %v2744_v20, %v2736_v3  ;;  %v2871_v3 = vpack.c.bf16 %v2775_v23, %v2767_v18 }
 0x5af   : > { %2690 = vmatmul.bf16.gmra.mxu2 %v5273_v63  ;;  %v5294_v63 = vld [vmem:[%s9026_s1 + $0x160] sm:$0xff] }
 0x5b0   : > { %3057 = vmatpush.bf16.msra.mxu2 %v5272_v1  ;;  %v3018_v1 = vpop.f32.mrf.mxu1 }
 0x5b3   : > { %3159 = vmatmul.bf16.vlgmr.msra.gmra.mxu0 %v2847_v43  ;;  %v2733_v43 = vld [vmem:[%s5571_s26 + $0x3d8] sm:$0xff] }
 0x5b4   : > { %3058 = vmatpush.bf16.msra.mxu2 %v5274_v27  ;;  %3739 = vmatpush.bf16.msra.mxu0 %v5283_v5 }
 0x5b7   : > { %3110 = vmatmul.bf16.vlgmr.msra.gmra.mxu3 %v2846_v61  ;;  %v5300_v61 = vld [vmem:[%s9026_s1 + $0x108] sm:$0xff] }
 0x5b8   : > { %3059 = vmatpush.bf16.msra.mxu2 %v5275_v62  ;;  %3740 = vmatpush.bf16.msra.mxu0 %v5287_v4  ;;  %v5296_v62 = vld [vmem:[%s9026_s1 + $0x158] sm:$0xff] }
 0x5ba   : > { %v2915_v37 = vpop.f32.mrf.mxu3  ;;  %3208 = vmatmul.bf16.vlgmr.msra.gmra.mxu1 %v2848_v50 }
 0x5bb   : > { %v2965_v54 = vadd.f32 %v2964_v38, %v2915_v37  ;;  %3788 = vmatpush.bf16.msra.mxu1 %v5284_v25  ;;  %v2760_v37 = vld [vmem:[%s5571_s26 + $0x870] sm:$0xff]  ;;  %v5302_v38 = vld [vmem:[%s9026_s1 + $0x148] sm:$0xff]  ;;  %v5306_v25 = vld [vmem:[%s9026_s1 + $0xa0] sm:$0xff] }
 0x5bc   : > { %3060 = vmatpush.bf16.msra.mxu2 %v5276_v42  ;;  %3741 = vmatpush.bf16.msra.mxu0 %v5290_v22  ;;  %v5298_v42 = vld [vmem:[%s9026_s1 + $0xb8] sm:$0xff]  ;;  %v5308_v22 = vld [vmem:[%s9026_s1 + $0x90] sm:$0xff] }
 0x5bd   : > { %v7585_v10 = vadd.f32 %v3013_v16, %v2965_v54  ;;  %v2969_v19 = vpop.f32.mrf.mxu0  ;;  %v2863_v54 = vpack.c.bf16 %v2759_v30, %v2751_v36  ;;  %v2864_v16 = vpack.c.bf16 %v2760_v37, %v2752_v34  ;;  %v2765_v36 = vld [vmem:[%s5571_s26 + $0x9d8] sm:$0xff]  ;;  %v2792_v34 = vld [vmem:[%s5571_s26 + $0xe70] sm:$0xff] }
 0x5be   : > { %v2773_v30 = vld [vmem:[%s5571_s26 + $0xb58] sm:$0xff] }
 0x5bf   : > { %2695 = vmatmul.bf16.gmra.mxu2 %v5279_v28  ;;  %3789 = vmatpush.bf16.msra.mxu1 %v5288_v45 }
 0x5c0   : > { %3249 = vmatpush.bf16.msrb.mxu2 %v5277_v51  ;;  %3742 = vmatpush.bf16.msra.mxu0 %v5293_v48  ;;  %v3020_v51 = vpop.f32.mrf.mxu1 }
 0x5c2   : > { %v2917_v32 = vpop.f32.mrf.mxu3 }
 0x5c3   : > { %v2967_v29 = vadd.f32 %v2966_v55, %v2917_v32  ;;  %3790 = vmatpush.bf16.msra.mxu1 %v5291_v7  ;;  %3164 = vmatmul.bf16.gmra.mxu0 %v2855_v47  ;;  %v5305_v32 = vld [vmem:[%s9026_s1 + $0x140] sm:$0xff]  ;;  %v2749_v7 = vld [vmem:[%s5571_s26 + $0x6d8] sm:$0xff] }
 0x5c4   : > { %3250 = vmatpush.bf16.msrb.mxu2 %v5278_v17  ;;  %3743 = vmatpush.bf16.msra.mxu0 %v5295_v56  ;;  %v5299_v17 = vld [vmem:[%s9026_s1 + $0x150] sm:$0xff]  ;;  %v2757_v47 = vld [vmem:[%s5571_s26 + $0x858] sm:$0xff] }
 0x5c5   : > { %v7610_v49 = vadd.f32 %v3015_v2, %v2967_v29  ;;  %v2971_v59 = vpop.f32.mrf.mxu0  ;;  %v5307_v2 = vld [vmem:[%s9026_s1 + $0x98] sm:$0xff] }
 0x5c7   : > { %3115 = vmatmul.bf16.gmra.mxu3 %v2854_v15  ;;  %3791 = vmatpush.bf16.msra.mxu1 %v5294_v63  ;;  %v2870_v15 = vpack.c.bf16 %v2774_v14, %v2766_v46  ;;  %v5310_v63 = vld [vmem:[%s9026_s1 + $0x80] sm:$0xff] }
 0x5c8   : > { %3251 = vmatpush.bf16.msrb.mxu2 %v5280_v44  ;;  %3744 = vmatpush.bf16.msra.mxu0 %v5297_v8  ;;  %v5301_v44 = vld [vmem:[%s9026_s1 + $0xb0] sm:$0xff] }
 0x5ca   : > { %v2920_v33 = vpop.f32.mrf.mxu3  ;;  %3213 = vmatmul.bf16.gmra.mxu1 %v2856_v53 }
 0x5cb   : > { %v2970_v13 = vadd.f32 %v2969_v19, %v2920_v33  ;;  %3792 = vmatpush.bf16.msra.mxu1 %v5296_v62  ;;  %v2768_v19 = vld [vmem:[%s5571_s26 + $0x9f0] sm:$0xff] }
 0x5cc   : > { %3252 = vmatpush.bf16.msrb.mxu2 %v5281_v9  ;;  %3745 = vmatpush.bf16.msra.mxu0 %v5300_v61  ;;  %v2741_v9 = vld [vmem:[%s5571_s26 + $0x558] sm:$0xff] }
 0x5cd   : > { %v7636_v31 = vadd.f32 %v3018_v1, %v2970_v13  ;;  %v2974_v26 = vpop.f32.mrf.mxu0  ;;  %v2853_v29 = vpack.c.bf16 %v2741_v9, %v2733_v43  ;;  %v2776_v13 = vld [vmem:[%s5571_s26 + $0xb70] sm:$0xff]  ;;  %v2861_v1 = vpack.c.bf16 %v2757_v47, %v2749_v7  ;;  %v2798_v43 = vld [vmem:[%s5571_s26 + $0xfe0] sm:$0xff] }
 0x5ce   : > { %v2872_v48 = vpack.c.bf16 %v2776_v13, %v2768_v19  ;;  %v2806_v9 = vld [vmem:[%s5571_s26 + $0x1160] sm:$0xff]  ;;  %v2669_v13 = vld [vmem:[%s9028_s3 + $0x10] sm:$0xff] }
 0x5cf   : > { %2700 = vmatmul.bf16.gmra.mxu2 %v5286_v41  ;;  %3793 = vmatpush.bf16.msra.mxu1 %v5299_v17  ;;  %v2822_v19 = vld [vmem:[%s5571_s26 + $0x1460] sm:$0xff] }
 0x5d0   : > { %3253 = vmatpush.bf16.msrb.mxu2 %v5282_v52  ;;  %3746 = vmatpush.bf16.msra.mxu0 %v5303_v57  ;;  %v5304_v52 = vld [vmem:[%s9026_s1 + $0xa8] sm:$0xff] }
 0x5d2   : > { %v2922_v27 = vpop.f32.mrf.mxu3 }
 0x5d3   : > { %v2972_v35 = vadd.f32 %v2971_v59, %v2922_v27  ;;  %3794 = vmatpush.bf16.msra.mxu1 %v5302_v38  ;;  %3169 = vmatmul.bf16.gmra.mxu0 %v2863_v54  ;;  %v2782_v27 = vld [vmem:[%s5571_s26 + $0xce0] sm:$0xff]  ;;  %v2869_v54 = vpack.c.bf16 %v2773_v30, %v2765_v36 }
 0x5d4   : > { %3254 = vmatpush.bf16.msrb.mxu2 %v5285_v39  ;;  %v2790_v59 = vld [vmem:[%s5571_s26 + $0xe60] sm:$0xff] }
 0x5d5   : > { %v7655_v28 = vadd.f32 %v3020_v51, %v2972_v35  ;;  %v2976_v41 = vpop.f32.mrf.mxu0  ;;  %v2878_v62 = vpack.c.bf16 %v2790_v59, %v2782_v27  ;;  %v2830_v30 = vld [vmem:[%s5571_s26 + $0x15e0] sm:$0xff] }
 0x5d7   : > { %3120 = vmatmul.bf16.gmra.mxu3 %v2862_v24  ;;  %v3023_v5 = vpop.f32.mrf.mxu1  ;;  %3795 = vmatpush.bf16.msra.mxu1 %v5305_v32  ;;  %v2783_v24 = vld [vmem:[%s5571_s26 + $0xce8] sm:$0xff] }
 0x5d8   : > { %3255 = vmatpush.bf16.msrb.mxu2 %v5289_v58  ;;  %v2807_v32 = vld [vmem:[%s5571_s26 + $0x1168] sm:$0xff] }
 0x5da   : > { %v2925_v11 = vpop.f32.mrf.mxu3  ;;  %3218 = vmatmul.bf16.gmra.mxu1 %v2864_v16 }
 0x5db   : > { %v2975_v50 = vadd.f32 %v2974_v26, %v2925_v11  ;;  %v2784_v11 = vld [vmem:[%s5571_s26 + $0xcf0] sm:$0xff] }
 0x5dc   : > { %3256 = vmatpush.bf16.msrb.mxu2 %v5292_v12  ;;  %v2880_v38 = vpack.c.bf16 %v2792_v34, %v2784_v11 }
 0x5dd   : > { %v7681_v55 = vadd.f32 %v3023_v5, %v2975_v50  ;;  %v2979_v20 = vpop.f32.mrf.mxu0  ;;  %v2886_v50 = vpack.c.bf16 %v2806_v9, %v2798_v43  ;;  %v2799_v5 = vld [vmem:[%s5571_s26 + $0xfe8] sm:$0xff] }
 0x5de   : > { %v2831_v43 = vld [vmem:[%s5571_s26 + $0x15e8] sm:$0xff] }
 0x5df   : > { %3061 = vmatmul.bf16.vlgmr.msra.gmra.mxu2 %v2845_v6  ;;  %v3025_v45 = vpop.f32.mrf.mxu1  ;;  %v2839_v9 = vld [vmem:[%s5571_s26 + $0x1768] sm:$0xff] }
 0x5e0   : > { %3641 = vmatpush.bf16.msra.mxu2 %v5298_v42  ;;  %v2791_v42 = vld [vmem:[%s5571_s26 + $0xe68] sm:$0xff] }
 0x5e1   : > { %v2879_v51 = vpack.c.bf16 %v2791_v42, %v2783_v24 }
 0x5e2   : > { %v2927_v39 = vpop.f32.mrf.mxu3 }
 0x5e3   : > { %v2977_v4 = vadd.f32 %v2976_v41, %v2927_v39  ;;  %3174 = vmatmul.bf16.gmra.mxu0 %v2871_v3  ;;  %v2781_v39 = vld [vmem:[%s5571_s26 + $0xcd8] sm:$0xff] }
 0x5e4   : > { %3642 = vmatpush.bf16.msra.mxu2 %v5301_v44  ;;  %v2789_v41 = vld [vmem:[%s5571_s26 + $0xe58] sm:$0xff] }
 0x5e5   : > { %v7691_v58 = vadd.f32 %v3025_v45, %v2977_v4  ;;  %v2981_v56 = vpop.f32.mrf.mxu0  ;;  %v2800_v4 = vld [vmem:[%s5571_s26 + $0xff0] sm:$0xff]  ;;  %v2877_v18 = vpack.c.bf16 %v2789_v41, %v2781_v39 }
 0x5e7   : > { %3125 = vmatmul.bf16.gmra.mxu3 %v2870_v15  ;;  %v3028_v40 = vpop.f32.mrf.mxu1  ;;  %v2808_v15 = vld [vmem:[%s5571_s26 + $0x1170] sm:$0xff] }
 0x5e8   : > { %3643 = vmatpush.bf16.msra.mxu2 %v5304_v52  ;;  %v2888_v45 = vpack.c.bf16 %v2808_v15, %v2800_v4 }
 0x5ea   : > { %v2930_v33 = vpop.f32.mrf.mxu3  ;;  %3223 = vmatmul.bf16.gmra.mxu1 %v2872_v48  ;;  %v2815_v48 = vld [vmem:[%s5571_s26 + $0x12e8] sm:$0xff] }
 0x5eb   : > { %v2980_v12 = vadd.f32 %v2979_v20, %v2930_v33  ;;  %v2814_v33 = vld [vmem:[%s5571_s26 + $0x12e0] sm:$0xff] }
 0x5ec   : > { %3644 = vmatpush.bf16.msra.mxu2 %v5306_v25  ;;  %v2894_v3 = vpack.c.bf16 %v2822_v19, %v2814_v33  ;;  %v2673_v19 = vld [vmem:[%s9028_s3 + $0xd0] sm:$0xff] }
 0x5ed   : > { %v7705_v53 = vadd.f32 %v3028_v40, %v2980_v12  ;;  %v2984_v17 = vpop.f32.mrf.mxu0 }
 0x5ef   : > { %3066 = vmatmul.bf16.gmra.mxu2 %v2853_v29  ;;  %v3030_v60 = vpop.f32.mrf.mxu1  ;;  %v2887_v29 = vpack.c.bf16 %v2807_v32, %v2799_v5  ;;  %v2672_v32 = vld [vmem:[%s9028_s3 + $0xa0] sm:$0xff] }
 0x5f0   : > { %3645 = vmatpush.bf16.msra.mxu2 %v5307_v2 }
 0x5f2   : > { %v2932_v6 = vpop.f32.mrf.mxu3 }
 0x5f3   : > { %v2982_v35 = vadd.f32 %v2981_v56, %v2932_v6  ;;  %3179 = vmatmul.bf16.gmra.mxu0 %v2879_v51  ;;  %v2797_v6 = vld [vmem:[%s5571_s26 + $0xfd8] sm:$0xff] }
 0x5f4   : > { %3646 = vmatpush.bf16.msra.mxu2 %v5308_v22  ;;  %v2805_v56 = vld [vmem:[%s5571_s26 + $0x1158] sm:$0xff] }
 0x5f5   : > { %v7712_v0 = vadd.f32 %v3030_v60, %v2982_v35  ;;  %v7724_v57 = vpop.f32.mrf.mxu0  ;;  %v2816_v35 = vld [vmem:[%s5571_s26 + $0x12f0] sm:$0xff]  ;;  %v2885_v51 = vpack.c.bf16 %v2805_v56, %v2797_v6 }
 0x5f6   : > { %v2675_v56 = vld [vmem:[%s9028_s3 + $0x130] sm:$0xff] }
 0x5f7   : > { %3130 = vmatmul.bf16.gmra.mxu3 %v2878_v62  ;;  %v3033_v44 = vpop.f32.mrf.mxu1  ;;  %v2824_v62 = vld [vmem:[%s5571_s26 + $0x1470] sm:$0xff] }
 0x5f8   : > { %3647 = vmatpush.bf16.msra.mxu2 %v5309_v21  ;;  %v2823_v21 = vld [vmem:[%s5571_s26 + $0x1468] sm:$0xff]  ;;  %v2896_v24 = vpack.c.bf16 %v2824_v62, %v2816_v35 }
 0x5f9   : > { %v2895_v40 = vpack.c.bf16 %v2823_v21, %v2815_v48 }
 0x5fa   : > { %v2935_v8 = vpop.f32.mrf.mxu3  ;;  %3228 = vmatmul.bf16.gmra.mxu1 %v2880_v38 }
 0x5fb   : > { %v2985_v61 = vadd.f32 %v2984_v17, %v2935_v8 }
 0x5fc   : > { %3648 = vmatpush.bf16.msra.mxu2 %v5310_v63  ;;  %v2670_v63 = vld [vmem:[%s9028_s3 + $0x40] sm:$0xff] }
 0x5fd   : > { %v7720_v37 = vadd.f32 %v3033_v44, %v2985_v61  ;;  %v2989_v25 = vpop.f32.mrf.mxu0  ;;  %v2838_v61 = vld [vmem:[%s5571_s26 + $0x1760] sm:$0xff]  ;;  %v2671_v44 = vld [vmem:[%s9028_s3 + $0x70] sm:$0xff] }
 0x5fe   : > { %v2902_v11 = vpack.c.bf16 %v2838_v61, %v2830_v30 }
 0x5ff   : > { %3071 = vmatmul.bf16.gmra.mxu2 %v2861_v1  ;;  %v7728_v16 = vpop.f32.mrf.mxu1 }
 0x602   : > { %v7722_v26 = vpop.f32.mrf.mxu3 }
 0x603   : > { %3184 = vmatmul.bf16.gmra.mxu0 %v2887_v29  ;;  %v2813_v29 = vld [vmem:[%s5571_s26 + $0x12d8] sm:$0xff] }
 0x605   : > { %v7740_v22 = vpop.f32.mrf.mxu0 }
 0x607   : > { %3135 = vmatmul.bf16.gmra.mxu3 %v2886_v50  ;;  %v3038_v14 = vpop.f32.mrf.mxu1  ;;  %v2903_v50 = vpack.c.bf16 %v2839_v9, %v2831_v43  ;;  %v5311_v43 = vld [vmem:[%s9026_s1 + $0x1b8] sm:$0xff] }
 0x60a   : > { %v2940_v52 = vpop.f32.mrf.mxu3  ;;  %3233 = vmatmul.bf16.gmra.mxu1 %v2888_v45 }
 0x60b   : > { %v2990_v46 = vadd.f32 %v2989_v25, %v2940_v52  ;;  %v2821_v25 = vld [vmem:[%s5571_s26 + $0x1458] sm:$0xff] }
 0x60c   : > { %v2893_v33 = vpack.c.bf16 %v2821_v25, %v2813_v29  ;;  %v2737_v25 = vld [vmem:[%s5571_s26 + $0x3f8] sm:$0xff] }
 0x60d   : > { %v7736_v2 = vadd.f32 %v3038_v14, %v2990_v46  ;;  %v2832_v46 = vld [vmem:[%s5571_s26 + $0x15f0] sm:$0xff] }
 0x60e   : > { %v2840_v14 = vld [vmem:[%s5571_s26 + $0x1770] sm:$0xff] }
 0x60f   : > { %3076 = vmatmul.bf16.gmra.mxu2 %v2869_v54  ;;  %v7747_v20 = vpop.f32.mrf.mxu1  ;;  %v2904_v45 = vpack.c.bf16 %v2840_v14, %v2832_v46  ;;  %v5313_v46 = vld [vmem:[%s9026_s1 + $0x1a8] sm:$0xff] }
 0x610   : > { %v2994_v1 = vpop.f32.mrf.mxu0 }
 0x612   : > { %v7738_v23 = vpop.f32.mrf.mxu3 }
 0x613   : > { %3189 = vmatmul.bf16.gmra.mxu0 %v2895_v40 }
 0x617   : > { %3140 = vmatmul.bf16.gmra.mxu3 %v2894_v3  ;;  %v3043_v59 = vpop.f32.mrf.mxu1 }
 0x618   : > { %v7764_v36 = vpop.f32.mrf.mxu0 }
 0x61a   : > { %v2945_v12 = vpop.f32.mrf.mxu3  ;;  %3238 = vmatmul.bf16.gmra.mxu1 %v2896_v24  ;;  %v2676_v24 = vld [vmem:[%s9028_s3 + $0x160] sm:$0xff] }
 0x61b   : > { %v2995_v27 = vadd.f32 %v2994_v1, %v2945_v12  ;;  %v2837_v12 = vld [vmem:[%s5571_s26 + $0x1758] sm:$0xff] }
 0x61d   : > { %v7759_v8 = vadd.f32 %v3043_v59, %v2995_v27 }
 0x61f   : > { %3081 = vmatmul.bf16.gmra.mxu2 %v2877_v18  ;;  %v7771_v34 = vpop.f32.mrf.mxu1 }
 0x620   : > { %v2999_v5 = vpop.f32.mrf.mxu0 }
 0x622   : > { %v2686_v7 = vpop.f32.mrf.mxu2  ;;  %v7762_v17 = vpop.f32.mrf.mxu3 }
 0x623   : > { %v2687_v47 = vadd.f32 %v2686_v7, %v2669_v13  ;;  %3194 = vmatmul.bf16.gmra.mxu0 %v2903_v50  ;;  %v2674_v7 = vld [vmem:[%s9028_s3 + $0x100] sm:$0xff] }
 0x625   : > { %2706 = vst [vmem:[%s6539_s22 + $0x10] sm:$0xff] %v2687_v47  ;;  %v2829_v47 = vld [vmem:[%s5571_s26 + $0x15d8] sm:$0xff] }
 0x627   : > { %3145 = vmatmul.bf16.gmra.mxu3 %v2902_v11  ;;  %v3048_v41 = vpop.f32.mrf.mxu1 }
 0x628   : > { %v7797_v40 = vpop.f32.mrf.mxu0 }
 0x62a   : > { %v2688_v60 = vpop.f32.mrf.mxu2  ;;  %v2950_v52 = vpop.f32.mrf.mxu3  ;;  %3243 = vmatmul.bf16.gmra.mxu1 %v2904_v45 }
 0x62b   : > { %v2689_v42 = vadd.f32 %v2688_v60, %v2670_v63  ;;  %v3000_v39 = vadd.f32 %v2999_v5, %v2950_v52  ;;  %v2901_v63 = vpack.c.bf16 %v2837_v12, %v2829_v47  ;;  %v5312_v52 = vld [vmem:[%s9026_s1 + $0x1b0] sm:$0xff] }
 0x62c   : > { %v5316_v12 = vld [vmem:[%s9026_s1 + $0x190] sm:$0xff] }
 0x62d   : > { %2707 = vst [vmem:[%s6539_s22 + $0x40] sm:$0xff] %v2689_v42  ;;  %v7783_v15 = vadd.f32 %v3048_v41, %v3000_v39  ;;  %v2721_v42 = vld [vmem:[%s5571_s26 + $0xf8] sm:$0xff] }
 0x62e   : > { %v2745_v39 = vld [vmem:[%s5571_s26 + $0x578] sm:$0xff] }
 0x62f   : > { %3086 = vmatmul.bf16.gmra.mxu2 %v2885_v51  ;;  %v7799_v6 = vpop.f32.mrf.mxu1  ;;  %v2729_v51 = vld [vmem:[%s5571_s26 + $0x278] sm:$0xff] }
 0x630   : > { %v3160_v62 = vpop.f32.mrf.mxu0 }
 0x632   : > { %v2691_v38 = vpop.f32.mrf.mxu2  ;;  %v7795_v48 = vpop.f32.mrf.mxu3 }
 0x633   : > { %v2692_v54 = vadd.f32 %v2691_v38, %v2671_v44  ;;  %v2849_v44 = vpack.c.bf16 %v2729_v51, %v2721_v42  ;;  %v5318_v42 = vld [vmem:[%s9026_s1 + $0x180] sm:$0xff] }
 0x635   : > { %2708 = vst [vmem:[%s6539_s22 + $0x70] sm:$0xff] %v2692_v54 }
 0x637   : > { %v3209_v60 = vpop.f32.mrf.mxu1 }
 0x638   : > { %v7814_v38 = vpop.f32.mrf.mxu0 }
 0x63a   : > { %v2693_v4 = vpop.f32.mrf.mxu2  ;;  %v3111_v59 = vpop.f32.mrf.mxu3 }
 0x63b   : > { %v2694_v18 = vadd.f32 %v2693_v4, %v2672_v32 }
 0x63d   : > { %2709 = vst [vmem:[%s6539_s22 + $0xa0] sm:$0xff] %v2694_v18  ;;  %v2857_v18 = vpack.c.bf16 %v2745_v39, %v2737_v25 }
 0x63f   : > { %3091 = vmatmul.bf16.gmra.mxu2 %v2893_v33  ;;  %v7816_v54 = vpop.f32.mrf.mxu1  ;;  %v5314_v33 = vld [vmem:[%s9026_s1 + $0x1a0] sm:$0xff] }
 0x640   : > { %v3165_v41 = vpop.f32.mrf.mxu0 }
 0x642   : > { %v2696_v13 = vpop.f32.mrf.mxu2  ;;  %v7811_v11 = vpop.f32.mrf.mxu3 }
 0x643   : > { %v2697_v3 = vadd.f32 %v2696_v13, %v2673_v19  ;;  %v5315_v13 = vld [vmem:[%s9026_s1 + $0x198] sm:$0xff] }
 0x645   : > { %2710 = vst [vmem:[%s6539_s22 + $0xd0] sm:$0xff] %v2697_v3 }
 0x64a   : > { %v2698_v21 = vpop.f32.mrf.mxu2  ;;  %v3116_v32 = vpop.f32.mrf.mxu3 }
 0x64b   : > { %v2699_v1 = vadd.f32 %v2698_v21, %v2674_v7  ;;  %v7843_v7 = vpop.f32.mrf.mxu0 }
 0x64d   : > { %2711 = vst [vmem:[%s6539_s22 + $0x100] sm:$0xff] %v2699_v1 }
 0x64f   : > { %3096 = vmatmul.bf16.gmra.mxu2 %v2901_v63  ;;  %v2753_v63 = vld [vmem:[%s5571_s26 + $0x6f8] sm:$0xff] }
 0x652   : > { %v2701_v27 = vpop.f32.mrf.mxu2  ;;  %v7838_v19 = vpop.f32.mrf.mxu3 }
 0x653   : > { %v2702_v35 = vadd.f32 %v2701_v27, %v2675_v56  ;;  %v2761_v56 = vld [vmem:[%s5571_s26 + $0x878] sm:$0xff]  ;;  %v5317_v27 = vld [vmem:[%s9026_s1 + $0x188] sm:$0xff] }
 0x655   : > { %2712 = vst [vmem:[%s6539_s22 + $0x130] sm:$0xff] %v2702_v35 }
 0x65a   : > { %v2703_v30 = vpop.f32.mrf.mxu2  ;;  %v3121_v35 = vpop.f32.mrf.mxu3 }
 0x65b   : > { %v2704_v61 = vadd.f32 %v2703_v30, %v2676_v24  ;;  %v3170_v24 = vpop.f32.mrf.mxu0 }
 0x65d   : > { %2713 = vst [vmem:[%s6539_s22 + $0x160] sm:$0xff] %v2704_v61 }
 0x65f   : > { %3257 = vmatmul.bf16.vlgmr.msrb.gmra.mxu2 %v2849_v44 }
 0x660   : > { %3837 = vmatpush.bf16.msrb.mxu2 %v5311_v43 }
 0x662   : > { %v3062_v9 = vpop.f32.mrf.mxu2  ;;  %v7865_v44 = vpop.f32.mrf.mxu3 }
 0x663   : > { %v3063_v50 = vadd.f32 %v3062_v9, %v7585_v10  ;;  %v3214_v10 = vpop.f32.mrf.mxu1  ;;  %v7867_v9 = vpop.f32.mrf.mxu0 }
 0x664   : > { %3838 = vmatpush.bf16.msrb.mxu2 %v5312_v52  ;;  %v2777_v52 = vld [vmem:[%s5571_s26 + $0xb78] sm:$0xff] }
 0x665   : > { %v3112_v5 = vadd.f32 %v3111_v59, %v3063_v50 }
 0x667   : > { %v3161_v29 = vadd.f32 %v3160_v62, %v3112_v5 }
 0x668   : > { %3839 = vmatpush.bf16.msrb.mxu2 %v5313_v46 }
 0x669   : > { %v7830_v14 = vadd.f32 %v3209_v60, %v3161_v29  ;;  %v2865_v60 = vpack.c.bf16 %v2761_v56, %v2753_v63 }
 0x66a   : > { %v3064_v4 = vpop.f32.mrf.mxu2 }
 0x66b   : > { %v7833_v45 = vadd.f32 %v3064_v4, %v7610_v49  ;;  %v7846_v47 = vpop.f32.mrf.mxu1 }
 0x66c   : > { %3840 = vmatpush.bf16.msrb.mxu2 %v5314_v33 }
 0x66f   : > { %3262 = vmatmul.bf16.gmra.mxu2 %v2857_v18 }
 0x670   : > { %3841 = vmatpush.bf16.msrb.mxu2 %v5315_v13 }
 0x672   : > { %v3067_v3 = vpop.f32.mrf.mxu2 }
 0x673   : > { %v3068_v49 = vadd.f32 %v3067_v3, %v7636_v31  ;;  %v3219_v51 = vpop.f32.mrf.mxu1  ;;  %v2785_v3 = vld [vmem:[%s5571_s26 + $0xcf8] sm:$0xff] }
 0x674   : > { %3842 = vmatpush.bf16.msrb.mxu2 %v5316_v12 }
 0x675   : > { %v3117_v21 = vadd.f32 %v3116_v32, %v3068_v49  ;;  %v2793_v49 = vld [vmem:[%s5571_s26 + $0xe78] sm:$0xff] }
 0x676   : > { %v2881_v63 = vpack.c.bf16 %v2793_v49, %v2785_v3  ;;  %v3114_v49 = vadd.f32 %v7811_v11, %v7833_v45 }
 0x677   : > { %v3166_v1 = vadd.f32 %v3165_v41, %v3117_v21  ;;  %v3175_v41 = vpop.f32.mrf.mxu0 }
 0x678   : > { %3843 = vmatpush.bf16.msrb.mxu2 %v5317_v27 }
 0x679   : > { %v7856_v59 = vadd.f32 %v3214_v10, %v3166_v1 }
 0x67a   : > { %v3069_v31 = vpop.f32.mrf.mxu2 }
 0x67b   : > { %v7859_v62 = vadd.f32 %v3069_v31, %v7655_v28  ;;  %v2769_v28 = vld [vmem:[%s5571_s26 + $0x9f8] sm:$0xff]  ;;  %v7871_v5 = vpop.f32.mrf.mxu1 }
 0x67c   : > { %3844 = vmatpush.bf16.msrb.mxu2 %v5318_v42  ;;  %v2873_v39 = vpack.c.bf16 %v2777_v52, %v2769_v28  ;;  %v2817_v52 = vld [vmem:[%s5571_s26 + $0x12f8] sm:$0xff] }
 0x67f   : > { %3267 = vmatmul.bf16.gmra.mxu2 %v2865_v60  ;;  %v7885_v21 = vpop.f32.mrf.mxu0 }
 0x682   : > { %v3072_v30 = vpop.f32.mrf.mxu2 }
 0x683   : > { %v3073_v61 = vadd.f32 %v3072_v30, %v7681_v55  ;;  %v3126_v55 = vpop.f32.mrf.mxu3  ;;  %v3224_v4 = vpop.f32.mrf.mxu1  ;;  %v2809_v30 = vld [vmem:[%s5571_s26 + $0x1178] sm:$0xff] }
 0x685   : > { %v3122_v43 = vadd.f32 %v3121_v35, %v3073_v61 }
 0x687   : > { %v3171_v50 = vadd.f32 %v3170_v24, %v3122_v43  ;;  %v3180_v35 = vpop.f32.mrf.mxu0 }
 0x689   : > { %v7873_v32 = vadd.f32 %v3219_v51, %v3171_v50  ;;  %v2801_v51 = vld [vmem:[%s5571_s26 + $0xff8] sm:$0xff] }
 0x68a   : > { %v3074_v29 = vpop.f32.mrf.mxu2 }
 0x68b   : > { %v7876_v25 = vadd.f32 %v3074_v29, %v7691_v58  ;;  %v7879_v13 = vpop.f32.mrf.mxu3  ;;  %v3226_v56 = vpop.f32.mrf.mxu1  ;;  %v2825_v29 = vld [vmem:[%s5571_s26 + $0x1478] sm:$0xff] }
 0x68f   : > { %3272 = vmatmul.bf16.gmra.mxu2 %v2873_v39  ;;  %v2897_v39 = vpack.c.bf16 %v2825_v29, %v2817_v52 }
 0x692   : > { %v3077_v46 = vpop.f32.mrf.mxu2 }
 0x693   : > { %v3078_v10 = vadd.f32 %v3077_v46, %v7705_v53  ;;  %v3131_v27 = vpop.f32.mrf.mxu3  ;;  %v3229_v24 = vpop.f32.mrf.mxu1  ;;  %v2833_v46 = vld [vmem:[%s5571_s26 + $0x15f8] sm:$0xff] }
 0x695   : > { %v3127_v18 = vadd.f32 %v3126_v55, %v3078_v10 }
 0x697   : > { %v3176_v33 = vadd.f32 %v3175_v41, %v3127_v18 }
 0x699   : > { %v7883_v12 = vadd.f32 %v3224_v4, %v3176_v33  ;;  %v2841_v4 = vld [vmem:[%s5571_s26 + $0x1778] sm:$0xff] }
 0x69a   : > { %v3079_v58 = vpop.f32.mrf.mxu2  ;;  %v2905_v18 = vpack.c.bf16 %v2841_v4, %v2833_v46  ;;  %v3353_v46 = vld [vmem:[%s5571_s26 + $0x110] sm:$0xff] }
 0x69b   : > { %v3080_v1 = vadd.f32 %v3079_v58, %v7712_v0  ;;  %v2889_v0 = vpack.c.bf16 %v2809_v30, %v2801_v51  ;;  %v7954_v52 = vpop.f32.mrf.mxu1 }
 0x69f   : > { %3277 = vmatmul.bf16.gmra.mxu2 %v2881_v63 }
 0x6a2   : > { %v3082_v53 = vpop.f32.mrf.mxu2 }
 0x6a3   : > { %v3083_v31 = vadd.f32 %v3082_v53, %v7720_v37 }
 0x6a5   : > { %v3132_v60 = vadd.f32 %v3131_v27, %v3083_v31 }
 0x6a7   : > { %v3181_v42 = vadd.f32 %v3180_v35, %v3132_v60  ;;  %v3119_v35 = vadd.f32 %v7838_v19, %v7859_v62 }
 0x6a9   : > { %v3230_v61 = vadd.f32 %v3229_v24, %v3181_v42  ;;  %v3124_v42 = vadd.f32 %v7865_v44, %v7876_v25 }
 0x6aa   : > { %v7891_v43 = vpop.f32.mrf.mxu2 }
 0x6af   : > { %3282 = vmatmul.bf16.gmra.mxu2 %v2889_v0  ;;  %v3129_v0 = vadd.f32 %v7879_v13, %v3080_v1 }
 0x6b2   : > { %v3087_v50 = vpop.f32.mrf.mxu2 }
 0x6b3   : > { %v7894_v28 = vadd.f32 %v3087_v50, %v7736_v2  ;;  %v7946_v50 = vpop.f32.mrf.mxu3 }
 0x6ba   : > { %v7898_v37 = vpop.f32.mrf.mxu2 }
 0x6bb   : > { %v7958_v13 = vpop.f32.mrf.mxu3 }
 0x6bf   : > { %3287 = vmatmul.bf16.gmra.mxu2 %v2897_v39 }
 0x6c2   : > { %v3092_v55 = vpop.f32.mrf.mxu2 }
 0x6c3   : > { %v7901_v41 = vadd.f32 %v3092_v55, %v7759_v8  ;;  %v3163_v8 = vadd.f32 %v7814_v38, %v3114_v49  ;;  %v3352_v49 = vld [vmem:[%s5571_s26 + $0x108] sm:$0xff] }
 0x6c5   : > { %v3212_v53 = vadd.f32 %v7816_v54, %v3163_v8 }
 0x6ca   : > { %v7905_v10 = vpop.f32.mrf.mxu2 }
 0x6cf   : > { %3292 = vmatmul.bf16.gmra.mxu2 %v2905_v18 }
 0x6d2   : > { %v3097_v33 = vpop.f32.mrf.mxu2 }
 0x6d3   : > { %v7908_v2 = vadd.f32 %v3097_v33, %v7783_v15  ;;  %v3359_v33 = vld [vmem:[%s5571_s26 + $0x280] sm:$0xff] }
 0x6da   : > { %v7910_v3 = vpop.f32.mrf.mxu2 }
 0x6e2   : > { %v3258_v58 = vpop.f32.mrf.mxu2 }
 0x6e3   : > { %v7915_v63 = vadd.f32 %v3258_v58, %v7830_v14  ;;  %v3168_v14 = vadd.f32 %v7843_v7, %v3119_v35  ;;  %v7971_v58 = vpop.f32.mrf.mxu1  ;;  %v7974_v35 = vpop.f32.mrf.mxu3 }
 0x6e5   : > { %v3217_v45 = vadd.f32 %v7846_v47, %v3168_v14 }
 0x6ea   : > { %v3260_v27 = vpop.f32.mrf.mxu2 }
 0x6eb   : > { %v7919_v31 = vadd.f32 %v3260_v27, %v3212_v53  ;;  %v3360_v53 = vld [vmem:[%s5571_s26 + $0x288] sm:$0xff] }
 0x6ec   : > { %v3480_v27 = vpack.c.bf16 %v3360_v53, %v3352_v49  ;;  %v5326_v49 = vld [vmem:[%s9026_s1 + $0x20] sm:$0xff]  ;;  %v5327_v53 = vld [vmem:[%s9026_s1 + $0x58] sm:$0xff] }
 0x6ee   : > { %3600 = vmatmul.bf16.vlgmr.msrb.gmra.mxu1 %v3480_v27 }
 0x6f2   : > { %v3263_v60 = vpop.f32.mrf.mxu2 }
 0x6f3   : > { %v7926_v11 = vadd.f32 %v3263_v60, %v7856_v59  ;;  %v3173_v59 = vadd.f32 %v7867_v9, %v3124_v42  ;;  %v3178_v9 = vadd.f32 %v7885_v21, %v3129_v0  ;;  %v3361_v21 = vld [vmem:[%s5571_s26 + $0x290] sm:$0xff]  ;;  %v5319_v60 = vld [vmem:[%s9026_s1 + $0x78] sm:$0xff] }
 0x6f4   : > { %v3481_v18 = vpack.c.bf16 %v3361_v21, %v3353_v46  ;;  %v5322_v42 = vld [vmem:[%s9026_s1 + $0x30] sm:$0xff]  ;;  %v3375_v46 = vld [vmem:[%s5571_s26 + $0x580] sm:$0xff]  ;;  %v3368_v21 = vld [vmem:[%s5571_s26 + $0x408] sm:$0xff] }
 0x6f5   : > { %v3222_v62 = vadd.f32 %v7871_v5, %v3173_v59  ;;  %v7952_v5 = vpop.f32.mrf.mxu0  ;;  %v3227_v25 = vadd.f32 %v3226_v56, %v3178_v9  ;;  %v3351_v56 = vld [vmem:[%s5571_s26 + $0x100] sm:$0xff]  ;;  %v5323_v59 = vld [vmem:[%s9026_s1 + $0x68] sm:$0xff]  ;;  %v3377_v9 = vld [vmem:[%s5571_s26 + $0x590] sm:$0xff] }
 0x6f6   : > { %v3479_v8 = vpack.c.bf16 %v3359_v33, %v3351_v56  ;;  %3649 = vmatmul.bf16.vlgmr.msra.gmra.mxu2 %v3481_v18  ;;  %v3376_v33 = vld [vmem:[%s5571_s26 + $0x588] sm:$0xff] }
 0x6f7   : > { %4229 = vmatpush.bf16.msra.mxu2 %v5319_v60  ;;  %v5328_v60 = vld [vmem:[%s9026_s1 + $0x18] sm:$0xff] }
 0x6f8   : > { %3551 = vmatmul.bf16.vlgmr.msrb.gmra.mxu0 %v3479_v8  ;;  %v3488_v8 = vpack.c.bf16 %v3376_v33, %v3368_v21  ;;  %v5333_v21 = vld [vmem:[%s9026_s1 + $0x40] sm:$0xff] }
 0x6f9   : > { %v3383_v33 = vld [vmem:[%s5571_s26 + $0x700] sm:$0xff] }
 0x6fa   : > { %v3265_v38 = vpop.f32.mrf.mxu2 }
 0x6fb   : > { %v7930_v24 = vadd.f32 %v3265_v38, %v3217_v45  ;;  %v5321_v38 = vld [vmem:[%s9026_s1 + $0x70] sm:$0xff] }
 0x6fc   : > { %4230 = vmatpush.bf16.msra.mxu2 %v5321_v38 }
 0x6fd   : > { %v3299_v54 = vpack.c.bf16 %v7930_v24, %v7926_v11  ;;  %v3457_v11 = vld [vmem:[%s5571_s26 + $0x1490] sm:$0xff]  ;;  %v3447_v24 = vld [vmem:[%s5571_s26 + $0x1300] sm:$0xff] }
 0x6fe   : > { %3605 = vmatmul.bf16.gmra.mxu1 %v3488_v8 }
 0x700   : > { %4231 = vmatpush.bf16.msra.mxu2 %v5323_v59  ;;  %v5330_v59 = vld [vmem:[%s9026_s1 + $0x10] sm:$0xff] }
 0x702   : > { %v3268_v51 = vpop.f32.mrf.mxu2 }
 0x703   : > { %v7937_v19 = vadd.f32 %v3268_v51, %v7873_v32  ;;  %v7992_v51 = vpop.f32.mrf.mxu1 }
 0x70a   : > { %v3270_v7 = vpop.f32.mrf.mxu2 }
 0x70b   : > { %v7941_v30 = vadd.f32 %v3270_v7, %v3222_v62  ;;  %v7997_v62 = vpop.f32.mrf.mxu3  ;;  %v5324_v7 = vld [vmem:[%s9026_s1 + $0x28] sm:$0xff]  ;;  %v8021_v27 = vpop.f32.mrf.mxu1 }
 0x70d   : > { %v3300_v47 = vpack.c.bf16 %v7941_v30, %v7937_v19  ;;  %v5336_v19 = vld [vmem:[%s9027_s2] sm:$0xff]  ;;  %v3449_v30 = vld [vmem:[%s5571_s26 + $0x1310] sm:$0xff] }
 0x712   : > { %v3273_v44 = vpop.f32.mrf.mxu2 }
 0x713   : > { %v7949_v32 = vadd.f32 %v3273_v44, %v7883_v12  ;;  %v7962_v12 = vpop.f32.mrf.mxu0  ;;  %v3369_v44 = vld [vmem:[%s5571_s26 + $0x410] sm:$0xff] }
 0x71a   : > { %v3275_v29 = vpop.f32.mrf.mxu2 }
 0x71b   : > { %v7956_v39 = vadd.f32 %v3275_v29, %v3227_v25  ;;  %v7982_v14 = vpop.f32.mrf.mxu0  ;;  %v5325_v25 = vld [vmem:[%s9026_s1 + $0x60] sm:$0xff]  ;;  %v3489_v29 = vpack.c.bf16 %v3377_v9, %v3369_v44  ;;  %v5331_v44 = vld [vmem:[%s9026_s1 + $0x48] sm:$0xff] }
 0x71c   : > { %4232 = vmatpush.bf16.msra.mxu2 %v5325_v25  ;;  %v5332_v9 = vld [vmem:[%s9026_s1 + $0x8] sm:$0xff]  ;;  %v8040_v25 = vpop.f32.mrf.mxu1 }
 0x71d   : > { %v3301_v1 = vpack.c.bf16 %v7956_v39, %v7949_v32  ;;  %3654 = vmatmul.bf16.gmra.mxu2 %v3489_v29  ;;  %v9034_v32 = vpack.c.bf16 %v7919_v31, %v7915_v63  ;;  %v5335_v39 = vld [vmem:[%s9026_s1 + $0xf8] sm:$0xff]  ;;  %v3529_v63 = vpack.c.bf16 %v3457_v11, %v3449_v30  ;;  %v3372_v11 = vld [vmem:[%s5571_s26 + $0x428] sm:$0xff] }
 0x720   : > { %4233 = vmatpush.bf16.msra.mxu2 %v5327_v53 }
 0x722   : > { %v3278_v55 = vpop.f32.mrf.mxu2 }
 0x723   : > { %v7966_v4 = vadd.f32 %v3278_v55, %v3230_v61  ;;  %v5320_v61 = vld [vmem:[%s9026_s1 + $0x38] sm:$0xff]  ;;  %v3367_v55 = vld [vmem:[%s5571_s26 + $0x400] sm:$0xff]  ;;  %v8012_v18 = vpop.f32.mrf.mxu0 }
 0x724   : > { %4180 = vmatpush.bf16.msrb.mxu1 %v5320_v61  ;;  %v3487_v56 = vpack.c.bf16 %v3375_v46, %v3367_v55  ;;  %v3143_v61 = vpop.f32.mrf.mxu3  ;;  %v3385_v55 = vld [vmem:[%s5571_s26 + $0x710] sm:$0xff] }
 0x725   : > { %v3393_v46 = vld [vmem:[%s5571_s26 + $0x890] sm:$0xff] }
 0x726   : > { %3556 = vmatmul.bf16.gmra.mxu0 %v3487_v56  ;;  %v3497_v56 = vpack.c.bf16 %v3393_v46, %v3385_v55  ;;  %v2997_v55 = vadd.f32 %v7764_v36, %v7762_v17  ;;  %v2987_v17 = vadd.f32 %v7724_v57, %v7722_v26  ;;  %v3142_v57 = vadd.f32 %v7997_v62, %v7901_v41 }
 0x728   : > { %4181 = vmatpush.bf16.msrb.mxu1 %v5322_v42  ;;  %v5329_v42 = vld [vmem:[%s9026_s1 + $0x50] sm:$0xff]  ;;  %v3191_v41 = vadd.f32 %v8012_v18, %v3142_v57  ;;  %v3456_v57 = vld [vmem:[%s5571_s26 + $0x1488] sm:$0xff] }
 0x729   : > { %4234 = vmatpush.bf16.msra.mxu2 %v5329_v42  ;;  %v3384_v42 = vld [vmem:[%s5571_s26 + $0x708] sm:$0xff] }
 0x72a   : > { %v7984_v45 = vpop.f32.mrf.mxu2 }
 0x72c   : > { %4182 = vmatpush.bf16.msrb.mxu1 %v5324_v7  ;;  %v3192_v7 = vpop.f32.mrf.mxu0  ;;  %v3146_v8 = vpop.f32.mrf.mxu3 }
 0x72d   : > { %4235 = vmatpush.bf16.msra.mxu2 %v5331_v44  ;;  %v3002_v44 = vadd.f32 %v7797_v40, %v7795_v48 }
 0x72e   : > { %3659 = vmatmul.bf16.gmra.mxu2 %v3497_v56  ;;  %v2992_v56 = vadd.f32 %v7740_v22, %v7738_v23  ;;  %v3401_v23 = vld [vmem:[%s5571_s26 + $0xa10] sm:$0xff] }
 0x72f   : > { %v3409_v22 = vld [vmem:[%s5571_s26 + $0xb90] sm:$0xff] }
 0x730   : > { %4183 = vmatpush.bf16.msrb.mxu1 %v5326_v49  ;;  %v3391_v49 = vld [vmem:[%s5571_s26 + $0x880] sm:$0xff]  ;;  %v3041_v36 = vadd.f32 %v7747_v20, %v2992_v56  ;;  %v3400_v56 = vld [vmem:[%s5571_s26 + $0xa08] sm:$0xff] }
 0x731   : > { %4236 = vmatpush.bf16.msra.mxu2 %v5333_v21  ;;  %v3495_v53 = vpack.c.bf16 %v3391_v49, %v3383_v33  ;;  %v3051_v21 = vadd.f32 %v7799_v6, %v3002_v44  ;;  %v3244_v33 = vpop.f32.mrf.mxu1  ;;  %v3046_v49 = vadd.f32 %v7771_v34, %v2997_v55  ;;  %v3147_v6 = vadd.f32 %v3146_v8, %v7908_v2 }
 0x732   : > { %v8002_v0 = vpop.f32.mrf.mxu2  ;;  %v3090_v34 = vadd.f32 %v7898_v37, %v3041_v36  ;;  %v3505_v44 = vpack.c.bf16 %v3409_v22, %v3401_v23  ;;  %v3036_v55 = vadd.f32 %v7728_v16, %v2987_v17  ;;  %v3137_v16 = vadd.f32 %v7958_v13, %v7894_v28  ;;  %v3416_v22 = vld [vmem:[%s5571_s26 + $0xd08] sm:$0xff] }
 0x733   : > { %v3100_v48 = vadd.f32 %v7910_v3, %v3051_v21  ;;  %v3240_v28 = vadd.f32 %v8021_v27, %v3191_v41 }
 0x734   : > { %4184 = vmatpush.bf16.msrb.mxu1 %v5328_v60  ;;  %v5334_v60 = vld [vmem:[%s9026_s1] sm:$0xff]  ;;  %v3195_v15 = vpop.f32.mrf.mxu0  ;;  %v3148_v40 = vpop.f32.mrf.mxu3  ;;  %v3085_v8 = vadd.f32 %v7891_v43, %v3036_v55  ;;  %v3139_v37 = vadd.f32 %v7974_v35, %v3090_v34  ;;  %v3186_v36 = vadd.f32 %v7962_v12, %v3137_v16  ;;  %v3424_v34 = vld [vmem:[%s5571_s26 + $0xe88] sm:$0xff]  ;;  %v5342_v16 = vld [vmem:[%s9026_s1 + $0xd0] sm:$0xff] }
 0x735   : > { %v3196_v20 = vadd.f32 %v3195_v15, %v3147_v6  ;;  %v3425_v6 = vld [vmem:[%s5571_s26 + $0xe90] sm:$0xff]  ;;  %v3432_v55 = vld [vmem:[%s5571_s26 + $0x1008] sm:$0xff] }
 0x736   : > { %3561 = vmatmul.bf16.gmra.mxu0 %v3495_v53  ;;  %v3095_v53 = vadd.f32 %v7905_v10, %v3046_v49  ;;  %v3407_v10 = vld [vmem:[%s5571_s26 + $0xb80] sm:$0xff]  ;;  %v3408_v49 = vld [vmem:[%s5571_s26 + $0xb88] sm:$0xff]  ;;  %v3134_v43 = vadd.f32 %v7946_v50, %v3085_v8 }
 0x737   : > { %v3245_v15 = vadd.f32 %v3244_v33, %v3196_v20  ;;  %v3417_v33 = vld [vmem:[%s5571_s26 + $0xd10] sm:$0xff]  ;;  %v5338_v20 = vld [vmem:[%s9026_s1 + $0xe8] sm:$0xff]  ;;  %v5339_v8 = vld [vmem:[%s9026_s1 + $0xe0] sm:$0xff] }
 0x738   : > { %4185 = vmatpush.bf16.msrb.mxu1 %v5330_v59  ;;  %v3392_v59 = vld [vmem:[%s5571_s26 + $0x888] sm:$0xff]  ;;  %v3144_v3 = vadd.f32 %v3143_v61, %v3095_v53  ;;  %v3188_v53 = vadd.f32 %v7982_v14, %v3139_v37  ;;  %v3183_v50 = vadd.f32 %v7952_v5, %v3134_v43  ;;  %v3513_v23 = vpack.c.bf16 %v3425_v6, %v3417_v33  ;;  %v3473_v37 = vld [vmem:[%s5571_s26 + $0x1790] sm:$0xff]  ;;  %v3363_v33 = vld [vmem:[%s5571_s26 + $0x2a0] sm:$0xff] }
 0x739   : > { %v3246_v21 = vpop.f32.mrf.mxu1  ;;  %v3472_v43 = vld [vmem:[%s5571_s26 + $0x1788] sm:$0xff] }
 0x73a   : > { %v8026_v38 = vpop.f32.mrf.mxu2  ;;  %v3193_v61 = vadd.f32 %v3192_v7, %v3144_v3  ;;  %v3232_v5 = vadd.f32 %v7954_v52, %v3183_v50  ;;  %v3431_v52 = vld [vmem:[%s5571_s26 + $0x1000] sm:$0xff]  ;;  %v5348_v50 = vld [vmem:[%s9026_s1 + $0x1e8] sm:$0xff] }
 0x73c   : > { %4186 = vmatpush.bf16.msrb.mxu1 %v5332_v9  ;;  %v3496_v9 = vpack.c.bf16 %v3392_v59, %v3384_v42  ;;  %v3197_v42 = vpop.f32.mrf.mxu0  ;;  %v3242_v35 = vadd.f32 %v8040_v25, %v3193_v61  ;;  %v3415_v25 = vld [vmem:[%s5571_s26 + $0xd00] sm:$0xff] }
 0x73d   : > { %v3463_v61 = vld [vmem:[%s5571_s26 + $0x1600] sm:$0xff] }
 0x73e   : > { %3610 = vmatmul.bf16.gmra.mxu1 %v3496_v9  ;;  %v3399_v9 = vld [vmem:[%s5571_s26 + $0xa00] sm:$0xff]  ;;  %3664 = vmatmul.bf16.gmra.mxu2 %v3505_v44  ;;  %v3433_v44 = vld [vmem:[%s5571_s26 + $0x1010] sm:$0xff] }
 0x73f   : > { %v3503_v26 = vpack.c.bf16 %v3407_v10, %v3399_v9  ;;  %v3441_v9 = vld [vmem:[%s5571_s26 + $0x1190] sm:$0xff] }
 0x740   : > { %4187 = vmatpush.bf16.msrb.mxu1 %v5334_v60  ;;  %v3149_v60 = vadd.f32 %v3148_v40, %v3100_v48  ;;  %v3504_v48 = vpack.c.bf16 %v3408_v49, %v3400_v56  ;;  %v5341_v56 = vld [vmem:[%s9027_s2 + $0x8] sm:$0xff]  ;;  %v3465_v49 = vld [vmem:[%s5571_s26 + $0x1610] sm:$0xff] }
 0x741   : > { %v3537_v41 = vpack.c.bf16 %v3473_v37, %v3465_v49 }
 0x742   : > { %v8042_v29 = vpop.f32.mrf.mxu2  ;;  %v3198_v2 = vadd.f32 %v3197_v42, %v3149_v60  ;;  %v3237_v60 = vadd.f32 %v7992_v51, %v3188_v53  ;;  %v3423_v42 = vld [vmem:[%s5571_s26 + $0xe80] sm:$0xff] }
 0x743   : > { %v3289_v14 = vadd.f32 %v8042_v29, %v3240_v28  ;;  %v3281_v29 = vadd.f32 %v7984_v45, %v3232_v5  ;;  %v3521_v45 = vpack.c.bf16 %v3441_v9, %v3433_v44  ;;  %v3357_v28 = vld [vmem:[%s5571_s26 + $0x130] sm:$0xff]  ;;  %v5351_v5 = vld [vmem:[%s9026_s1 + $0x1d8] sm:$0xff] }
 0x744   : > { %v3247_v62 = vadd.f32 %v3246_v21, %v3198_v2  ;;  %v3286_v12 = vadd.f32 %v8026_v38, %v3237_v60  ;;  %v3512_v38 = vpack.c.bf16 %v3424_v34, %v3416_v22  ;;  %v5340_v21 = vld [vmem:[%s9026_s1 + $0xd8] sm:$0xff]  ;;  %v5354_v44 = vld [vmem:[%s9026_s1 + $0x1d0] sm:$0xff] }
 0x745   : > { %v3302_v3 = vpack.c.bf16 %v3281_v29, %v7966_v4  ;;  %v5353_v29 = vld [vmem:[%s9026_s1 + $0x170] sm:$0xff]  ;;  %v5355_v9 = vld [vmem:[%s9027_s2 + $0x18] sm:$0xff] }
 0x746   : > { %3566 = vmatmul.bf16.gmra.mxu0 %v3503_v26  ;;  %v3440_v26 = vld [vmem:[%s5571_s26 + $0x1188] sm:$0xff] }
 0x747   : > { %v3520_v4 = vpack.c.bf16 %v3440_v26, %v3432_v55  ;;  %v3379_v55 = vld [vmem:[%s5571_s26 + $0x5a0] sm:$0xff]  ;;  %v5357_v26 = vld [vmem:[%s9026_s1 + $0x168] sm:$0xff] }
 0x74a   : > { %v3290_v46 = vpop.f32.mrf.mxu2 }
 0x74b   : > { %v3291_v13 = vadd.f32 %v3290_v46, %v3242_v35  ;;  %v3511_v46 = vpack.c.bf16 %v3423_v42, %v3415_v25  ;;  %v5344_v35 = vld [vmem:[%s9026_s1 + $0xc0] sm:$0xff]  ;;  %v3364_v25 = vld [vmem:[%s5571_s26 + $0x2a8] sm:$0xff] }
 0x74d   : > { %v3304_v27 = vpack.c.bf16 %v3291_v13, %v3289_v14  ;;  %v3365_v13 = vld [vmem:[%s5571_s26 + $0x2b0] sm:$0xff]  ;;  %v3356_v14 = vld [vmem:[%s5571_s26 + $0x128] sm:$0xff] }
 0x74e   : > { %3615 = vmatmul.bf16.gmra.mxu1 %v3504_v48  ;;  %3669 = vmatmul.bf16.gmra.mxu2 %v3513_v23  ;;  %v3471_v48 = vld [vmem:[%s5571_s26 + $0x1780] sm:$0xff]  ;;  %v3485_v6 = vpack.c.bf16 %v3365_v13, %v3357_v28 }
 0x74f   : > { %v5349_v23 = vld [vmem:[%s9026_s1 + $0x1e0] sm:$0xff] }
 0x752   : > { %v3293_v59 = vpop.f32.mrf.mxu2 }
 0x753   : > { %v3294_v7 = vadd.f32 %v3293_v59, %v3245_v15  ;;  %v3235_v59 = vadd.f32 %v7971_v58, %v3186_v36  ;;  %v3535_v15 = vpack.c.bf16 %v3471_v48, %v3463_v61  ;;  %v5347_v36 = vld [vmem:[%s9027_s2 + $0x10] sm:$0xff]  ;;  %v5364_v48 = vld [vmem:[%s9026_s1 + $0x118] sm:$0xff] }
 0x755   : > { %v3284_v51 = vadd.f32 %v8002_v0, %v3235_v59  ;;  %v3439_v0 = vld [vmem:[%s5571_s26 + $0x1180] sm:$0xff] }
 0x756   : > { %3571 = vmatmul.bf16.gmra.mxu0 %v3511_v46  ;;  %v3519_v10 = vpack.c.bf16 %v3439_v0, %v3431_v52  ;;  %v5350_v46 = vld [vmem:[%s9026_s1 + $0x178] sm:$0xff]  ;;  %v3373_v52 = vld [vmem:[%s5571_s26 + $0x430] sm:$0xff] }
 0x757   : > { %v3303_v58 = vpack.c.bf16 %v3286_v12, %v3284_v51  ;;  %v5352_v51 = vld [vmem:[%s9026_s1 + $0x138] sm:$0xff]  ;;  %v3381_v0 = vld [vmem:[%s5571_s26 + $0x5b0] sm:$0xff] }
 0x75a   : > { %v3295_v40 = vpop.f32.mrf.mxu2 }
 0x75b   : > { %v3296_v17 = vadd.f32 %v3295_v40, %v3247_v62  ;;  %v3464_v62 = vld [vmem:[%s5571_s26 + $0x1608] sm:$0xff] }
 0x75c   : > { %v5343_v40 = vld [vmem:[%s9026_s1 + $0xc8] sm:$0xff]  ;;  %v3536_v53 = vpack.c.bf16 %v3472_v43, %v3464_v62  ;;  %v3389_v43 = vld [vmem:[%s5571_s26 + $0x730] sm:$0xff] }
 0x75d   : > { %v3305_v18 = vpack.c.bf16 %v3296_v17, %v3294_v7  ;;  %v5345_v7 = vld [vmem:[%s9026_s1 + $0x1f8] sm:$0xff]  ;;  %v5346_v17 = vld [vmem:[%s9026_s1 + $0x1f0] sm:$0xff] }
 0x75e   : > { %3620 = vmatmul.bf16.gmra.mxu1 %v3512_v38  ;;  %3674 = vmatmul.bf16.gmra.mxu2 %v3521_v45  ;;  %v5356_v45 = vld [vmem:[%s9026_s1 + $0x130] sm:$0xff] }
 0x75f   : > { %3314 = vmatpush.bf16.msrb.mxu3 %v3305_v18  ;;  %v3355_v18 = vld [vmem:[%s5571_s26 + $0x120] sm:$0xff] }
 0x760   : > { %v3483_v60 = vpack.c.bf16 %v3363_v33, %v3355_v18 }
 0x763   : > { %3315 = vmatpush.bf16.msrb.mxu3 %v3304_v27  ;;  %v3484_v27 = vpack.c.bf16 %v3364_v25, %v3356_v14  ;;  %v5370_v25 = vld [vmem:[%s9026_s1 + $0xb0] sm:$0xff] }
 0x766   : > { %3576 = vmatmul.bf16.gmra.mxu0 %v3519_v10  ;;  %v3371_v10 = vld [vmem:[%s5571_s26 + $0x420] sm:$0xff] }
 0x767   : > { %3316 = vmatpush.bf16.msrb.mxu3 %v3303_v58  ;;  %v3491_v30 = vpack.c.bf16 %v3379_v55, %v3371_v10  ;;  %v3411_v10 = vld [vmem:[%s5571_s26 + $0xba0] sm:$0xff]  ;;  %v5375_v55 = vld [vmem:[%s9026_s1 + $0x98] sm:$0xff] }
 0x76b   : > { %3317 = vmatpush.bf16.msrb.mxu3 %v3302_v3  ;;  %v3601_v59 = vpop.f32.mrf.mxu1 }
 0x76e   : > { %3625 = vmatmul.bf16.gmra.mxu1 %v3520_v4  ;;  %3679 = vmatmul.bf16.gmra.mxu2 %v3529_v63  ;;  %v5360_v63 = vld [vmem:[%s9026_s1 + $0x160] sm:$0xff] }
 0x76f   : > { %3318 = vmatpush.bf16.msrb.mxu3 %v3301_v1  ;;  %v3448_v1 = vld [vmem:[%s5571_s26 + $0x1308] sm:$0xff] }
 0x770   : > { %v3528_v2 = vpack.c.bf16 %v3456_v57, %v3448_v1 }
 0x773   : > { %3319 = vmatpush.bf16.msrb.mxu3 %v3300_v47  ;;  %v5337_v47 = vld [vmem:[%s9026_s1 + $0xf0] sm:$0xff]  ;;  %v3603_v38 = vpop.f32.mrf.mxu1 }
 0x775   : > { %v3552_v42 = vpop.f32.mrf.mxu0 }
 0x776   : > { %v3602_v12 = vadd.f32 %v3601_v59, %v3552_v42  ;;  %v5371_v42 = vld [vmem:[%s9026_s1 + $0x140] sm:$0xff] }
 0x777   : > { %3320 = vmatpush.bf16.msrb.mxu3 %v3299_v54  ;;  %v3455_v54 = vld [vmem:[%s5571_s26 + $0x1480] sm:$0xff] }
 0x778   : > { %v3527_v31 = vpack.c.bf16 %v3455_v54, %v3447_v24  ;;  %v3380_v24 = vld [vmem:[%s5571_s26 + $0x5a8] sm:$0xff] }
 0x779   : > { %v3650_v22 = vpop.f32.mrf.mxu2  ;;  %v5359_v54 = vld [vmem:[%s9026_s1 + $0x128] sm:$0xff]  ;;  %v3492_v57 = vpack.c.bf16 %v3380_v24, %v3372_v11 }
 0x77a   : > { %3581 = vmatmul.bf16.gmra.mxu0 %v3527_v31  ;;  %v8189_v34 = vadd.f32 %v3650_v22, %v3602_v12  ;;  %v3412_v11 = vld [vmem:[%s5571_s26 + $0xba8] sm:$0xff] }
 0x77b   : > { %3321 = vmatpush.bf16.msrb.mxu3 %v9034_v32  ;;  %v3606_v31 = vpop.f32.mrf.mxu1 }
 0x77d   : > { %v3554_v58 = vpop.f32.mrf.mxu0 }
 0x77e   : > { %3322 = vmatmul.bf16.vlgmr.msrb.gmra.mxu3 %v5336_v19  ;;  %3630 = vmatmul.bf16.gmra.mxu1 %v3528_v2  ;;  %v3604_v3 = vadd.f32 %v3603_v38, %v3554_v58  ;;  %v5358_v19 = vld [vmem:[%s9026_s1 + $0x1c8] sm:$0xff]  ;;  %v5362_v2 = vld [vmem:[%s9026_s1 + $0x120] sm:$0xff] }
 0x77f   : > { %3690 = vmatpush.bf16.msra.mxu3 %v5335_v39  ;;  %3684 = vmatmul.bf16.gmra.mxu2 %v3537_v41  ;;  %v3493_v39 = vpack.c.bf16 %v3381_v0, %v3373_v52  ;;  %v5365_v41 = vld [vmem:[%s9026_s1 + $0x150] sm:$0xff] }
 0x780   : > { %v3413_v52 = vld [vmem:[%s5571_s26 + $0xbb0] sm:$0xff] }
 0x781   : > { %v3652_v4 = vpop.f32.mrf.mxu2 }
 0x782   : > { %v8216_v32 = vadd.f32 %v3652_v4, %v3604_v3  ;;  %v5374_v3 = vld [vmem:[%s9026_s1 + $0xa0] sm:$0xff] }
 0x783   : > { %3691 = vmatpush.bf16.msra.mxu3 %v5337_v47 }
 0x787   : > { %3692 = vmatpush.bf16.msra.mxu3 %v5338_v20  ;;  %v5361_v20 = vld [vmem:[%s9026_s1 + $0x1c0] sm:$0xff] }
 0x78a   : > { %3586 = vmatmul.bf16.gmra.mxu0 %v3535_v15  ;;  %v3608_v15 = vpop.f32.mrf.mxu1 }
 0x78b   : > { %3693 = vmatpush.bf16.msra.mxu3 %v5339_v8  ;;  %v3354_v8 = vld [vmem:[%s5571_s26 + $0x118] sm:$0xff] }
 0x78e   : > { %3327 = vmatmul.bf16.gmra.mxu3 %v5341_v56  ;;  %3635 = vmatmul.bf16.gmra.mxu1 %v3536_v53  ;;  %v5363_v56 = vld [vmem:[%s9026_s1 + $0x158] sm:$0xff]  ;;  %v5366_v53 = vld [vmem:[%s9026_s1 + $0x110] sm:$0xff] }
 0x78f   : > { %3694 = vmatpush.bf16.msra.mxu3 %v5340_v21  ;;  %3845 = vmatmul.bf16.vlgmr.msrb.gmra.mxu2 %v3485_v6  ;;  %v3362_v21 = vld [vmem:[%s5571_s26 + $0x298] sm:$0xff]  ;;  %v3388_v6 = vld [vmem:[%s5571_s26 + $0x728] sm:$0xff] }
 0x790   : > { %4425 = vmatpush.bf16.msrb.mxu2 %v5350_v46  ;;  %v3482_v61 = vpack.c.bf16 %v3362_v21, %v3354_v8  ;;  %v3378_v46 = vld [vmem:[%s5571_s26 + $0x598] sm:$0xff] }
 0x793   : > { %3695 = vmatpush.bf16.msra.mxu3 %v5342_v16 }
 0x794   : > { %4426 = vmatpush.bf16.msrb.mxu2 %v5353_v29 }
 0x797   : > { %3696 = vmatpush.bf16.msra.mxu3 %v5343_v40  ;;  %v3397_v40 = vld [vmem:[%s5571_s26 + $0x8b0] sm:$0xff] }
 0x798   : > { %4427 = vmatpush.bf16.msrb.mxu2 %v5357_v26  ;;  %v3501_v18 = vpack.c.bf16 %v3397_v40, %v3389_v43 }
 0x79a   : > { %3747 = vmatmul.bf16.vlgmr.msra.gmra.mxu0 %v3483_v60  ;;  %v5369_v60 = vld [vmem:[%s9026_s1 + $0x108] sm:$0xff] }
 0x79b   : > { %3697 = vmatpush.bf16.msra.mxu3 %v5344_v35  ;;  %v3387_v35 = vld [vmem:[%s5571_s26 + $0x720] sm:$0xff] }
 0x79c   : > { %4428 = vmatpush.bf16.msrb.mxu2 %v5360_v63 }
 0x79e   : > { %3332 = vmatmul.bf16.gmra.mxu3 %v5347_v36  ;;  %3796 = vmatmul.bf16.vlgmr.msra.gmra.mxu1 %v3484_v27  ;;  %v5368_v36 = vld [vmem:[%s9026_s1 + $0x148] sm:$0xff]  ;;  %v5372_v27 = vld [vmem:[%s9026_s1 + $0x100] sm:$0xff] }
 0x79f   : > { %3886 = vmatpush.bf16.msrb.mxu3 %v5345_v7  ;;  %4376 = vmatpush.bf16.msra.mxu1 %v5352_v51  ;;  %v3395_v7 = vld [vmem:[%s5571_s26 + $0x8a0] sm:$0xff] }
 0x7a0   : > { %3850 = vmatmul.bf16.gmra.mxu2 %v3493_v39  ;;  %v3655_v49 = vpop.f32.mrf.mxu2  ;;  %v3499_v33 = vpack.c.bf16 %v3395_v7, %v3387_v35  ;;  %v3427_v35 = vld [vmem:[%s5571_s26 + $0xea0] sm:$0xff]  ;;  %v3420_v7 = vld [vmem:[%s5571_s26 + $0xd28] sm:$0xff] }
 0x7a1   : > { %4429 = vmatpush.bf16.msrb.mxu2 %v5363_v56 }
 0x7a3   : > { %3887 = vmatpush.bf16.msrb.mxu3 %v5346_v17  ;;  %4377 = vmatpush.bf16.msra.mxu1 %v5356_v45  ;;  %v3557_v47 = vpop.f32.mrf.mxu0  ;;  %v5367_v17 = vld [vmem:[%s9026_s1 + $0xb8] sm:$0xff]  ;;  %v3403_v45 = vld [vmem:[%s5571_s26 + $0xa20] sm:$0xff] }
 0x7a4   : > { %v3607_v1 = vadd.f32 %v3606_v31, %v3557_v47  ;;  %v3386_v31 = vld [vmem:[%s5571_s26 + $0x718] sm:$0xff] }
 0x7a5   : > { %4430 = vmatpush.bf16.msrb.mxu2 %v5365_v41 }
 0x7a6   : > { %v8240_v37 = vadd.f32 %v3655_v49, %v3607_v1  ;;  %v3394_v1 = vld [vmem:[%s5571_s26 + $0x898] sm:$0xff]  ;;  %v5378_v49 = vld [vmem:[%s9026_s1 + $0x80] sm:$0xff] }
 0x7a7   : > { %3888 = vmatpush.bf16.msrb.mxu3 %v5348_v50  ;;  %4378 = vmatpush.bf16.msra.mxu1 %v5359_v54  ;;  %v3396_v50 = vld [vmem:[%s5571_s26 + $0x8a8] sm:$0xff]  ;;  %v5376_v54 = vld [vmem:[%s9026_s1 + $0x90] sm:$0xff]  ;;  %v3498_v21 = vpack.c.bf16 %v3394_v1, %v3386_v31 }
 0x7a8   : > { %v3657_v28 = vpop.f32.mrf.mxu2  ;;  %v3500_v59 = vpack.c.bf16 %v3396_v50, %v3388_v6  ;;  %v3410_v6 = vld [vmem:[%s5571_s26 + $0xb98] sm:$0xff] }
 0x7a9   : > { %4431 = vmatpush.bf16.msrb.mxu2 %v5368_v36  ;;  %v3428_v36 = vld [vmem:[%s5571_s26 + $0xea8] sm:$0xff] }
 0x7aa   : > { %3752 = vmatmul.bf16.gmra.mxu0 %v3491_v30  ;;  %v3404_v30 = vld [vmem:[%s5571_s26 + $0xa28] sm:$0xff] }
 0x7ab   : > { %3889 = vmatpush.bf16.msrb.mxu3 %v5349_v23  ;;  %4379 = vmatpush.bf16.msra.mxu1 %v5362_v2  ;;  %v3559_v16 = vpop.f32.mrf.mxu0  ;;  %v3370_v23 = vld [vmem:[%s5571_s26 + $0x418] sm:$0xff]  ;;  %v3508_v47 = vpack.c.bf16 %v3412_v11, %v3404_v30 }
 0x7ac   : > { %v3609_v62 = vadd.f32 %v3608_v15, %v3559_v16  ;;  %v3490_v58 = vpack.c.bf16 %v3378_v46, %v3370_v23  ;;  %v3421_v15 = vld [vmem:[%s5571_s26 + $0xd30] sm:$0xff]  ;;  %v3306_v30 = vld [vmem:[%s9028_s3 + $0x18] sm:$0xff] }
 0x7ad   : > { %4432 = vmatpush.bf16.msrb.mxu2 %v5371_v42  ;;  %v3445_v23 = vld [vmem:[%s5571_s26 + $0x11b0] sm:$0xff] }
 0x7ae   : > { %3337 = vmatmul.bf16.gmra.mxu3 %v5355_v9  ;;  %3801 = vmatmul.bf16.gmra.mxu1 %v3492_v57  ;;  %v8261_v13 = vadd.f32 %v3657_v28, %v3609_v62  ;;  %v3405_v9 = vld [vmem:[%s5571_s26 + $0xa30] sm:$0xff] }
 0x7af   : > { %3890 = vmatpush.bf16.msrb.mxu3 %v5351_v5  ;;  %4380 = vmatpush.bf16.msra.mxu1 %v5364_v48  ;;  %v5373_v5 = vld [vmem:[%s9026_s1 + $0xa8] sm:$0xff]  ;;  %v3509_v39 = vpack.c.bf16 %v3413_v52, %v3405_v9  ;;  %v3429_v62 = vld [vmem:[%s5571_s26 + $0xeb0] sm:$0xff]  ;;  %v3418_v52 = vld [vmem:[%s5571_s26 + $0xd18] sm:$0xff] }
 0x7b0   : > { %3855 = vmatmul.bf16.gmra.mxu2 %v3501_v18  ;;  %v3517_v43 = vpack.c.bf16 %v3429_v62, %v3421_v15  ;;  %v3516_v18 = vpack.c.bf16 %v3428_v36, %v3420_v7  ;;  %v3442_v15 = vld [vmem:[%s5571_s26 + $0x1198] sm:$0xff] }
 0x7b1   : > { %v3660_v51 = vpop.f32.mrf.mxu2 }
 0x7b3   : > { %3891 = vmatpush.bf16.msrb.mxu3 %v5354_v44  ;;  %4381 = vmatpush.bf16.msra.mxu1 %v5366_v53  ;;  %v3562_v14 = vpop.f32.mrf.mxu0  ;;  %v3419_v53 = vld [vmem:[%s5571_s26 + $0xd20] sm:$0xff] }
 0x7b7   : > { %3892 = vmatpush.bf16.msrb.mxu3 %v5358_v19  ;;  %4382 = vmatpush.bf16.msra.mxu1 %v5369_v60  ;;  %v3507_v19 = vpack.c.bf16 %v3411_v10, %v3403_v45 }
 0x7b9   : > { %v3662_v26 = vpop.f32.mrf.mxu2 }
 0x7ba   : > { %3757 = vmatmul.bf16.gmra.mxu0 %v3499_v33  ;;  %v3402_v33 = vld [vmem:[%s5571_s26 + $0xa18] sm:$0xff] }
 0x7bb   : > { %3893 = vmatpush.bf16.msrb.mxu3 %v5361_v20  ;;  %v3611_v12 = vpop.f32.mrf.mxu1  ;;  %4383 = vmatpush.bf16.msra.mxu1 %v5372_v27  ;;  %v3564_v38 = vpop.f32.mrf.mxu0  ;;  %v5377_v20 = vld [vmem:[%s9026_s1 + $0x88] sm:$0xff]  ;;  %v3437_v27 = vld [vmem:[%s5571_s26 + $0x1030] sm:$0xff] }
 0x7bc   : > { %v3612_v22 = vadd.f32 %v3611_v12, %v3562_v14  ;;  %v3525_v46 = vpack.c.bf16 %v3445_v23, %v3437_v27  ;;  %v3467_v27 = vld [vmem:[%s5571_s26 + $0x1620] sm:$0xff] }
 0x7bd   : > { %v3475_v23 = vld [vmem:[%s5571_s26 + $0x17a0] sm:$0xff] }
 0x7be   : > { %3698 = vmatmul.bf16.vlgmr.msra.gmra.mxu3 %v3482_v61  ;;  %v8282_v29 = vadd.f32 %v3660_v51, %v3612_v22  ;;  %3806 = vmatmul.bf16.gmra.mxu1 %v3500_v59  ;;  %v3443_v51 = vld [vmem:[%s5571_s26 + $0x11a0] sm:$0xff] }
 0x7bf   : > { %4278 = vmatpush.bf16.msra.mxu3 %v5367_v17  ;;  %v3515_v17 = vpack.c.bf16 %v3427_v35, %v3419_v53 }
 0x7c0   : > { %3860 = vmatmul.bf16.gmra.mxu2 %v3509_v39 }
 0x7c1   : > { %v3665_v2 = vpop.f32.mrf.mxu2 }
 0x7c3   : > { %4279 = vmatpush.bf16.msra.mxu3 %v5370_v25  ;;  %v3613_v44 = vpop.f32.mrf.mxu1  ;;  %v3567_v24 = vpop.f32.mrf.mxu0  ;;  %v3506_v25 = vpack.c.bf16 %v3410_v6, %v3402_v33 }
 0x7c4   : > { %v3614_v0 = vadd.f32 %v3613_v44, %v3564_v38 }
 0x7c6   : > { %v8294_v4 = vadd.f32 %v3662_v26, %v3614_v0  ;;  %v3426_v0 = vld [vmem:[%s5571_s26 + $0xe98] sm:$0xff] }
 0x7c7   : > { %4280 = vmatpush.bf16.msra.mxu3 %v5373_v5  ;;  %v3435_v5 = vld [vmem:[%s5571_s26 + $0x1020] sm:$0xff]  ;;  %v3514_v26 = vpack.c.bf16 %v3426_v0, %v3418_v52 }
 0x7c8   : > { %v3523_v38 = vpack.c.bf16 %v3443_v51, %v3435_v5  ;;  %v3476_v5 = vld [vmem:[%s5571_s26 + $0x17a8] sm:$0xff] }
 0x7c9   : > { %v3667_v16 = vpop.f32.mrf.mxu2 }
 0x7ca   : > { %3762 = vmatmul.bf16.gmra.mxu0 %v3507_v19 }
 0x7cb   : > { %4281 = vmatpush.bf16.msra.mxu3 %v5374_v3  ;;  %v3616_v63 = vpop.f32.mrf.mxu1  ;;  %v3569_v56 = vpop.f32.mrf.mxu0  ;;  %v3444_v3 = vld [vmem:[%s5571_s26 + $0x11a8] sm:$0xff] }
 0x7cc   : > { %v3617_v57 = vadd.f32 %v3616_v63, %v3567_v24  ;;  %v3461_v63 = vld [vmem:[%s5571_s26 + $0x14b0] sm:$0xff] }
 0x7ce   : > { %3703 = vmatmul.bf16.gmra.mxu3 %v3490_v58  ;;  %v8306_v8 = vadd.f32 %v3665_v2, %v3617_v57  ;;  %3811 = vmatmul.bf16.gmra.mxu1 %v3508_v47  ;;  %v3436_v58 = vld [vmem:[%s5571_s26 + $0x1028] sm:$0xff]  ;;  %v3453_v47 = vld [vmem:[%s5571_s26 + $0x1330] sm:$0xff]  ;;  %v3451_v57 = vld [vmem:[%s5571_s26 + $0x1320] sm:$0xff] }
 0x7cf   : > { %4282 = vmatpush.bf16.msra.mxu3 %v5375_v55  ;;  %v3524_v9 = vpack.c.bf16 %v3444_v3, %v3436_v58  ;;  %v3533_v31 = vpack.c.bf16 %v3461_v63, %v3453_v47  ;;  %v3452_v2 = vld [vmem:[%s5571_s26 + $0x1328] sm:$0xff] }
 0x7d0   : > { %3865 = vmatmul.bf16.gmra.mxu2 %v3517_v43  ;;  %v3309_v3 = vld [vmem:[%s9028_s3 + $0xa8] sm:$0xff] }
 0x7d1   : > { %v3670_v60 = vpop.f32.mrf.mxu2  ;;  %v3311_v63 = vld [vmem:[%s9028_s3 + $0x108] sm:$0xff] }
 0x7d3   : > { %4283 = vmatpush.bf16.msra.mxu3 %v5376_v54  ;;  %v3618_v61 = vpop.f32.mrf.mxu1  ;;  %v3572_v40 = vpop.f32.mrf.mxu0 }
 0x7d4   : > { %v3619_v48 = vadd.f32 %v3618_v61, %v3569_v56  ;;  %v3460_v56 = vld [vmem:[%s5571_s26 + $0x14a8] sm:$0xff] }
 0x7d5   : > { %v3532_v61 = vpack.c.bf16 %v3460_v56, %v3452_v2 }
 0x7d6   : > { %v8311_v41 = vadd.f32 %v3667_v16, %v3619_v48  ;;  %v3307_v48 = vld [vmem:[%s9028_s3 + $0x48] sm:$0xff]  ;;  %v3434_v16 = vld [vmem:[%s5571_s26 + $0x1018] sm:$0xff] }
 0x7d7   : > { %4284 = vmatpush.bf16.msra.mxu3 %v5377_v20  ;;  %v3459_v20 = vld [vmem:[%s5571_s26 + $0x14a0] sm:$0xff]  ;;  %v3522_v7 = vpack.c.bf16 %v3442_v15, %v3434_v16 }
 0x7d9   : > { %v8327_v12 = vpop.f32.mrf.mxu2 }
 0x7da   : > { %3767 = vmatmul.bf16.gmra.mxu0 %v3515_v17 }
 0x7db   : > { %4285 = vmatpush.bf16.msra.mxu3 %v5378_v49  ;;  %v3621_v28 = vpop.f32.mrf.mxu1  ;;  %v8323_v42 = vpop.f32.mrf.mxu0 }
 0x7dc   : > { %v3622_v50 = vadd.f32 %v3621_v28, %v3572_v40  ;;  %v3308_v28 = vld [vmem:[%s9028_s3 + $0x78] sm:$0xff] }
 0x7de   : > { %3708 = vmatmul.bf16.gmra.mxu3 %v3498_v21  ;;  %v8321_v14 = vadd.f32 %v3670_v60, %v3622_v50  ;;  %3816 = vmatmul.bf16.gmra.mxu1 %v3516_v18  ;;  %v3531_v21 = vpack.c.bf16 %v3459_v20, %v3451_v57  ;;  %v3469_v50 = vld [vmem:[%s5571_s26 + $0x1630] sm:$0xff] }
 0x7df   : > { %v3477_v60 = vld [vmem:[%s5571_s26 + $0x17b0] sm:$0xff] }
 0x7e0   : > { %3870 = vmatmul.bf16.gmra.mxu2 %v3525_v46  ;;  %v3468_v46 = vld [vmem:[%s5571_s26 + $0x1628] sm:$0xff] }
 0x7e1   : > { %v3675_v10 = vpop.f32.mrf.mxu2 }
 0x7e3   : > { %v8325_v59 = vpop.f32.mrf.mxu1  ;;  %v3577_v22 = vpop.f32.mrf.mxu0 }
 0x7e9   : > { %v8346_v11 = vpop.f32.mrf.mxu2 }
 0x7ea   : > { %3772 = vmatmul.bf16.gmra.mxu0 %v3523_v38  ;;  %v3540_v38 = vpack.c.bf16 %v3476_v5, %v3468_v46 }
 0x7eb   : > { %v3626_v44 = vpop.f32.mrf.mxu1  ;;  %v8339_v39 = vpop.f32.mrf.mxu0 }
 0x7ec   : > { %v3627_v45 = vadd.f32 %v3626_v44, %v3577_v22  ;;  %v3539_v22 = vpack.c.bf16 %v3475_v23, %v3467_v27  ;;  %v3450_v44 = vld [vmem:[%s5571_s26 + $0x1318] sm:$0xff] }
 0x7ed   : > { %v5379_v27 = vld [vmem:[%s9026_s1 + $0x1b8] sm:$0xff] }
 0x7ee   : > { %3713 = vmatmul.bf16.gmra.mxu3 %v3506_v25  ;;  %v8337_v55 = vadd.f32 %v3675_v10, %v3627_v45  ;;  %3821 = vmatmul.bf16.gmra.mxu1 %v3524_v9  ;;  %v3541_v25 = vpack.c.bf16 %v3477_v60, %v3469_v50  ;;  %v3458_v9 = vld [vmem:[%s5571_s26 + $0x1498] sm:$0xff] }
 0x7f0   : > { %3875 = vmatmul.bf16.gmra.mxu2 %v3533_v31  ;;  %v3466_v31 = vld [vmem:[%s5571_s26 + $0x1618] sm:$0xff] }
 0x7f1   : > { %v3680_v43 = vpop.f32.mrf.mxu2 }
 0x7f3   : > { %v8341_v19 = vpop.f32.mrf.mxu1 }
 0x7f7   : > { %v3582_v1 = vpop.f32.mrf.mxu0 }
 0x7f9   : > { %v8370_v18 = vpop.f32.mrf.mxu2 }
 0x7fa   : > { %3777 = vmatmul.bf16.gmra.mxu0 %v3531_v21 }
 0x7fb   : > { %v3631_v49 = vpop.f32.mrf.mxu1 }
 0x7fc   : > { %v3632_v62 = vadd.f32 %v3631_v49, %v3582_v1  ;;  %v3474_v1 = vld [vmem:[%s5571_s26 + $0x1798] sm:$0xff] }
 0x7fd   : > { %v3538_v56 = vpack.c.bf16 %v3474_v1, %v3466_v31  ;;  %v5384_v1 = vld [vmem:[%s9026_s1 + $0x190] sm:$0xff] }
 0x7fe   : > { %3718 = vmatmul.bf16.gmra.mxu3 %v3514_v26  ;;  %v8360_v53 = vadd.f32 %v3680_v43, %v3632_v62  ;;  %3826 = vmatmul.bf16.gmra.mxu1 %v3532_v61  ;;  %v3312_v61 = vld [vmem:[%s9028_s3 + $0x138] sm:$0xff] }
 0x7ff   : > { %v8363_v17 = vpop.f32.mrf.mxu0 }
 0x800   : > { %3880 = vmatmul.bf16.gmra.mxu2 %v3541_v25 }
 0x801   : > { %v3323_v24 = vpop.f32.mrf.mxu3 }
 0x802   : > { %v3324_v54 = vadd.f32 %v3323_v24, %v3306_v30  ;;  %v3685_v0 = vpop.f32.mrf.mxu2  ;;  %v3530_v30 = vpack.c.bf16 %v3458_v9, %v3450_v44  ;;  %v3310_v24 = vld [vmem:[%s9028_s3 + $0xd8] sm:$0xff]  ;;  %v5381_v9 = vld [vmem:[%s9026_s1 + $0x1a8] sm:$0xff] }
 0x803   : > { %v8365_v36 = vpop.f32.mrf.mxu1 }
 0x804   : > { %3343 = vst [vmem:[%s6539_s22 + $0x18] sm:$0xff] %v3324_v54 }
 0x807   : > { %v3587_v51 = vpop.f32.mrf.mxu0 }
 0x809   : > { %v3325_v40 = vpop.f32.mrf.mxu3 }
 0x80a   : > { %v3326_v35 = vadd.f32 %v3325_v40, %v3307_v48  ;;  %3782 = vmatmul.bf16.gmra.mxu0 %v3539_v22  ;;  %v8400_v49 = vpop.f32.mrf.mxu2  ;;  %v3313_v40 = vld [vmem:[%s9028_s3 + $0x168] sm:$0xff]  ;;  %v5380_v22 = vld [vmem:[%s9026_s1 + $0x1b0] sm:$0xff] }
 0x80b   : > { %v3636_v58 = vpop.f32.mrf.mxu1 }
 0x80c   : > { %3344 = vst [vmem:[%s6539_s22 + $0x48] sm:$0xff] %v3326_v35  ;;  %v3637_v52 = vadd.f32 %v3636_v58, %v3587_v51  ;;  %v3358_v35 = vld [vmem:[%s5571_s26 + $0x138] sm:$0xff] }
 0x80e   : > { %3723 = vmatmul.bf16.gmra.mxu3 %v3522_v7  ;;  %v8384_v10 = vadd.f32 %v3685_v0, %v3637_v52  ;;  %3831 = vmatmul.bf16.gmra.mxu1 %v3540_v38  ;;  %v3366_v7 = vld [vmem:[%s5571_s26 + $0x2b8] sm:$0xff] }
 0x80f   : > { %v8396_v57 = vpop.f32.mrf.mxu0  ;;  %v3374_v38 = vld [vmem:[%s5571_s26 + $0x438] sm:$0xff] }
 0x811   : > { %v3328_v33 = vpop.f32.mrf.mxu3 }
 0x812   : > { %v3329_v6 = vadd.f32 %v3328_v33, %v3308_v28  ;;  %v3846_v43 = vpop.f32.mrf.mxu2 }
 0x813   : > { %v8398_v2 = vpop.f32.mrf.mxu1 }
 0x814   : > { %3345 = vst [vmem:[%s6539_s22 + $0x78] sm:$0xff] %v3329_v6  ;;  %v3486_v6 = vpack.c.bf16 %v3366_v7, %v3358_v35  ;;  %v5386_v35 = vld [vmem:[%s9026_s1 + $0x180] sm:$0xff] }
 0x817   : > { %v3748_v16 = vpop.f32.mrf.mxu0 }
 0x819   : > { %v3330_v45 = vpop.f32.mrf.mxu3 }
 0x81a   : > { %v3331_v26 = vadd.f32 %v3330_v45, %v3309_v3  ;;  %v8417_v25 = vpop.f32.mrf.mxu2  ;;  %v3382_v3 = vld [vmem:[%s5571_s26 + $0x5b8] sm:$0xff] }
 0x81b   : > { %v3797_v62 = vpop.f32.mrf.mxu1 }
 0x81c   : > { %3346 = vst [vmem:[%s6539_s22 + $0xa8] sm:$0xff] %v3331_v26  ;;  %v3494_v26 = vpack.c.bf16 %v3382_v3, %v3374_v38 }
 0x81e   : > { %3728 = vmatmul.bf16.gmra.mxu3 %v3530_v30  ;;  %v5382_v30 = vld [vmem:[%s9026_s1 + $0x1a0] sm:$0xff] }
 0x81f   : > { %v8412_v50 = vpop.f32.mrf.mxu0 }
 0x821   : > { %v3333_v54 = vpop.f32.mrf.mxu3 }
 0x822   : > { %v3334_v47 = vadd.f32 %v3333_v54, %v3310_v24  ;;  %v5383_v54 = vld [vmem:[%s9026_s1 + $0x198] sm:$0xff] }
 0x823   : > { %v8415_v60 = vpop.f32.mrf.mxu1 }
 0x824   : > { %3347 = vst [vmem:[%s6539_s22 + $0xd8] sm:$0xff] %v3334_v47 }
 0x827   : > { %v3753_v51 = vpop.f32.mrf.mxu0 }
 0x829   : > { %v3335_v20 = vpop.f32.mrf.mxu3 }
 0x82a   : > { %v3336_v21 = vadd.f32 %v3335_v20, %v3311_v63 }
 0x82b   : > { %v3802_v44 = vpop.f32.mrf.mxu1 }
 0x82c   : > { %3348 = vst [vmem:[%s6539_s22 + $0x108] sm:$0xff] %v3336_v21 }
 0x82e   : > { %3733 = vmatmul.bf16.gmra.mxu3 %v3538_v56  ;;  %v3390_v56 = vld [vmem:[%s5571_s26 + $0x738] sm:$0xff] }
 0x82f   : > { %v8439_v24 = vpop.f32.mrf.mxu0 }
 0x831   : > { %v3338_v48 = vpop.f32.mrf.mxu3 }
 0x832   : > { %v3339_v15 = vadd.f32 %v3338_v48, %v3312_v61  ;;  %v3398_v61 = vld [vmem:[%s5571_s26 + $0x8b8] sm:$0xff]  ;;  %v5385_v48 = vld [vmem:[%s9026_s1 + $0x188] sm:$0xff] }
 0x833   : > { %v8444_v63 = vpop.f32.mrf.mxu1 }
 0x834   : > { %3349 = vst [vmem:[%s6539_s22 + $0x138] sm:$0xff] %v3339_v15 }
 0x837   : > { %v3758_v15 = vpop.f32.mrf.mxu0 }
 0x839   : > { %v3340_v28 = vpop.f32.mrf.mxu3 }
 0x83a   : > { %v3341_v33 = vadd.f32 %v3340_v28, %v3313_v40 }
 0x83b   : > { %v3807_v40 = vpop.f32.mrf.mxu1 }
 0x83c   : > { %3350 = vst [vmem:[%s6539_s22 + $0x168] sm:$0xff] %v3341_v33 }
 0x83e   : > { %3894 = vmatmul.bf16.vlgmr.msrb.gmra.mxu3 %v3486_v6 }
 0x83f   : > { %4474 = vmatpush.bf16.msrb.mxu3 %v5379_v27  ;;  %v8466_v6 = vpop.f32.mrf.mxu0 }
 0x841   : > { %v3699_v23 = vpop.f32.mrf.mxu3 }
 0x842   : > { %v3700_v46 = vadd.f32 %v3699_v23, %v8189_v34  ;;  %v3851_v34 = vpop.f32.mrf.mxu2 }
 0x843   : > { %4475 = vmatpush.bf16.msrb.mxu3 %v5380_v22  ;;  %v8468_v23 = vpop.f32.mrf.mxu1  ;;  %v3414_v22 = vld [vmem:[%s5571_s26 + $0xbb8] sm:$0xff] }
 0x844   : > { %v3749_v5 = vadd.f32 %v3748_v16, %v3700_v46 }
 0x846   : > { %v3798_v58 = vadd.f32 %v3797_v62, %v3749_v5 }
 0x847   : > { %4476 = vmatpush.bf16.msrb.mxu3 %v5381_v9 }
 0x848   : > { %v8431_v52 = vadd.f32 %v3846_v43, %v3798_v58  ;;  %v3502_v43 = vpack.c.bf16 %v3398_v61, %v3390_v56 }
 0x849   : > { %v3701_v0 = vpop.f32.mrf.mxu3 }
 0x84a   : > { %v8434_v45 = vadd.f32 %v3701_v0, %v8216_v32  ;;  %v8447_v31 = vpop.f32.mrf.mxu2 }
 0x84b   : > { %4477 = vmatpush.bf16.msrb.mxu3 %v5382_v30 }
 0x84e   : > { %3899 = vmatmul.bf16.gmra.mxu3 %v3494_v26 }
 0x84f   : > { %4478 = vmatpush.bf16.msrb.mxu3 %v5383_v54 }
 0x851   : > { %v3704_v47 = vpop.f32.mrf.mxu3 }
 0x852   : > { %v3705_v32 = vadd.f32 %v3704_v47, %v8240_v37  ;;  %v3856_v7 = vpop.f32.mrf.mxu2  ;;  %v3422_v47 = vld [vmem:[%s5571_s26 + $0xd38] sm:$0xff] }
 0x853   : > { %4479 = vmatpush.bf16.msrb.mxu3 %v5384_v1 }
 0x854   : > { %v3754_v20 = vadd.f32 %v3753_v51, %v3705_v32  ;;  %v3430_v32 = vld [vmem:[%s5571_s26 + $0xeb8] sm:$0xff] }
 0x855   : > { %v3518_v56 = vpack.c.bf16 %v3430_v32, %v3422_v47  ;;  %v3751_v32 = vadd.f32 %v8412_v50, %v8434_v45 }
 0x856   : > { %v3803_v21 = vadd.f32 %v3802_v44, %v3754_v20  ;;  %v3812_v44 = vpop.f32.mrf.mxu1 }
 0x857   : > { %4480 = vmatpush.bf16.msrb.mxu3 %v5385_v48 }
 0x858   : > { %v8457_v16 = vadd.f32 %v3851_v34, %v3803_v21 }
 0x859   : > { %v3706_v37 = vpop.f32.mrf.mxu3 }
 0x85a   : > { %v8460_v62 = vadd.f32 %v3706_v37, %v8261_v13  ;;  %v3406_v13 = vld [vmem:[%s5571_s26 + $0xa38] sm:$0xff]  ;;  %v8472_v5 = vpop.f32.mrf.mxu2 }
 0x85b   : > { %4481 = vmatpush.bf16.msrb.mxu3 %v5386_v35  ;;  %v3510_v3 = vpack.c.bf16 %v3414_v22, %v3406_v13  ;;  %v3454_v22 = vld [vmem:[%s5571_s26 + $0x1338] sm:$0xff] }
 0x85e   : > { %3904 = vmatmul.bf16.gmra.mxu3 %v3502_v43  ;;  %v8486_v20 = vpop.f32.mrf.mxu1 }
 0x861   : > { %v3709_v28 = vpop.f32.mrf.mxu3 }
 0x862   : > { %v3710_v33 = vadd.f32 %v3709_v28, %v8282_v29  ;;  %v3763_v29 = vpop.f32.mrf.mxu0  ;;  %v3861_v0 = vpop.f32.mrf.mxu2  ;;  %v3446_v28 = vld [vmem:[%s5571_s26 + $0x11b8] sm:$0xff] }
 0x864   : > { %v3759_v27 = vadd.f32 %v3758_v15, %v3710_v33 }
 0x866   : > { %v3808_v46 = vadd.f32 %v3807_v40, %v3759_v27  ;;  %v3817_v15 = vpop.f32.mrf.mxu1 }
 0x868   : > { %v8474_v51 = vadd.f32 %v3856_v7, %v3808_v46  ;;  %v3438_v7 = vld [vmem:[%s5571_s26 + $0x1038] sm:$0xff] }
 0x869   : > { %v3711_v58 = vpop.f32.mrf.mxu3  ;;  %v3526_v27 = vpack.c.bf16 %v3446_v28, %v3438_v7 }
 0x86a   : > { %v8477_v38 = vadd.f32 %v3711_v58, %v8294_v4  ;;  %v8480_v54 = vpop.f32.mrf.mxu0  ;;  %v3863_v61 = vpop.f32.mrf.mxu2 }
 0x86e   : > { %3909 = vmatmul.bf16.gmra.mxu3 %v3510_v3 }
 0x871   : > { %v3714_v9 = vpop.f32.mrf.mxu3 }
 0x872   : > { %v3715_v34 = vadd.f32 %v3714_v9, %v8306_v8  ;;  %v3768_v48 = vpop.f32.mrf.mxu0  ;;  %v3866_v40 = vpop.f32.mrf.mxu2  ;;  %v3470_v9 = vld [vmem:[%s5571_s26 + $0x1638] sm:$0xff] }
 0x874   : > { %v3764_v26 = vadd.f32 %v3763_v29, %v3715_v34 }
 0x876   : > { %v3813_v30 = vadd.f32 %v3812_v44, %v3764_v26 }
 0x878   : > { %v8484_v1 = vadd.f32 %v3861_v0, %v3813_v30  ;;  %v3478_v0 = vld [vmem:[%s5571_s26 + $0x17b8] sm:$0xff] }
 0x879   : > { %v3716_v4 = vpop.f32.mrf.mxu3  ;;  %v3542_v26 = vpack.c.bf16 %v3478_v0, %v3470_v9  ;;  %v3990_v0 = vld [vmem:[%s5571_s26 + $0x150] sm:$0xff] }
 0x87a   : > { %v3717_v21 = vadd.f32 %v3716_v4, %v8311_v41 }
 0x87e   : > { %3914 = vmatmul.bf16.gmra.mxu3 %v3518_v56 }
 0x881   : > { %v3719_v8 = vpop.f32.mrf.mxu3 }
 0x882   : > { %v3720_v37 = vadd.f32 %v3719_v8, %v8321_v14  ;;  %v3462_v14 = vld [vmem:[%s5571_s26 + $0x14b8] sm:$0xff] }
 0x883   : > { %v3534_v3 = vpack.c.bf16 %v3462_v14, %v3454_v22  ;;  %v8557_v22 = vpop.f32.mrf.mxu2 }
 0x884   : > { %v3769_v43 = vadd.f32 %v3768_v48, %v3720_v37 }
 0x886   : > { %v3818_v35 = vadd.f32 %v3817_v15, %v3769_v43  ;;  %v3756_v15 = vadd.f32 %v8439_v24, %v8460_v62 }
 0x888   : > { %v8492_v33 = vadd.f32 %v3866_v40, %v3818_v35  ;;  %v3761_v35 = vadd.f32 %v8466_v6, %v8477_v38  ;;  %v3766_v6 = vadd.f32 %v8480_v54, %v3717_v21  ;;  %v8549_v38 = vpop.f32.mrf.mxu0 }
 0x889   : > { %v8494_v41 = vpop.f32.mrf.mxu3 }
 0x88e   : > { %3919 = vmatmul.bf16.gmra.mxu3 %v3526_v27 }
 0x890   : > { %v8563_v21 = vpop.f32.mrf.mxu0 }
 0x891   : > { %v3724_v46 = vpop.f32.mrf.mxu3 }
 0x892   : > { %v8497_v13 = vadd.f32 %v3724_v46, %v8337_v55 }
 0x899   : > { %v8501_v58 = vpop.f32.mrf.mxu3 }
 0x89e   : > { %3924 = vmatmul.bf16.gmra.mxu3 %v3534_v3  ;;  %v3989_v3 = vld [vmem:[%s5571_s26 + $0x148] sm:$0xff] }
 0x8a1   : > { %v3729_v29 = vpop.f32.mrf.mxu3 }
 0x8a2   : > { %v8504_v44 = vadd.f32 %v3729_v29, %v8360_v53  ;;  %v3800_v53 = vadd.f32 %v8415_v60, %v3751_v32  ;;  %v3997_v29 = vld [vmem:[%s5571_s26 + $0x2c8] sm:$0xff] }
 0x8a3   : > { %v4117_v54 = vpack.c.bf16 %v3997_v29, %v3989_v3 }
 0x8a4   : > { %v3849_v8 = vadd.f32 %v8417_v25, %v3800_v53  ;;  %v4044_v25 = vld [vmem:[%s5571_s26 + $0xbc0] sm:$0xff] }
 0x8a5   : > { %4237 = vmatmul.bf16.vlgmr.msra.gmra.mxu2 %v4117_v54 }
 0x8a9   : > { %v8508_v34 = vpop.f32.mrf.mxu3 }
 0x8ae   : > { %3929 = vmatmul.bf16.gmra.mxu3 %v3542_v26 }
 0x8b1   : > { %v3734_v30 = vpop.f32.mrf.mxu3 }
 0x8b2   : > { %v8511_v55 = vadd.f32 %v3734_v30, %v8384_v10  ;;  %v3996_v30 = vld [vmem:[%s5571_s26 + $0x2c0] sm:$0xff] }
 0x8b9   : > { %v8513_v47 = vpop.f32.mrf.mxu3 }
 0x8c1   : > { %v3895_v4 = vpop.f32.mrf.mxu3 }
 0x8c2   : > { %v8518_v56 = vadd.f32 %v3895_v4, %v8431_v52  ;;  %v3805_v52 = vadd.f32 %v8444_v63, %v3756_v15  ;;  %v8578_v15 = vpop.f32.mrf.mxu0 }
 0x8c4   : > { %v3854_v45 = vadd.f32 %v8447_v31, %v3805_v52 }
 0x8c9   : > { %v3897_v48 = vpop.f32.mrf.mxu3 }
 0x8ca   : > { %v8522_v37 = vadd.f32 %v3897_v48, %v3849_v8  ;;  %v8576_v48 = vpop.f32.mrf.mxu2 }
 0x8d1   : > { %v3900_v43 = vpop.f32.mrf.mxu3 }
 0x8d2   : > { %v8529_v50 = vadd.f32 %v3900_v43, %v8457_v16  ;;  %v3810_v16 = vadd.f32 %v8468_v23, %v3761_v35  ;;  %v3815_v23 = vadd.f32 %v8486_v20, %v3766_v6  ;;  %v8590_v6 = vpop.f32.mrf.mxu2 }
 0x8d4   : > { %v3859_v63 = vadd.f32 %v8472_v5, %v3810_v16  ;;  %v8555_v5 = vpop.f32.mrf.mxu1  ;;  %v3864_v46 = vadd.f32 %v3863_v61, %v3815_v23  ;;  %v3988_v61 = vld [vmem:[%s5571_s26 + $0x140] sm:$0xff]  ;;  %v4014_v16 = vld [vmem:[%s5571_s26 + $0x5d0] sm:$0xff]  ;;  %v3778_v23 = vpop.f32.mrf.mxu0 }
 0x8d5   : > { %v4116_v32 = vpack.c.bf16 %v3996_v30, %v3988_v61  ;;  %v4022_v61 = vld [vmem:[%s5571_s26 + $0x750] sm:$0xff] }
 0x8d6   : > { %v4030_v30 = vld [vmem:[%s5571_s26 + $0x8d0] sm:$0xff] }
 0x8d7   : > { %4188 = vmatmul.bf16.vlgmr.msrb.gmra.mxu1 %v4116_v32  ;;  %v4134_v32 = vpack.c.bf16 %v4030_v30, %v4022_v61 }
 0x8d9   : > { %v3902_v60 = vpop.f32.mrf.mxu3 }
 0x8da   : > { %v8533_v40 = vadd.f32 %v3902_v60, %v3854_v45  ;;  %v4005_v45 = vld [vmem:[%s5571_s26 + $0x448] sm:$0xff]  ;;  %v8594_v3 = vpop.f32.mrf.mxu2 }
 0x8db   : > { %v4013_v60 = vld [vmem:[%s5571_s26 + $0x5c8] sm:$0xff] }
 0x8dc   : > { %v8571_v4 = vpop.f32.mrf.mxu1  ;;  %v4125_v35 = vpack.c.bf16 %v4013_v60, %v4005_v45  ;;  %v3780_v29 = vpop.f32.mrf.mxu0  ;;  %v4020_v45 = vld [vmem:[%s5571_s26 + $0x740] sm:$0xff] }
 0x8dd   : > { %v4028_v60 = vld [vmem:[%s5571_s26 + $0x8c0] sm:$0xff] }
 0x8de   : > { %4242 = vmatmul.bf16.gmra.mxu2 %v4125_v35  ;;  %v4132_v35 = vpack.c.bf16 %v4028_v60, %v4020_v45  ;;  %v4046_v45 = vld [vmem:[%s5571_s26 + $0xbd0] sm:$0xff]  ;;  %v3629_v60 = vadd.f32 %v8341_v19, %v8339_v39 }
 0x8e1   : > { %v3905_v7 = vpop.f32.mrf.mxu3 }
 0x8e2   : > { %v8540_v24 = vadd.f32 %v3905_v7, %v8474_v51  ;;  %v4006_v7 = vld [vmem:[%s5571_s26 + $0x450] sm:$0xff] }
 0x8e4   : > { %v8580_v43 = vpop.f32.mrf.mxu1 }
 0x8e9   : > { %v3907_v31 = vpop.f32.mrf.mxu3 }
 0x8ea   : > { %v8544_v62 = vadd.f32 %v3907_v31, %v3859_v63  ;;  %v4126_v63 = vpack.c.bf16 %v4014_v16, %v4006_v7  ;;  %v4012_v31 = vld [vmem:[%s5571_s26 + $0x5c0] sm:$0xff]  ;;  %v3878_v7 = vpop.f32.mrf.mxu2 }
 0x8f1   : > { %v3910_v27 = vpop.f32.mrf.mxu3 }
 0x8f2   : > { %v8552_v51 = vadd.f32 %v3910_v27, %v8484_v1  ;;  %v3998_v1 = vld [vmem:[%s5571_s26 + $0x2d0] sm:$0xff] }
 0x8f3   : > { %v4118_v26 = vpack.c.bf16 %v3998_v1, %v3990_v0  ;;  %v4021_v0 = vld [vmem:[%s5571_s26 + $0x748] sm:$0xff] }
 0x8f4   : > { %v4029_v1 = vld [vmem:[%s5571_s26 + $0x8c8] sm:$0xff] }
 0x8f5   : > { %4286 = vmatmul.bf16.vlgmr.msra.gmra.mxu3 %v4118_v26  ;;  %v4133_v26 = vpack.c.bf16 %v4029_v1, %v4021_v0  ;;  %v4037_v1 = vld [vmem:[%s5571_s26 + $0xa48] sm:$0xff] }
 0x8f7   : > { %4247 = vmatmul.bf16.gmra.mxu2 %v4133_v26  ;;  %v4045_v26 = vld [vmem:[%s5571_s26 + $0xbc8] sm:$0xff] }
 0x8f8   : > { %v4141_v30 = vpack.c.bf16 %v4045_v26, %v4037_v1  ;;  %v3678_v1 = vadd.f32 %v8346_v11, %v3629_v60  ;;  %v4054_v60 = vld [vmem:[%s5571_s26 + $0xd50] sm:$0xff] }
 0x8f9   : > { %v3912_v14 = vpop.f32.mrf.mxu3 }
 0x8fa   : > { %v8561_v9 = vadd.f32 %v3912_v14, %v3864_v46  ;;  %v3827_v14 = vpop.f32.mrf.mxu1 }
 0x8fc   : > { %v3938_v20 = vpack.c.bf16 %v8561_v9, %v8552_v51  ;;  %v9037_v51 = vpack.c.bf16 %v8522_v37, %v8518_v56  ;;  %v4086_v9 = vld [vmem:[%s5571_s26 + $0x1350] sm:$0xff]  ;;  %v4084_v56 = vld [vmem:[%s5571_s26 + $0x1340] sm:$0xff] }
 0x8fd   : > { %v4092_v37 = vld [vmem:[%s5571_s26 + $0x14c0] sm:$0xff] }
 0x901   : > { %v3915_v53 = vpop.f32.mrf.mxu3 }
 0x902   : > { %v8574_v8 = vadd.f32 %v3915_v53, %v8492_v33  ;;  %v4004_v33 = vld [vmem:[%s5571_s26 + $0x440] sm:$0xff]  ;;  %v3829_v53 = vpop.f32.mrf.mxu1 }
 0x903   : > { %v4124_v27 = vpack.c.bf16 %v4012_v31, %v4004_v33  ;;  %v3639_v33 = vadd.f32 %v8398_v2, %v8396_v57 }
 0x905   : > { %4291 = vmatmul.bf16.gmra.mxu3 %v4126_v63  ;;  %4193 = vmatmul.bf16.gmra.mxu1 %v4124_v27  ;;  %v3783_v63 = vpop.f32.mrf.mxu0  ;;  %v3634_v27 = vadd.f32 %v8365_v36, %v8363_v17  ;;  %v3688_v61 = vadd.f32 %v8400_v49, %v3639_v33  ;;  %v4036_v36 = vld [vmem:[%s5571_s26 + $0xa40] sm:$0xff]  ;;  %v3624_v33 = vadd.f32 %v8325_v59, %v8323_v42 }
 0x906   : > { %v4140_v49 = vpack.c.bf16 %v4044_v25, %v4036_v36  ;;  %v3784_v39 = vadd.f32 %v3783_v63, %v8511_v55 }
 0x907   : > { %v3683_v57 = vadd.f32 %v8370_v18, %v3634_v27  ;;  %v3737_v2 = vadd.f32 %v8513_v47, %v3688_v61  ;;  %4252 = vmatmul.bf16.gmra.mxu2 %v4141_v30  ;;  %v3727_v18 = vadd.f32 %v8501_v58, %v3678_v1  ;;  %v3673_v61 = vadd.f32 %v8327_v12, %v3624_v33  ;;  %v4069_v33 = vld [vmem:[%s5571_s26 + $0x1048] sm:$0xff] }
 0x908   : > { %v3774_v58 = vadd.f32 %v8563_v21, %v8497_v13  ;;  %v4062_v13 = vld [vmem:[%s5571_s26 + $0xed0] sm:$0xff]  ;;  %v4077_v1 = vld [vmem:[%s5571_s26 + $0x11c8] sm:$0xff] }
 0x909   : > { %v8582_v52 = vpop.f32.mrf.mxu3  ;;  %v3732_v28 = vadd.f32 %v8508_v34, %v3683_v57  ;;  %v3779_v34 = vadd.f32 %v3778_v23, %v8504_v44  ;;  %v3722_v42 = vadd.f32 %v8494_v41, %v3673_v61  ;;  %v3776_v59 = vadd.f32 %v8578_v15, %v3727_v18  ;;  %v4061_v41 = vld [vmem:[%s5571_s26 + $0xec8] sm:$0xff]  ;;  %v4052_v57 = vld [vmem:[%s5571_s26 + $0xd40] sm:$0xff] }
 0x90a   : > { %v3832_v31 = vpop.f32.mrf.mxu1  ;;  %v4076_v18 = vld [vmem:[%s5571_s26 + $0x11c0] sm:$0xff] }
 0x90b   : > { %v3781_v26 = vadd.f32 %v3780_v29, %v3732_v28  ;;  %v3828_v28 = vadd.f32 %v3827_v14, %v3779_v34  ;;  %v3771_v12 = vadd.f32 %v8549_v38, %v3722_v42  ;;  %v3825_v44 = vadd.f32 %v8580_v43, %v3776_v59  ;;  %v5389_v34 = vld [vmem:[%s9026_s1 + $0xf0] sm:$0xff]  ;;  %v4109_v42 = vld [vmem:[%s5571_s26 + $0x17c8] sm:$0xff]  ;;  %v5391_v59 = vld [vmem:[%s9026_s1 + $0xe0] sm:$0xff] }
 0x90c   : > { %v4150_v38 = vpack.c.bf16 %v4062_v13, %v4054_v60  ;;  %v3994_v60 = vld [vmem:[%s5571_s26 + $0x170] sm:$0xff] }
 0x90d   : > { %v3785_v17 = vpop.f32.mrf.mxu0  ;;  %v3830_v55 = vadd.f32 %v3829_v53, %v3781_v26  ;;  %v3877_v21 = vadd.f32 %v8594_v3, %v3828_v28  ;;  %v3820_v43 = vadd.f32 %v8555_v5, %v3771_v12  ;;  %v9036_v26 = vpack.c.bf16 %v8533_v40, %v8529_v50  ;;  %v8680_v50 = vld [vmem:[%s9027_s2] sm:$0xff]  ;;  %v5392_v28 = vld [vmem:[%s9026_s1 + $0xd8] sm:$0xff]  ;;  %v4002_v13 = vld [vmem:[%s5571_s26 + $0x2f0] sm:$0xff] }
 0x90e   : > { %v3786_v19 = vadd.f32 %v3785_v17, %v3737_v2  ;;  %v4060_v2 = vld [vmem:[%s5571_s26 + $0xec0] sm:$0xff]  ;;  %v4164_v40 = vpack.c.bf16 %v4092_v37, %v4084_v56  ;;  %v4025_v37 = vld [vmem:[%s5571_s26 + $0x768] sm:$0xff] }
 0x90f   : > { %v3879_v15 = vadd.f32 %v3878_v7, %v3830_v55  ;;  %v3874_v7 = vadd.f32 %v8590_v6, %v3825_v44  ;;  %v3869_v5 = vadd.f32 %v8557_v22, %v3820_v43  ;;  %v4102_v55 = vld [vmem:[%s5571_s26 + $0x1650] sm:$0xff]  ;;  %v4100_v12 = vld [vmem:[%s5571_s26 + $0x1640] sm:$0xff] }
 0x910   : > { %v4108_v44 = vld [vmem:[%s5571_s26 + $0x17c0] sm:$0xff] }
 0x911   : > { %v8592_v46 = vpop.f32.mrf.mxu3  ;;  %v3918_v6 = vadd.f32 %v8582_v52, %v3869_v5  ;;  %v3992_v43 = vld [vmem:[%s5571_s26 + $0x160] sm:$0xff] }
 0x912   : > { %v3834_v47 = vpop.f32.mrf.mxu1  ;;  %v5401_v5 = vld [vmem:[%s9026_s1 + $0x1e0] sm:$0xff] }
 0x913   : > { %v3835_v25 = vadd.f32 %v3834_v47, %v3786_v19  ;;  %v4078_v19 = vld [vmem:[%s5571_s26 + $0x11d0] sm:$0xff]  ;;  %v4085_v47 = vld [vmem:[%s5571_s26 + $0x1348] sm:$0xff]  ;;  %v5406_v56 = vld [vmem:[%s9026_s1 + $0x1c0] sm:$0xff] }
 0x915   : > { %4296 = vmatmul.bf16.gmra.mxu3 %v4134_v32  ;;  %4198 = vmatmul.bf16.gmra.mxu1 %v4132_v35  ;;  %v4038_v32 = vld [vmem:[%s5571_s26 + $0xa50] sm:$0xff]  ;;  %v3881_v35 = vpop.f32.mrf.mxu2 }
 0x916   : > { %v4142_v10 = vpack.c.bf16 %v4046_v45, %v4038_v32  ;;  %v3823_v45 = vadd.f32 %v8571_v4, %v3774_v58  ;;  %v4148_v4 = vpack.c.bf16 %v4060_v2, %v4052_v57  ;;  %v4110_v58 = vld [vmem:[%s5571_s26 + $0x17d0] sm:$0xff]  ;;  %v4000_v57 = vld [vmem:[%s5571_s26 + $0x2e0] sm:$0xff] }
 0x917   : > { %v4120_v2 = vpack.c.bf16 %v4000_v57, %v3992_v43 }
 0x918   : > { %v3872_v3 = vadd.f32 %v8576_v48, %v3823_v45  ;;  %v3939_v48 = vpack.c.bf16 %v3918_v6, %v8574_v8  ;;  %v9035_v8 = vpack.c.bf16 %v8544_v62, %v8540_v24  ;;  %v5387_v24 = vld [vmem:[%s9026_s1 + $0xf8] sm:$0xff]  ;;  %v4017_v6 = vld [vmem:[%s5571_s26 + $0x5e8] sm:$0xff] }
 0x919   : > { %v8596_v54 = vpop.f32.mrf.mxu3  ;;  %v5397_v45 = vld [vmem:[%s9026_s1 + $0x1f8] sm:$0xff] }
 0x91d   : > { %v3883_v11 = vpop.f32.mrf.mxu2 }
 0x91e   : > { %v3884_v63 = vadd.f32 %v3883_v11, %v3835_v25  ;;  %v4101_v25 = vld [vmem:[%s5571_s26 + $0x1648] sm:$0xff] }
 0x91f   : > { %v4173_v11 = vpack.c.bf16 %v4109_v42, %v4101_v25 }
 0x921   : > { %v8604_v16 = vpop.f32.mrf.mxu3 }
 0x922   : > { %v3926_v17 = vadd.f32 %v8604_v16, %v3877_v21 }
 0x925   : > { %4301 = vmatmul.bf16.gmra.mxu3 %v4142_v10  ;;  %4203 = vmatmul.bf16.gmra.mxu1 %v4140_v49  ;;  %v3833_v10 = vadd.f32 %v3832_v31, %v3784_v39  ;;  %v4053_v31 = vld [vmem:[%s5571_s26 + $0xd48] sm:$0xff]  ;;  %v3921_v49 = vadd.f32 %v8592_v46, %v3872_v3  ;;  %v4070_v39 = vld [vmem:[%s5571_s26 + $0x1050] sm:$0xff]  ;;  %v4068_v46 = vld [vmem:[%s5571_s26 + $0x1040] sm:$0xff] }
 0x926   : > { %v4149_v53 = vpack.c.bf16 %v4061_v41, %v4053_v31  ;;  %v4158_v22 = vpack.c.bf16 %v4078_v19, %v4070_v39  ;;  %v4156_v52 = vpack.c.bf16 %v4076_v18, %v4068_v46  ;;  %v5394_v31 = vld [vmem:[%s9026_s1 + $0xd0] sm:$0xff]  ;;  %v5395_v41 = vld [vmem:[%s9026_s1 + $0xc8] sm:$0xff] }
 0x927   : > { %v3882_v29 = vadd.f32 %v3881_v35, %v3833_v10  ;;  %v5390_v10 = vld [vmem:[%s9026_s1 + $0xe8] sm:$0xff]  ;;  %v4010_v19 = vld [vmem:[%s5571_s26 + $0x470] sm:$0xff] }
 0x928   : > { %4257 = vmatmul.bf16.gmra.mxu2 %v4149_v53 }
 0x929   : > { %v3927_v0 = vpop.f32.mrf.mxu3 }
 0x92a   : > { %v3928_v14 = vadd.f32 %v3927_v0, %v3879_v15  ;;  %v3923_v0 = vadd.f32 %v8596_v54, %v3874_v7  ;;  %v4157_v54 = vpack.c.bf16 %v4077_v1, %v4069_v33  ;;  %v3993_v15 = vld [vmem:[%s5571_s26 + $0x168] sm:$0xff]  ;;  %v4238_v7 = vpop.f32.mrf.mxu2 }
 0x92c   : > { %v3941_v36 = vpack.c.bf16 %v3928_v14, %v3926_v17  ;;  %v3940_v16 = vpack.c.bf16 %v3923_v0, %v3921_v49  ;;  %v4122_v14 = vpack.c.bf16 %v4002_v13, %v3994_v60  ;;  %v4009_v49 = vld [vmem:[%s5571_s26 + $0x468] sm:$0xff] }
 0x92d   : > { %v4129_v1 = vpack.c.bf16 %v4017_v6, %v4009_v49  ;;  %v4041_v60 = vld [vmem:[%s5571_s26 + $0xa68] sm:$0xff]  ;;  %v4040_v49 = vld [vmem:[%s5571_s26 + $0xa60] sm:$0xff] }
 0x92e   : > { %v4049_v13 = vld [vmem:[%s5571_s26 + $0xbe8] sm:$0xff]  ;;  %v4048_v6 = vld [vmem:[%s5571_s26 + $0xbe0] sm:$0xff] }
 0x92f   : > { %v4145_v57 = vpack.c.bf16 %v4049_v13, %v4041_v60  ;;  %v4082_v60 = vld [vmem:[%s5571_s26 + $0x11f0] sm:$0xff] }
 0x931   : > { %v3930_v27 = vpop.f32.mrf.mxu3 }
 0x932   : > { %v3931_v30 = vadd.f32 %v3930_v27, %v3882_v29  ;;  %v4093_v27 = vld [vmem:[%s5571_s26 + $0x14c8] sm:$0xff]  ;;  %v4174_v29 = vpack.c.bf16 %v4110_v58, %v4102_v55 }
 0x933   : > { %v4165_v61 = vpack.c.bf16 %v4093_v27, %v4085_v47  ;;  %v4008_v47 = vld [vmem:[%s5571_s26 + $0x460] sm:$0xff] }
 0x934   : > { %v4016_v27 = vld [vmem:[%s5571_s26 + $0x5e0] sm:$0xff] }
 0x935   : > { %4306 = vmatmul.bf16.gmra.mxu3 %v4150_v38  ;;  %4208 = vmatmul.bf16.gmra.mxu1 %v4148_v4  ;;  %v8731_v38 = vld [vmem:[%s9027_s2 + $0x10] sm:$0xff]  ;;  %v5400_v4 = vld [vmem:[%s9026_s1 + $0x1e8] sm:$0xff] }
 0x938   : > { %4262 = vmatmul.bf16.gmra.mxu2 %v4157_v54 }
 0x939   : > { %v3932_v23 = vpop.f32.mrf.mxu3 }
 0x93a   : > { %v3933_v32 = vadd.f32 %v3932_v23, %v3884_v63  ;;  %v8704_v63 = vld [vmem:[%s9027_s2 + $0x8] sm:$0xff]  ;;  %v4172_v23 = vpack.c.bf16 %v4108_v44, %v4100_v12 }
 0x93c   : > { %v3942_v35 = vpack.c.bf16 %v3933_v32, %v3931_v30  ;;  %v4001_v30 = vld [vmem:[%s5571_s26 + $0x2e8] sm:$0xff]  ;;  %v5396_v32 = vld [vmem:[%s9026_s1 + $0xc0] sm:$0xff] }
 0x93d   : > { %v4121_v53 = vpack.c.bf16 %v4001_v30, %v3993_v15 }
 0x93e   : > { %3951 = vmatpush.bf16.msrb.mxu0 %v3942_v35  ;;  %v5398_v35 = vld [vmem:[%s9026_s1 + $0x1f0] sm:$0xff] }
 0x942   : > { %3952 = vmatpush.bf16.msrb.mxu0 %v3941_v36 }
 0x945   : > { %4311 = vmatmul.bf16.gmra.mxu3 %v4158_v22  ;;  %4213 = vmatmul.bf16.gmra.mxu1 %v4156_v52  ;;  %v4018_v22 = vld [vmem:[%s5571_s26 + $0x5f0] sm:$0xff] }
 0x946   : > { %3953 = vmatpush.bf16.msrb.mxu0 %v3940_v16  ;;  %v4240_v16 = vpop.f32.mrf.mxu2  ;;  %v4130_v18 = vpack.c.bf16 %v4018_v22, %v4010_v19  ;;  %v5403_v52 = vld [vmem:[%s9026_s1 + $0x1d0] sm:$0xff]  ;;  %v4023_v22 = vld [vmem:[%s5571_s26 + $0x758] sm:$0xff] }
 0x948   : > { %4267 = vmatmul.bf16.gmra.mxu2 %v4165_v61 }
 0x94a   : > { %3954 = vmatpush.bf16.msrb.mxu0 %v3939_v48  ;;  %v5402_v48 = vld [vmem:[%s9026_s1 + $0x1d8] sm:$0xff] }
 0x94e   : > { %3955 = vmatpush.bf16.msrb.mxu0 %v3938_v20  ;;  %v4094_v20 = vld [vmem:[%s5571_s26 + $0x14d0] sm:$0xff] }
 0x94f   : > { %v4166_v62 = vpack.c.bf16 %v4094_v20, %v4086_v9  ;;  %v5405_v9 = vld [vmem:[%s9026_s1 + $0x1c8] sm:$0xff] }
 0x952   : > { %3956 = vmatpush.bf16.msrb.mxu0 %v9035_v8  ;;  %v8759_v8 = vld [vmem:[%s9027_s2 + $0x18] sm:$0xff] }
 0x954   : > { %v4189_v21 = vpop.f32.mrf.mxu1 }
 0x955   : > { %4316 = vmatmul.bf16.gmra.mxu3 %v4166_v62  ;;  %4218 = vmatmul.bf16.gmra.mxu1 %v4164_v40  ;;  %v4239_v17 = vadd.f32 %v4238_v7, %v4189_v21  ;;  %v4033_v40 = vld [vmem:[%s5571_s26 + $0x8e8] sm:$0xff]  ;;  %v4007_v21 = vld [vmem:[%s5571_s26 + $0x458] sm:$0xff] }
 0x956   : > { %3957 = vmatpush.bf16.msrb.mxu0 %v9036_v26  ;;  %v4128_v26 = vpack.c.bf16 %v4016_v27, %v4008_v47 }
 0x958   : > { %4272 = vmatmul.bf16.gmra.mxu2 %v4173_v11 }
 0x95a   : > { %3958 = vmatpush.bf16.msrb.mxu0 %v9037_v51 }
 0x95c   : > { %v4191_v36 = vpop.f32.mrf.mxu1 }
 0x95d   : > { %3959 = vmatmul.bf16.vlgmr.msrb.gmra.mxu0 %v8680_v50  ;;  %v4241_v33 = vadd.f32 %v4240_v16, %v4191_v36  ;;  %v4144_v16 = vpack.c.bf16 %v4048_v6, %v4040_v49  ;;  %v3943_v6 = vld [vmem:[%s9028_s3 + $0x20] sm:$0xff] }
 0x95e   : > { %4327 = vmatpush.bf16.msra.mxu0 %v5387_v24 }
 0x961   : > { %v4243_v61 = vpop.f32.mrf.mxu2 }
 0x962   : > { %4328 = vmatpush.bf16.msra.mxu0 %v5389_v34  ;;  %v3991_v34 = vld [vmem:[%s5571_s26 + $0x158] sm:$0xff] }
 0x965   : > { %4321 = vmatmul.bf16.gmra.mxu3 %v4174_v29  ;;  %4223 = vmatmul.bf16.gmra.mxu1 %v4172_v23  ;;  %v4034_v29 = vld [vmem:[%s5571_s26 + $0x8f0] sm:$0xff]  ;;  %v4024_v23 = vld [vmem:[%s5571_s26 + $0x760] sm:$0xff] }
 0x966   : > { %4329 = vmatpush.bf16.msra.mxu0 %v5390_v10  ;;  %v3999_v10 = vld [vmem:[%s5571_s26 + $0x2d8] sm:$0xff] }
 0x967   : > { %v4119_v11 = vpack.c.bf16 %v3999_v10, %v3991_v34  ;;  %v4064_v34 = vld [vmem:[%s5571_s26 + $0xee0] sm:$0xff] }
 0x968   : > { %4433 = vmatmul.bf16.vlgmr.msrb.gmra.mxu2 %v4121_v53 }
 0x969   : > { %v4245_v25 = vpop.f32.mrf.mxu2 }
 0x96a   : > { %4330 = vmatpush.bf16.msra.mxu0 %v5391_v59  ;;  %v4137_v59 = vpack.c.bf16 %v4033_v40, %v4025_v37  ;;  %v4056_v40 = vld [vmem:[%s5571_s26 + $0xd60] sm:$0xff] }
 0x96b   : > { %v4152_v10 = vpack.c.bf16 %v4064_v34, %v4056_v40 }
 0x96d   : > { %3964 = vmatmul.bf16.gmra.mxu0 %v8704_v63 }
 0x96e   : > { %4331 = vmatpush.bf16.msra.mxu0 %v5392_v28  ;;  %v4026_v28 = vld [vmem:[%s5571_s26 + $0x770] sm:$0xff] }
 0x96f   : > { %v4138_v12 = vpack.c.bf16 %v4034_v29, %v4026_v28  ;;  %v4039_v28 = vld [vmem:[%s5571_s26 + $0xa58] sm:$0xff] }
 0x970   : > { %v4047_v29 = vld [vmem:[%s5571_s26 + $0xbd8] sm:$0xff] }
 0x972   : > { %4332 = vmatpush.bf16.msra.mxu0 %v5394_v31  ;;  %v4032_v31 = vld [vmem:[%s5571_s26 + $0x8e0] sm:$0xff] }
 0x975   : > { %4482 = vmatmul.bf16.vlgmr.msrb.gmra.mxu3 %v4122_v14  ;;  %4384 = vmatmul.bf16.vlgmr.msra.gmra.mxu1 %v4120_v2  ;;  %v4015_v14 = vld [vmem:[%s5571_s26 + $0x5d8] sm:$0xff] }
 0x976   : > { %4333 = vmatpush.bf16.msra.mxu0 %v5395_v41  ;;  %v4136_v41 = vpack.c.bf16 %v4032_v31, %v4024_v23  ;;  %v4127_v2 = vpack.c.bf16 %v4015_v14, %v4007_v21  ;;  %v4143_v23 = vpack.c.bf16 %v4047_v29, %v4039_v28  ;;  %v4072_v14 = vld [vmem:[%s5571_s26 + $0x1060] sm:$0xff]  ;;  %v4079_v28 = vld [vmem:[%s5571_s26 + $0x11d8] sm:$0xff] }
 0x978   : > { %v4287_v3 = vpop.f32.mrf.mxu3  ;;  %4438 = vmatmul.bf16.gmra.mxu2 %v4129_v1 }
 0x979   : > { %v8739_v0 = vadd.f32 %v4287_v3, %v4239_v17  ;;  %v4050_v3 = vld [vmem:[%s5571_s26 + $0xbf0] sm:$0xff] }
 0x97a   : > { %4334 = vmatpush.bf16.msra.mxu0 %v5396_v32  ;;  %v4248_v15 = vpop.f32.mrf.mxu2 }
 0x97d   : > { %3969 = vmatmul.bf16.gmra.mxu0 %v8731_v38 }
 0x97e   : > { %4523 = vmatpush.bf16.msrb.mxu0 %v5397_v45 }
 0x980   : > { %v4289_v54 = vpop.f32.mrf.mxu3 }
 0x981   : > { %v8749_v39 = vadd.f32 %v4289_v54, %v4241_v33 }
 0x982   : > { %4524 = vmatpush.bf16.msrb.mxu0 %v5398_v35  ;;  %v4194_v46 = vpop.f32.mrf.mxu1  ;;  %v4250_v35 = vpop.f32.mrf.mxu2 }
 0x983   : > { %v4244_v51 = vadd.f32 %v4243_v61, %v4194_v46  ;;  %v4031_v46 = vld [vmem:[%s5571_s26 + $0x8d8] sm:$0xff]  ;;  %v4065_v61 = vld [vmem:[%s5571_s26 + $0xee8] sm:$0xff] }
 0x984   : > { %v4135_v47 = vpack.c.bf16 %v4031_v46, %v4023_v22 }
 0x985   : > { %4487 = vmatmul.bf16.gmra.mxu3 %v4130_v18  ;;  %4389 = vmatmul.bf16.gmra.mxu1 %v4128_v26  ;;  %v4057_v26 = vld [vmem:[%s5571_s26 + $0xd68] sm:$0xff] }
 0x986   : > { %4525 = vmatpush.bf16.msrb.mxu0 %v5400_v4  ;;  %v4042_v4 = vld [vmem:[%s5571_s26 + $0xa70] sm:$0xff] }
 0x987   : > { %v4146_v36 = vpack.c.bf16 %v4050_v3, %v4042_v4 }
 0x988   : > { %v4292_v20 = vpop.f32.mrf.mxu3  ;;  %4443 = vmatmul.bf16.gmra.mxu2 %v4137_v59 }
 0x989   : > { %v8767_v24 = vadd.f32 %v4292_v20, %v4244_v51  ;;  %v4058_v20 = vld [vmem:[%s5571_s26 + $0xd70] sm:$0xff] }
 0x98a   : > { %4526 = vmatpush.bf16.msrb.mxu0 %v5401_v5  ;;  %v4196_v62 = vpop.f32.mrf.mxu1  ;;  %v4253_v33 = vpop.f32.mrf.mxu2 }
 0x98b   : > { %v4246_v42 = vadd.f32 %v4245_v25, %v4196_v62  ;;  %v4066_v62 = vld [vmem:[%s5571_s26 + $0xef0] sm:$0xff] }
 0x98c   : > { %v4154_v37 = vpack.c.bf16 %v4066_v62, %v4058_v20  ;;  %v4096_v20 = vld [vmem:[%s5571_s26 + $0x14e0] sm:$0xff] }
 0x98d   : > { %3974 = vmatmul.bf16.gmra.mxu0 %v8759_v8 }
 0x98e   : > { %4527 = vmatpush.bf16.msrb.mxu0 %v5402_v48 }
 0x990   : > { %v4294_v55 = vpop.f32.mrf.mxu3 }
 0x991   : > { %v8776_v58 = vadd.f32 %v4294_v55, %v4246_v42 }
 0x992   : > { %4528 = vmatpush.bf16.msrb.mxu0 %v5403_v52  ;;  %v4199_v44 = vpop.f32.mrf.mxu1  ;;  %v4255_v18 = vpop.f32.mrf.mxu2 }
 0x993   : > { %v4249_v30 = vadd.f32 %v4248_v15, %v4199_v44  ;;  %v4081_v15 = vld [vmem:[%s5571_s26 + $0x11e8] sm:$0xff] }
 0x995   : > { %4492 = vmatmul.bf16.gmra.mxu3 %v4138_v12  ;;  %4394 = vmatmul.bf16.gmra.mxu1 %v4136_v41  ;;  %v4073_v41 = vld [vmem:[%s5571_s26 + $0x1068] sm:$0xff] }
 0x996   : > { %4529 = vmatpush.bf16.msrb.mxu0 %v5405_v9  ;;  %v4153_v9 = vpack.c.bf16 %v4065_v61, %v4057_v26 }
 0x998   : > { %v4297_v32 = vpop.f32.mrf.mxu3  ;;  %4448 = vmatmul.bf16.gmra.mxu2 %v4145_v57 }
 0x999   : > { %v8782_v53 = vadd.f32 %v4297_v32, %v4249_v30  ;;  %v4161_v32 = vpack.c.bf16 %v4081_v15, %v4073_v41  ;;  %v4105_v41 = vld [vmem:[%s5571_s26 + $0x1668] sm:$0xff] }
 0x99a   : > { %4530 = vmatpush.bf16.msrb.mxu0 %v5406_v56  ;;  %v4201_v45 = vpop.f32.mrf.mxu1  ;;  %v4113_v15 = vld [vmem:[%s5571_s26 + $0x17e8] sm:$0xff] }
 0x99b   : > { %v4251_v43 = vadd.f32 %v4250_v35, %v4201_v45  ;;  %v4074_v45 = vld [vmem:[%s5571_s26 + $0x1070] sm:$0xff]  ;;  %v4080_v35 = vld [vmem:[%s5571_s26 + $0x11e0] sm:$0xff] }
 0x99c   : > { %v4162_v21 = vpack.c.bf16 %v4082_v60, %v4074_v45  ;;  %v4177_v60 = vpack.c.bf16 %v4113_v15, %v4105_v41  ;;  %v3995_v41 = vld [vmem:[%s5571_s26 + $0x178] sm:$0xff] }
 0x99d   : > { %4335 = vmatmul.bf16.vlgmr.msra.gmra.mxu0 %v4119_v11  ;;  %v4003_v15 = vld [vmem:[%s5571_s26 + $0x2f8] sm:$0xff] }
 0x9a0   : > { %v4299_v7 = vpop.f32.mrf.mxu3 }
 0x9a1   : > { %v8788_v17 = vadd.f32 %v4299_v7, %v4251_v43  ;;  %v4160_v43 = vpack.c.bf16 %v4080_v35, %v4072_v14  ;;  %v4114_v14 = vld [vmem:[%s5571_s26 + $0x17f0] sm:$0xff] }
 0x9a2   : > { %v4204_v5 = vpop.f32.mrf.mxu1 }
 0x9a3   : > { %v4254_v1 = vadd.f32 %v4253_v33, %v4204_v5  ;;  %v4063_v5 = vld [vmem:[%s5571_s26 + $0xed8] sm:$0xff] }
 0x9a5   : > { %4497 = vmatmul.bf16.gmra.mxu3 %v4146_v36  ;;  %4399 = vmatmul.bf16.gmra.mxu1 %v4144_v16  ;;  %v4055_v36 = vld [vmem:[%s5571_s26 + $0xd58] sm:$0xff] }
 0x9a6   : > { %v4151_v33 = vpack.c.bf16 %v4063_v5, %v4055_v36  ;;  %v3946_v36 = vld [vmem:[%s9028_s3 + $0xb0] sm:$0xff] }
 0x9a8   : > { %v4302_v48 = vpop.f32.mrf.mxu3  ;;  %4453 = vmatmul.bf16.gmra.mxu2 %v4153_v9  ;;  %v4088_v9 = vld [vmem:[%s5571_s26 + $0x1360] sm:$0xff] }
 0x9a9   : > { %v8794_v54 = vadd.f32 %v4302_v48, %v4254_v1  ;;  %v4089_v48 = vld [vmem:[%s5571_s26 + $0x1368] sm:$0xff]  ;;  %v4168_v62 = vpack.c.bf16 %v4096_v20, %v4088_v9  ;;  %v3948_v20 = vld [vmem:[%s9028_s3 + $0x110] sm:$0xff] }
 0x9aa   : > { %v4206_v19 = vpop.f32.mrf.mxu1 }
 0x9ab   : > { %v4256_v52 = vadd.f32 %v4255_v18, %v4206_v19  ;;  %v4258_v25 = vpop.f32.mrf.mxu2  ;;  %v4097_v19 = vld [vmem:[%s5571_s26 + $0x14e8] sm:$0xff] }
 0x9ac   : > { %v4169_v18 = vpack.c.bf16 %v4097_v19, %v4089_v48  ;;  %v4095_v48 = vld [vmem:[%s5571_s26 + $0x14d8] sm:$0xff] }
 0x9ad   : > { %4340 = vmatmul.bf16.gmra.mxu0 %v4127_v2 }
 0x9b0   : > { %v4304_v27 = vpop.f32.mrf.mxu3 }
 0x9b1   : > { %v8800_v51 = vadd.f32 %v4304_v27, %v4256_v52  ;;  %v4098_v27 = vld [vmem:[%s5571_s26 + $0x14f0] sm:$0xff] }
 0x9b2   : > { %v4209_v56 = vpop.f32.mrf.mxu1 }
 0x9b3   : > { %v4259_v42 = vadd.f32 %v4258_v25, %v4209_v56  ;;  %v4260_v12 = vpop.f32.mrf.mxu2 }
 0x9b5   : > { %4502 = vmatmul.bf16.gmra.mxu3 %v4154_v37  ;;  %4404 = vmatmul.bf16.gmra.mxu1 %v4152_v10  ;;  %v3944_v37 = vld [vmem:[%s9028_s3 + $0x50] sm:$0xff] }
 0x9b8   : > { %v4307_v59 = vpop.f32.mrf.mxu3  ;;  %4458 = vmatmul.bf16.gmra.mxu2 %v4161_v32 }
 0x9b9   : > { %v8806_v11 = vadd.f32 %v4307_v59, %v4259_v42 }
 0x9ba   : > { %v4211_v55 = vpop.f32.mrf.mxu1 }
 0x9bb   : > { %v4261_v44 = vadd.f32 %v4260_v12, %v4211_v55  ;;  %v4263_v57 = vpop.f32.mrf.mxu2  ;;  %v4071_v55 = vld [vmem:[%s5571_s26 + $0x1058] sm:$0xff]  ;;  %v3945_v12 = vld [vmem:[%s9028_s3 + $0x80] sm:$0xff] }
 0x9bd   : > { %4345 = vmatmul.bf16.gmra.mxu0 %v4135_v47  ;;  %v4090_v47 = vld [vmem:[%s5571_s26 + $0x1370] sm:$0xff] }
 0x9be   : > { %v4170_v61 = vpack.c.bf16 %v4098_v27, %v4090_v47 }
 0x9c0   : > { %v4309_v31 = vpop.f32.mrf.mxu3 }
 0x9c1   : > { %v8812_v30 = vadd.f32 %v4309_v31, %v4261_v44 }
 0x9c2   : > { %v4214_v13 = vpop.f32.mrf.mxu1 }
 0x9c3   : > { %v4264_v2 = vadd.f32 %v4263_v57, %v4214_v13  ;;  %v4265_v49 = vpop.f32.mrf.mxu2  ;;  %v4104_v57 = vld [vmem:[%s5571_s26 + $0x1660] sm:$0xff] }
 0x9c5   : > { %4507 = vmatmul.bf16.gmra.mxu3 %v4162_v21  ;;  %4409 = vmatmul.bf16.gmra.mxu1 %v4160_v43  ;;  %v4106_v21 = vld [vmem:[%s5571_s26 + $0x1670] sm:$0xff] }
 0x9c6   : > { %v4178_v43 = vpack.c.bf16 %v4114_v14, %v4106_v21 }
 0x9c8   : > { %v4312_v7 = vpop.f32.mrf.mxu3  ;;  %4463 = vmatmul.bf16.gmra.mxu2 %v4169_v18  ;;  %v3947_v18 = vld [vmem:[%s9028_s3 + $0xe0] sm:$0xff] }
 0x9c9   : > { %v8818_v4 = vadd.f32 %v4312_v7, %v4264_v2  ;;  %v4112_v2 = vld [vmem:[%s5571_s26 + $0x17e0] sm:$0xff] }
 0x9ca   : > { %v4216_v3 = vpop.f32.mrf.mxu1  ;;  %v4176_v7 = vpack.c.bf16 %v4112_v2, %v4104_v57 }
 0x9cb   : > { %v4266_v16 = vadd.f32 %v4265_v49, %v4216_v3  ;;  %v4268_v56 = vpop.f32.mrf.mxu2 }
 0x9cd   : > { %4350 = vmatmul.bf16.gmra.mxu0 %v4143_v23  ;;  %v4159_v23 = vpack.c.bf16 %v4079_v28, %v4071_v55 }
 0x9d0   : > { %v4314_v1 = vpop.f32.mrf.mxu3 }
 0x9d1   : > { %v8827_v46 = vadd.f32 %v4314_v1, %v4266_v16  ;;  %v4087_v1 = vld [vmem:[%s5571_s26 + $0x1358] sm:$0xff] }
 0x9d2   : > { %v4219_v26 = vpop.f32.mrf.mxu1  ;;  %v4167_v47 = vpack.c.bf16 %v4095_v48, %v4087_v1 }
 0x9d3   : > { %v4269_v40 = vadd.f32 %v4268_v56, %v4219_v26  ;;  %v4270_v29 = vpop.f32.mrf.mxu2 }
 0x9d5   : > { %4512 = vmatmul.bf16.gmra.mxu3 %v4170_v61  ;;  %4414 = vmatmul.bf16.gmra.mxu1 %v4168_v62 }
 0x9d8   : > { %v4317_v34 = vpop.f32.mrf.mxu3  ;;  %4468 = vmatmul.bf16.gmra.mxu2 %v4177_v60 }
 0x9d9   : > { %v8837_v25 = vadd.f32 %v4317_v34, %v4269_v40  ;;  %v4111_v40 = vld [vmem:[%s5571_s26 + $0x17d8] sm:$0xff]  ;;  %v3949_v34 = vld [vmem:[%s9028_s3 + $0x140] sm:$0xff] }
 0x9da   : > { %v3960_v22 = vpop.f32.mrf.mxu0  ;;  %v4221_v59 = vpop.f32.mrf.mxu1 }
 0x9db   : > { %v3961_v52 = vadd.f32 %v3960_v22, %v3943_v6  ;;  %v4271_v44 = vadd.f32 %v4270_v29, %v4221_v59  ;;  %v4273_v3 = vpop.f32.mrf.mxu2 }
 0x9dd   : > { %3980 = vst [vmem:[%s6539_s22 + $0x20] sm:$0xff] %v3961_v52  ;;  %4355 = vmatmul.bf16.gmra.mxu0 %v4151_v33 }
 0x9e0   : > { %v4319_v31 = vpop.f32.mrf.mxu3 }
 0x9e1   : > { %v8847_v45 = vadd.f32 %v4319_v31, %v4271_v44 }
 0x9e2   : > { %v3962_v10 = vpop.f32.mrf.mxu0  ;;  %v4224_v35 = vpop.f32.mrf.mxu1 }
 0x9e3   : > { %v3963_v42 = vadd.f32 %v3962_v10, %v3944_v37  ;;  %v4274_v5 = vadd.f32 %v4273_v3, %v4224_v35  ;;  %v4275_v22 = vpop.f32.mrf.mxu2  ;;  %v4103_v37 = vld [vmem:[%s5571_s26 + $0x1658] sm:$0xff] }
 0x9e4   : > { %v4175_v10 = vpack.c.bf16 %v4111_v40, %v4103_v37  ;;  %v4027_v40 = vld [vmem:[%s5571_s26 + $0x778] sm:$0xff] }
 0x9e5   : > { %3981 = vst [vmem:[%s6539_s22 + $0x50] sm:$0xff] %v3963_v42  ;;  %4517 = vmatmul.bf16.gmra.mxu3 %v4178_v43  ;;  %4419 = vmatmul.bf16.gmra.mxu1 %v4176_v7 }
 0x9e8   : > { %v4322_v49 = vpop.f32.mrf.mxu3 }
 0x9e9   : > { %v8857_v16 = vadd.f32 %v4322_v49, %v4274_v5 }
 0x9ea   : > { %v3965_v32 = vpop.f32.mrf.mxu0  ;;  %v4226_v19 = vpop.f32.mrf.mxu1 }
 0x9eb   : > { %v3966_v13 = vadd.f32 %v3965_v32, %v3945_v12  ;;  %v4276_v52 = vadd.f32 %v4275_v22, %v4226_v19  ;;  %v4434_v28 = vpop.f32.mrf.mxu2  ;;  %v3950_v12 = vld [vmem:[%s9028_s3 + $0x170] sm:$0xff] }
 0x9ed   : > { %3982 = vst [vmem:[%s6539_s22 + $0x80] sm:$0xff] %v3966_v13  ;;  %4360 = vmatmul.bf16.gmra.mxu0 %v4159_v23  ;;  %v4123_v13 = vpack.c.bf16 %v4003_v15, %v3995_v41 }
 0x9f0   : > { %v4324_v27 = vpop.f32.mrf.mxu3 }
 0x9f1   : > { %v8865_v61 = vadd.f32 %v4324_v27, %v4276_v52 }
 0x9f2   : > { %v3967_v6 = vpop.f32.mrf.mxu0  ;;  %v4385_v59 = vpop.f32.mrf.mxu1 }
 0x9f3   : > { %v3968_v33 = vadd.f32 %v3967_v6, %v3946_v36  ;;  %v4436_v32 = vpop.f32.mrf.mxu2  ;;  %v4011_v6 = vld [vmem:[%s5571_s26 + $0x478] sm:$0xff] }
 0x9f5   : > { %3983 = vst [vmem:[%s6539_s22 + $0xb0] sm:$0xff] %v3968_v33  ;;  %v4019_v33 = vld [vmem:[%s5571_s26 + $0x5f8] sm:$0xff] }
 0x9f8   : > { %v4483_v29 = vpop.f32.mrf.mxu3 }
 0x9fa   : > { %v3970_v26 = vpop.f32.mrf.mxu0  ;;  %v4387_v31 = vpop.f32.mrf.mxu1 }
 0x9fb   : > { %v3971_v9 = vadd.f32 %v3970_v26, %v3947_v18  ;;  %v4439_v2 = vpop.f32.mrf.mxu2 }
 0x9fd   : > { %3984 = vst [vmem:[%s6539_s22 + $0xe0] sm:$0xff] %v3971_v9  ;;  %4365 = vmatmul.bf16.gmra.mxu0 %v4167_v47 }
 0xa00   : > { %v4485_v60 = vpop.f32.mrf.mxu3 }
 0xa02   : > { %v3972_v62 = vpop.f32.mrf.mxu0  ;;  %v4390_v43 = vpop.f32.mrf.mxu1 }
 0xa03   : > { %v3973_v56 = vadd.f32 %v3972_v62, %v3948_v20  ;;  %v4441_v18 = vpop.f32.mrf.mxu2 }
 0xa05   : > { %3985 = vst [vmem:[%s6539_s22 + $0x110] sm:$0xff] %v3973_v56 }
 0xa08   : > { %v4488_v36 = vpop.f32.mrf.mxu3 }
 0xa0a   : > { %v3975_v42 = vpop.f32.mrf.mxu0  ;;  %v4392_v48 = vpop.f32.mrf.mxu1 }
 0xa0b   : > { %v3976_v55 = vadd.f32 %v3975_v42, %v3949_v34  ;;  %v4444_v56 = vpop.f32.mrf.mxu2  ;;  %v4035_v34 = vld [vmem:[%s5571_s26 + $0x8f8] sm:$0xff] }
 0xa0d   : > { %3986 = vst [vmem:[%s6539_s22 + $0x140] sm:$0xff] %v3976_v55  ;;  %4370 = vmatmul.bf16.gmra.mxu0 %v4175_v10 }
 0xa10   : > { %v4490_v47 = vpop.f32.mrf.mxu3 }
 0xa12   : > { %v3977_v44 = vpop.f32.mrf.mxu0  ;;  %v4395_v20 = vpop.f32.mrf.mxu1 }
 0xa13   : > { %v3978_v23 = vadd.f32 %v3977_v44, %v3950_v12  ;;  %v4446_v44 = vpop.f32.mrf.mxu2 }
 0xa15   : > { %3987 = vst [vmem:[%s6539_s22 + $0x170] sm:$0xff] %v3978_v23 }
 0xa18   : > { %v4493_v10 = vpop.f32.mrf.mxu3 }
 0xa1a   : > { %v4336_v21 = vpop.f32.mrf.mxu0 }
 0xa1b   : > { %v4337_v14 = vadd.f32 %v4336_v21, %v8739_v0  ;;  %v4131_v0 = vpack.c.bf16 %v4019_v33, %v4011_v6  ;;  %v4051_v21 = vld [vmem:[%s5571_s26 + $0xbf8] sm:$0xff] }
 0xa1d   : > { %v4386_v35 = vadd.f32 %v4385_v59, %v4337_v14  ;;  %4531 = vmatmul.bf16.vlgmr.msrb.gmra.mxu0 %v4123_v13  ;;  %v4043_v13 = vld [vmem:[%s5571_s26 + $0xa78] sm:$0xff] }
 0xa1f   : > { %v4435_v57 = vadd.f32 %v4434_v28, %v4386_v35  ;;  %v4449_v35 = vpop.f32.mrf.mxu2 }
 0xa21   : > { %v8885_v7 = vadd.f32 %v4483_v29, %v4435_v57  ;;  %v4397_v29 = vpop.f32.mrf.mxu1 }
 0xa22   : > { %v4338_v3 = vpop.f32.mrf.mxu0 }
 0xa23   : > { %v4339_v5 = vadd.f32 %v4338_v3, %v8749_v39 }
 0xa25   : > { %v4388_v49 = vadd.f32 %v4387_v31, %v4339_v5 }
 0xa27   : > { %v4437_v1 = vadd.f32 %v4436_v32, %v4388_v49  ;;  %v4451_v33 = vpop.f32.mrf.mxu2 }
 0xa29   : > { %v8890_v19 = vadd.f32 %v4485_v60, %v4437_v1  ;;  %v4400_v60 = vpop.f32.mrf.mxu1 }
 0xa2a   : > { %v4341_v22 = vpop.f32.mrf.mxu0 }
 0xa2b   : > { %v4342_v52 = vadd.f32 %v4341_v22, %v8767_v24  ;;  %v4139_v24 = vpack.c.bf16 %v4035_v34, %v4027_v40  ;;  %v4059_v22 = vld [vmem:[%s5571_s26 + $0xd78] sm:$0xff] }
 0xa2d   : > { %v4391_v27 = vadd.f32 %v4390_v43, %v4342_v52  ;;  %4536 = vmatmul.bf16.gmra.mxu0 %v4131_v0 }
 0xa2f   : > { %v4440_v26 = vadd.f32 %v4439_v2, %v4391_v27 }
 0xa31   : > { %v8893_v9 = vadd.f32 %v4488_v36, %v4440_v26  ;;  %v4402_v49 = vpop.f32.mrf.mxu1 }
 0xa32   : > { %v4343_v39 = vpop.f32.mrf.mxu0 }
 0xa33   : > { %v4344_v62 = vadd.f32 %v4343_v39, %v8776_v58  ;;  %v4495_v58 = vpop.f32.mrf.mxu3 }
 0xa35   : > { %v4393_v37 = vadd.f32 %v4392_v48, %v4344_v62 }
 0xa37   : > { %v4442_v42 = vadd.f32 %v4441_v18, %v4393_v37  ;;  %v4067_v18 = vld [vmem:[%s5571_s26 + $0xef8] sm:$0xff] }
 0xa38   : > { %v4155_v27 = vpack.c.bf16 %v4067_v18, %v4059_v22 }
 0xa39   : > { %v8898_v59 = vadd.f32 %v4490_v47, %v4442_v42  ;;  %v4405_v26 = vpop.f32.mrf.mxu1  ;;  %v4083_v42 = vld [vmem:[%s5571_s26 + $0x11f8] sm:$0xff] }
 0xa3a   : > { %v4346_v55 = vpop.f32.mrf.mxu0 }
 0xa3b   : > { %v4347_v28 = vadd.f32 %v4346_v55, %v8782_v53  ;;  %v4147_v53 = vpack.c.bf16 %v4051_v21, %v4043_v13  ;;  %v4498_v2 = vpop.f32.mrf.mxu3 }
 0xa3d   : > { %v4396_v12 = vadd.f32 %v4395_v20, %v4347_v28  ;;  %4541 = vmatmul.bf16.gmra.mxu0 %v4139_v24  ;;  %v4454_v20 = vpop.f32.mrf.mxu2 }
 0xa3f   : > { %v4445_v23 = vadd.f32 %v4444_v56, %v4396_v12  ;;  %v4091_v12 = vld [vmem:[%s5571_s26 + $0x1378] sm:$0xff] }
 0xa41   : > { %v8901_v31 = vadd.f32 %v4493_v10, %v4445_v23  ;;  %v4075_v10 = vld [vmem:[%s5571_s26 + $0x1078] sm:$0xff] }
 0xa42   : > { %v4348_v41 = vpop.f32.mrf.mxu0  ;;  %v4163_v24 = vpack.c.bf16 %v4083_v42, %v4075_v10 }
 0xa43   : > { %v4349_v15 = vadd.f32 %v4348_v41, %v8788_v17  ;;  %v4500_v48 = vpop.f32.mrf.mxu3 }
 0xa45   : > { %v4398_v32 = vadd.f32 %v4397_v29, %v4349_v15 }
 0xa47   : > { %v4447_v14 = vadd.f32 %v4446_v44, %v4398_v32  ;;  %v4099_v44 = vld [vmem:[%s5571_s26 + $0x14f8] sm:$0xff] }
 0xa48   : > { %v4171_v23 = vpack.c.bf16 %v4099_v44, %v4091_v12  ;;  %v4107_v32 = vld [vmem:[%s5571_s26 + $0x1678] sm:$0xff] }
 0xa49   : > { %v8906_v43 = vadd.f32 %v4495_v58, %v4447_v14 }
 0xa4a   : > { %v4351_v57 = vpop.f32.mrf.mxu0 }
 0xa4b   : > { %v4352_v3 = vadd.f32 %v4351_v57, %v8794_v54  ;;  %v4503_v56 = vpop.f32.mrf.mxu3 }
 0xa4d   : > { %v4401_v36 = vadd.f32 %v4400_v60, %v4352_v3  ;;  %4546 = vmatmul.bf16.gmra.mxu0 %v4147_v53  ;;  %v4115_v60 = vld [vmem:[%s5571_s26 + $0x17f8] sm:$0xff] }
 0xa4e   : > { %v4179_v13 = vpack.c.bf16 %v4115_v60, %v4107_v32 }
 0xa4f   : > { %v4450_v5 = vadd.f32 %v4449_v35, %v4401_v36 }
 0xa51   : > { %v8909_v17 = vadd.f32 %v4498_v2, %v4450_v5 }
 0xa52   : > { %v4353_v6 = vpop.f32.mrf.mxu0 }
 0xa53   : > { %v4354_v1 = vadd.f32 %v4353_v6, %v8800_v51 }
 0xa55   : > { %v4403_v0 = vadd.f32 %v4402_v49, %v4354_v1 }
 0xa57   : > { %v4452_v52 = vadd.f32 %v4451_v33, %v4403_v0 }
 0xa59   : > { %v4501_v47 = vadd.f32 %v4500_v48, %v4452_v52  ;;  %v4505_v48 = vpop.f32.mrf.mxu3 }
 0xa5a   : > { %v4356_v54 = vpop.f32.mrf.mxu0 }
 0xa5b   : > { %v4357_v39 = vadd.f32 %v4356_v54, %v8806_v11 }
 0xa5d   : > { %v4406_v62 = vadd.f32 %v4405_v26, %v4357_v39  ;;  %4551 = vmatmul.bf16.gmra.mxu0 %v4155_v27 }
 0xa5f   : > { %v4455_v51 = vadd.f32 %v4454_v20, %v4406_v62 }
 0xa61   : > { %v4504_v37 = vadd.f32 %v4503_v56, %v4455_v51  ;;  %v4508_v26 = vpop.f32.mrf.mxu3 }
 0xa62   : > { %v4358_v40 = vpop.f32.mrf.mxu0 }
 0xa63   : > { %v4359_v34 = vadd.f32 %v4358_v40, %v8812_v30 }
 0xa69   : > { %v4510_v10 = vpop.f32.mrf.mxu3 }
 0xa6a   : > { %v4361_v55 = vpop.f32.mrf.mxu0 }
 0xa6b   : > { %v4362_v28 = vadd.f32 %v4361_v55, %v8818_v4 }
 0xa6d   : > { %4556 = vmatmul.bf16.gmra.mxu0 %v4163_v24 }
 0xa72   : > { %v4363_v11 = vpop.f32.mrf.mxu0 }
 0xa73   : > { %v4364_v29 = vadd.f32 %v4363_v11, %v8827_v46 }
 0xa7a   : > { %v4366_v58 = vpop.f32.mrf.mxu0 }
 0xa7b   : > { %v8923_v41 = vadd.f32 %v4366_v58, %v8837_v25 }
 0xa7d   : > { %4561 = vmatmul.bf16.gmra.mxu0 %v4171_v23  ;;  %v4513_v23 = vpop.f32.mrf.mxu3 }
 0xa82   : > { %v4368_v30 = vpop.f32.mrf.mxu0 }
 0xa83   : > { %v8926_v15 = vadd.f32 %v4368_v30, %v8847_v45 }
 0xa8a   : > { %v4371_v4 = vpop.f32.mrf.mxu0 }
 0xa8b   : > { %v8931_v21 = vadd.f32 %v4371_v4, %v8857_v16 }
 0xa8d   : > { %4566 = vmatmul.bf16.gmra.mxu0 %v4179_v13 }
 0xa92   : > { %v4373_v46 = vpop.f32.mrf.mxu0 }
 0xa93   : > { %v8934_v14 = vadd.f32 %v4373_v46, %v8865_v61 }
 0xa9a   : > { %v4532_v35 = vpop.f32.mrf.mxu0 }
 0xa9b   : > { %v8937_v25 = vadd.f32 %v4532_v35, %v8885_v7 }
 0xaa2   : > { %v4534_v53 = vpop.f32.mrf.mxu0 }
 0xaa3   : > { %v8940_v45 = vadd.f32 %v4534_v53, %v8890_v19  ;;  %v4515_v53 = vpop.f32.mrf.mxu3 }
 0xaa5   : > { %v4572_v57 = vpack.c.bf16 %v8940_v45, %v8937_v25  ;;  %v4581_v25 = vld [vmem:[%s9028_s3 + $0x58] sm:$0xff] }
 0xaaa   : > { %v4537_v2 = vpop.f32.mrf.mxu0 }
 0xaab   : > { %v8945_v16 = vadd.f32 %v4537_v2, %v8893_v9  ;;  %v4407_v9 = vpop.f32.mrf.mxu1 }
 0xab2   : > { %v4539_v3 = vpop.f32.mrf.mxu0 }
 0xab3   : > { %v8948_v36 = vadd.f32 %v4539_v3, %v8898_v59  ;;  %v4456_v59 = vpop.f32.mrf.mxu2  ;;  %v4410_v18 = vpop.f32.mrf.mxu1 }
 0xab5   : > { %v4573_v61 = vpack.c.bf16 %v8948_v36, %v8945_v16 }
 0xaba   : > { %v4542_v7 = vpop.f32.mrf.mxu0 }
 0xabb   : > { %v8953_v5 = vadd.f32 %v4542_v7, %v8901_v31  ;;  %v4459_v52 = vpop.f32.mrf.mxu2  ;;  %v4412_v20 = vpop.f32.mrf.mxu1 }
 0xabc   : > { %v4413_v24 = vadd.f32 %v4412_v20, %v4364_v29 }
 0xac2   : > { %v4544_v19 = vpop.f32.mrf.mxu0 }
 0xac3   : > { %v8956_v49 = vadd.f32 %v4544_v19, %v8906_v43  ;;  %v4408_v43 = vadd.f32 %v4407_v9, %v4359_v34  ;;  %v4461_v56 = vpop.f32.mrf.mxu2  ;;  %v4415_v42 = vpop.f32.mrf.mxu1 }
 0xac4   : > { %v4462_v44 = vadd.f32 %v4461_v56, %v4413_v24  ;;  %v4416_v46 = vadd.f32 %v4415_v42, %v8923_v41  ;;  %v4587_v24 = vld [vmem:[%s9028_s3 + $0x178] sm:$0xff] }
 0xac5   : > { %v4574_v6 = vpack.c.bf16 %v8956_v49, %v8953_v5  ;;  %v4457_v39 = vadd.f32 %v4456_v59, %v4408_v43  ;;  %v4584_v5 = vld [vmem:[%s9028_s3 + $0xe8] sm:$0xff] }
 0xac6   : > { %v4511_v58 = vadd.f32 %v4510_v10, %v4462_v44  ;;  %v4586_v10 = vld [vmem:[%s9028_s3 + $0x148] sm:$0xff] }
 0xac7   : > { %v4506_v62 = vadd.f32 %v4505_v48, %v4457_v39  ;;  %v4518_v48 = vpop.f32.mrf.mxu3 }
 0xaca   : > { %v4547_v33 = vpop.f32.mrf.mxu0 }
 0xacb   : > { %v8961_v1 = vadd.f32 %v4547_v33, %v8909_v17  ;;  %v4464_v11 = vpop.f32.mrf.mxu2 }
 0xacc   : > { %v4465_v2 = vadd.f32 %v4464_v11, %v4416_v46 }
 0xace   : > { %v4514_v19 = vadd.f32 %v4513_v23, %v4465_v2 }
 0xad2   : > { %v4549_v0 = vpop.f32.mrf.mxu0 }
 0xad3   : > { %v8963_v22 = vadd.f32 %v4549_v0, %v4501_v47  ;;  %v4411_v47 = vadd.f32 %v4410_v18, %v4362_v28  ;;  %v4466_v4 = vpop.f32.mrf.mxu2 }
 0xad5   : > { %v4575_v31 = vpack.c.bf16 %v8963_v22, %v8961_v1  ;;  %v4460_v12 = vadd.f32 %v4459_v52, %v4411_v47 }
 0xad7   : > { %v4509_v34 = vadd.f32 %v4508_v26, %v4460_v12 }
 0xada   : > { %v4552_v27 = vpop.f32.mrf.mxu0 }
 0xadb   : > { %v4553_v54 = vadd.f32 %v4552_v27, %v4504_v37  ;;  %v4417_v37 = vpop.f32.mrf.mxu1  ;;  %v4469_v7 = vpop.f32.mrf.mxu2 }
 0xadc   : > { %v4418_v35 = vadd.f32 %v4417_v37, %v8926_v15 }
 0xade   : > { %v4467_v3 = vadd.f32 %v4466_v4, %v4418_v35 }
 0xae0   : > { %v4516_v9 = vadd.f32 %v4515_v53, %v4467_v3 }
 0xae2   : > { %v4554_v17 = vpop.f32.mrf.mxu0 }
 0xae3   : > { %v4555_v51 = vadd.f32 %v4554_v17, %v4506_v62  ;;  %v4420_v29 = vpop.f32.mrf.mxu1  ;;  %v4471_v52 = vpop.f32.mrf.mxu2 }
 0xae4   : > { %v4421_v18 = vadd.f32 %v4420_v29, %v8931_v21  ;;  %v4580_v21 = vld [vmem:[%s9028_s3 + $0x28] sm:$0xff] }
 0xae5   : > { %v4576_v40 = vpack.c.bf16 %v4555_v51, %v4553_v54  ;;  %v4520_v54 = vpop.f32.mrf.mxu3 }
 0xae6   : > { %v4470_v43 = vadd.f32 %v4469_v7, %v4421_v18 }
 0xae8   : > { %v4519_v26 = vadd.f32 %v4518_v48, %v4470_v43 }
 0xaea   : > { %v4557_v55 = vpop.f32.mrf.mxu0 }
 0xaeb   : > { %v4558_v32 = vadd.f32 %v4557_v55, %v4509_v34  ;;  %v4422_v22 = vpop.f32.mrf.mxu1 }
 0xaec   : > { %v4423_v41 = vadd.f32 %v4422_v22, %v8934_v14 }
 0xaee   : > { %v4472_v27 = vadd.f32 %v4471_v52, %v4423_v41 }
 0xaf0   : > { %v4521_v39 = vadd.f32 %v4520_v54, %v4472_v27 }
 0xaf2   : > { %v4559_v30 = vpop.f32.mrf.mxu0 }
 0xaf3   : > { %v4560_v60 = vadd.f32 %v4559_v30, %v4511_v58 }
 0xaf5   : > { %v4577_v13 = vpack.c.bf16 %v4560_v60, %v4558_v32 }
 0xafa   : > { %v4562_v28 = vpop.f32.mrf.mxu0 }
 0xafb   : > { %v4563_v1 = vadd.f32 %v4562_v28, %v4514_v19 }
 0xb02   : > { %v4564_v33 = vpop.f32.mrf.mxu0 }
 0xb03   : > { %v4565_v59 = vadd.f32 %v4564_v33, %v4516_v9 }
 0xb05   : > { %v4578_v0 = vpack.c.bf16 %v4565_v59, %v4563_v1 }
 0xb0a   : > { %v4567_v15 = vpop.f32.mrf.mxu0 }
 0xb0b   : > { %v4568_v62 = vadd.f32 %v4567_v15, %v4519_v26 }
 0xb12   : > { %v4569_v20 = vpop.f32.mrf.mxu0 }
 0xb13   : > { %v4570_v56 = vadd.f32 %v4569_v20, %v4521_v39 }
 0xb15   : > { %v4579_v17 = vpack.c.bf16 %v4570_v56, %v4568_v62 }
 0xb17   : > { %4588 = vmatpush.bf16.msrb.mxu1 %v4579_v17 }
 0xb1b   : > { %4589 = vmatpush.bf16.msrb.mxu1 %v4578_v0 }
 0xb1f   : > { %4590 = vmatpush.bf16.msrb.mxu1 %v4577_v13 }
 0xb23   : > { %4591 = vmatpush.bf16.msrb.mxu1 %v4576_v40 }
 0xb27   : > { %4592 = vmatpush.bf16.msrb.mxu1 %v4575_v31  ;;  %v4585_v31 = vld [vmem:[%s9028_s3 + $0x118] sm:$0xff] }
 0xb2b   : > { %4593 = vmatpush.bf16.msrb.mxu1 %v4574_v6 }
 0xb2f   : > { %4594 = vmatpush.bf16.msrb.mxu1 %v4573_v61 }
 0xb33   : > { %4595 = vmatpush.bf16.msrb.mxu1 %v4572_v57  ;;  %v4583_v57 = vld [vmem:[%s9028_s3 + $0xb8] sm:$0xff] }
 0xb36   : > { %4596 = vmatmul.bf16.vlgmr.msrb.gmra.mxu1 %v8680_v50 }
 0xb46   : > { %4601 = vmatmul.bf16.gmra.mxu1 %v8704_v63  ;;  %v4582_v63 = vld [vmem:[%s9028_s3 + $0x88] sm:$0xff] }
 0xb56   : > { %4606 = vmatmul.bf16.gmra.mxu1 %v8731_v38 }
 0xb66   : > { %4611 = vmatmul.bf16.gmra.mxu1 %v8759_v8 }
 0xbb3   : > { %v4597_v14 = vpop.f32.mrf.mxu1 }
 0xbb4   : > { %v4598_v16 = vadd.f32 %v4597_v14, %v4580_v21 }
 0xbb6   : > { %4617 = vst [vmem:[%s6539_s22 + $0x28] sm:$0xff] %v4598_v16 }
 0xbbb   : > { %v4599_v50 = vpop.f32.mrf.mxu1 }
 0xbbc   : > { %v4600_v45 = vadd.f32 %v4599_v50, %v4581_v25 }
 0xbbe   : > { %4618 = vst [vmem:[%s6539_s22 + $0x58] sm:$0xff] %v4600_v45 }
 0xbc3   : > { %v4602_v38 = vpop.f32.mrf.mxu1 }
 0xbc4   : > { %v4603_v8 = vadd.f32 %v4602_v38, %v4582_v63 }
 0xbc6   : > { %4619 = vst [vmem:[%s6539_s22 + $0x88] sm:$0xff] %v4603_v8 }
 0xbcb   : > { %v4604_v36 = vpop.f32.mrf.mxu1 }
 0xbcc   : > { %v4605_v61 = vadd.f32 %v4604_v36, %v4583_v57 }
 0xbce   : > { %4620 = vst [vmem:[%s6539_s22 + $0xb8] sm:$0xff] %v4605_v61 }
 0xbd3   : > { %v4607_v49 = vpop.f32.mrf.mxu1 }
 0xbd4   : > { %v4608_v6 = vadd.f32 %v4607_v49, %v4584_v5 }
 0xbd6   : > { %4621 = vst [vmem:[%s6539_s22 + $0xe8] sm:$0xff] %v4608_v6 }
 0xbdb   : > { %v4609_v51 = vpop.f32.mrf.mxu1 }
 0xbdc   : > { %v4610_v40 = vadd.f32 %v4609_v51, %v4585_v31 }
 0xbde   : > { %4622 = vst [vmem:[%s6539_s22 + $0x118] sm:$0xff] %v4610_v40 }
 0xbe3   : > { %v4612_v42 = vpop.f32.mrf.mxu1 }
 0xbe4   : > { %v4613_v47 = vadd.f32 %v4612_v42, %v4586_v10 }
 0xbe6   : > { %4623 = vst [vmem:[%s6539_s22 + $0x148] sm:$0xff] %v4613_v47 }
 0xbeb   : > { %v4614_v55 = vpop.f32.mrf.mxu1 }
 0xbec   : > { %v4615_v11 = vadd.f32 %v4614_v55, %v4587_v24 }
 0xbee   : > { %4624 = vst [vmem:[%s6539_s22 + $0x178] sm:$0xff] %v4615_v11 }
 0xbef PF: > { %s14_s17 = sadd.s32 1, %s5429_s17   ;;  %s9038_s15 = smov %s5425_s16 }
 0xbf0   : > { %p11_p5 = scmp.ge.s32.totalorder %s14_s17, 4   ;;  %s9039_s16 = smov %s9041_s18 }
 0xbf2   :  { %13 = sbr.rel (!%p11_p5) target bundleno = 2 (0x2), region = 69 }

</bundles_post_ra>
